<compile_context>
chip_gen: v6e
topology: v6e:2x2x1
jax: 0.10.0
libtpu: 0.0.40
codegen_flags: <defaults>
</compile_context>

<pallas_src>
import functools

import jax
import jax.numpy as jnp
from jax.experimental import pallas as pl
from jax.experimental.pallas import tpu as pltpu

# SELU constants (match torch.nn.SELU)
_SELU_SCALE = 1.0507009873554805
_SELU_ALPHA = 1.6732632423543772

INPUT_DIM = 27
INPUT_DIM_PADDED = 32      # pad 27 -> 32 (sublane multiple) host-side
HIDDEN_DIM = 256
OUTPUT_DIM = 1
DEPTH = 8                  # input layer + (DEPTH-1) hidden layers + output layer


def _selu_core(z):
    """SELU without the outer scale (the scale is folded into downstream weights)."""
    alpha = jnp.asarray(_SELU_ALPHA, z.dtype)
    one = jnp.asarray(1.0, z.dtype)
    return jnp.where(z > 0, z, alpha * (jnp.exp(z) - one))


def _mlp_kernel(x_ref, w_in_ref, b_in_ref, w_hid_ref, b_hid_ref,
                w_out_ref, b_out_ref, o_ref, *, mxu_dtype, act_dtype):
    # x_ref:     (INPUT_DIM_PADDED, tb)      mxu_dtype   (batch on lanes)
    # w_in_ref:  (HIDDEN, INPUT_DIM_PADDED)  mxu_dtype
    # b_in_ref:  (HIDDEN, 1)                 act_dtype
    # w_hid_ref: (DEPTH-1, HIDDEN, HIDDEN)   mxu_dtype   (SELU scale folded in)
    # b_hid_ref: (DEPTH-1, HIDDEN, 1)        act_dtype
    # w_out_ref: (HIDDEN, 1) f32 (scale folded in), b_out_ref: (1, 1) f32
    # o_ref:     (1, tb)                     f32

    # Input layer: (256, 32) @ (32, tb) on the MXU with f32 accumulation; the
    # bias-add and SELU run in act_dtype (bf16 on v6e/v7x -> ~2x VALU/EUP).
    z = jnp.dot(w_in_ref[...], x_ref[...], preferred_element_type=jnp.float32)
    h = _selu_core(z.astype(act_dtype) + b_in_ref[...])
    # TODO(synk): AlphaDropout omitted (identity in eval mode; training-mode
    # RNG-matched dropout not implemented).

    # Hidden layers: static unroll (7 iters).  When act_dtype == mxu_dtype the
    # astype below is a no-op (review: drop the per-layer recast).
    for l in range(w_hid_ref.shape[0]):
        z = jnp.dot(w_hid_ref[l], h.astype(mxu_dtype),
                    preferred_element_type=jnp.float32)
        h = _selu_core(z.astype(act_dtype) + b_hid_ref[l])

    # Output layer 256 -> 1 as an f32 broadcast-multiply + sublane reduction:
    # lane-dense (1, tb) store, avoids a degenerate N=1 MXU matmul.
    o_ref[...] = (jnp.sum(h.astype(jnp.float32) * w_out_ref[...],
                          axis=0, keepdims=True) + b_out_ref[...])


def prep_params(params, *, use_bf16=True, selu_in_bf16=True):
    """One-time host-side weight prep (hoisted out of the per-call forward path).

    - pads the 27-wide input feature dim to 32 (sublane multiple),
    - folds the SELU output scale into w_hid[*] and w_out,
    - reshapes biases to column vectors,
    - casts MXU operands to bf16 (use_bf16) and biases to the SELU compute
      dtype (selu_in_bf16; keep the f32 path on v5e, which lacks bf16 VALU/EUP).
    """
    mxu_dtype = jnp.bfloat16 if use_bf16 else jnp.float32
    act_dtype = jnp.bfloat16 if (use_bf16 and selu_in_bf16) else jnp.float32
    n_hid = params["w_hid"].shape[0]

    w_in = jnp.pad(params["w_in"],
                   ((0, 0), (0, INPUT_DIM_PADDED - INPUT_DIM))).astype(mxu_dtype)
    b_in = params["b_in"].reshape(HIDDEN_DIM, 1).astype(act_dtype)
    w_hid = (params["w_hid"] * _SELU_SCALE).astype(mxu_dtype)     # scale folded
    b_hid = params["b_hid"].reshape(n_hid, HIDDEN_DIM, 1).astype(act_dtype)
    w_out = (params["w_out"] * _SELU_SCALE).reshape(HIDDEN_DIM, 1).astype(jnp.float32)
    b_out = params["b_out"].reshape(1, 1).astype(jnp.float32)
    # TODO(synk): optional int8 weight path for v5e (MXU-bound there) not implemented.
    return {"w_in": w_in, "b_in": b_in, "w_hid": w_hid, "b_hid": b_hid,
            "w_out": w_out, "b_out": b_out}


def _pick_batch_tile(batch):
    # Largest lane-aligned tile that still leaves >= 2 grid steps: big tiles
    # amortize the ~0.35us per-grid-step overhead, >= 2 steps keeps the
    # "parallel" batch axis splittable across v7x's two TensorCores.
    for t in (1024, 512, 256, 128):
        if pl.cdiv(batch, t) >= 2:
            return t
    return 128


def selu_network_forward(x, prepped, *, batch_tile=None):
    """SELU MLP forward pass via one Pallas kernel.

    x: (B, 27) float32 (any B; padded internally).  Returns (B, 1) float32.
    prepped: output of prep_params() (weight prep hoisted out of this call).
    """
    B, F = x.shape
    assert F == INPUT_DIM
    mxu_dtype = prepped["w_hid"].dtype
    act_dtype = prepped["b_in"].dtype
    n_hid = prepped["w_hid"].shape[0]

    tb = batch_tile if batch_tile is not None else _pick_batch_tile(B)
    assert tb % 128 == 0, "batch_tile must be a multiple of 128 (lane width)"
    b_pad = pl.cdiv(B, tb) * tb
    grid = (b_pad // tb,)

    # Activation layout prep (cheap, stays per-call): batch -> lane axis,
    # pad features 27 -> 32 and batch B -> b_pad.
    x_t = jnp.pad(x.T, ((0, INPUT_DIM_PADDED - INPUT_DIM),
                        (0, b_pad - B))).astype(mxu_dtype)

    def const(shape):
        # Layer-invariant block: DMA'd once, resident in VMEM across the whole
        # batch grid, single-buffered (a second pipeline buffer is dead VMEM).
        return pl.BlockSpec(shape, lambda i: (0,) * len(shape),
                            pipeline_mode=pl.Buffered(1))

    out = pl.pallas_call(
        functools.partial(_mlp_kernel, mxu_dtype=mxu_dtype, act_dtype=act_dtype),
        out_shape=jax.ShapeDtypeStruct((1, b_pad), jnp.float32),
        grid_spec=pltpu.PrefetchScalarGridSpec(
            num_scalar_prefetch=0,
            grid=grid,
            in_specs=[
                pl.BlockSpec((INPUT_DIM_PADDED, tb), lambda i: (0, i)),   # x^T
                const((HIDDEN_DIM, INPUT_DIM_PADDED)),                    # w_in
                const((HIDDEN_DIM, 1)),                                   # b_in
                const((n_hid, HIDDEN_DIM, HIDDEN_DIM)),                   # w_hid
                const((n_hid, HIDDEN_DIM, 1)),                            # b_hid
                const((HIDDEN_DIM, 1)),                                   # w_out
                const((1, 1)),                                            # b_out
            ],
            out_specs=pl.BlockSpec((1, tb), lambda i: (0, i)),
        ),
        # TODO(synk): on v7x, if a profile shows one idle TensorCore, switch
        # dimension_semantics to (pltpu.CORE_PARALLEL,).
        compiler_params=pltpu.CompilerParams(
            dimension_semantics=("parallel",),
            vmem_limit_bytes=32 * 1024 * 1024,
        ),
    )(x_t, prepped["w_in"], prepped["b_in"], prepped["w_hid"],
      prepped["b_hid"], prepped["w_out"], prepped["b_out"])

    return out[0, :B].reshape(B, OUTPUT_DIM)


def init_params(key):
    """kaiming_normal_(nonlinearity='linear'): W ~ N(0, 1/fan_in), bias = 0.
    Weights stored in PyTorch (out_features, in_features) layout."""
    ks = jax.random.split(key, DEPTH + 1)
    w_in = (jax.random.normal(ks[0], (HIDDEN_DIM, INPUT_DIM), jnp.float32)
            / jnp.sqrt(float(INPUT_DIM)))
    b_in = jnp.zeros((HIDDEN_DIM,), jnp.float32)
    w_hid = jnp.stack([
        jax.random.normal(ks[1 + l], (HIDDEN_DIM, HIDDEN_DIM), jnp.float32)
        / jnp.sqrt(float(HIDDEN_DIM))
        for l in range(DEPTH - 1)
    ])
    b_hid = jnp.zeros((DEPTH - 1, HIDDEN_DIM), jnp.float32)
    w_out = (jax.random.normal(ks[DEPTH], (OUTPUT_DIM, HIDDEN_DIM), jnp.float32)
             / jnp.sqrt(float(HIDDEN_DIM)))
    b_out = jnp.zeros((OUTPUT_DIM,), jnp.float32)
    return {"w_in": w_in, "b_in": b_in, "w_hid": w_hid, "b_hid": b_hid,
            "w_out": w_out, "b_out": b_out}


def reference_forward_f32(x, params):
    """Plain-XLA f32 reference (standard SELU, PyTorch-layout weights)."""
    def selu(z):
        return _SELU_SCALE * jnp.where(z > 0, z, _SELU_ALPHA * (jnp.exp(z) - 1.0))
    h = selu(x @ params["w_in"].T + params["b_in"][None, :])
    for l in range(params["w_hid"].shape[0]):
        h = selu(h @ params["w_hid"][l].T + params["b_hid"][l][None, :])
    return h @ params["w_out"].T + params["b_out"][None, :]


def reference_forward_prepped(x, prepped):
    """Plain-XLA reference with the SAME dtype policy / scale folding as the
    kernel (validates the Pallas mechanics apples-to-apples)."""
    mxu_dtype = prepped["w_hid"].dtype
    act_dtype = prepped["b_in"].dtype
    xp = jnp.pad(x, ((0, 0), (0, INPUT_DIM_PADDED - INPUT_DIM))).astype(mxu_dtype)
    z = jnp.dot(xp, prepped["w_in"].T, preferred_element_type=jnp.float32)
    h = _selu_core(z.astype(act_dtype) + prepped["b_in"][:, 0][None, :])
    for l in range(prepped["w_hid"].shape[0]):
        z = jnp.dot(h.astype(mxu_dtype), prepped["w_hid"][l].T,
                    preferred_element_type=jnp.float32)
        h = _selu_core(z.astype(act_dtype) + prepped["b_hid"][l, :, 0][None, :])
    return (jnp.sum(h.astype(jnp.float32) * prepped["w_out"][:, 0][None, :],
                    axis=-1, keepdims=True) + prepped["b_out"])


if __name__ == "__main__":
    key = jax.random.PRNGKey(0)
    k_param, k_x = jax.random.split(key)

    params = init_params(k_param)
    batch = 160  # small; not a multiple of 128 -> exercises padding + a 2-step grid
    x = jax.random.normal(k_x, (batch, INPUT_DIM), jnp.float32)

    fwd = jax.jit(selu_network_forward, static_argnames=("batch_tile",))

    # bf16 path (default: bf16 MXU operands + bf16 SELU, f32 accumulation).
    prepped_bf16 = prep_params(params, use_bf16=True, selu_in_bf16=True)
    out_bf16 = jax.block_until_ready(fwd(x, prepped_bf16))
    assert out_bf16.shape == (batch, OUTPUT_DIM)
    ref_matched = reference_forward_prepped(x, prepped_bf16)
    err_m = float(jnp.max(jnp.abs(out_bf16 - ref_matched)))
    assert jnp.allclose(out_bf16, ref_matched, atol=2e-2, rtol=2e-2), (
        f"bf16 kernel vs matched ref: max abs err = {err_m}")

    # full-f32 path (v5e-style): tight check against the plain f32 reference.
    prepped_f32 = prep_params(params, use_bf16=False)
    out_f32 = jax.block_until_ready(fwd(x, prepped_f32))
    ref_f32 = reference_forward_f32(x, params)
    err_f = float(jnp.max(jnp.abs(out_f32 - ref_f32)))
    assert jnp.allclose(out_f32, ref_f32, atol=1e-3, rtol=1e-3), (
        f"f32 kernel vs f32 ref: max abs err = {err_f}")

    # Gross sanity: bf16 kernel vs full-f32 reference (catches wiring bugs).
    err_x = float(jnp.max(jnp.abs(out_bf16 - ref_f32)))
    assert err_x < 0.5, f"bf16 kernel vs f32 ref: max abs err = {err_x}"

    print("KERNEL_OK")
</pallas_src>

<mosaic_0001>
module attributes {stable_mosaic.version = 11 : i64} {
  func.func @_mlp_kernel(%arg0: i32, %arg1: memref<32x128xbf16, #tpu.memory_space<vmem>>, %arg2: memref<256x32xbf16, #tpu.memory_space<vmem>>, %arg3: memref<256x1xbf16, #tpu.memory_space<vmem>>, %arg4: memref<7x256x256xbf16, #tpu.memory_space<vmem>>, %arg5: memref<7x256x1xbf16, #tpu.memory_space<vmem>>, %arg6: memref<256x1xf32, #tpu.memory_space<vmem>>, %arg7: memref<1x1xf32, #tpu.memory_space<vmem>>, %arg8: memref<1x128xf32, #tpu.memory_space<vmem>>) attributes {dimension_semantics = [#tpu.dimension_semantics<parallel>], iteration_bounds = array<i64: 2>, scalar_prefetch = 0 : i64, scratch_operands = 0 : i64, tpu.core_type = #tpu.core_type<tc>, window_params = [{transform_indices = @transform_0, window_bounds = array<i64: 32, 128>}, {pipeline_mode = #tpu.pipeline_mode<synchronous>, transform_indices = @transform_1, window_bounds = array<i64: 256, 32>}, {pipeline_mode = #tpu.pipeline_mode<synchronous>, transform_indices = @transform_2, window_bounds = array<i64: 256, 1>}, {pipeline_mode = #tpu.pipeline_mode<synchronous>, transform_indices = @transform_3, window_bounds = array<i64: 7, 256, 256>}, {pipeline_mode = #tpu.pipeline_mode<synchronous>, transform_indices = @transform_4, window_bounds = array<i64: 7, 256, 1>}, {pipeline_mode = #tpu.pipeline_mode<synchronous>, transform_indices = @transform_5, window_bounds = array<i64: 256, 1>}, {pipeline_mode = #tpu.pipeline_mode<synchronous>, transform_indices = @transform_6, window_bounds = array<i64: 1, 1>}, {transform_indices = @transform_7, window_bounds = array<i64: 1, 128>}]} {
    %c0 = arith.constant 0 : index
    %c0_0 = arith.constant 0 : index
    %0 = vector.load %arg2[%c0, %c0_0] : memref<256x32xbf16, #tpu.memory_space<vmem>>, vector<256x32xbf16>
    %c0_1 = arith.constant 0 : index
    %c0_2 = arith.constant 0 : index
    %1 = vector.load %arg1[%c0_1, %c0_2] : memref<32x128xbf16, #tpu.memory_space<vmem>>, vector<32x128xbf16>
    %cst = arith.constant dense<0.000000e+00> : vector<256x128xf32>
    %2 = tpu.matmul %0, %1, %cst {dimension_numbers = #tpu.dot_dimension_numbers<[1], [0], [0], [1], [0, 0, 1, 1], [], []>} : vector<256x32xbf16>, vector<32x128xbf16>, vector<256x128xf32> -> vector<256x128xf32>
    %3 = arith.truncf %2 : vector<256x128xf32> to vector<256x128xbf16>
    %c0_3 = arith.constant 0 : index
    %c0_4 = arith.constant 0 : index
    %4 = vector.load %arg3[%c0_3, %c0_4] : memref<256x1xbf16, #tpu.memory_space<vmem>>, vector<256x1xbf16>
    %5 = vector.broadcast %4 : vector<256x1xbf16> to vector<256x128xbf16>
    %6 = arith.addf %3, %5 : vector<256x128xbf16>
    %cst_5 = arith.constant 0.000000e+00 : bf16
    %7 = vector.broadcast %cst_5 : bf16 to vector<256x128xbf16>
    %8 = arith.cmpf ogt, %6, %7 : vector<256x128xbf16>
    %9 = math.exp %6 : vector<256x128xbf16>
    %cst_6 = arith.constant 1.000000e+00 : bf16
    %10 = vector.broadcast %cst_6 : bf16 to vector<256x128xbf16>
    %11 = arith.subf %9, %10 : vector<256x128xbf16>
    %cst_7 = arith.constant 1.671880e+00 : bf16
    %12 = vector.broadcast %cst_7 : bf16 to vector<256x128xbf16>
    %13 = arith.mulf %12, %11 : vector<256x128xbf16>
    %14 = arith.select %8, %6, %13 : vector<256x128xi1>, vector<256x128xbf16>
    %c0_8 = arith.constant 0 : index
    %c0_9 = arith.constant 0 : index
    %c0_10 = arith.constant 0 : index
    %15 = vector.load %arg4[%c0_8, %c0_9, %c0_10] : memref<7x256x256xbf16, #tpu.memory_space<vmem>>, vector<1x256x256xbf16>
    %16 = vector.shape_cast %15 : vector<1x256x256xbf16> to vector<256x256xbf16>
    %cst_11 = arith.constant dense<0.000000e+00> : vector<256x128xf32>
    %17 = tpu.matmul %16, %14, %cst_11 {dimension_numbers = #tpu.dot_dimension_numbers<[1], [0], [0], [1], [0, 0, 1, 1], [], []>} : vector<256x256xbf16>, vector<256x128xbf16>, vector<256x128xf32> -> vector<256x128xf32>
    %18 = arith.truncf %17 : vector<256x128xf32> to vector<256x128xbf16>
    %c0_12 = arith.constant 0 : index
    %c0_13 = arith.constant 0 : index
    %c0_14 = arith.constant 0 : index
    %19 = vector.load %arg5[%c0_12, %c0_13, %c0_14] : memref<7x256x1xbf16, #tpu.memory_space<vmem>>, vector<1x256x1xbf16>
    %20 = vector.shape_cast %19 : vector<1x256x1xbf16> to vector<256x1xbf16>
    %21 = vector.broadcast %20 : vector<256x1xbf16> to vector<256x128xbf16>
    %22 = arith.addf %18, %21 : vector<256x128xbf16>
    %cst_15 = arith.constant 0.000000e+00 : bf16
    %23 = vector.broadcast %cst_15 : bf16 to vector<256x128xbf16>
    %24 = arith.cmpf ogt, %22, %23 : vector<256x128xbf16>
    %25 = math.exp %22 : vector<256x128xbf16>
    %cst_16 = arith.constant 1.000000e+00 : bf16
    %26 = vector.broadcast %cst_16 : bf16 to vector<256x128xbf16>
    %27 = arith.subf %25, %26 : vector<256x128xbf16>
    %cst_17 = arith.constant 1.671880e+00 : bf16
    %28 = vector.broadcast %cst_17 : bf16 to vector<256x128xbf16>
    %29 = arith.mulf %28, %27 : vector<256x128xbf16>
    %30 = arith.select %24, %22, %29 : vector<256x128xi1>, vector<256x128xbf16>
    %c1 = arith.constant 1 : index
    %c0_18 = arith.constant 0 : index
    %c0_19 = arith.constant 0 : index
    %31 = vector.load %arg4[%c1, %c0_18, %c0_19] : memref<7x256x256xbf16, #tpu.memory_space<vmem>>, vector<1x256x256xbf16>
    %32 = vector.shape_cast %31 : vector<1x256x256xbf16> to vector<256x256xbf16>
    %cst_20 = arith.constant dense<0.000000e+00> : vector<256x128xf32>
    %33 = tpu.matmul %32, %30, %cst_20 {dimension_numbers = #tpu.dot_dimension_numbers<[1], [0], [0], [1], [0, 0, 1, 1], [], []>} : vector<256x256xbf16>, vector<256x128xbf16>, vector<256x128xf32> -> vector<256x128xf32>
    %34 = arith.truncf %33 : vector<256x128xf32> to vector<256x128xbf16>
    %c1_21 = arith.constant 1 : index
    %c0_22 = arith.constant 0 : index
    %c0_23 = arith.constant 0 : index
    %35 = vector.load %arg5[%c1_21, %c0_22, %c0_23] : memref<7x256x1xbf16, #tpu.memory_space<vmem>>, vector<1x256x1xbf16>
    %36 = vector.shape_cast %35 : vector<1x256x1xbf16> to vector<256x1xbf16>
    %37 = vector.broadcast %36 : vector<256x1xbf16> to vector<256x128xbf16>
    %38 = arith.addf %34, %37 : vector<256x128xbf16>
    %cst_24 = arith.constant 0.000000e+00 : bf16
    %39 = vector.broadcast %cst_24 : bf16 to vector<256x128xbf16>
    %40 = arith.cmpf ogt, %38, %39 : vector<256x128xbf16>
    %41 = math.exp %38 : vector<256x128xbf16>
    %cst_25 = arith.constant 1.000000e+00 : bf16
    %42 = vector.broadcast %cst_25 : bf16 to vector<256x128xbf16>
    %43 = arith.subf %41, %42 : vector<256x128xbf16>
    %cst_26 = arith.constant 1.671880e+00 : bf16
    %44 = vector.broadcast %cst_26 : bf16 to vector<256x128xbf16>
    %45 = arith.mulf %44, %43 : vector<256x128xbf16>
    %46 = arith.select %40, %38, %45 : vector<256x128xi1>, vector<256x128xbf16>
    %c2 = arith.constant 2 : index
    %c0_27 = arith.constant 0 : index
    %c0_28 = arith.constant 0 : index
    %47 = vector.load %arg4[%c2, %c0_27, %c0_28] : memref<7x256x256xbf16, #tpu.memory_space<vmem>>, vector<1x256x256xbf16>
    %48 = vector.shape_cast %47 : vector<1x256x256xbf16> to vector<256x256xbf16>
    %cst_29 = arith.constant dense<0.000000e+00> : vector<256x128xf32>
    %49 = tpu.matmul %48, %46, %cst_29 {dimension_numbers = #tpu.dot_dimension_numbers<[1], [0], [0], [1], [0, 0, 1, 1], [], []>} : vector<256x256xbf16>, vector<256x128xbf16>, vector<256x128xf32> -> vector<256x128xf32>
    %50 = arith.truncf %49 : vector<256x128xf32> to vector<256x128xbf16>
    %c2_30 = arith.constant 2 : index
    %c0_31 = arith.constant 0 : index
    %c0_32 = arith.constant 0 : index
    %51 = vector.load %arg5[%c2_30, %c0_31, %c0_32] : memref<7x256x1xbf16, #tpu.memory_space<vmem>>, vector<1x256x1xbf16>
    %52 = vector.shape_cast %51 : vector<1x256x1xbf16> to vector<256x1xbf16>
    %53 = vector.broadcast %52 : vector<256x1xbf16> to vector<256x128xbf16>
    %54 = arith.addf %50, %53 : vector<256x128xbf16>
    %cst_33 = arith.constant 0.000000e+00 : bf16
    %55 = vector.broadcast %cst_33 : bf16 to vector<256x128xbf16>
    %56 = arith.cmpf ogt, %54, %55 : vector<256x128xbf16>
    %57 = math.exp %54 : vector<256x128xbf16>
    %cst_34 = arith.constant 1.000000e+00 : bf16
    %58 = vector.broadcast %cst_34 : bf16 to vector<256x128xbf16>
    %59 = arith.subf %57, %58 : vector<256x128xbf16>
    %cst_35 = arith.constant 1.671880e+00 : bf16
    %60 = vector.broadcast %cst_35 : bf16 to vector<256x128xbf16>
    %61 = arith.mulf %60, %59 : vector<256x128xbf16>
    %62 = arith.select %56, %54, %61 : vector<256x128xi1>, vector<256x128xbf16>
    %c3 = arith.constant 3 : index
    %c0_36 = arith.constant 0 : index
    %c0_37 = arith.constant 0 : index
    %63 = vector.load %arg4[%c3, %c0_36, %c0_37] : memref<7x256x256xbf16, #tpu.memory_space<vmem>>, vector<1x256x256xbf16>
    %64 = vector.shape_cast %63 : vector<1x256x256xbf16> to vector<256x256xbf16>
    %cst_38 = arith.constant dense<0.000000e+00> : vector<256x128xf32>
    %65 = tpu.matmul %64, %62, %cst_38 {dimension_numbers = #tpu.dot_dimension_numbers<[1], [0], [0], [1], [0, 0, 1, 1], [], []>} : vector<256x256xbf16>, vector<256x128xbf16>, vector<256x128xf32> -> vector<256x128xf32>
    %66 = arith.truncf %65 : vector<256x128xf32> to vector<256x128xbf16>
    %c3_39 = arith.constant 3 : index
    %c0_40 = arith.constant 0 : index
    %c0_41 = arith.constant 0 : index
    %67 = vector.load %arg5[%c3_39, %c0_40, %c0_41] : memref<7x256x1xbf16, #tpu.memory_space<vmem>>, vector<1x256x1xbf16>
    %68 = vector.shape_cast %67 : vector<1x256x1xbf16> to vector<256x1xbf16>
    %69 = vector.broadcast %68 : vector<256x1xbf16> to vector<256x128xbf16>
    %70 = arith.addf %66, %69 : vector<256x128xbf16>
    %cst_42 = arith.constant 0.000000e+00 : bf16
    %71 = vector.broadcast %cst_42 : bf16 to vector<256x128xbf16>
    %72 = arith.cmpf ogt, %70, %71 : vector<256x128xbf16>
    %73 = math.exp %70 : vector<256x128xbf16>
    %cst_43 = arith.constant 1.000000e+00 : bf16
    %74 = vector.broadcast %cst_43 : bf16 to vector<256x128xbf16>
    %75 = arith.subf %73, %74 : vector<256x128xbf16>
    %cst_44 = arith.constant 1.671880e+00 : bf16
    %76 = vector.broadcast %cst_44 : bf16 to vector<256x128xbf16>
    %77 = arith.mulf %76, %75 : vector<256x128xbf16>
    %78 = arith.select %72, %70, %77 : vector<256x128xi1>, vector<256x128xbf16>
    %c4 = arith.constant 4 : index
    %c0_45 = arith.constant 0 : index
    %c0_46 = arith.constant 0 : index
    %79 = vector.load %arg4[%c4, %c0_45, %c0_46] : memref<7x256x256xbf16, #tpu.memory_space<vmem>>, vector<1x256x256xbf16>
    %80 = vector.shape_cast %79 : vector<1x256x256xbf16> to vector<256x256xbf16>
    %cst_47 = arith.constant dense<0.000000e+00> : vector<256x128xf32>
    %81 = tpu.matmul %80, %78, %cst_47 {dimension_numbers = #tpu.dot_dimension_numbers<[1], [0], [0], [1], [0, 0, 1, 1], [], []>} : vector<256x256xbf16>, vector<256x128xbf16>, vector<256x128xf32> -> vector<256x128xf32>
    %82 = arith.truncf %81 : vector<256x128xf32> to vector<256x128xbf16>
    %c4_48 = arith.constant 4 : index
    %c0_49 = arith.constant 0 : index
    %c0_50 = arith.constant 0 : index
    %83 = vector.load %arg5[%c4_48, %c0_49, %c0_50] : memref<7x256x1xbf16, #tpu.memory_space<vmem>>, vector<1x256x1xbf16>
    %84 = vector.shape_cast %83 : vector<1x256x1xbf16> to vector<256x1xbf16>
    %85 = vector.broadcast %84 : vector<256x1xbf16> to vector<256x128xbf16>
    %86 = arith.addf %82, %85 : vector<256x128xbf16>
    %cst_51 = arith.constant 0.000000e+00 : bf16
    %87 = vector.broadcast %cst_51 : bf16 to vector<256x128xbf16>
    %88 = arith.cmpf ogt, %86, %87 : vector<256x128xbf16>
    %89 = math.exp %86 : vector<256x128xbf16>
    %cst_52 = arith.constant 1.000000e+00 : bf16
    %90 = vector.broadcast %cst_52 : bf16 to vector<256x128xbf16>
    %91 = arith.subf %89, %90 : vector<256x128xbf16>
    %cst_53 = arith.constant 1.671880e+00 : bf16
    %92 = vector.broadcast %cst_53 : bf16 to vector<256x128xbf16>
    %93 = arith.mulf %92, %91 : vector<256x128xbf16>
    %94 = arith.select %88, %86, %93 : vector<256x128xi1>, vector<256x128xbf16>
    %c5 = arith.constant 5 : index
    %c0_54 = arith.constant 0 : index
    %c0_55 = arith.constant 0 : index
    %95 = vector.load %arg4[%c5, %c0_54, %c0_55] : memref<7x256x256xbf16, #tpu.memory_space<vmem>>, vector<1x256x256xbf16>
    %96 = vector.shape_cast %95 : vector<1x256x256xbf16> to vector<256x256xbf16>
    %cst_56 = arith.constant dense<0.000000e+00> : vector<256x128xf32>
    %97 = tpu.matmul %96, %94, %cst_56 {dimension_numbers = #tpu.dot_dimension_numbers<[1], [0], [0], [1], [0, 0, 1, 1], [], []>} : vector<256x256xbf16>, vector<256x128xbf16>, vector<256x128xf32> -> vector<256x128xf32>
    %98 = arith.truncf %97 : vector<256x128xf32> to vector<256x128xbf16>
    %c5_57 = arith.constant 5 : index
    %c0_58 = arith.constant 0 : index
    %c0_59 = arith.constant 0 : index
    %99 = vector.load %arg5[%c5_57, %c0_58, %c0_59] : memref<7x256x1xbf16, #tpu.memory_space<vmem>>, vector<1x256x1xbf16>
    %100 = vector.shape_cast %99 : vector<1x256x1xbf16> to vector<256x1xbf16>
    %101 = vector.broadcast %100 : vector<256x1xbf16> to vector<256x128xbf16>
    %102 = arith.addf %98, %101 : vector<256x128xbf16>
    %cst_60 = arith.constant 0.000000e+00 : bf16
    %103 = vector.broadcast %cst_60 : bf16 to vector<256x128xbf16>
    %104 = arith.cmpf ogt, %102, %103 : vector<256x128xbf16>
    %105 = math.exp %102 : vector<256x128xbf16>
    %cst_61 = arith.constant 1.000000e+00 : bf16
    %106 = vector.broadcast %cst_61 : bf16 to vector<256x128xbf16>
    %107 = arith.subf %105, %106 : vector<256x128xbf16>
    %cst_62 = arith.constant 1.671880e+00 : bf16
    %108 = vector.broadcast %cst_62 : bf16 to vector<256x128xbf16>
    %109 = arith.mulf %108, %107 : vector<256x128xbf16>
    %110 = arith.select %104, %102, %109 : vector<256x128xi1>, vector<256x128xbf16>
    %c6 = arith.constant 6 : index
    %c0_63 = arith.constant 0 : index
    %c0_64 = arith.constant 0 : index
    %111 = vector.load %arg4[%c6, %c0_63, %c0_64] : memref<7x256x256xbf16, #tpu.memory_space<vmem>>, vector<1x256x256xbf16>
    %112 = vector.shape_cast %111 : vector<1x256x256xbf16> to vector<256x256xbf16>
    %cst_65 = arith.constant dense<0.000000e+00> : vector<256x128xf32>
    %113 = tpu.matmul %112, %110, %cst_65 {dimension_numbers = #tpu.dot_dimension_numbers<[1], [0], [0], [1], [0, 0, 1, 1], [], []>} : vector<256x256xbf16>, vector<256x128xbf16>, vector<256x128xf32> -> vector<256x128xf32>
    %114 = arith.truncf %113 : vector<256x128xf32> to vector<256x128xbf16>
    %c6_66 = arith.constant 6 : index
    %c0_67 = arith.constant 0 : index
    %c0_68 = arith.constant 0 : index
    %115 = vector.load %arg5[%c6_66, %c0_67, %c0_68] : memref<7x256x1xbf16, #tpu.memory_space<vmem>>, vector<1x256x1xbf16>
    %116 = vector.shape_cast %115 : vector<1x256x1xbf16> to vector<256x1xbf16>
    %117 = vector.broadcast %116 : vector<256x1xbf16> to vector<256x128xbf16>
    %118 = arith.addf %114, %117 : vector<256x128xbf16>
    %cst_69 = arith.constant 0.000000e+00 : bf16
    %119 = vector.broadcast %cst_69 : bf16 to vector<256x128xbf16>
    %120 = arith.cmpf ogt, %118, %119 : vector<256x128xbf16>
    %121 = math.exp %118 : vector<256x128xbf16>
    %cst_70 = arith.constant 1.000000e+00 : bf16
    %122 = vector.broadcast %cst_70 : bf16 to vector<256x128xbf16>
    %123 = arith.subf %121, %122 : vector<256x128xbf16>
    %cst_71 = arith.constant 1.671880e+00 : bf16
    %124 = vector.broadcast %cst_71 : bf16 to vector<256x128xbf16>
    %125 = arith.mulf %124, %123 : vector<256x128xbf16>
    %126 = arith.select %120, %118, %125 : vector<256x128xi1>, vector<256x128xbf16>
    %127 = arith.extf %126 : vector<256x128xbf16> to vector<256x128xf32>
    %c0_72 = arith.constant 0 : index
    %c0_73 = arith.constant 0 : index
    %128 = vector.load %arg6[%c0_72, %c0_73] : memref<256x1xf32, #tpu.memory_space<vmem>>, vector<256x1xf32>
    %129 = vector.broadcast %128 : vector<256x1xf32> to vector<256x128xf32>
    %130 = arith.mulf %127, %129 : vector<256x128xf32>
    %cst_74 = arith.constant dense<0.000000e+00> : vector<128xf32>
    %131 = vector.multi_reduction <add>, %130, %cst_74 [0] : vector<256x128xf32> to vector<128xf32>
    %132 = vector.shape_cast %131 : vector<128xf32> to vector<1x128xf32>
    %c0_75 = arith.constant 0 : index
    %c0_76 = arith.constant 0 : index
    %133 = vector.load %arg7[%c0_75, %c0_76] : memref<1x1xf32, #tpu.memory_space<vmem>>, vector<1x1xf32>
    %134 = vector.broadcast %133 : vector<1x1xf32> to vector<1x128xf32>
    %135 = arith.addf %132, %134 : vector<1x128xf32>
    %c0_77 = arith.constant 0 : index
    %c0_78 = arith.constant 0 : index
    %136 = vector.load %arg8[%c0_77, %c0_78] : memref<1x128xf32, #tpu.memory_space<vmem>>, vector<1x128xf32>
    tpu.vector_store %arg8[%c0_77, %c0_78], %135 {strides = array<i32>} : memref<1x128xf32, #tpu.memory_space<vmem>>, vector<1x128xf32>,
    return
  }
  func.func @transform_0(%arg0: i32) -> (i32, i32) {
    %c0_i32 = arith.constant 0 : i32
    %c0_i32_0 = arith.constant 0 : i32
    return %c0_i32, %arg0 : i32, i32
  }
  func.func @transform_1(%arg0: i32) -> (i32, i32) {
    %c0_i32 = arith.constant 0 : i32
    %c0_i32_0 = arith.constant 0 : i32
    %c0_i32_1 = arith.constant 0 : i32
    return %c0_i32, %c0_i32_0 : i32, i32
  }
  func.func @transform_2(%arg0: i32) -> (i32, i32) {
    %c0_i32 = arith.constant 0 : i32
    %c0_i32_0 = arith.constant 0 : i32
    %c0_i32_1 = arith.constant 0 : i32
    return %c0_i32, %c0_i32_0 : i32, i32
  }
  func.func @transform_3(%arg0: i32) -> (i32, i32, i32) {
    %c0_i32 = arith.constant 0 : i32
    %c0_i32_0 = arith.constant 0 : i32
    %c0_i32_1 = arith.constant 0 : i32
    %c0_i32_2 = arith.constant 0 : i32
    return %c0_i32, %c0_i32_0, %c0_i32_1 : i32, i32, i32
  }
  func.func @transform_4(%arg0: i32) -> (i32, i32, i32) {
    %c0_i32 = arith.constant 0 : i32
    %c0_i32_0 = arith.constant 0 : i32
    %c0_i32_1 = arith.constant 0 : i32
    %c0_i32_2 = arith.constant 0 : i32
    return %c0_i32, %c0_i32_0, %c0_i32_1 : i32, i32, i32
  }
  func.func @transform_5(%arg0: i32) -> (i32, i32) {
    %c0_i32 = arith.constant 0 : i32
    %c0_i32_0 = arith.constant 0 : i32
    %c0_i32_1 = arith.constant 0 : i32
    return %c0_i32, %c0_i32_0 : i32, i32
  }
  func.func @transform_6(%arg0: i32) -> (i32, i32) {
    %c0_i32 = arith.constant 0 : i32
    %c0_i32_0 = arith.constant 0 : i32
    %c0_i32_1 = arith.constant 0 : i32
    return %c0_i32, %c0_i32_0 : i32, i32
  }
  func.func @transform_7(%arg0: i32) -> (i32, i32) {
    %c0_i32 = arith.constant 0 : i32
    %c0_i32_0 = arith.constant 0 : i32
    return %c0_i32, %arg0 : i32, i32
  }
}

</mosaic_0001>

<bundles_post_ra>
// kernel: selu_network_forward.1
= control target key start
LH: loop header
LB: loop body
LE: loop exit
PB: predicated region body
PF: predicated region fallthrough
CT: control target
= control target key end

     0   :  { %s14460_s0 = inlined_call_operand.vmem [shape: bf16[32,256], index: 0, kind: input, shape index: {}]   ;;  %s14461_s1 = inlined_call_operand.vmem [shape: bf16[256,32], index: 1, kind: input, shape index: {}]   ;;  %s14462_s2 = inlined_call_operand.vmem [shape: bf16[256,1], index: 2, kind: input, shape index: {}]   ;;  %s14463_s3 = inlined_call_operand.hbm [shape: bf16[7,256,256], index: 3, kind: input, shape index: {}]   ;;  %s14464_s4 = inlined_call_operand.vmem [shape: bf16[7,256,1], index: 4, kind: input, shape index: {}]   ;;  %s14465_s5 = inlined_call_operand.vmem [shape: f32[256,1], index: 5, kind: input, shape index: {}]   ;;  %s14466_s6 = inlined_call_operand.<no memory space> [shape: f32[1,1], index: 6, kind: input, shape index: {}]   ;;  %s14467_s7 = inlined_call_operand.vmem [shape: f32[1,256], index: 7, kind: output, shape index: {}]  }
   0x1   :  { %v12_v0 = vstv %s14466_s6 }
   0x2   :  { %13 = vst [vmem:[#allocation2] sm:$0x1] %v12_v0 }
   0x3   :  { %14 = vsyncpa [#allocation5], 0  ;;  %s10988_s26 = smov 0   ;;  %s10990_s27 = smov 0  }
   0x4   :  { %s10992_s28 = smov 0  }
   0x5 LB: > { %s11004_s6 = sadd.s32 4294967295, %s10937_s28   ;;  %s11007_s29 = sadd.s32 1, %s10937_s28   ;;  %s10937_s28 = sphi %s10992_s28, %s14939_s28   ;;  %s10933_s27 = sphi %s10990_s27, %s14938_s27   ;;  %s10929_s26 = sphi %s10988_s26, %s14937_s26  }
   0x6   : > { %s24_s30 = ssub.s32 %s10937_s28, %s11007_s29  ;;  %s27_s8 = sadd.s32 1, %s10933_s27 }
   0x7   : > { %p25_p0 = scmp.eq.s32.totalorder %s24_s30, 0  ;;  %p34_p1 = scmp.ne.s32.totalorder %s10933_s27, %s10929_s26 }
   0x8   : > { %p35_p2 = scmp.eq.s32.totalorder %s10937_s28, 0  ;;  %p8791_p3 = scmp.ge.s32.totalorder %s10937_s28, 1 }
   0x9   : > { %s11017_s9 = scalar_select %p25_p0, %s10933_s27, %s27_s8  }
   0xa   : > { %p11019_p4 = por %p35_p2, %p34_p1  ;;  %p203_p5 = scmp.lt.s32.totalorder %s10937_s28, 3 }
   0xb   : > { %p10241_p6 = scmp.eq.s32.totalorder %s11004_s6, 0  ;;  %s10939_s12 = smov [#allocation4]  }
   0xc   : > { %p11025_p7 = pnand %p8791_p3, %p203_p5  ;;  %s221_s13 = sshll.u32 %s10939_s12, 4  ;;  %s222_s13 = int_to_ptr.vmem [resolvable:$true] %s221_s13 }
   0xd   : > { %s10896_s14 = scalar_lea.vmem %s222_s13, 28672  ;;  %p10904_p0 = scmp.lt.s32.totalorder %s222_s13, %s222_s13 }
   0xe   : > { %p10237_p8 = pneg %p11025_p7  ;;  %p10897_p11 = scmp.ne.s32.totalorder %s222_s13, %s10896_s14 }
   0xf   : > { %p10905_p1 = scmp.lt.s32.totalorder %s10896_s14, %s10896_s14 }
  0x10   : > { %p10238_p9 = pnand %p10241_p6, %p10237_p8 }
  0x11   : > { %p10906_p2 = por %p10905_p1, %p10904_p0 }
  0x12   : > { %p10887_p10 = pneg %p10238_p9 }
  0x14   : > { %p10899_p12 = pnand %p10897_p11, %p10887_p10 }
  0x16   : > { %p10900_p13 = pneg %p10899_p12 }
  0x18   : > { %p10907_p3 = pnand %p10906_p2, %p10900_p13 }
  0x1a   : > { %10910 = shalt.err (!%p10907_p3)
}
  0x1b   : > { %s10940_s15 = smov 128   ;;  %s10941_s16 = smov 8  }
  0x1c   : > { %10240 = dma.hbm_to_vmem [thread:$0]  (!%p10238_p9), %s14463_s3, 28672, %s222_s13, [#allocation5], %s10940_s15, %s10940_s15, %s10941_s16  }
  0x1d   : > { %p8793_p5 = scmp.ge.s32.totalorder %s10937_s28, 2 }
  0x1f   : > { %240 = sbr.rel (%p8793_p5) target bundleno = 42 (0x2a), region = 40 }
  0x24   : > { %243 = sbr.rel (!%p11019_p4) target bundleno = 42 (0x2a), region = 44  ;;  %s245_s19 = sand.u32 (%p11019_p4), 1, %s10933_s27  }
  0x25   : > { %s8795_s20 = sshll.u32 (%p11019_p4), %s10937_s28, 2  ;;  %s8794_s21 = sshll.u32 (%p11019_p4), %s245_s19, 4 }
  0x26   : > { %s249_s24 = scalar_lea.vmem (%p11019_p4), %s14460_s0, %s8795_s20  ;;  %s247_s25 = scalar_lea.vmem (%p11019_p4), [#allocation3], %s8794_s21 }
  0x27   : > { %v266_v1 = vld [vmem:[%s249_s24] sm:$0xf] (%p11019_p4)  ;;  %v268_v2 = vld [vmem:[%s249_s24 + $0x8] sm:$0xf] (%p11019_p4)  ;;  %v270_v3 = vld [vmem:[%s249_s24 + $0x10] sm:$0xf] (%p11019_p4) }
  0x28   : > { %267 = vst [vmem:[%s247_s25] sm:$0xf] (%p11019_p4), %v266_v1  ;;  %269 = vst [vmem:[%s247_s25 + $0x4] sm:$0xf] (%p11019_p4), %v268_v2  ;;  %v272_v4 = vld [vmem:[%s249_s24 + $0x18] sm:$0xf] (%p11019_p4) }
  0x29   : > { %271 = vst [vmem:[%s247_s25 + $0x8] sm:$0xf] %v270_v3  ;;  %273 = vst [vmem:[%s247_s25 + $0xc] sm:$0xf] %v272_v4 }
  0x2a PF: > { %308 = sbr.rel (%p11025_p7) target bundleno = 2978 (0xba2), region = 85 }
  0x2f   : > { %s311_s28 = sand.u32 1, %s10929_s26  }
  0x30   : > { %s8797_s30 = sshll.u32 %s311_s28, 4 }
  0x31   : > { %s313_s8 = scalar_lea.vmem [#allocation3], %s8797_s30 }
  0x32   : > { %10924 = dma.done.wait (%p10241_p6), [#allocation5], 28672  }
  0x33   : > { %10926 = vsyncadd (%p10241_p6), [#allocation5], 4294938624  ;;  %v10942_v5 = vmov 0   ;;  %v734_v6 = vld [vmem:[%s14462_s2 + $0x78] sm:$0xf]  ;;  %vm478_vm0 = vcmask 261120  }
  0x34   : > { %10274 = vset.pattern.permute.xlu1 %v10942_v5  ;;  %10273 = vset.pattern.permute.xlu0 %v10942_v5  ;;  %v718_v7 = vld [vmem:[%s14462_s2 + $0x38] sm:$0xf]  ;;  %v735_v9 = vld [vmem:[%s14462_s2 + $0x7c] sm:$0xf]  ;;  %v10277_v12 = vld [vmem:[%s14461_s1] sm:$0xff]   ;;  %p344_p4 = scmp.lt.s32.totalorder %s11004_s6, 1 }
  0x35   : > { %1098 = vperm.xlu0 %10273, %v734_v6   ;;  %906 = vperm.xlu1 %10274, %v718_v7   ;;  %v10275_v8 = vld [vmem:[%s313_s8 + $0x8] sm:$0xff]   ;;  %v10276_v11 = vld [vmem:[%s313_s8] sm:$0xff]  }
  0x36   : > { %v719_v10 = vld [vmem:[%s14462_s2 + $0x3c] sm:$0xf]  ;;  %10181 = vmatprep.subr.bf16.mxu0 %v10275_v8  ;;  %v732_v13 = vld [vmem:[%s14462_s2 + $0x70] sm:$0xf]  ;;  %v733_v14 = vld [vmem:[%s14462_s2 + $0x74] sm:$0xf]  ;;  %10185 = vmatprep.mubr.msk.bf16.mxu0 %vm478_vm0, %v10277_v12 }
  0x37   : > { %10182 = vmatpush3.bf16.msra.mxu0 %v10275_v8  ;;  %v10278_v15 = vld [vmem:[%s14461_s1 + $0x8] sm:$0xff]   ;;  %v10279_v16 = vld [vmem:[%s14461_s1 + $0x10] sm:$0xff]   ;;  %v10280_v21 = vld [vmem:[%s14461_s1 + $0x18] sm:$0xff]   ;;  %s14941_s6 = smov (!%p344_p4, %s11004_s6), 1 }
  0x38   : > { %10183 = vmatprep.subr.bf16.mxu0 %v10276_v11  ;;  %v717_v17 = vld [vmem:[%s14462_s2 + $0x34] sm:$0xf]  ;;  %v716_v18 = vld [vmem:[%s14462_s2 + $0x30] sm:$0xf]  ;;  %v731_v19 = vld [vmem:[%s14462_s2 + $0x6c] sm:$0xf]  ;;  %s346_s19 = scalar_lea.vmem %s14467_s7, %s14941_s6 }
  0x39   : > { %1110 = vperm.xlu0 %10273, %v735_v9   ;;  %918 = vperm.xlu1 %10274, %v719_v10   ;;  %v730_v20 = vld [vmem:[%s14462_s2 + $0x68] sm:$0xf]  ;;  %v10281_v22 = vld [vmem:[%s14461_s1 + $0x20] sm:$0xff]   ;;  %v715_v23 = vld [vmem:[%s14462_s2 + $0x2c] sm:$0xf] }
  0x3a   : > { %v714_v24 = vld [vmem:[%s14462_s2 + $0x28] sm:$0xf]  ;;  %v729_v25 = vld [vmem:[%s14462_s2 + $0x64] sm:$0xf]  ;;  %v728_v26 = vld [vmem:[%s14462_s2 + $0x60] sm:$0xf] }
  0x3b   : > { %10184 = vmatpush3.bf16.msra.mxu0 %v10276_v11  ;;  %v10282_v27 = vld [vmem:[%s14461_s1 + $0x28] sm:$0xff]   ;;  %v10283_v28 = vld [vmem:[%s14461_s1 + $0x30] sm:$0xff]   ;;  %v713_v29 = vld [vmem:[%s14462_s2 + $0x24] sm:$0xf] }
  0x3c   : > { %v712_v30 = vld [vmem:[%s14462_s2 + $0x20] sm:$0xf]  ;;  %v727_v31 = vld [vmem:[%s14462_s2 + $0x5c] sm:$0xf]  ;;  %v726_v32 = vld [vmem:[%s14462_s2 + $0x58] sm:$0xf] }
  0x3d   : > { %1074 = vperm.xlu0 %10273, %v732_v13   ;;  %1086 = vperm.xlu1 %10274, %v733_v14   ;;  %v10284_v33 = vld [vmem:[%s14461_s1 + $0x38] sm:$0xff]   ;;  %v10285_v34 = vld [vmem:[%s14461_s1 + $0x40] sm:$0xff]   ;;  %v725_v37 = vld [vmem:[%s14462_s2 + $0x54] sm:$0xf] }
  0x3e   : > { %10186 = vmatmul.mubr.msk.bf16.vlgmr.msra.gmra.mxu0 %vm478_vm0, %v10278_v15  ;;  %v711_v35 = vld [vmem:[%s14462_s2 + $0x1c] sm:$0xf]  ;;  %v710_v36 = vld [vmem:[%s14462_s2 + $0x18] sm:$0xf]  ;;  %v724_v38 = vld [vmem:[%s14462_s2 + $0x50] sm:$0xf] }
  0x3f   : > { %10189 = vmatprep.mubr.msk.bf16.mxu0 %vm478_vm0, %v10279_v16  ;;  %v10286_v39 = vld [vmem:[%s14461_s1 + $0x48] sm:$0xff]   ;;  %v10287_v40 = vld [vmem:[%s14461_s1 + $0x50] sm:$0xff]   ;;  %v10288_v45 = vld [vmem:[%s14461_s1 + $0x58] sm:$0xff]  }
  0x40   : > { %v709_v41 = vld [vmem:[%s14462_s2 + $0x14] sm:$0xf]  ;;  %v708_v42 = vld [vmem:[%s14462_s2 + $0x10] sm:$0xf]  ;;  %v723_v43 = vld [vmem:[%s14462_s2 + $0x4c] sm:$0xf] }
  0x41   : > { %894 = vperm.xlu1 %10274, %v717_v17   ;;  %882 = vperm.xlu0 %10273, %v716_v18   ;;  %v722_v44 = vld [vmem:[%s14462_s2 + $0x48] sm:$0xf]  ;;  %v10289_v46 = vld [vmem:[%s14461_s1 + $0x60] sm:$0xff]   ;;  %v707_v47 = vld [vmem:[%s14462_s2 + $0xc] sm:$0xf] }
  0x42   : > { %v706_v48 = vld [vmem:[%s14462_s2 + $0x8] sm:$0xf]  ;;  %v721_v49 = vld [vmem:[%s14462_s2 + $0x44] sm:$0xf]  ;;  %v720_v50 = vld [vmem:[%s14462_s2 + $0x40] sm:$0xf] }
  0x43   : > { %v10290_v51 = vld [vmem:[%s14461_s1 + $0x68] sm:$0xff]   ;;  %v10291_v52 = vld [vmem:[%s14461_s1 + $0x70] sm:$0xff]   ;;  %v705_v53 = vld [vmem:[%s14462_s2 + $0x4] sm:$0xf] }
  0x44   : > { %v704_v54 = vld [vmem:[%s14462_s2] sm:$0xf]  ;;  %v1744_v55 = vld [vmem:[%s14464_s4 + $0x7c] sm:$0xf]  ;;  %v1743_v56 = vld [vmem:[%s14464_s4 + $0x78] sm:$0xf] }
  0x45   : > { %1062 = vperm.xlu1 %10274, %v731_v19   ;;  %1050 = vperm.xlu0 %10273, %v730_v20   ;;  %v10292_v57 = vld [vmem:[%s14461_s1 + $0x78] sm:$0xff]   ;;  %v1742_v60 = vld [vmem:[%s14464_s4 + $0x74] sm:$0xf]  ;;  %v1741_v61 = vld [vmem:[%s14464_s4 + $0x70] sm:$0xf] }
  0x46   : > { %10190 = vmatmul.mubr.msk.bf16.gmra.mxu0 %vm478_vm0, %v10280_v21  ;;  %v1728_v58 = vld [vmem:[%s14464_s4 + $0x3c] sm:$0xf]  ;;  %v1727_v59 = vld [vmem:[%s14464_s4 + $0x38] sm:$0xf]  ;;  %v1726_v62 = vld [vmem:[%s14464_s4 + $0x34] sm:$0xf] }
  0x47   : > { %10193 = vmatprep.mubr.msk.bf16.mxu0 %vm478_vm0, %v10281_v22  ;;  %v1725_v63 = vld [vmem:[%s14464_s4 + $0x30] sm:$0xf]  ;;  %v1740_v0 = vld [vmem:[%s14464_s4 + $0x6c] sm:$0xf]  ;;  %v1739_v1 = vld [vmem:[%s14464_s4 + $0x68] sm:$0xf] }
  0x48   : > { %v1724_v2 = vld [vmem:[%s14464_s4 + $0x2c] sm:$0xf]  ;;  %v1723_v3 = vld [vmem:[%s14464_s4 + $0x28] sm:$0xf]  ;;  %v1738_v4 = vld [vmem:[%s14464_s4 + $0x64] sm:$0xf] }
  0x49   : > { %870 = vperm.xlu1 %10274, %v715_v23   ;;  %858 = vperm.xlu0 %10273, %v714_v24   ;;  %v1737_v5 = vld [vmem:[%s14464_s4 + $0x60] sm:$0xf]  ;;  %v1722_v6 = vld [vmem:[%s14464_s4 + $0x24] sm:$0xf]  ;;  %v1736_v8 = vld [vmem:[%s14464_s4 + $0x5c] sm:$0xf] }
  0x4a   : > { %v1721_v7 = vld [vmem:[%s14464_s4 + $0x20] sm:$0xf]  ;;  %v1735_v9 = vld [vmem:[%s14464_s4 + $0x58] sm:$0xf]  ;;  %v1720_v10 = vld [vmem:[%s14464_s4 + $0x1c] sm:$0xf] }
  0x4b   : > { %v1719_v11 = vld [vmem:[%s14464_s4 + $0x18] sm:$0xf]  ;;  %v1734_v12 = vld [vmem:[%s14464_s4 + $0x54] sm:$0xf]  ;;  %v1733_v13 = vld [vmem:[%s14464_s4 + $0x50] sm:$0xf] }
  0x4c   : > { %v1718_v14 = vld [vmem:[%s14464_s4 + $0x14] sm:$0xf]  ;;  %v1717_v15 = vld [vmem:[%s14464_s4 + $0x10] sm:$0xf]  ;;  %v1732_v16 = vld [vmem:[%s14464_s4 + $0x4c] sm:$0xf] }
  0x4d   : > { %1038 = vperm.xlu1 %10274, %v729_v25   ;;  %1026 = vperm.xlu0 %10273, %v728_v26   ;;  %v1731_v17 = vld [vmem:[%s14464_s4 + $0x48] sm:$0xf]  ;;  %v1716_v18 = vld [vmem:[%s14464_s4 + $0xc] sm:$0xf]  ;;  %v1730_v20 = vld [vmem:[%s14464_s4 + $0x44] sm:$0xf] }
  0x4e   : > { %10194 = vmatmul.mubr.msk.bf16.gmra.mxu0 %vm478_vm0, %v10282_v27  ;;  %v1715_v19 = vld [vmem:[%s14464_s4 + $0x8] sm:$0xf]  ;;  %v1729_v21 = vld [vmem:[%s14464_s4 + $0x40] sm:$0xf]  ;;  %v1714_v22 = vld [vmem:[%s14464_s4 + $0x4] sm:$0xf] }
  0x4f   : > { %10197 = vmatprep.mubr.msk.bf16.mxu0 %vm478_vm0, %v10283_v28  ;;  %v1713_v23 = vld [vmem:[%s14464_s4] sm:$0xf]  ;;  %v8960_v26 = vld [vmem:[%s14464_s4 + $0xfc] sm:$0xf]  ;;  %v8959_v27 = vld [vmem:[%s14464_s4 + $0xf8] sm:$0xf] }
  0x51   : > { %846 = vperm.xlu1 %10274, %v713_v29   ;;  %834 = vperm.xlu0 %10273, %v712_v30   ;;  %v8944_v30 = vld [vmem:[%s14464_s4 + $0xbc] sm:$0xf] }
  0x55   : > { %1014 = vperm.xlu1 %10274, %v727_v31   ;;  %1002 = vperm.xlu0 %10273, %v726_v32   ;;  %v8943_v31 = vld [vmem:[%s14464_s4 + $0xb8] sm:$0xf] }
  0x56   : > { %10198 = vmatmul.mubr.msk.bf16.gmra.mxu0 %vm478_vm0, %v10284_v33 }
  0x57   : > { %10201 = vmatprep.mubr.msk.bf16.mxu0 %vm478_vm0, %v10285_v34  ;;  %v8958_v34 = vld [vmem:[%s14464_s4 + $0xf4] sm:$0xf] }
  0x59   : > { %822 = vperm.xlu1 %10274, %v711_v35   ;;  %810 = vperm.xlu0 %10273, %v710_v36   ;;  %v8957_v35 = vld [vmem:[%s14464_s4 + $0xf0] sm:$0xf] }
  0x5d   : > { %990 = vperm.xlu1 %10274, %v725_v37   ;;  %978 = vperm.xlu0 %10273, %v724_v38   ;;  %v8942_v38 = vld [vmem:[%s14464_s4 + $0xb4] sm:$0xf] }
  0x5e   : > { %10202 = vmatmul.mubr.msk.bf16.gmra.mxu0 %vm478_vm0, %v10286_v39  ;;  %v8941_v39 = vld [vmem:[%s14464_s4 + $0xb0] sm:$0xf] }
  0x5f   : > { %10205 = vmatprep.mubr.msk.bf16.mxu0 %vm478_vm0, %v10287_v40 }
  0x61   : > { %798 = vperm.xlu1 %10274, %v709_v41   ;;  %786 = vperm.xlu0 %10273, %v708_v42   ;;  %v8956_v42 = vld [vmem:[%s14464_s4 + $0xec] sm:$0xf] }
  0x65   : > { %966 = vperm.xlu1 %10274, %v723_v43   ;;  %954 = vperm.xlu0 %10273, %v722_v44   ;;  %v8955_v43 = vld [vmem:[%s14464_s4 + $0xe8] sm:$0xf] }
  0x66   : > { %10206 = vmatmul.mubr.msk.bf16.gmra.mxu0 %vm478_vm0, %v10288_v45 }
  0x67   : > { %10209 = vmatprep.mubr.msk.bf16.mxu0 %vm478_vm0, %v10289_v46  ;;  %v8940_v46 = vld [vmem:[%s14464_s4 + $0xac] sm:$0xf] }
  0x69   : > { %774 = vperm.xlu1 %10274, %v707_v47   ;;  %762 = vperm.xlu0 %10273, %v706_v48   ;;  %v8939_v47 = vld [vmem:[%s14464_s4 + $0xa8] sm:$0xf] }
  0x6d   : > { %942 = vperm.xlu1 %10274, %v721_v49   ;;  %930 = vperm.xlu0 %10273, %v720_v50   ;;  %v8954_v50 = vld [vmem:[%s14464_s4 + $0xe4] sm:$0xf] }
  0x6e   : > { %10210 = vmatmul.mubr.msk.bf16.gmra.mxu0 %vm478_vm0, %v10290_v51  ;;  %v8953_v51 = vld [vmem:[%s14464_s4 + $0xe0] sm:$0xf] }
  0x6f   : > { %10213 = vmatprep.mubr.msk.bf16.mxu0 %vm478_vm0, %v10291_v52 }
  0x71   : > { %750 = vperm.xlu1 %10274, %v705_v53   ;;  %738 = vperm.xlu0 %10273, %v704_v54   ;;  %v8938_v54 = vld [vmem:[%s14464_s4 + $0xa4] sm:$0xf] }
  0x75   : > { %2119 = vperm.xlu1 %10274, %v1744_v55   ;;  %2107 = vperm.xlu0 %10273, %v1743_v56   ;;  %v8937_v55 = vld [vmem:[%s14464_s4 + $0xa0] sm:$0xf] }
  0x76   : > { %10214 = vmatmul.mubr.msk.bf16.gmra.mxu0 %vm478_vm0, %v10292_v57 }
  0x79   : > { %1927 = vperm.xlu1 %10274, %v1728_v58   ;;  %1915 = vperm.xlu0 %10273, %v1727_v59   ;;  %v8952_v58 = vld [vmem:[%s14464_s4 + $0xdc] sm:$0xf]  ;;  %v8951_v59 = vld [vmem:[%s14464_s4 + $0xd8] sm:$0xf] }
  0x7d   : > { %2095 = vperm.xlu1 %10274, %v1742_v60   ;;  %2083 = vperm.xlu0 %10273, %v1741_v61  }
  0x81   : > { %1903 = vperm.xlu1 %10274, %v1726_v62   ;;  %1891 = vperm.xlu0 %10273, %v1725_v63   ;;  %v8936_v62 = vld [vmem:[%s14464_s4 + $0x9c] sm:$0xf]  ;;  %v8935_v63 = vld [vmem:[%s14464_s4 + $0x98] sm:$0xf] }
  0x85   : > { %2071 = vperm.xlu1 %10274, %v1740_v0   ;;  %2059 = vperm.xlu0 %10273, %v1739_v1  }
  0x89   : > { %1879 = vperm.xlu1 %10274, %v1724_v2   ;;  %1867 = vperm.xlu0 %10273, %v1723_v3   ;;  %v8950_v2 = vld [vmem:[%s14464_s4 + $0xd4] sm:$0xf]  ;;  %v8949_v3 = vld [vmem:[%s14464_s4 + $0xd0] sm:$0xf] }
  0x8d   : > { %2047 = vperm.xlu1 %10274, %v1738_v4   ;;  %2035 = vperm.xlu0 %10273, %v1737_v5  }
  0x91   : > { %1855 = vperm.xlu1 %10274, %v1722_v6   ;;  %1843 = vperm.xlu0 %10273, %v1721_v7   ;;  %v8934_v6 = vld [vmem:[%s14464_s4 + $0x94] sm:$0xf]  ;;  %v8933_v7 = vld [vmem:[%s14464_s4 + $0x90] sm:$0xf] }
  0x95   : > { %2023 = vperm.xlu1 %10274, %v1736_v8   ;;  %2011 = vperm.xlu0 %10273, %v1735_v9  }
  0x99   : > { %1831 = vperm.xlu1 %10274, %v1720_v10   ;;  %1819 = vperm.xlu0 %10273, %v1719_v11   ;;  %v8948_v10 = vld [vmem:[%s14464_s4 + $0xcc] sm:$0xf]  ;;  %v8947_v11 = vld [vmem:[%s14464_s4 + $0xc8] sm:$0xf] }
  0x9d   : > { %1999 = vperm.xlu1 %10274, %v1734_v12   ;;  %1987 = vperm.xlu0 %10273, %v1733_v13  }
  0xa1   : > { %1807 = vperm.xlu1 %10274, %v1718_v14   ;;  %1795 = vperm.xlu0 %10273, %v1717_v15   ;;  %v8932_v14 = vld [vmem:[%s14464_s4 + $0x8c] sm:$0xf]  ;;  %v8931_v15 = vld [vmem:[%s14464_s4 + $0x88] sm:$0xf] }
  0xa5   : > { %1975 = vperm.xlu1 %10274, %v1732_v16   ;;  %1963 = vperm.xlu0 %10273, %v1731_v17  }
  0xa9   : > { %1783 = vperm.xlu1 %10274, %v1716_v18   ;;  %1771 = vperm.xlu0 %10273, %v1715_v19   ;;  %v8946_v18 = vld [vmem:[%s14464_s4 + $0xc4] sm:$0xf]  ;;  %v8945_v19 = vld [vmem:[%s14464_s4 + $0xc0] sm:$0xf] }
  0xad   : > { %1951 = vperm.xlu1 %10274, %v1730_v20   ;;  %1939 = vperm.xlu0 %10273, %v1729_v21  }
  0xb0   : > { %v11307_v24 = vpop.permute.xlu0 %1098  ;;  %v11309_v25 = vpop.permute.xlu1 %906 }
  0xb1   : > { %1759 = vperm.xlu1 %10274, %v1714_v22   ;;  %1747 = vperm.xlu0 %10273, %v1713_v23   ;;  %v8930_v22 = vld [vmem:[%s14464_s4 + $0x84] sm:$0xf]  ;;  %v8929_v23 = vld [vmem:[%s14464_s4 + $0x80] sm:$0xf] }
  0xb4   : > { %v11317_v28 = vpop.permute.xlu0 %1110  ;;  %v11319_v29 = vpop.permute.xlu1 %918 }
  0xb5   : > { %3130 = vperm.xlu1 %10274, %v8960_v26   ;;  %3118 = vperm.xlu0 %10273, %v8959_v27  }
  0xb8   : > { %v11327_v32 = vpop.permute.xlu0 %1074  ;;  %v11329_v33 = vpop.permute.xlu1 %1086 }
  0xb9   : > { %2938 = vperm.xlu1 %10274, %v8944_v30   ;;  %2926 = vperm.xlu0 %10273, %v8943_v31   ;;  %v9040_v30 = vld [vmem:[%s14464_s4 + $0x17c] sm:$0xf]  ;;  %v9039_v31 = vld [vmem:[%s14464_s4 + $0x178] sm:$0xf] }
  0xbc   : > { %v11337_v36 = vpop.permute.xlu1 %894  ;;  %v11339_v37 = vpop.permute.xlu0 %882 }
  0xbd   : > { %3106 = vperm.xlu1 %10274, %v8958_v34   ;;  %3094 = vperm.xlu0 %10273, %v8957_v35   ;;  %v10295_v34 = vld [vmem:[#allocation4 + $0x54] ss:$8 sps:$4 sm:$0xff]   ;;  %v10298_v35 = vld [vmem:[#allocation4 + $0x4] ss:$8 sps:$4 sm:$0xff]  }
  0xbe   : > { %1608 = vmatprep.mubr.bf16.mxu1 %v10295_v34  ;;  %1568 = vmatprep.mubr.bf16.mxu0 %v10298_v35  ;;  %v9034_v35 = vld [vmem:[%s14464_s4 + $0x164] sm:$0xf] }
  0xc0   : > { %v11347_v40 = vpop.permute.xlu1 %1062  ;;  %v11349_v41 = vpop.permute.xlu0 %1050 }
  0xc1   : > { %2914 = vperm.xlu1 %10274, %v8942_v38   ;;  %2902 = vperm.xlu0 %10273, %v8941_v39  }
  0xc4   : > { %v11357_v44 = vpop.permute.xlu1 %870  ;;  %v11359_v45 = vpop.permute.xlu0 %858 }
  0xc5   : > { %3082 = vperm.xlu1 %10274, %v8956_v42   ;;  %3070 = vperm.xlu0 %10273, %v8955_v43   ;;  %v9024_v42 = vld [vmem:[%s14464_s4 + $0x13c] sm:$0xf]  ;;  %v9023_v43 = vld [vmem:[%s14464_s4 + $0x138] sm:$0xf] }
  0xc8   : > { %v11367_v48 = vpop.permute.xlu1 %1038  ;;  %v11369_v49 = vpop.permute.xlu0 %1026 }
  0xc9   : > { %2890 = vperm.xlu1 %10274, %v8940_v46   ;;  %2878 = vperm.xlu0 %10273, %v8939_v47  }
  0xcc   : > { %v11377_v52 = vpop.permute.xlu1 %846  ;;  %v11379_v53 = vpop.permute.xlu0 %834 }
  0xcd   : > { %3058 = vperm.xlu1 %10274, %v8954_v50   ;;  %3046 = vperm.xlu0 %10273, %v8953_v51   ;;  %v9038_v50 = vld [vmem:[%s14464_s4 + $0x174] sm:$0xf]  ;;  %v9037_v51 = vld [vmem:[%s14464_s4 + $0x170] sm:$0xf] }
  0xd0   : > { %v11387_v56 = vpop.permute.xlu1 %1014  ;;  %v11389_v57 = vpop.permute.xlu0 %1002 }
  0xd1   : > { %2866 = vperm.xlu1 %10274, %v8938_v54   ;;  %2854 = vperm.xlu0 %10273, %v8937_v55  }
  0xd4   : > { %v11397_v60 = vpop.permute.xlu1 %822  ;;  %v11399_v61 = vpop.permute.xlu0 %810 }
  0xd5   : > { %3034 = vperm.xlu1 %10274, %v8952_v58   ;;  %3022 = vperm.xlu0 %10273, %v8951_v59   ;;  %v9022_v58 = vld [vmem:[%s14464_s4 + $0x134] sm:$0xf]  ;;  %v9021_v59 = vld [vmem:[%s14464_s4 + $0x130] sm:$0xf] }
  0xd8   : > { %v11407_v0 = vpop.permute.xlu1 %990  ;;  %v11409_v1 = vpop.permute.xlu0 %978 }
  0xd9   : > { %2842 = vperm.xlu1 %10274, %v8936_v62   ;;  %2830 = vperm.xlu0 %10273, %v8935_v63  }
  0xdc   : > { %v11417_v4 = vpop.permute.xlu1 %798  ;;  %v11419_v5 = vpop.permute.xlu0 %786 }
  0xdd   : > { %3010 = vperm.xlu1 %10274, %v8950_v2   ;;  %2998 = vperm.xlu0 %10273, %v8949_v3  }
  0xe0   : > { %v11427_v8 = vpop.permute.xlu1 %966  ;;  %v11429_v9 = vpop.permute.xlu0 %954 }
  0xe1   : > { %2818 = vperm.xlu1 %10274, %v8934_v6   ;;  %2806 = vperm.xlu0 %10273, %v8933_v7   ;;  %v9036_v6 = vld [vmem:[%s14464_s4 + $0x16c] sm:$0xf]  ;;  %v9035_v7 = vld [vmem:[%s14464_s4 + $0x168] sm:$0xf] }
  0xe4   : > { %v11437_v12 = vpop.permute.xlu1 %774  ;;  %v11439_v13 = vpop.permute.xlu0 %762 }
  0xe5   : > { %2986 = vperm.xlu1 %10274, %v8948_v10   ;;  %2974 = vperm.xlu0 %10273, %v8947_v11  }
  0xe8   : > { %v11447_v16 = vpop.permute.xlu1 %942  ;;  %v11449_v17 = vpop.permute.xlu0 %930 }
  0xe9   : > { %2794 = vperm.xlu1 %10274, %v8932_v14   ;;  %2782 = vperm.xlu0 %10273, %v8931_v15  }
  0xec   : > { %v11457_v20 = vpop.permute.xlu1 %750  ;;  %v11459_v21 = vpop.permute.xlu0 %738 }
  0xed   : > { %2962 = vperm.xlu1 %10274, %v8946_v18   ;;  %2950 = vperm.xlu0 %10273, %v8945_v19   ;;  %v9020_v19 = vld [vmem:[%s14464_s4 + $0x12c] sm:$0xf] }
  0xf0   : > { %v11467_v26 = vpop.permute.xlu1 %2119  ;;  %v11469_v27 = vpop.permute.xlu0 %2107 }
  0xf1   : > { %14492 = vst [vmem:[#allocation7_spill] sm:$0xff] %v11467_v26  ;;  %14493 = vst [vmem:[#allocation8_spill] sm:$0xff] %v11469_v27  ;;  %2770 = vperm.xlu1 %10274, %v8930_v22   ;;  %2758 = vperm.xlu0 %10273, %v8929_v23   ;;  %v9019_v22 = vld [vmem:[%s14464_s4 + $0x128] sm:$0xf] }
  0xf2   : > { %v9011_v27 = vld [vmem:[%s14464_s4 + $0x108] sm:$0xf] }
  0xf4   : > { %v11477_v38 = vpop.permute.xlu1 %1927  ;;  %v11479_v39 = vpop.permute.xlu0 %1915 }
  0xf5   : > { %14494 = vst [vmem:[#allocation9_spill] sm:$0xff] %v11477_v38  ;;  %14495 = vst [vmem:[#allocation10_spill] sm:$0xff] %v11479_v39  ;;  %4141 = vperm.xlu1 %10274, %v9040_v30   ;;  %4129 = vperm.xlu0 %10273, %v9039_v31  }
  0xf8   : > { %v11487_v46 = vpop.permute.xlu1 %2095  ;;  %v11489_v47 = vpop.permute.xlu0 %2083 }
  0xf9   : > { %14496 = vst [vmem:[#allocation11_spill] sm:$0xff] %v11487_v46  ;;  %14497 = vst [vmem:[#allocation12_spill] sm:$0xff] %v11489_v47  ;;  %3949 = vperm.xlu1 %10274, %v9024_v42   ;;  %3937 = vperm.xlu0 %10273, %v9023_v43   ;;  %v9033_v42 = vld [vmem:[%s14464_s4 + $0x160] sm:$0xf]  ;;  %v744_v47 = vlaneseq }
  0xfb   : > { %v11651_v26 = vshrl.u32 %v744_v47, 7 }
  0xfc   : > { %v11497_v54 = vpop.permute.xlu1 %1903  ;;  %v11499_v55 = vpop.permute.xlu0 %1891 }
  0xfd   : > { %14498 = vst [vmem:[#allocation13_spill] sm:$0xff] %v11497_v54  ;;  %14499 = vst [vmem:[#allocation14_spill] sm:$0xff] %v11499_v55  ;;  %4117 = vperm.xlu1 %10274, %v9038_v50   ;;  %4105 = vperm.xlu0 %10273, %v9037_v51   ;;  %v9031_v50 = vld [vmem:[%s14464_s4 + $0x158] sm:$0xf] }
  0xfe   : > { %v11507_v62 = vpop.f32.mrf.mxu0  ;;  %14525 = vst [vmem:[#allocation40_spill] sm:$0xff] %v11651_v26 }
  0xff   : > { %14500 = vst [vmem:[#allocation15_spill] sm:$0xff] %v11507_v62 }
 0x100   : > { %v11509_v63 = vpop.permute.xlu1 %2071  ;;  %v11511_v2 = vpop.permute.xlu0 %2059 }
 0x101   : > { %14501 = vst [vmem:[#allocation16_spill] sm:$0xff] %v11509_v63  ;;  %14502 = vst [vmem:[#allocation17_spill] sm:$0xff] %v11511_v2  ;;  %3925 = vperm.xlu1 %10274, %v9022_v58   ;;  %3913 = vperm.xlu0 %10273, %v9021_v59   ;;  %v11513_v3 = vpop.f32.mrf.mxu0 }
 0x102   : > { %14503 = vst [vmem:[#allocation18_spill] sm:$0xff] %v11513_v3 }
 0x103   : > { %v11521_v10 = vpop.f32.mrf.mxu0 }
 0x104   : > { %14504 = vst [vmem:[#allocation19_spill] sm:$0xff] %v11521_v10  ;;  %v11525_v14 = vpop.permute.xlu1 %1879  ;;  %v11527_v15 = vpop.permute.xlu0 %1867 }
 0x105   : > { %14505 = vst [vmem:[#allocation20_spill] sm:$0xff] %v11525_v14  ;;  %14506 = vst [vmem:[#allocation21_spill] sm:$0xff] %v11527_v15  ;;  %4093 = vperm.xlu1 %10274, %v9036_v6   ;;  %4081 = vperm.xlu0 %10273, %v9035_v7   ;;  %v11529_v18 = vpop.f32.mrf.mxu0  ;;  %v9018_v6 = vld [vmem:[%s14464_s4 + $0x124] sm:$0xf]  ;;  %v9017_v7 = vld [vmem:[%s14464_s4 + $0x120] sm:$0xf] }
 0x106   : > { %14507 = vst [vmem:[#allocation22_spill] sm:$0xff] %v11529_v18 }
 0x107   : > { %v11537_v23 = vpop.f32.mrf.mxu0 }
 0x108   : > { %v11539_v30 = vpop.permute.xlu1 %2047  ;;  %v11541_v31 = vpop.permute.xlu0 %2035 }
 0x109   : > { %14508 = vst [vmem:[#allocation23_spill] sm:$0xff] %v11539_v30  ;;  %14509 = vst [vmem:[#allocation24_spill] sm:$0xff] %v11541_v31  ;;  %3901 = vperm.xlu1 %10274, %v9020_v19   ;;  %3889 = vperm.xlu0 %10273, %v9019_v22   ;;  %v11543_v34 = vpop.f32.mrf.mxu0 }
 0x10b   : > { %v11551_v43 = vpop.f32.mrf.mxu0 }
 0x10c   : > { %v11555_v51 = vpop.permute.xlu1 %1855  ;;  %v11557_v58 = vpop.permute.xlu0 %1843 }
 0x10d   : > { %14510 = vst [vmem:[#allocation25_spill] sm:$0xff] %v11555_v51  ;;  %14511 = vst [vmem:[#allocation26_spill] sm:$0xff] %v11557_v58  ;;  %4069 = vperm.xlu1 %10274, %v9034_v35   ;;  %4057 = vperm.xlu0 %10273, %v9033_v42   ;;  %v11559_v59 = vpop.f32.mrf.mxu0  ;;  %v9032_v42 = vld [vmem:[%s14464_s4 + $0x15c] sm:$0xf] }
 0x10f   : > { %v11567_v19 = vpop.f32.mrf.mxu0 }
 0x110   : > { %v11569_v22 = vpop.permute.xlu1 %2023  ;;  %v11571_v11 = vpop.permute.xlu0 %2011 }
 0x111   : > { %14512 = vst [vmem:[#allocation27_spill] sm:$0xff] %v11569_v22  ;;  %14513 = vst [vmem:[#allocation28_spill] sm:$0xff] %v11571_v11  ;;  %3877 = vperm.xlu1 %10274, %v9018_v6   ;;  %3865 = vperm.xlu0 %10273, %v9017_v7   ;;  %v11573_v35 = vpop.f32.mrf.mxu0  ;;  %v9016_v7 = vld [vmem:[%s14464_s4 + $0x11c] sm:$0xf]  ;;  %v9015_v11 = vld [vmem:[%s14464_s4 + $0x118] sm:$0xf] }
 0x113   : > { %v11581_v58 = vpop.f32.mrf.mxu0 }
 0x114   : > { %v11583_v51 = vpop.permute.xlu1 %1831  ;;  %v11585_v31 = vpop.permute.xlu0 %1819 }
 0x115   : > { %14514 = vst [vmem:[#allocation29_spill] sm:$0xff] %v11583_v51  ;;  %14515 = vst [vmem:[#allocation30_spill] sm:$0xff] %v11585_v31  ;;  %4045 = vperm.xlu1 %10274, %v9032_v42   ;;  %4033 = vperm.xlu0 %10273, %v9031_v50   ;;  %v11587_v6 = vpop.f32.mrf.mxu0  ;;  %v9030_v50 = vld [vmem:[%s14464_s4 + $0x154] sm:$0xf]  ;;  %v9029_v31 = vld [vmem:[%s14464_s4 + $0x150] sm:$0xf] }
 0x117   : > { %v11595_v22 = vpop.f32.mrf.mxu0 }
 0x118   : > { %v11597_v30 = vpop.permute.xlu1 %1999  ;;  %v11599_v15 = vpop.permute.xlu0 %1987 }
 0x119   : > { %14516 = vst [vmem:[#allocation31_spill] sm:$0xff] %v11597_v30  ;;  %14517 = vst [vmem:[#allocation32_spill] sm:$0xff] %v11599_v15  ;;  %3853 = vperm.xlu1 %10274, %v9016_v7   ;;  %3841 = vperm.xlu0 %10273, %v9015_v11   ;;  %v11601_v42 = vpop.f32.mrf.mxu0  ;;  %v9014_v11 = vld [vmem:[%s14464_s4 + $0x114] sm:$0xf]  ;;  %v9013_v15 = vld [vmem:[%s14464_s4 + $0x110] sm:$0xf] }
 0x11b   : > { %v11609_v51 = vpop.f32.mrf.mxu0 }
 0x11c   : > { %v11611_v14 = vpop.permute.xlu1 %1807  ;;  %v11613_v2 = vpop.permute.xlu0 %1795  ;;  %v695_v3 = vpack.c.bf16 %v11609_v51, %v11595_v22  ;;  %v9120_v51 = vld [vmem:[%s14464_s4 + $0x1fc] sm:$0xf] }
 0x11d   : > { %14518 = vst [vmem:[#allocation33_spill] sm:$0xff] %v11611_v14  ;;  %14519 = vst [vmem:[#allocation34_spill] sm:$0xff] %v11613_v2  ;;  %4021 = vperm.xlu1 %10274, %v9030_v50   ;;  %4009 = vperm.xlu0 %10273, %v9029_v31   ;;  %v11615_v7 = vpop.f32.mrf.mxu0  ;;  %v9028_v31 = vld [vmem:[%s14464_s4 + $0x14c] sm:$0xf]  ;;  %v9027_v2 = vld [vmem:[%s14464_s4 + $0x148] sm:$0xf] }
 0x11e   : > { %v10943_v14 = vmov 839922192  }
 0x11f   : > { %v11623_v30 = vpop.f32.mrf.mxu0  ;;  %v742_v54 = vunpack.c.l.s4 %v10943_v14 }
 0x120   : > { %v11625_v63 = vpop.permute.xlu1 %1975  ;;  %v11627_v55 = vpop.permute.xlu0 %1963 }
 0x121   : > { %14520 = vst [vmem:[#allocation35_spill] sm:$0xff] %v11625_v63  ;;  %14521 = vst [vmem:[#allocation36_spill] sm:$0xff] %v11627_v55  ;;  %3829 = vperm.xlu1 %10274, %v9014_v11   ;;  %3817 = vperm.xlu0 %10273, %v9013_v15   ;;  %v11629_v50 = vpop.f32.mrf.mxu0  ;;  %v9012_v11 = vld [vmem:[%s14464_s4 + $0x10c] sm:$0xf]  ;;  %v743_v14 = vunpack.c.0.s8 %v742_v54  ;;  %v9025_v54 = vld [vmem:[%s14464_s4 + $0x140] sm:$0xf] }
 0x123   : > { %v11637_v46 = vpop.f32.mrf.mxu0  ;;  %v11668_v47 = vsub.s32 %v743_v14, %v11651_v26  ;;  %v9010_v14 = vld [vmem:[%s14464_s4 + $0x104] sm:$0xf]  ;;  %v9009_v26 = vld [vmem:[%s14464_s4 + $0x100] sm:$0xf] }
 0x124   : > { %v11639_v63 = vpop.permute.xlu1 %1783  ;;  %v11641_v55 = vpop.permute.xlu0 %1771 }
 0x125   : > { %14522 = vst [vmem:[#allocation37_spill] sm:$0xff] %v11639_v63  ;;  %14523 = vst [vmem:[#allocation38_spill] sm:$0xff] %v11641_v55  ;;  %3997 = vperm.xlu1 %10274, %v9028_v31   ;;  %3985 = vperm.xlu0 %10273, %v9027_v2   ;;  %v11643_v15 = vpop.f32.mrf.mxu0  ;;  %v9026_v31 = vld [vmem:[%s14464_s4 + $0x144] sm:$0xf]  ;;  %v1071_v10 = vrot.slane %v11347_v40, %v11668_v47  ;;  %v1107_v40 = vrot.slane %v11307_v24, %v11668_v47 }
 0x126   : > { %14524 = vst [vmem:[#allocation39_spill] sm:$0xff] %v11643_v15  ;;  %v1083_v24 = vrot.slane %v11327_v32, %v11668_v47  ;;  %v855_v32 = vrot.slane %v11377_v52, %v11668_v47 }
 0x127   : > { %v11653_v39 = vpop.f32.mrf.mxu0 }
 0x128   : > { %v11655_v63 = vpop.permute.xlu1 %1951  ;;  %v11657_v55 = vpop.permute.xlu0 %1939 }
 0x129   : > { %14526 = vst [vmem:[#allocation41_spill] sm:$0xff] %v11655_v63  ;;  %14527 = vst [vmem:[#allocation42_spill] sm:$0xff] %v11657_v55  ;;  %3805 = vperm.xlu1 %10274, %v9012_v11   ;;  %3793 = vperm.xlu0 %10273, %v9011_v27   ;;  %v11659_v2 = vpop.f32.mrf.mxu0  ;;  %v915_v27 = vrot.slane %v11309_v25, %v11668_v47  ;;  %v927_v11 = vrot.slane %v11319_v29, %v11668_v47 }
 0x12a   : > { %v891_v25 = vrot.slane %v11339_v37, %v11668_v47  ;;  %v879_v37 = vrot.slane %v11357_v44, %v11668_v47 }
 0x12b   : > { %v11670_v38 = vpop.f32.mrf.mxu0 }
 0x12c   : > { %v11672_v63 = vpop.permute.xlu1 %1759  ;;  %v11674_v55 = vpop.permute.xlu0 %1747 }
 0x12d   : > { %14528 = vst [vmem:[#allocation43_spill] sm:$0xff] %v11672_v63  ;;  %14529 = vst [vmem:[#allocation44_spill] sm:$0xff] %v11674_v55  ;;  %3973 = vperm.xlu1 %10274, %v9026_v31   ;;  %3961 = vperm.xlu0 %10273, %v9025_v54   ;;  %v11680_v18 = vpop.f32.mrf.mxu0  ;;  %v903_v55 = vrot.slane %v11337_v36, %v11668_v47  ;;  %v8840_v54 = vcombine.low %v915_v27, %v927_v11 }
 0x12e   : > { %v1059_v36 = vrot.slane %v11349_v41, %v11668_v47  ;;  %v694_v41 = vpack.c.bf16 %v11615_v7, %v11601_v42 }
 0x12f   : > { %v10211_v63 = vpop.f32.mrf.mxu0  ;;  %v8839_v27 = vcombine.low %v891_v25, %v903_v55  ;;  %v1095_v55 = vrot.slane %v11329_v33, %v11668_v47  ;;  %v9104_v25 = vld [vmem:[%s14464_s4 + $0x1bc] sm:$0xf]  ;;  %v693_v33 = vpack.c.bf16 %v11581_v58, %v11567_v19  ;;  %v9118_v19 = vld [vmem:[%s14464_s4 + $0x1f4] sm:$0xf] }
 0x130   : > { %v11692_v29 = vpop.permute.xlu1 %3130  ;;  %v11694_v31 = vpop.permute.xlu0 %3118  ;;  %v8846_v42 = vcombine.low %v1059_v36, %v1071_v10  ;;  %v1011_v36 = vrot.slane %v11389_v57, %v11668_v47 }
 0x131   : > { %14530 = vst [vmem:[#allocation45_spill] sm:$0xff] %v11692_v29  ;;  %14531 = vst [vmem:[#allocation46_spill] sm:$0xff] %v11694_v31  ;;  %3781 = vperm.xlu1 %10274, %v9010_v14   ;;  %3769 = vperm.xlu0 %10273, %v9009_v26   ;;  %v11698_v62 = vpop.f32.mrf.mxu0  ;;  %v867_v31 = vrot.slane %v11359_v45, %v11668_v47  ;;  %v9119_v26 = vld [vmem:[%s14464_s4 + $0x1f8] sm:$0xf]  ;;  %v1119_v45 = vrot.slane %v11317_v28, %v11668_v47 }
 0x132   : > { %v11724_v14 = vadd.bf16 %v8840_v54, %v695_v3  ;;  %v9103_v28 = vld [vmem:[%s14464_s4 + $0x1b8] sm:$0xf]  ;;  %v1035_v3 = vrot.slane %v11369_v49, %v11668_v47  ;;  %v1023_v54 = vrot.slane %v11387_v56, %v11668_v47  ;;  %v819_v56 = vrot.slane %v11399_v61, %v11668_v47 }
 0x133   : > { %v10212_v22 = vpop.f32.mrf.mxu0  ;;  %v8838_v7 = vcombine.low %v867_v31, %v879_v37  ;;  %v843_v31 = vrot.slane %v11379_v53, %v11668_v47  ;;  %v831_v53 = vrot.slane %v11397_v60, %v11668_v47 }
 0x134   : > { %v11718_v44 = vpop.permute.xlu1 %2938  ;;  %v11720_v11 = vpop.permute.xlu0 %2926  ;;  %v701_v29 = vpack.c.bf16 %v10212_v22, %v10211_v63  ;;  %v1047_v63 = vrot.slane %v11367_v48, %v11668_v47  ;;  %v11750_v48 = vadd.bf16 %v8839_v27, %v694_v41  ;;  %v1270_v52 = vmul.bf16 1069105081, %v11724_v14 }
 0x135   : > { %14532 = vst [vmem:[#allocation47_spill] sm:$0xff] %v11718_v44  ;;  %14533 = vst [vmem:[#allocation48_spill] sm:$0xff] %v11720_v11  ;;  %5152 = vperm.xlu1 %10274, %v9120_v51   ;;  %5140 = vperm.xlu0 %10273, %v9119_v26   ;;  %v660_v15 = vpop.f32.mrf.mxu0  ;;  %v8848_v26 = vcombine.low %v1107_v40, %v1119_v45  ;;  %v8847_v22 = vcombine.low %v1083_v24, %v1095_v55  ;;  %vm1239_vm2 = vcmp.gt.bf16.partialorder %v11724_v14, 0 }
 0x136   : > { %v11757_v51 = vadd.bf16 %v8846_v42, %v701_v29  ;;  %v700_v57 = vpack.c.bf16 %v660_v15, %v11698_v62  ;;  %v9117_v29 = vld [vmem:[%s14464_s4 + $0x1f0] sm:$0xf]  ;;  %v8845_v27 = vcombine.low %v1035_v3, %v1047_v63  ;;  %v11770_v41 = vadd.bf16 %v8838_v7, %v693_v33 }
 0x137   : > { %v10215_v10 = vpop.f32.mrf.mxu0  ;;  %v8837_v60 = vcombine.low %v843_v31, %v855_v32  ;;  %v1267_v61 = vmul.bf16 1069105081, %v11750_v48  ;;  %10629 = vpow.bf16 %v1270_v52  ;;  %v699_v40 = vpack.c.bf16 %v11670_v38, %v11653_v39  ;;  %v9102_v32 = vld [vmem:[%s14464_s4 + $0x1b4] sm:$0xf] }
 0x138   : > { %v11752_v37 = vpop.permute.xlu1 %3106  ;;  %v11754_v49 = vpop.permute.xlu0 %3094  ;;  %v1288_v45 = vmul.bf16 1069105081, %v11757_v51  ;;  %v8836_v55 = vcombine.low %v819_v56, %v831_v53  ;;  %v11782_v7 = vadd.bf16 %v8845_v27, %v700_v57  ;;  %v999_v38 = vrot.slane %v11407_v0, %v11668_v47 }
 0x139   : > { %14534 = vst [vmem:[#allocation49_spill] sm:$0xff] %v11752_v37  ;;  %14535 = vst [vmem:[#allocation50_spill] sm:$0xff] %v11754_v49  ;;  %4960 = vperm.xlu1 %10274, %v9104_v25   ;;  %4948 = vperm.xlu0 %10273, %v9103_v28   ;;  %v673_v58 = vpop.f32.mrf.mxu0  ;;  %v8844_v25 = vcombine.low %v1011_v36, %v1023_v54  ;;  %v692_v49 = vpack.c.bf16 %v11587_v6, %v11573_v35  ;;  %v9101_v35 = vld [vmem:[%s14464_s4 + $0x1b0] sm:$0xf]  ;;  %v1264_v33 = vmul.bf16 1069105081, %v11770_v41 }
 0x13a   : > { %v987_v39 = vrot.slane %v11409_v1, %v11668_v47  ;;  %v807_v6 = vrot.slane %v11417_v4, %v11668_v47  ;;  %10631 = vpow.bf16 %v1267_v61  ;;  %v975_v0 = vrot.slane %v11427_v8, %v11668_v47  ;;  %v9115_v8 = vld [vmem:[%s14464_s4 + $0x1e8] sm:$0xf]  ;;  %v14688_v37 = vld [vmem:[#allocation14_spill] sm:$0xff] }
 0x13b   : > { %v10216_v42 = vpop.f32.mrf.mxu0  ;;  %v11810_v1 = vadd.bf16 %v8837_v60, %v692_v49  ;;  %v11812_v4 = vadd.bf16 %v8844_v25, %v699_v40  ;;  %10633 = vpow.bf16 %v1288_v45  ;;  %v1285_v53 = vmul.bf16 1069105081, %v11782_v7 }
 0x13c   : > { %v703_v28 = vpack.c.bf16 %v10216_v42, %v10215_v10  ;;  %v11773_v62 = vpop.permute.xlu1 %2914  ;;  %v11775_v15 = vpop.permute.xlu0 %2902  ;;  %v795_v10 = vrot.slane %v11419_v5, %v11668_v47  ;;  %v9116_v5 = vld [vmem:[%s14464_s4 + $0x1ec] sm:$0xf]  ;;  %v963_v49 = vrot.slane %v11429_v9, %v11668_v47  ;;  %v783_v57 = vrot.slane %v11437_v12, %v11668_v47 }
 0x13d   : > { %14536 = vst [vmem:[#allocation51_spill] sm:$0xff] %v11773_v62  ;;  %14537 = vst [vmem:[#allocation52_spill] sm:$0xff] %v11775_v15  ;;  %5128 = vperm.xlu1 %10274, %v9118_v19   ;;  %5116 = vperm.xlu0 %10273, %v9117_v29   ;;  %v676_v24 = vpop.f32.mrf.mxu0  ;;  %v771_v19 = vrot.slane %v11439_v13, %v11668_v47  ;;  %v690_v9 = vpack.c.bf16 %v11559_v59, %v11543_v34  ;;  %v1261_v12 = vmul.bf16 1069105081, %v11810_v1  ;;  %v9099_v34 = vld [vmem:[%s14464_s4 + $0x1a8] sm:$0xf] }
 0x13e   : > { %v11784_v63 = vadd.bf16 %v8848_v26, %v703_v28  ;;  %v702_v3 = vpack.c.bf16 %v676_v24, %v673_v58  ;;  %v698_v58 = vpack.c.bf16 %v11680_v18, %v11659_v2  ;;  %v8843_v18 = vcombine.low %v987_v39, %v999_v38  ;;  %v14546_v39 = vld [vmem:[#allocation19_spill] sm:$0xff]  ;;  %v14687_v62 = vld [vmem:[#allocation13_spill] sm:$0xff] }
 0x13f   : > { %v8835_v26 = vcombine.low %v795_v10, %v807_v6  ;;  %v697_v13 = vpack.c.bf16 %v11637_v46, %v11623_v30  ;;  %v1282_v42 = vmul.bf16 1069105081, %v11812_v4  ;;  %v8834_v59 = vcombine.low %v771_v19, %v783_v57  ;;  %v14547_v6 = vld [vmem:[#allocation15_spill] sm:$0xff] }
 0x140   : > { %v1294_v31 = vmul.bf16 1069105081, %v11784_v63  ;;  %v11802_v54 = vadd.bf16 %v8847_v22, %v702_v3  ;;  %v11804_v36 = vpop.permute.xlu1 %3082  ;;  %v11806_v52 = vpop.permute.xlu0 %3070  ;;  %v14542_v22 = vpack.c.bf16 %v11551_v43, %v11537_v23  ;;  %v11845_v60 = vadd.bf16 %v8843_v18, %v698_v58  ;;  %v9100_v23 = vld [vmem:[%s14464_s4 + $0x1ac] sm:$0xf]  ;;  %v9113_v3 = vld [vmem:[%s14464_s4 + $0x1e0] sm:$0xf] }
 0x141   : > { %14538 = vst [vmem:[#allocation53_spill] sm:$0xff] %v11804_v36  ;;  %14539 = vst [vmem:[#allocation54_spill] sm:$0xff] %v11806_v52  ;;  %4936 = vperm.xlu1 %10274, %v9102_v32   ;;  %4924 = vperm.xlu0 %10273, %v9101_v35   ;;  %v8842_v43 = vcombine.low %v963_v49, %v975_v0  ;;  %v951_v25 = vrot.slane %v11447_v16, %v11668_v47  ;;  %v9098_v57 = vld [vmem:[%s14464_s4 + $0x1a4] sm:$0xf]  ;;  %v9097_v19 = vld [vmem:[%s14464_s4 + $0x1a0] sm:$0xf] }
 0x142   : > { %10635 = vpow.bf16 %v1294_v31  ;;  %v1291_v56 = vmul.bf16 1069105081, %v11802_v54  ;;  %v11837_v27 = vadd.bf16 %v8836_v55, %v14542_v22  ;;  %v939_v46 = vrot.slane %v11449_v17, %v11668_v47  ;;  %v14545_v17 = vld [vmem:[#allocation39_spill] sm:$0xff]  ;;  %v14550_v31 = vld [vmem:[#allocation22_spill] sm:$0xff]  ;;  %v14686_v36 = vld [vmem:[#allocation12_spill] sm:$0xff] }
 0x143   : > { %10637 = vpow.bf16 %v1264_v33  ;;  %v759_v30 = vrot.slane %v11457_v20, %v11668_v47  ;;  %v747_v61 = vrot.slane %v11459_v21, %v11668_v47  ;;  %v11866_v24 = vadd.bf16 %v8835_v26, %v690_v9  ;;  %v9114_v21 = vld [vmem:[%s14464_s4 + $0x1e4] sm:$0xf] }
 0x144   : > { %10639 = vpow.bf16 %v1291_v56  ;;  %v11830_v2 = vpop.permute.xlu1 %2890  ;;  %v11832_v29 = vpop.permute.xlu0 %2878  ;;  %v1258_v45 = vmul.bf16 1069105081, %v11837_v27  ;;  %v11868_v16 = vadd.bf16 %v8842_v43, %v697_v13  ;;  %v696_v55 = vpack.c.bf16 %v14545_v17, %v11629_v50  ;;  %v14549_v50 = vld [vmem:[#allocation18_spill] sm:$0xff] }
 0x145   : > { %14540 = vst [vmem:[#allocation55_spill] sm:$0xff] %v11830_v2  ;;  %14541 = vst [vmem:[#allocation56_spill] sm:$0xff] %v11832_v29  ;;  %5104 = vperm.xlu1 %10274, %v9116_v5   ;;  %5092 = vperm.xlu0 %10273, %v9115_v8   ;;  %10641 = vpow.bf16 %v1285_v53  ;;  %v1279_v20 = vmul.bf16 1069105081, %v11845_v60  ;;  %v10630_v32 = vpop.eup %10629  ;;  %v8841_v35 = vcombine.low %v939_v46, %v951_v25  ;;  %v1255_v53 = vmul.bf16 1069105081, %v11866_v24 }
 0x146   : > { %10643 = vpow.bf16 %v1261_v12  ;;  %v8833_v38 = vcombine.low %v747_v61, %v759_v30  ;;  %v14548_v33 = vpack.c.bf16 %v14546_v39, %v14547_v6  ;;  %v688_v0 = vpack.c.bf16 %v14550_v31, %v14549_v50  ;;  %v9112_v43 = vld [vmem:[%s14464_s4 + $0x1dc] sm:$0xf]  ;;  %v9111_v30 = vld [vmem:[%s14464_s4 + $0x1d8] sm:$0xf]  ;;  %v14685_v2 = vld [vmem:[#allocation11_spill] sm:$0xff] }
 0x147   : > { %10645 = vpow.bf16 %v1282_v42  ;;  %v1276_v8 = vmul.bf16 1069105081, %v11868_v16  ;;  %v11892_v49 = vadd.bf16 %v8841_v35, %v696_v55  ;;  %v14471_v18 = vmov 1065369472   ;;  %v9096_v6 = vld [vmem:[%s14464_s4 + $0x19c] sm:$0xf] }
 0x148   : > { %v11861_v28 = vpop.permute.xlu1 %3058  ;;  %v11863_v40 = vpop.permute.xlu0 %3046  ;;  %v11882_v10 = vadd.bf16 %v8834_v59, %v14548_v33  ;;  %10647 = vpow.bf16 %v1258_v45  ;;  %v1303_v26 = vsub.bf16 %v10630_v32, %v14471_v18  ;;  %v11902_v13 = vadd.bf16 %v8833_v38, %v688_v0 }
 0x149   : > { %14543 = vst [vmem:[#allocation57_spill] sm:$0xff] %v11861_v28  ;;  %14544 = vst [vmem:[#allocation58_spill] sm:$0xff] %v11863_v40  ;;  %4912 = vperm.xlu1 %10274, %v9100_v23   ;;  %4900 = vperm.xlu0 %10273, %v9099_v34   ;;  %v10632_v56 = vpop.eup %10631  ;;  %10649 = vpow.bf16 %v1279_v20  ;;  %v1273_v46 = vmul.bf16 1069105081, %v11892_v49  ;;  %vm1247_vm1 = vcmp.gt.bf16.partialorder %v11784_v63, 0  ;;  %vm1246_vm3 = vcmp.gt.bf16.partialorder %v11802_v54, 0 }
 0x14a   : > { %v10634_v22 = vpop.eup %10633  ;;  %v1252_v12 = vmul.bf16 1069105081, %v11882_v10  ;;  %10651 = vpow.bf16 %v1255_v53  ;;  %v1319_v61 = vmul.bf16 1071005654, %v1303_v26  ;;  %v1302_v45 = vsub.bf16 %v10632_v56, %v14471_v18  ;;  %v14684_v40 = vld [vmem:[#allocation8_spill] sm:$0xff] }
 0x14b   : > { %10653 = vpow.bf16 %v1276_v8  ;;  %v1309_v20 = vsub.bf16 %v10634_v22, %v14471_v18  ;;  %vm1238_vm4 = vcmp.gt.bf16.partialorder %v11750_v48, 0  ;;  %vm1245_vm5 = vcmp.gt.bf16.partialorder %v11757_v51, 0  ;;  %v9109_v22 = vld [vmem:[%s14464_s4 + $0x1d0] sm:$0xf] }
 0x14c   : > { %v11886_v5 = vpop.permute.xlu1 %2866  ;;  %v11888_v58 = vpop.permute.xlu0 %2854  ;;  %10655 = vpow.bf16 %v1252_v12  ;;  %v1335_v50 = vsel %vm1239_vm2, %v11724_v14, %v1319_v61  ;;  %v1318_v31 = vmul.bf16 1071005654, %v1302_v45  ;;  %v9110_v14 = vld [vmem:[%s14464_s4 + $0x1d4] sm:$0xf]  ;;  %vm1237_vm6 = vcmp.gt.bf16.partialorder %v11770_v41, 0 }
 0x14d   : > { %14551 = vst [vmem:[#allocation39_spill] sm:$0xff] %v11886_v5  ;;  %14552 = vst [vmem:[#allocation19_spill] sm:$0xff] %v11888_v58  ;;  %5080 = vperm.xlu1 %10274, %v9114_v21   ;;  %5068 = vperm.xlu0 %10273, %v9113_v3   ;;  %v1249_v3 = vmul.bf16 1069105081, %v11902_v13  ;;  %10657 = vpow.bf16 %v1273_v46  ;;  %v1325_v56 = vmul.bf16 1071005654, %v1309_v20  ;;  %v2116_v28 = vrot.slane %v14684_v40, %v11668_v47 }
 0x14e   : > { %v9094_v61 = vld [vmem:[%s14464_s4 + $0x194] sm:$0xf]  ;;  %vm1244_vm7 = vcmp.gt.bf16.partialorder %v11782_v7, 0  ;;  %v9093_v45 = vld [vmem:[%s14464_s4 + $0x190] sm:$0xf]  ;;  %vm1236_vm8 = vcmp.gt.bf16.partialorder %v11810_v1, 0  ;;  %v2104_v52 = vrot.slane %v14685_v2, %v11668_v47  ;;  %v2092_v15 = vrot.slane %v14686_v36, %v11668_v47 }
 0x14f   : > { %10659 = vpow.bf16 %v1249_v3  ;;  %vm1243_vm9 = vcmp.gt.bf16.partialorder %v11812_v4, 0  ;;  %vm1235_vm10 = vcmp.gt.bf16.partialorder %v11837_v27, 0  ;;  %vm1242_vm11 = vcmp.gt.bf16.partialorder %v11845_v60, 0  ;;  %v14692_v2 = vld [vmem:[#allocation21_spill] sm:$0xff]  ;;  %v14693_v36 = vld [vmem:[#allocation23_spill] sm:$0xff] }
 0x150   : > { %v10636_v9 = vpop.eup %10635  ;;  %v11904_v42 = vpop.permute.xlu1 %3034  ;;  %vm1234_vm12 = vcmp.gt.bf16.partialorder %v11866_v24, 0  ;;  %vm1241_vm13 = vcmp.gt.bf16.partialorder %v11868_v16, 0  ;;  %vm1233_vm14 = vcmp.gt.bf16.partialorder %v11882_v10, 0  ;;  %vm1240_vm15 = vcmp.gt.bf16.partialorder %v11892_v49, 0 }
 0x151   : > { %14553 = vst [vmem:[#allocation15_spill] sm:$0xff] %v11904_v42  ;;  %v11906_v23 = vpop.permute.xlu0 %3022  ;;  %v10638_v34 = vpop.eup %10637  ;;  %4888 = vperm.xlu1 %10274, %v9098_v57   ;;  %4876 = vperm.xlu0 %10273, %v9097_v19   ;;  %v1311_v59 = vsub.bf16 %v10636_v9, %v14471_v18  ;;  %vm1232_vm0 = vcmp.gt.bf16.partialorder %v11902_v13, 0  ;;  %v1900_v11 = vrot.slane %v14688_v37, %v11668_v47 }
 0x152   : > { %14554 = vst [vmem:[#allocation18_spill] sm:$0xff] %v11906_v23  ;;  %v10640_v25 = vpop.eup %10639  ;;  %v1301_v33 = vsub.bf16 %v10638_v34, %v14471_v18 }
 0x153   : > { %v1327_v17 = vmul.bf16 1071005654, %v1311_v59  ;;  %v1310_v55 = vsub.bf16 %v10640_v25, %v14471_v18  ;;  %v10642_v21 = vpop.eup %10641 }
 0x154   : > { %v11920_v32 = vpop.permute.xlu1 %2842  ;;  %v10644_v0 = vpop.eup %10643  ;;  %v1308_v8 = vsub.bf16 %v10642_v21, %v14471_v18  ;;  %v1317_v9 = vmul.bf16 1071005654, %v1301_v33  ;;  %v9108_v33 = vld [vmem:[%s14464_s4 + $0x1cc] sm:$0xf] }
 0x155   : > { %14555 = vst [vmem:[#allocation22_spill] sm:$0xff] %v11920_v32  ;;  %v11922_v35 = vpop.permute.xlu0 %2830  ;;  %5056 = vperm.xlu1 %10274, %v9112_v43   ;;  %5044 = vperm.xlu0 %10273, %v9111_v30   ;;  %v1343_v38 = vsel %vm1247_vm1, %v11784_v63, %v1327_v17  ;;  %v1326_v39 = vmul.bf16 1071005654, %v1310_v55  ;;  %v9095_v63 = vld [vmem:[%s14464_s4 + $0x198] sm:$0xf]  ;;  %v10646_v57 = vpop.eup %10645  ;;  %v1300_v12 = vsub.bf16 %v10644_v0, %v14471_v18 }
 0x156   : > { %14556 = vst [vmem:[#allocation59_spill] sm:$0xff] %v11922_v35  ;;  %9397 = vmatprep.subr.bf16.mxu0 %v1343_v38  ;;  %10217 = vmatprep.subr.bf16.mxu1 %v1343_v38  ;;  %v10648_v34 = vpop.eup %10647  ;;  %v1341_v43 = vsel %vm1245_vm5, %v11757_v51, %v1325_v56  ;;  %v1324_v59 = vmul.bf16 1071005654, %v1308_v8  ;;  %v1307_v25 = vsub.bf16 %v10646_v57, %v14471_v18  ;;  %v14682_v32 = vld [vmem:[#allocation10_spill] sm:$0xff] }
 0x157   : > { %9398 = vmatpush3.bf16.msra.mxu0 %v1335_v50  ;;  %10225 = vmatpush3.bf16.msra.mxu1 %v1335_v50  ;;  %v1342_v53 = vsel %vm1246_vm3, %v11802_v54, %v1326_v39  ;;  %v1334_v54 = vsel %vm1238_vm4, %v11750_v48, %v1318_v31  ;;  %v10650_v46 = vpop.eup %10649  ;;  %v1333_v51 = vsel %vm1237_vm6, %v11770_v41, %v1317_v9  ;;  %v1316_v17 = vmul.bf16 1071005654, %v1300_v12 }
 0x158   : > { %v11938_v19 = vpop.permute.xlu1 %3010  ;;  %9399 = vmatprep.subr.bf16.mxu0 %v1342_v53  ;;  %10218 = vmatprep.subr.bf16.mxu1 %v1342_v53  ;;  %v1299_v55 = vsub.bf16 %v10648_v34, %v14471_v18  ;;  %v10652_v20 = vpop.eup %10651  ;;  %v1340_v21 = vsel %vm1244_vm7, %v11782_v7, %v1324_v59  ;;  %v1323_v3 = vmul.bf16 1071005654, %v1307_v25  ;;  %v1306_v38 = vsub.bf16 %v10650_v46, %v14471_v18 }
 0x159   : > { %14557 = vst [vmem:[#allocation60_spill] sm:$0xff] %v11938_v19  ;;  %v11940_v26 = vpop.permute.xlu0 %2998  ;;  %4864 = vperm.xlu1 %10274, %v9096_v6   ;;  %4852 = vperm.xlu0 %10273, %v9095_v63   ;;  %v10654_v39 = vpop.eup %10653  ;;  %v1332_v7 = vsel %vm1236_vm8, %v11810_v1, %v1316_v17  ;;  %v9107_v63 = vld [vmem:[%s14464_s4 + $0x1c8] sm:$0xf]  ;;  %v1298_v0 = vsub.bf16 %v10652_v20, %v14471_v18 }
 0x15a   : > { %14558 = vst [vmem:[#allocation61_spill] sm:$0xff] %v11940_v26  ;;  %v10656_v50 = vpop.eup %10655  ;;  %v1315_v31 = vmul.bf16 1071005654, %v1299_v55  ;;  %v1339_v53 = vsel %vm1243_vm9, %v11812_v4, %v1323_v3  ;;  %v1322_v56 = vmul.bf16 1071005654, %v1306_v38  ;;  %v1305_v8 = vsub.bf16 %v10654_v39, %v14471_v18 }
 0x15b   : > { %9400 = vmatpush3.bf16.msra.mxu0 %v1334_v54  ;;  %10226 = vmatpush3.bf16.msra.mxu1 %v1334_v54  ;;  %v10658_v57 = vpop.eup %10657  ;;  %v9092_v54 = vld [vmem:[%s14464_s4 + $0x18c] sm:$0xf]  ;;  %v1314_v9 = vmul.bf16 1071005654, %v1298_v0  ;;  %v1297_v12 = vsub.bf16 %v10656_v50, %v14471_v18  ;;  %v1924_v23 = vrot.slane %v14682_v32, %v11668_v47  ;;  %v1912_v32 = vrot.slane %v14687_v62, %v11668_v47 }
 0x15c   : > { %v11954_v30 = vpop.permute.xlu1 %2818  ;;  %9401 = vmatprep.subr.bf16.mxu0 %v1341_v43  ;;  %10219 = vmatprep.subr.bf16.mxu1 %v1341_v43  ;;  %v1331_v4 = vsel %vm1235_vm10, %v11837_v27, %v1315_v31  ;;  %v1338_v43 = vsel %vm1242_vm11, %v11845_v60, %v1322_v56  ;;  %v1321_v59 = vmul.bf16 1071005654, %v1305_v8  ;;  %v1304_v25 = vsub.bf16 %v10658_v57, %v14471_v18  ;;  %v9105_v60 = vld [vmem:[%s14464_s4 + $0x1c0] sm:$0xf]  ;;  %v9200_v31 = vld [vmem:[%s14464_s4 + $0x27c] sm:$0xf] }
 0x15d   : > { %14559 = vst [vmem:[#allocation62_spill] sm:$0xff] %v11954_v30  ;;  %v11956_v48 = vpop.permute.xlu0 %2806  ;;  %5032 = vperm.xlu1 %10274, %v9110_v14   ;;  %5020 = vperm.xlu0 %10273, %v9109_v22   ;;  %v9091_v22 = vld [vmem:[%s14464_s4 + $0x188] sm:$0xf]  ;;  %v10660_v34 = vpop.eup %10659 }
 0x15e   : > { %14560 = vst [vmem:[#allocation63_spill] sm:$0xff] %v11956_v48  ;;  %v1296_v17 = vsub.bf16 %v10660_v34, %v14471_v18  ;;  %v1337_v55 = vsel %vm1241_vm13, %v11868_v16, %v1321_v59  ;;  %v1320_v20 = vmul.bf16 1071005654, %v1304_v25  ;;  %v9089_v16 = vld [vmem:[%s14464_s4 + $0x180] sm:$0xf] }
 0x15f   : > { %9402 = vmatpush3.bf16.msra.mxu0 %v1333_v51  ;;  %10227 = vmatpush3.bf16.msra.mxu1 %v1333_v51  ;;  %v1330_v51 = vsel %vm1234_vm12, %v11866_v24, %v1314_v9  ;;  %v9090_v24 = vld [vmem:[%s14464_s4 + $0x184] sm:$0xf]  ;;  %v10303_v9 = vld [vmem:[#allocation4 + $0x10] ss:$8 sps:$4 sm:$0xff]   ;;  %v10307_v25 = vld [vmem:[#allocation4 + $0x74] ss:$8 sps:$4 sm:$0xff]  }
 0x160   : > { %v11970_v6 = vpop.permute.xlu1 %2986  ;;  %9403 = vmatprep.subr.bf16.mxu0 %v1340_v21  ;;  %10220 = vmatprep.subr.bf16.mxu1 %v1340_v21  ;;  %v1312_v39 = vmul.bf16 1071005654, %v1296_v17  ;;  %v10296_v0 = vld [vmem:[#allocation4] ss:$8 sps:$4 sm:$0xff]   ;;  %v10301_v56 = vld [vmem:[#allocation4 + $0x64] ss:$8 sps:$4 sm:$0xff]  }
 0x161   : > { %14561 = vst [vmem:[#allocation64_spill] sm:$0xff] %v11970_v6  ;;  %v11972_v41 = vpop.permute.xlu0 %2974  ;;  %4840 = vperm.xlu1 %10274, %v9094_v61   ;;  %4828 = vperm.xlu0 %10273, %v9093_v45   ;;  %v9106_v61 = vld [vmem:[%s14464_s4 + $0x1c4] sm:$0xf]  ;;  %v1313_v45 = vmul.bf16 1071005654, %v1297_v12 }
 0x162   : > { %14562 = vst [vmem:[#allocation65_spill] sm:$0xff] %v11972_v41  ;;  %v9198_v12 = vld [vmem:[%s14464_s4 + $0x274] sm:$0xf]  ;;  %v9197_v34 = vld [vmem:[%s14464_s4 + $0x270] sm:$0xf] }
 0x163   : > { %9404 = vmatpush3.bf16.msra.mxu0 %v1332_v7  ;;  %10228 = vmatpush3.bf16.msra.mxu1 %v1332_v7  ;;  %v1329_v38 = vsel %vm1233_vm14, %v11882_v10, %v1313_v45  ;;  %v10293_v10 = vld [vmem:[#allocation4 + $0x50] ss:$8 sps:$4 sm:$0xff]   ;;  %v10305_v59 = vld [vmem:[#allocation4 + $0x24] ss:$8 sps:$4 sm:$0xff]  }
 0x164   : > { %v11986_v14 = vpop.permute.xlu1 %2794  ;;  %9405 = vmatprep.subr.bf16.mxu0 %v1339_v53  ;;  %10221 = vmatprep.subr.bf16.mxu1 %v1339_v53  ;;  %v10299_v53 = vld [vmem:[#allocation4 + $0x14] ss:$8 sps:$4 sm:$0xff]   ;;  %v9181_v45 = vld [vmem:[%s14464_s4 + $0x230] sm:$0xf]  ;;  %v9186_v18 = vld [vmem:[%s14464_s4 + $0x244] sm:$0xf] }
 0x165   : > { %14563 = vst [vmem:[#allocation66_spill] sm:$0xff] %v11986_v14  ;;  %v11988_v1 = vpop.permute.xlu0 %2782  ;;  %5008 = vperm.xlu1 %10274, %v9108_v33   ;;  %4996 = vperm.xlu0 %10273, %v9107_v63   ;;  %v1336_v33 = vsel %vm1240_vm15, %v11892_v49, %v1320_v20  ;;  %v1328_v63 = vsel %vm1232_vm0, %v11902_v13, %v1312_v39  ;;  %v9199_v49 = vld [vmem:[%s14464_s4 + $0x278] sm:$0xf]  ;;  %v9184_v13 = vld [vmem:[%s14464_s4 + $0x23c] sm:$0xf] }
 0x166   : > { %14564 = vst [vmem:[#allocation67_spill] sm:$0xff] %v11988_v1  ;;  %v10309_v20 = vld [vmem:[#allocation4 + $0x20] ss:$8 sps:$4 sm:$0xff]   ;;  %v10311_v39 = vld [vmem:[#allocation4 + $0x34] ss:$8 sps:$4 sm:$0xff]  }
 0x167   : > { %9406 = vmatpush3.bf16.msra.mxu0 %v1331_v4  ;;  %10229 = vmatpush3.bf16.msra.mxu1 %v1331_v4 }
 0x168   : > { %v12002_v46 = vpop.permute.xlu1 %2962  ;;  %9407 = vmatprep.subr.bf16.mxu0 %v1338_v43  ;;  %10222 = vmatprep.subr.bf16.mxu1 %v1338_v43  ;;  %v10304_v43 = vld [vmem:[#allocation4 + $0x60] ss:$8 sps:$4 sm:$0xff]  }
 0x169   : > { %14565 = vst [vmem:[#allocation68_spill] sm:$0xff] %v12002_v46  ;;  %v12004_v27 = vpop.permute.xlu0 %2950  ;;  %4816 = vperm.xlu1 %10274, %v9092_v54   ;;  %4804 = vperm.xlu0 %10273, %v9091_v22   ;;  %v9183_v54 = vld [vmem:[%s14464_s4 + $0x238] sm:$0xf] }
 0x16a   : > { %14566 = vst [vmem:[#allocation69_spill] sm:$0xff] %v12004_v27 }
 0x16b   : > { %9408 = vmatpush3.bf16.msra.mxu0 %v1330_v51  ;;  %10230 = vmatpush3.bf16.msra.mxu1 %v1330_v51 }
 0x16c   : > { %v12017_v21 = vpop.permute.xlu1 %2770  ;;  %9409 = vmatprep.subr.bf16.mxu0 %v1337_v55  ;;  %10223 = vmatprep.subr.bf16.mxu1 %v1337_v55 }
 0x16d   : > { %14567 = vst [vmem:[#allocation70_spill] sm:$0xff] %v12017_v21  ;;  %v12019_v3 = vpop.permute.xlu0 %2758  ;;  %4984 = vperm.xlu1 %10274, %v9106_v61   ;;  %4972 = vperm.xlu0 %10273, %v9105_v60   ;;  %v9182_v60 = vld [vmem:[%s14464_s4 + $0x234] sm:$0xf] }
 0x16e   : > { %14568 = vst [vmem:[#allocation71_spill] sm:$0xff] %v12019_v3 }
 0x16f   : > { %9410 = vmatpush3.bf16.msra.mxu0 %v1329_v38  ;;  %10231 = vmatpush3.bf16.msra.mxu1 %v1329_v38  ;;  %v9195_v38 = vld [vmem:[%s14464_s4 + $0x268] sm:$0xf] }
 0x170   : > { %v12031_v50 = vpop.permute.xlu1 %4141  ;;  %9411 = vmatprep.subr.bf16.mxu0 %v1336_v33  ;;  %10224 = vmatprep.subr.bf16.mxu1 %v1336_v33  ;;  %v10313_v33 = vld [vmem:[#allocation4 + $0x84] ss:$8 sps:$4 sm:$0xff]  }
 0x171   : > { %14569 = vst [vmem:[#allocation72_spill] sm:$0xff] %v12031_v50  ;;  %v12033_v7 = vpop.permute.xlu0 %4129  ;;  %4792 = vperm.xlu1 %10274, %v9090_v24   ;;  %4780 = vperm.xlu0 %10273, %v9089_v16   ;;  %v9196_v24 = vld [vmem:[%s14464_s4 + $0x26c] sm:$0xf]  ;;  %v10310_v16 = vld [vmem:[#allocation4 + $0x70] ss:$8 sps:$4 sm:$0xff]  }
 0x172   : > { %14570 = vst [vmem:[#allocation73_spill] sm:$0xff] %v12033_v7 }
 0x173   : > { %9412 = vmatpush3.bf16.msra.mxu0 %v1328_v63  ;;  %10232 = vmatpush3.bf16.msra.mxu1 %v1328_v63 }
 0x174   : > { %v12043_v8 = vpop.permute.xlu1 %3949 }
 0x175   : > { %14571 = vst [vmem:[#allocation74_spill] sm:$0xff] %v12043_v8  ;;  %v12045_v57 = vpop.permute.xlu0 %3937  ;;  %6163 = vperm.xlu1 %10274, %v9200_v31   ;;  %6151 = vperm.xlu0 %10273, %v9199_v49   ;;  %v9180_v31 = vld [vmem:[%s14464_s4 + $0x22c] sm:$0xf]  ;;  %v9179_v49 = vld [vmem:[%s14464_s4 + $0x228] sm:$0xf] }
 0x176   : > { %14572 = vst [vmem:[#allocation75_spill] sm:$0xff] %v12045_v57  ;;  %1569 = vmatmul.mubr.bf16.vlgmr.msra.gmra.mxu0 %v10296_v0  ;;  %1609 = vmatmul.mubr.bf16.vlgmr.msra.gmra.mxu1 %v10293_v10 }
 0x177   : > { %1576 = vmatprep.mubr.bf16.mxu0 %v10299_v53  ;;  %1616 = vmatprep.mubr.bf16.mxu1 %v10301_v56  ;;  %v10315_v56 = vld [vmem:[#allocation4 + $0x30] ss:$8 sps:$4 sm:$0xff]  }
 0x178   : > { %v12053_v4 = vpop.permute.xlu1 %4117 }
 0x179   : > { %14573 = vst [vmem:[#allocation76_spill] sm:$0xff] %v12053_v4  ;;  %v12055_v22 = vpop.permute.xlu0 %4105  ;;  %5971 = vperm.xlu1 %10274, %v9184_v13   ;;  %5959 = vperm.xlu0 %10273, %v9183_v54   ;;  %v9194_v13 = vld [vmem:[%s14464_s4 + $0x264] sm:$0xf]  ;;  %v9193_v54 = vld [vmem:[%s14464_s4 + $0x260] sm:$0xf] }
 0x17a   : > { %14574 = vst [vmem:[#allocation77_spill] sm:$0xff] %v12055_v22  ;;  %v8477_v22 = vld [vmem:[%s14465_s5 + $0xd0] sm:$0xff] }
 0x17c   : > { %v12063_v61 = vpop.permute.xlu1 %3925 }
 0x17d   : > { %14575 = vst [vmem:[#allocation78_spill] sm:$0xff] %v12063_v61  ;;  %v12065_v51 = vpop.permute.xlu0 %3913  ;;  %6139 = vperm.xlu1 %10274, %v9198_v12   ;;  %6127 = vperm.xlu0 %10273, %v9197_v34   ;;  %v10317_v12 = vld [vmem:[#allocation4 + $0x44] ss:$8 sps:$4 sm:$0xff]   ;;  %v10319_v34 = vld [vmem:[#allocation4 + $0x94] ss:$8 sps:$4 sm:$0xff]  }
 0x17e   : > { %14576 = vst [vmem:[#allocation79_spill] sm:$0xff] %v12065_v51  ;;  %1577 = vmatmul.mubr.bf16.gmra.mxu0 %v10303_v9  ;;  %1617 = vmatmul.mubr.bf16.gmra.mxu1 %v10304_v43  ;;  %v10316_v9 = vld [vmem:[#allocation4 + $0x80] ss:$8 sps:$4 sm:$0xff]  }
 0x17f   : > { %1584 = vmatprep.mubr.bf16.mxu0 %v10305_v59  ;;  %1624 = vmatprep.mubr.bf16.mxu1 %v10307_v25  ;;  %v9178_v25 = vld [vmem:[%s14464_s4 + $0x224] sm:$0xf] }
 0x180   : > { %v12073_v17 = vpop.permute.xlu1 %4093 }
 0x181   : > { %14577 = vst [vmem:[#allocation80_spill] sm:$0xff] %v12073_v17  ;;  %v12075_v55 = vpop.permute.xlu0 %4081  ;;  %5947 = vperm.xlu1 %10274, %v9182_v60   ;;  %5935 = vperm.xlu0 %10273, %v9181_v45   ;;  %v9177_v60 = vld [vmem:[%s14464_s4 + $0x220] sm:$0xf] }
 0x182   : > { %14578 = vst [vmem:[#allocation81_spill] sm:$0xff] %v12075_v55 }
 0x184   : > { %v12083_v10 = vpop.permute.xlu1 %3901 }
 0x185   : > { %14579 = vst [vmem:[#allocation82_spill] sm:$0xff] %v12083_v10  ;;  %v12085_v63 = vpop.permute.xlu0 %3889  ;;  %6115 = vperm.xlu1 %10274, %v9196_v24   ;;  %6103 = vperm.xlu0 %10273, %v9195_v38   ;;  %v10321_v24 = vld [vmem:[#allocation4 + $0x40] ss:$8 sps:$4 sm:$0xff]   ;;  %v9192_v38 = vld [vmem:[%s14464_s4 + $0x25c] sm:$0xf] }
 0x186   : > { %14580 = vst [vmem:[#allocation83_spill] sm:$0xff] %v12085_v63  ;;  %1585 = vmatmul.mubr.bf16.gmra.mxu0 %v10309_v20  ;;  %1625 = vmatmul.mubr.bf16.gmra.mxu1 %v10310_v16  ;;  %v9191_v16 = vld [vmem:[%s14464_s4 + $0x258] sm:$0xf]  ;;  %v8472_v63 = vld [vmem:[%s14465_s5 + $0xa8] sm:$0xff] }
 0x187   : > { %1592 = vmatprep.mubr.bf16.mxu0 %v10311_v39  ;;  %1632 = vmatprep.mubr.bf16.mxu1 %v10313_v33  ;;  %v10322_v39 = vld [vmem:[#allocation4 + $0x90] ss:$8 sps:$4 sm:$0xff]   ;;  %v10323_v33 = vld [vmem:[#allocation4 + $0xa4] ss:$8 sps:$4 sm:$0xff]  }
 0x188   : > { %v12093_v0 = vpop.permute.xlu1 %4069 }
 0x189   : > { %14581 = vst [vmem:[#allocation84_spill] sm:$0xff] %v12093_v0  ;;  %v12095_v53 = vpop.permute.xlu0 %4057  ;;  %5923 = vperm.xlu1 %10274, %v9180_v31   ;;  %5911 = vperm.xlu0 %10273, %v9179_v49  }
 0x18a   : > { %14582 = vst [vmem:[#allocation85_spill] sm:$0xff] %v12095_v53  ;;  %v8467_v53 = vld [vmem:[%s14465_s5 + $0x80] sm:$0xff] }
 0x18c   : > { %v12103_v43 = vpop.permute.xlu1 %3877 }
 0x18d   : > { %14583 = vst [vmem:[#allocation86_spill] sm:$0xff] %v12103_v43  ;;  %v12105_v59 = vpop.permute.xlu0 %3865  ;;  %6091 = vperm.xlu1 %10274, %v9194_v13   ;;  %6079 = vperm.xlu0 %10273, %v9193_v54   ;;  %v9175_v13 = vld [vmem:[%s14464_s4 + $0x218] sm:$0xf]  ;;  %v9360_v43 = vld [vmem:[%s14464_s4 + $0x37c] sm:$0xf] }
 0x18e   : > { %14584 = vst [vmem:[#allocation87_spill] sm:$0xff] %v12105_v59  ;;  %1593 = vmatmul.mubr.bf16.gmra.mxu0 %v10315_v56  ;;  %1633 = vmatmul.mubr.bf16.gmra.mxu1 %v10316_v9  ;;  %v9176_v56 = vld [vmem:[%s14464_s4 + $0x21c] sm:$0xf] }
 0x18f   : > { %1600 = vmatprep.mubr.bf16.mxu0 %v10317_v12  ;;  %1640 = vmatprep.mubr.bf16.mxu1 %v10319_v34  ;;  %v9190_v12 = vld [vmem:[%s14464_s4 + $0x254] sm:$0xf]  ;;  %v9189_v34 = vld [vmem:[%s14464_s4 + $0x250] sm:$0xf] }
 0x190   : > { %v12113_v45 = vpop.permute.xlu1 %4045 }
 0x191   : > { %14585 = vst [vmem:[#allocation88_spill] sm:$0xff] %v12113_v45  ;;  %v12115_v20 = vpop.permute.xlu0 %4033  ;;  %5899 = vperm.xlu1 %10274, %v9178_v25   ;;  %5887 = vperm.xlu0 %10273, %v9177_v60   ;;  %v10325_v25 = vld [vmem:[#allocation4 + $0xa0] ss:$8 sps:$4 sm:$0xff]   ;;  %v10326_v60 = vld [vmem:[#allocation4 + $0xb4] ss:$8 sps:$4 sm:$0xff]  }
 0x192   : > { %14586 = vst [vmem:[#allocation89_spill] sm:$0xff] %v12115_v20  ;;  %v9359_v20 = vld [vmem:[%s14464_s4 + $0x378] sm:$0xf] }
 0x194   : > { %v12123_v31 = vpop.permute.xlu1 %3853 }
 0x195   : > { %14587 = vst [vmem:[#allocation90_spill] sm:$0xff] %v12123_v31  ;;  %v12125_v49 = vpop.permute.xlu0 %3841  ;;  %6067 = vperm.xlu1 %10274, %v9192_v38   ;;  %6055 = vperm.xlu0 %10273, %v9191_v16   ;;  %v9174_v38 = vld [vmem:[%s14464_s4 + $0x214] sm:$0xf]  ;;  %v9173_v16 = vld [vmem:[%s14464_s4 + $0x210] sm:$0xf] }
 0x196   : > { %14588 = vst [vmem:[#allocation91_spill] sm:$0xff] %v12125_v49  ;;  %1601 = vmatmul.mubr.bf16.gmra.mxu0 %v10321_v24  ;;  %1641 = vmatmul.mubr.bf16.gmra.mxu1 %v10322_v39 }
 0x197   : > { %1648 = vmatprep.mubr.bf16.mxu1 %v10323_v33  ;;  %v9188_v33 = vld [vmem:[%s14464_s4 + $0x24c] sm:$0xf] }
 0x198   : > { %v12135_v9 = vpop.permute.xlu1 %4021 }
 0x199   : > { %v12133_v54 = vpop.permute.xlu0 %4009  ;;  %14590 = vst [vmem:[#allocation93_spill] sm:$0xff] %v12135_v9  ;;  %5875 = vperm.xlu1 %10274, %v9176_v56   ;;  %5863 = vperm.xlu0 %10273, %v9175_v13   ;;  %v9187_v56 = vld [vmem:[%s14464_s4 + $0x248] sm:$0xf]  ;;  %v10328_v13 = vld [vmem:[#allocation4 + $0xb0] ss:$8 sps:$4 sm:$0xff]  }
 0x19a   : > { %14589 = vst [vmem:[#allocation92_spill] sm:$0xff] %v12133_v54  ;;  %v8462_v54 = vld [vmem:[%s14465_s5 + $0x58] sm:$0xff] }
 0x19c   : > { %v12151_v39 = vpop.permute.xlu1 %3829 }
 0x19d   : > { %v12143_v24 = vpop.permute.xlu0 %3817  ;;  %6043 = vperm.xlu1 %10274, %v9190_v12   ;;  %6031 = vperm.xlu0 %10273, %v9189_v34   ;;  %14592 = vst [vmem:[#allocation95_spill] sm:$0xff] %v12151_v39  ;;  %v10329_v34 = vld [vmem:[#allocation4 + $0xc4] ss:$8 sps:$4 sm:$0xff]  }
 0x19e   : > { %14591 = vst [vmem:[#allocation94_spill] sm:$0xff] %v12143_v24  ;;  %1649 = vmatmul.mubr.bf16.gmra.mxu1 %v10325_v25 }
 0x19f   : > { %1656 = vmatprep.mubr.bf16.mxu1 %v10326_v60  ;;  %v9172_v60 = vld [vmem:[%s14464_s4 + $0x20c] sm:$0xf] }
 0x1a0   : > { %v12161_v25 = vpop.permute.xlu1 %3997 }
 0x1a1   : > { %5851 = vperm.xlu1 %10274, %v9174_v38   ;;  %5839 = vperm.xlu0 %10273, %v9173_v16   ;;  %v12159_v12 = vpop.permute.xlu0 %3985  ;;  %14594 = vst [vmem:[#allocation97_spill] sm:$0xff] %v12161_v25  ;;  %v9171_v38 = vld [vmem:[%s14464_s4 + $0x208] sm:$0xf] }
 0x1a2   : > { %14593 = vst [vmem:[#allocation96_spill] sm:$0xff] %v12159_v12  ;;  %v10332_v12 = vld [vmem:[#allocation4 + $0xd4] ss:$8 sps:$4 sm:$0xff]  }
 0x1a5   : > { %6019 = vperm.xlu1 %10274, %v9188_v33   ;;  %6007 = vperm.xlu0 %10273, %v9187_v56   ;;  %v12169_v16 = vpop.permute.xlu0 %3793  ;;  %v9185_v33 = vld [vmem:[%s14464_s4 + $0x240] sm:$0xf] }
 0x1a6   : > { %1657 = vmatmul.mubr.bf16.gmra.mxu1 %v10328_v13  ;;  %14595 = vst [vmem:[#allocation98_spill] sm:$0xff] %v12169_v16  ;;  %v10331_v56 = vld [vmem:[#allocation4 + $0xc0] ss:$8 sps:$4 sm:$0xff]   ;;  %v12177_v13 = vpop.permute.xlu1 %3805 }
 0x1a7   : > { %1664 = vmatprep.mubr.bf16.mxu1 %v10329_v34  ;;  %14596 = vst [vmem:[#allocation99_spill] sm:$0xff] %v12177_v13  ;;  %v9170_v34 = vld [vmem:[%s14464_s4 + $0x204] sm:$0xf] }
 0x1a8   : > { %v10335_v13 = vld [vmem:[#allocation4 + $0xe4] ss:$8 sps:$4 sm:$0xff]  }
 0x1a9   : > { %5827 = vperm.xlu1 %10274, %v9172_v60   ;;  %5815 = vperm.xlu0 %10273, %v9171_v38   ;;  %v9169_v60 = vld [vmem:[%s14464_s4 + $0x200] sm:$0xf]  ;;  %v12185_v38 = vpop.permute.xlu0 %3961 }
 0x1aa   : > { %14597 = vst [vmem:[#allocation100_spill] sm:$0xff] %v12185_v38  ;;  %v12187_v16 = vpop.permute.xlu1 %3973  ;;  %v10338_v38 = vld [vmem:[#allocation4 + $0xf4] ss:$8 sps:$4 sm:$0xff]  }
 0x1ab   : > { %14598 = vst [vmem:[#allocation101_spill] sm:$0xff] %v12187_v16 }
 0x1ad   : > { %5995 = vperm.xlu1 %10274, %v9186_v18   ;;  %5983 = vperm.xlu0 %10273, %v9185_v33   ;;  %v9280_v18 = vld [vmem:[%s14464_s4 + $0x2fc] sm:$0xf]  ;;  %v9279_v33 = vld [vmem:[%s14464_s4 + $0x2f8] sm:$0xf]  ;;  %v12195_v25 = vpop.permute.xlu0 %3769 }
 0x1ae   : > { %1665 = vmatmul.mubr.bf16.gmra.mxu1 %v10331_v56  ;;  %v10334_v56 = vld [vmem:[#allocation4 + $0xd0] ss:$8 sps:$4 sm:$0xff]   ;;  %14599 = vst [vmem:[#allocation102_spill] sm:$0xff] %v12195_v25 }
 0x1af   : > { %1672 = vmatprep.mubr.bf16.mxu1 %v10332_v12  ;;  %v9264_v12 = vld [vmem:[%s14464_s4 + $0x2bc] sm:$0xf]  ;;  %v9278_v25 = vld [vmem:[%s14464_s4 + $0x2f4] sm:$0xf] }
 0x1b1   : > { %5803 = vperm.xlu1 %10274, %v9170_v34   ;;  %5791 = vperm.xlu0 %10273, %v9169_v60   ;;  %v9263_v34 = vld [vmem:[%s14464_s4 + $0x2b8] sm:$0xf]  ;;  %v12203_v60 = vpop.permute.xlu1 %3781 }
 0x1b2   : > { %14600 = vst [vmem:[#allocation103_spill] sm:$0xff] %v12203_v60 }
 0x1b5   : > { %7174 = vperm.xlu1 %10274, %v9280_v18   ;;  %7162 = vperm.xlu0 %10273, %v9279_v33   ;;  %v9277_v18 = vld [vmem:[%s14464_s4 + $0x2f0] sm:$0xf]  ;;  %v10337_v33 = vld [vmem:[#allocation4 + $0xe0] ss:$8 sps:$4 sm:$0xff]   ;;  %v12213_v16 = vpop.permute.xlu1 %5152 }
 0x1b6   : > { %1673 = vmatmul.mubr.bf16.gmra.mxu1 %v10334_v56  ;;  %v12211_v56 = vpop.permute.xlu0 %5140  ;;  %14602 = vst [vmem:[#allocation105_spill] sm:$0xff] %v12213_v16 }
 0x1b7   : > { %1680 = vmatprep.mubr.bf16.mxu1 %v10335_v13  ;;  %14601 = vst [vmem:[#allocation104_spill] sm:$0xff] %v12211_v56  ;;  %v9262_v13 = vld [vmem:[%s14464_s4 + $0x2b4] sm:$0xf]  ;;  %v9276_v56 = vld [vmem:[%s14464_s4 + $0x2ec] sm:$0xf] }
 0x1b9   : > { %6982 = vperm.xlu1 %10274, %v9264_v12   ;;  %6970 = vperm.xlu0 %10273, %v9263_v34   ;;  %v9261_v12 = vld [vmem:[%s14464_s4 + $0x2b0] sm:$0xf] }
 0x1ba   : > { %v12221_v34 = vpop.permute.xlu0 %4948 }
 0x1bb   : > { %14603 = vst [vmem:[#allocation106_spill] sm:$0xff] %v12221_v34 }
 0x1bd   : > { %7150 = vperm.xlu1 %10274, %v9278_v25   ;;  %7138 = vperm.xlu0 %10273, %v9277_v18   ;;  %v9275_v25 = vld [vmem:[%s14464_s4 + $0x2e8] sm:$0xf]  ;;  %v10340_v18 = vld [vmem:[#allocation4 + $0xf0] ss:$8 sps:$4 sm:$0xff]  }
 0x1be   : > { %1681 = vmatmul.mubr.bf16.gmra.mxu1 %v10337_v33  ;;  %v12229_v33 = vpop.permute.xlu1 %4960 }
 0x1bf   : > { %1688 = vmatprep.mubr.bf16.mxu1 %v10338_v38  ;;  %14604 = vst [vmem:[#allocation107_spill] sm:$0xff] %v12229_v33  ;;  %v9260_v38 = vld [vmem:[%s14464_s4 + $0x2ac] sm:$0xf] }
 0x1c1   : > { %6958 = vperm.xlu1 %10274, %v9262_v13   ;;  %6946 = vperm.xlu0 %10273, %v9261_v12   ;;  %v9259_v13 = vld [vmem:[%s14464_s4 + $0x2a8] sm:$0xf]  ;;  %v12237_v12 = vpop.permute.xlu0 %5116 }
 0x1c2   : > { %14605 = vst [vmem:[#allocation108_spill] sm:$0xff] %v12237_v12  ;;  %v12239_v16 = vpop.permute.xlu1 %5128  ;;  %v9258_v12 = vld [vmem:[%s14464_s4 + $0x2a4] sm:$0xf] }
 0x1c3   : > { %14606 = vst [vmem:[#allocation109_spill] sm:$0xff] %v12239_v16  ;;  %v9272_v16 = vld [vmem:[%s14464_s4 + $0x2dc] sm:$0xf] }
 0x1c5   : > { %7126 = vperm.xlu1 %10274, %v9276_v56   ;;  %7114 = vperm.xlu0 %10273, %v9275_v25   ;;  %v9274_v56 = vld [vmem:[%s14464_s4 + $0x2e4] sm:$0xf]  ;;  %v9273_v25 = vld [vmem:[%s14464_s4 + $0x2e0] sm:$0xf] }
 0x1c6   : > { %1689 = vmatmul.mubr.bf16.gmra.mxu1 %v10340_v18  ;;  %v12247_v18 = vpop.permute.xlu0 %4924 }
 0x1c7   : > { %14607 = vst [vmem:[#allocation110_spill] sm:$0xff] %v12247_v18 }
 0x1c9   : > { %6934 = vperm.xlu1 %10274, %v9260_v38   ;;  %6922 = vperm.xlu0 %10273, %v9259_v13   ;;  %v9257_v38 = vld [vmem:[%s14464_s4 + $0x2a0] sm:$0xf]  ;;  %v12255_v13 = vpop.permute.xlu1 %4936 }
 0x1ca   : > { %14608 = vst [vmem:[#allocation111_spill] sm:$0xff] %v12255_v13  ;;  %v9256_v13 = vld [vmem:[%s14464_s4 + $0x29c] sm:$0xf] }
 0x1cd   : > { %7102 = vperm.xlu1 %10274, %v9274_v56   ;;  %7090 = vperm.xlu0 %10273, %v9273_v25   ;;  %v9271_v56 = vld [vmem:[%s14464_s4 + $0x2d8] sm:$0xf]  ;;  %v12263_v25 = vpop.permute.xlu0 %5092  ;;  %v12265_v18 = vpop.permute.xlu1 %5104 }
 0x1ce   : > { %14609 = vst [vmem:[#allocation112_spill] sm:$0xff] %v12263_v25  ;;  %14610 = vst [vmem:[#allocation113_spill] sm:$0xff] %v12265_v18  ;;  %v9270_v25 = vld [vmem:[%s14464_s4 + $0x2d4] sm:$0xf] }
 0x1cf   : > { %v9254_v18 = vld [vmem:[%s14464_s4 + $0x294] sm:$0xf] }
 0x1d1   : > { %6910 = vperm.xlu1 %10274, %v9258_v12   ;;  %6898 = vperm.xlu0 %10273, %v9257_v38   ;;  %v9255_v12 = vld [vmem:[%s14464_s4 + $0x298] sm:$0xf]  ;;  %v12273_v38 = vpop.permute.xlu0 %4900 }
 0x1d2   : > { %14611 = vst [vmem:[#allocation114_spill] sm:$0xff] %v12273_v38 }
 0x1d5   : > { %7078 = vperm.xlu1 %10274, %v9272_v16   ;;  %7066 = vperm.xlu0 %10273, %v9271_v56   ;;  %v9269_v16 = vld [vmem:[%s14464_s4 + $0x2d0] sm:$0xf]  ;;  %v12281_v56 = vpop.permute.xlu1 %4912 }
 0x1d6   : > { %14612 = vst [vmem:[#allocation115_spill] sm:$0xff] %v12281_v56  ;;  %v9268_v56 = vld [vmem:[%s14464_s4 + $0x2cc] sm:$0xf] }
 0x1d9   : > { %6886 = vperm.xlu1 %10274, %v9256_v13   ;;  %6874 = vperm.xlu0 %10273, %v9255_v12   ;;  %v9253_v13 = vld [vmem:[%s14464_s4 + $0x290] sm:$0xf]  ;;  %v12289_v12 = vpop.permute.xlu0 %5068  ;;  %v12291_v38 = vpop.permute.xlu1 %5080 }
 0x1da   : > { %14613 = vst [vmem:[#allocation116_spill] sm:$0xff] %v12289_v12  ;;  %14614 = vst [vmem:[#allocation117_spill] sm:$0xff] %v12291_v38  ;;  %v9252_v12 = vld [vmem:[%s14464_s4 + $0x28c] sm:$0xf]  ;;  %v9266_v38 = vld [vmem:[%s14464_s4 + $0x2c4] sm:$0xf] }
 0x1dd   : > { %7054 = vperm.xlu1 %10274, %v9270_v25   ;;  %7042 = vperm.xlu0 %10273, %v9269_v16   ;;  %v9267_v25 = vld [vmem:[%s14464_s4 + $0x2c8] sm:$0xf]  ;;  %v12299_v16 = vpop.permute.xlu0 %4876 }
 0x1de   : > { %14615 = vst [vmem:[#allocation118_spill] sm:$0xff] %v12299_v16 }
 0x1e1   : > { %6862 = vperm.xlu1 %10274, %v9254_v18   ;;  %6850 = vperm.xlu0 %10273, %v9253_v13   ;;  %v9251_v18 = vld [vmem:[%s14464_s4 + $0x288] sm:$0xf]  ;;  %v12307_v13 = vpop.permute.xlu1 %4888 }
 0x1e2   : > { %14616 = vst [vmem:[#allocation119_spill] sm:$0xff] %v12307_v13  ;;  %v9250_v13 = vld [vmem:[%s14464_s4 + $0x284] sm:$0xf] }
 0x1e5   : > { %7030 = vperm.xlu1 %10274, %v9268_v56   ;;  %7018 = vperm.xlu0 %10273, %v9267_v25   ;;  %v9265_v56 = vld [vmem:[%s14464_s4 + $0x2c0] sm:$0xf]  ;;  %v12315_v25 = vpop.permute.xlu0 %5044  ;;  %v12317_v16 = vpop.permute.xlu1 %5056 }
 0x1e6   : > { %14617 = vst [vmem:[#allocation120_spill] sm:$0xff] %v12315_v25  ;;  %14618 = vst [vmem:[#allocation121_spill] sm:$0xff] %v12317_v16  ;;  %v9330_v25 = vld [vmem:[%s14464_s4 + $0x304] sm:$0xf]  ;;  %v9332_v16 = vld [vmem:[%s14464_s4 + $0x30c] sm:$0xf] }
 0x1e9   : > { %6838 = vperm.xlu1 %10274, %v9252_v12   ;;  %6826 = vperm.xlu0 %10273, %v9251_v18   ;;  %v9249_v12 = vld [vmem:[%s14464_s4 + $0x280] sm:$0xf]  ;;  %v12325_v18 = vpop.permute.xlu0 %4852 }
 0x1ea   : > { %14619 = vst [vmem:[#allocation122_spill] sm:$0xff] %v12325_v18 }
 0x1ed   : > { %7006 = vperm.xlu1 %10274, %v9266_v38   ;;  %6994 = vperm.xlu0 %10273, %v9265_v56   ;;  %v9329_v38 = vld [vmem:[%s14464_s4 + $0x300] sm:$0xf]  ;;  %v12333_v56 = vpop.permute.xlu1 %4864 }
 0x1ee   : > { %14620 = vst [vmem:[#allocation123_spill] sm:$0xff] %v12333_v56  ;;  %v9334_v56 = vld [vmem:[%s14464_s4 + $0x314] sm:$0xf] }
 0x1f1   : > { %6814 = vperm.xlu1 %10274, %v9250_v13   ;;  %6802 = vperm.xlu0 %10273, %v9249_v12   ;;  %v9331_v13 = vld [vmem:[%s14464_s4 + $0x308] sm:$0xf]  ;;  %v12341_v12 = vpop.permute.xlu0 %5020  ;;  %v12343_v18 = vpop.permute.xlu1 %5032 }
 0x1f2   : > { %14621 = vst [vmem:[#allocation124_spill] sm:$0xff] %v12341_v12  ;;  %14622 = vst [vmem:[#allocation125_spill] sm:$0xff] %v12343_v18  ;;  %v9336_v12 = vld [vmem:[%s14464_s4 + $0x31c] sm:$0xf]  ;;  %v9338_v18 = vld [vmem:[%s14464_s4 + $0x324] sm:$0xf] }
 0x1f5   : > { %7825 = vperm.xlu1 %10274, %v9330_v25   ;;  %7813 = vperm.xlu0 %10273, %v9329_v38   ;;  %v9333_v25 = vld [vmem:[%s14464_s4 + $0x310] sm:$0xf]  ;;  %v12351_v38 = vpop.permute.xlu0 %4828 }
 0x1f6   : > { %14623 = vst [vmem:[#allocation126_spill] sm:$0xff] %v12351_v38 }
 0x1f9   : > { %7849 = vperm.xlu1 %10274, %v9332_v16   ;;  %7837 = vperm.xlu0 %10273, %v9331_v13   ;;  %v9335_v16 = vld [vmem:[%s14464_s4 + $0x318] sm:$0xf]  ;;  %v12359_v13 = vpop.permute.xlu1 %4840 }
 0x1fa   : > { %14624 = vst [vmem:[#allocation127_spill] sm:$0xff] %v12359_v13  ;;  %v9340_v13 = vld [vmem:[%s14464_s4 + $0x32c] sm:$0xf] }
 0x1fd   : > { %7873 = vperm.xlu1 %10274, %v9334_v56   ;;  %7861 = vperm.xlu0 %10273, %v9333_v25   ;;  %v9337_v56 = vld [vmem:[%s14464_s4 + $0x320] sm:$0xf]  ;;  %v12367_v25 = vpop.permute.xlu0 %4996  ;;  %v12369_v38 = vpop.permute.xlu1 %5008 }
 0x1fe   : > { %14625 = vst [vmem:[#allocation128_spill] sm:$0xff] %v12367_v25  ;;  %14626 = vst [vmem:[#allocation129_spill] sm:$0xff] %v12369_v38  ;;  %v9342_v25 = vld [vmem:[%s14464_s4 + $0x334] sm:$0xf]  ;;  %v9344_v38 = vld [vmem:[%s14464_s4 + $0x33c] sm:$0xf] }
 0x201   : > { %7897 = vperm.xlu1 %10274, %v9336_v12   ;;  %7885 = vperm.xlu0 %10273, %v9335_v16   ;;  %v9339_v12 = vld [vmem:[%s14464_s4 + $0x328] sm:$0xf]  ;;  %v12377_v16 = vpop.permute.xlu0 %4804 }
 0x202   : > { %14627 = vst [vmem:[#allocation130_spill] sm:$0xff] %v12377_v16 }
 0x205   : > { %7921 = vperm.xlu1 %10274, %v9338_v18   ;;  %7909 = vperm.xlu0 %10273, %v9337_v56   ;;  %v9341_v18 = vld [vmem:[%s14464_s4 + $0x330] sm:$0xf]  ;;  %v12385_v56 = vpop.permute.xlu1 %4816 }
 0x206   : > { %14628 = vst [vmem:[#allocation131_spill] sm:$0xff] %v12385_v56  ;;  %v9346_v56 = vld [vmem:[%s14464_s4 + $0x344] sm:$0xf] }
 0x209   : > { %7945 = vperm.xlu1 %10274, %v9340_v13   ;;  %7933 = vperm.xlu0 %10273, %v9339_v12   ;;  %v9343_v13 = vld [vmem:[%s14464_s4 + $0x338] sm:$0xf]  ;;  %v12393_v12 = vpop.permute.xlu0 %4972  ;;  %v12395_v16 = vpop.permute.xlu1 %4984 }
 0x20a   : > { %14629 = vst [vmem:[#allocation132_spill] sm:$0xff] %v12393_v12  ;;  %14630 = vst [vmem:[#allocation133_spill] sm:$0xff] %v12395_v16  ;;  %v9348_v12 = vld [vmem:[%s14464_s4 + $0x34c] sm:$0xf]  ;;  %v9350_v16 = vld [vmem:[%s14464_s4 + $0x354] sm:$0xf] }
 0x20d   : > { %7969 = vperm.xlu1 %10274, %v9342_v25   ;;  %7957 = vperm.xlu0 %10273, %v9341_v18   ;;  %v9345_v25 = vld [vmem:[%s14464_s4 + $0x340] sm:$0xf]  ;;  %v12403_v18 = vpop.permute.xlu0 %4780 }
 0x20e   : > { %14631 = vst [vmem:[#allocation134_spill] sm:$0xff] %v12403_v18 }
 0x211   : > { %7993 = vperm.xlu1 %10274, %v9344_v38   ;;  %7981 = vperm.xlu0 %10273, %v9343_v13   ;;  %v9347_v38 = vld [vmem:[%s14464_s4 + $0x348] sm:$0xf]  ;;  %v12411_v13 = vpop.permute.xlu1 %4792 }
 0x212   : > { %14632 = vst [vmem:[#allocation135_spill] sm:$0xff] %v12411_v13  ;;  %v9352_v13 = vld [vmem:[%s14464_s4 + $0x35c] sm:$0xf] }
 0x215   : > { %8017 = vperm.xlu1 %10274, %v9346_v56   ;;  %8005 = vperm.xlu0 %10273, %v9345_v25   ;;  %v9349_v56 = vld [vmem:[%s14464_s4 + $0x350] sm:$0xf]  ;;  %v12419_v25 = vpop.permute.xlu0 %6151  ;;  %v12421_v18 = vpop.permute.xlu1 %6163 }
 0x216   : > { %14633 = vst [vmem:[#allocation136_spill] sm:$0xff] %v12419_v25  ;;  %14634 = vst [vmem:[#allocation137_spill] sm:$0xff] %v12421_v18  ;;  %v9354_v25 = vld [vmem:[%s14464_s4 + $0x364] sm:$0xf]  ;;  %v9356_v18 = vld [vmem:[%s14464_s4 + $0x36c] sm:$0xf] }
 0x219   : > { %8041 = vperm.xlu1 %10274, %v9348_v12   ;;  %8029 = vperm.xlu0 %10273, %v9347_v38   ;;  %v9351_v12 = vld [vmem:[%s14464_s4 + $0x358] sm:$0xf]  ;;  %v12429_v38 = vpop.permute.xlu0 %5959 }
 0x21a   : > { %14635 = vst [vmem:[#allocation138_spill] sm:$0xff] %v12429_v38 }
 0x21d   : > { %8065 = vperm.xlu1 %10274, %v9350_v16   ;;  %8053 = vperm.xlu0 %10273, %v9349_v56   ;;  %v9353_v16 = vld [vmem:[%s14464_s4 + $0x360] sm:$0xf]  ;;  %v12437_v56 = vpop.permute.xlu1 %5971 }
 0x21e   : > { %14636 = vst [vmem:[#allocation139_spill] sm:$0xff] %v12437_v56  ;;  %v9358_v56 = vld [vmem:[%s14464_s4 + $0x374] sm:$0xf] }
 0x221   : > { %8089 = vperm.xlu1 %10274, %v9352_v13   ;;  %8077 = vperm.xlu0 %10273, %v9351_v12   ;;  %v9355_v13 = vld [vmem:[%s14464_s4 + $0x368] sm:$0xf]  ;;  %v12445_v12 = vpop.permute.xlu0 %6127  ;;  %v12447_v38 = vpop.permute.xlu1 %6139 }
 0x222   : > { %14637 = vst [vmem:[#allocation140_spill] sm:$0xff] %v12445_v12  ;;  %14638 = vst [vmem:[#allocation141_spill] sm:$0xff] %v12447_v38  ;;  %v8452_v12 = vld [vmem:[%s14465_s5 + $0x8] sm:$0xff]  ;;  %v8454_v38 = vld [vmem:[%s14465_s5 + $0x18] sm:$0xff] }
 0x225   : > { %8113 = vperm.xlu1 %10274, %v9354_v25   ;;  %8101 = vperm.xlu0 %10273, %v9353_v16   ;;  %v9357_v25 = vld [vmem:[%s14464_s4 + $0x370] sm:$0xf]  ;;  %v12455_v16 = vpop.permute.xlu0 %5935 }
 0x226   : > { %14639 = vst [vmem:[#allocation142_spill] sm:$0xff] %v12455_v16 }
 0x229   : > { %8137 = vperm.xlu1 %10274, %v9356_v18   ;;  %8125 = vperm.xlu0 %10273, %v9355_v13   ;;  %v8451_v18 = vld [vmem:[%s14465_s5] sm:$0xff]  ;;  %v12463_v13 = vpop.permute.xlu1 %5947 }
 0x22a   : > { %14640 = vst [vmem:[#allocation143_spill] sm:$0xff] %v12463_v13 }
 0x22d   : > { %8161 = vperm.xlu1 %10274, %v9358_v56   ;;  %8149 = vperm.xlu0 %10273, %v9357_v25   ;;  %v8453_v56 = vld [vmem:[%s14465_s5 + $0x10] sm:$0xff]  ;;  %v12471_v25 = vpop.permute.xlu0 %6103  ;;  %v12473_v16 = vpop.permute.xlu1 %6115 }
 0x22e   : > { %14641 = vst [vmem:[#allocation144_spill] sm:$0xff] %v12471_v25  ;;  %14642 = vst [vmem:[#allocation145_spill] sm:$0xff] %v12473_v16 }
 0x231   : > { %8490 = vperm.xlu1 %10274, %v8452_v12   ;;  %8485 = vperm.xlu0 %10273, %v8451_v18   ;;  %v8456_v12 = vld [vmem:[%s14465_s5 + $0x28] sm:$0xff]  ;;  %v8455_v18 = vld [vmem:[%s14465_s5 + $0x20] sm:$0xff]  ;;  %v12481_v13 = vpop.permute.xlu0 %5911  ;;  %v12491_v25 = vpop.permute.xlu1 %5923 }
 0x232   : > { %14643 = vst [vmem:[#allocation146_spill] sm:$0xff] %v12481_v13  ;;  %14644 = vst [vmem:[#allocation147_spill] sm:$0xff] %v12491_v25 }
 0x235   : > { %8500 = vperm.xlu1 %10274, %v8454_v38   ;;  %8495 = vperm.xlu0 %10273, %v8453_v56   ;;  %v8458_v38 = vld [vmem:[%s14465_s5 + $0x38] sm:$0xff]  ;;  %v8457_v56 = vld [vmem:[%s14465_s5 + $0x30] sm:$0xff] }
 0x236   : > { %v9443_v34 = vpop.f32.mrf.mxu1  ;;  %v12493_v13 = vpop.f32.mrf.mxu0 }
 0x237   : > { %14645 = vst [vmem:[#allocation148_spill] sm:$0xff] %v12493_v13 }
 0x238   : > { %v9444_v33 = vpop.f32.mrf.mxu1 }
 0x239   : > { %8510 = vperm.xlu1 %10274, %v8456_v12   ;;  %8505 = vperm.xlu0 %10273, %v8455_v18   ;;  %v12483_v60 = vadd.f32 %v9444_v33, %v9443_v34  ;;  %v8460_v34 = vld [vmem:[%s14465_s5 + $0x48] sm:$0xff]  ;;  %v8459_v33 = vld [vmem:[%s14465_s5 + $0x40] sm:$0xff]  ;;  %v12503_v18 = vpop.permute.xlu0 %6079 }
 0x23a   : > { %v9446_v16 = vpop.f32.mrf.mxu1  ;;  %14646 = vst [vmem:[#allocation149_spill] sm:$0xff] %v12503_v18  ;;  %v8461_v18 = vld [vmem:[%s14465_s5 + $0x50] sm:$0xff] }
 0x23c   : > { %v9447_v24 = vpop.f32.mrf.mxu1 }
 0x23d   : > { %8520 = vperm.xlu1 %10274, %v8458_v38   ;;  %8515 = vperm.xlu0 %10273, %v8457_v56   ;;  %v12495_v12 = vadd.f32 %v9447_v24, %v9446_v16  ;;  %v12507_v38 = vpop.permute.xlu1 %6091  ;;  %v12509_v24 = vpop.f32.mrf.mxu0 }
 0x23e   : > { %v9449_v39 = vpop.f32.mrf.mxu1  ;;  %14647 = vst [vmem:[#allocation150_spill] sm:$0xff] %v12507_v38  ;;  %14648 = vst [vmem:[#allocation151_spill] sm:$0xff] %v12509_v24  ;;  %v12519_v49 = vpop.permute.xlu0 %5887 }
 0x23f   : > { %14649 = vst [vmem:[#allocation152_spill] sm:$0xff] %v12519_v49 }
 0x240   : > { %v9450_v56 = vpop.f32.mrf.mxu1 }
 0x241   : > { %8530 = vperm.xlu1 %10274, %v8460_v34   ;;  %8525 = vperm.xlu0 %10273, %v8459_v33   ;;  %v12511_v16 = vadd.f32 %v9450_v56, %v9449_v39  ;;  %v12521_v34 = vpop.f32.mrf.mxu0  ;;  %v8464_v39 = vld [vmem:[%s14465_s5 + $0x68] sm:$0xff]  ;;  %v8463_v56 = vld [vmem:[%s14465_s5 + $0x60] sm:$0xff]  ;;  %v12531_v38 = vpop.permute.xlu1 %5899 }
 0x242   : > { %v9452_v9 = vpop.f32.mrf.mxu1  ;;  %14650 = vst [vmem:[#allocation153_spill] sm:$0xff] %v12521_v34  ;;  %14651 = vst [vmem:[#allocation154_spill] sm:$0xff] %v12531_v38  ;;  %v8465_v38 = vld [vmem:[%s14465_s5 + $0x70] sm:$0xff]  ;;  %v12545_v45 = vpop.permute.xlu0 %6055 }
 0x243   : > { %14653 = vst [vmem:[#allocation156_spill] sm:$0xff] %v12545_v45  ;;  %v14695_v34 = vld [vmem:[#allocation25_spill] sm:$0xff] }
 0x244   : > { %v9453_v25 = vpop.f32.mrf.mxu1 }
 0x245   : > { %8540 = vperm.xlu1 %10274, %v8462_v54   ;;  %8535 = vperm.xlu0 %10273, %v8461_v18   ;;  %v12523_v33 = vadd.f32 %v9453_v25, %v9452_v9  ;;  %v10343_v18 = vld [vmem:[#allocation4 + $0x104] ss:$8 sps:$4 sm:$0xff]   ;;  %v12535_v9 = vpop.f32.mrf.mxu0  ;;  %v12547_v49 = vpop.permute.xlu1 %6067 }
 0x246   : > { %v9455_v31 = vpop.f32.mrf.mxu1  ;;  %14652 = vst [vmem:[#allocation155_spill] sm:$0xff] %v12535_v9  ;;  %2578 = vmatprep.mubr.bf16.mxu0 %v10343_v18  ;;  %14654 = vst [vmem:[#allocation157_spill] sm:$0xff] %v12547_v49  ;;  %v12561_v49 = vpop.permute.xlu0 %5863  ;;  %v14694_v9 = vld [vmem:[#allocation24_spill] sm:$0xff] }
 0x247   : > { %14656 = vst [vmem:[#allocation159_spill] sm:$0xff] %v12561_v49  ;;  %v2044_v37 = vrot.slane %v14694_v9, %v11668_v47 }
 0x248   : > { %v9456_v54 = vpop.f32.mrf.mxu1 }
 0x249   : > { %8550 = vperm.xlu1 %10274, %v8464_v39   ;;  %8545 = vperm.xlu0 %10273, %v8463_v56   ;;  %v12537_v25 = vadd.f32 %v9456_v54, %v9455_v31  ;;  %v12549_v56 = vpop.f32.mrf.mxu0  ;;  %v8466_v54 = vld [vmem:[%s14465_s5 + $0x78] sm:$0xff]  ;;  %v12573_v0 = vpop.permute.xlu1 %5875 }
 0x24a   : > { %v9458_v59 = vpop.f32.mrf.mxu1  ;;  %14655 = vst [vmem:[#allocation158_spill] sm:$0xff] %v12549_v56  ;;  %14659 = vst [vmem:[#allocation162_spill] sm:$0xff] %v12573_v0  ;;  %v12585_v49 = vpop.permute.xlu0 %6031  ;;  %v8895_v56 = vcombine.low %v2092_v15, %v2104_v52  ;;  %v14700_v15 = vld [vmem:[#allocation29_spill] sm:$0xff] }
 0x24b   : > { %14662 = vst [vmem:[#allocation165_spill] sm:$0xff] %v12585_v49  ;;  %v8471_v49 = vld [vmem:[%s14465_s5 + $0xa0] sm:$0xff]  ;;  %v1840_v52 = vrot.slane %v14700_v15, %v11668_v47 }
 0x24c   : > { %v9459_v39 = vpop.f32.mrf.mxu1 }
 0x24d   : > { %8173 = vperm.xlu1 %10274, %v9359_v20   ;;  %8555 = vperm.xlu0 %10273, %v8465_v38   ;;  %v12551_v31 = vadd.f32 %v9459_v39, %v9458_v59  ;;  %v12563_v38 = vpop.f32.mrf.mxu0  ;;  %v8468_v39 = vld [vmem:[%s14465_s5 + $0x88] sm:$0xff] }
 0x24e   : > { %v9461_v45 = vpop.f32.mrf.mxu1  ;;  %14657 = vst [vmem:[#allocation160_spill] sm:$0xff] %v12563_v38  ;;  %v12601_v55 = vpop.permute.xlu0 %5839  ;;  %v14698_v38 = vld [vmem:[#allocation28_spill] sm:$0xff] }
 0x24f   : > { %14666 = vst [vmem:[#allocation169_spill] sm:$0xff] %v12601_v55  ;;  %v8475_v55 = vld [vmem:[%s14465_s5 + $0xc0] sm:$0xff]  ;;  %v14699_v9 = vpack.c.bf16 %v12551_v31, %v12537_v25 }
 0x250   : > { %v9462_v20 = vpop.f32.mrf.mxu1  ;;  %v14703_v25 = vld [vmem:[#allocation31_spill] sm:$0xff] }
 0x251   : > { %8560 = vperm.xlu1 %10274, %v8466_v54   ;;  %8185 = vperm.xlu0 %10273, %v9360_v43   ;;  %v12565_v59 = vadd.f32 %v9462_v20, %v9461_v45  ;;  %v12575_v54 = vpop.f32.mrf.mxu0  ;;  %v8470_v45 = vld [vmem:[%s14465_s5 + $0x98] sm:$0xff]  ;;  %v8469_v20 = vld [vmem:[%s14465_s5 + $0x90] sm:$0xff]  ;;  %v2008_v31 = vrot.slane %v14703_v25, %v11668_v47 }
 0x252   : > { %v9464_v18 = vpop.f32.mrf.mxu1  ;;  %14660 = vst [vmem:[#allocation163_spill] sm:$0xff] %v12575_v54  ;;  %v14697_v54 = vld [vmem:[#allocation27_spill] sm:$0xff] }
 0x253   : > { %14658 = vst [vmem:[#allocation161_spill] sm:$0xff] %v12565_v59  ;;  %v14690_v59 = vld [vmem:[#allocation17_spill] sm:$0xff] }
 0x254   : > { %v9465_v7 = vpop.f32.mrf.mxu1  ;;  %v2068_v40 = vrot.slane %v14690_v59, %v11668_v47 }
 0x255   : > { %8570 = vperm.xlu1 %10274, %v8468_v39   ;;  %8565 = vperm.xlu0 %10273, %v8467_v53   ;;  %v12577_v43 = vadd.f32 %v9465_v7, %v9464_v18  ;;  %v12589_v39 = vpop.permute.xlu1 %6043  ;;  %v12591_v7 = vpop.f32.mrf.mxu0 }
 0x256   : > { %v9467_v50 = vpop.f32.mrf.mxu1  ;;  %14663 = vst [vmem:[#allocation166_spill] sm:$0xff] %v12589_v39  ;;  %14664 = vst [vmem:[#allocation167_spill] sm:$0xff] %v12591_v7  ;;  %v14696_v7 = vld [vmem:[#allocation26_spill] sm:$0xff] }
 0x257   : > { %14661 = vst [vmem:[#allocation164_spill] sm:$0xff] %v12577_v43  ;;  %v1876_v43 = vrot.slane %v14692_v2, %v11668_v47  ;;  %v2032_v2 = vrot.slane %v14697_v54, %v11668_v47 }
 0x258   : > { %v9468_v53 = vpop.f32.mrf.mxu1 }
 0x259   : > { %8580 = vperm.xlu1 %10274, %v8470_v45   ;;  %8575 = vperm.xlu0 %10273, %v8469_v20   ;;  %v12593_v18 = vadd.f32 %v9468_v53, %v9467_v50  ;;  %v12603_v45 = vpop.f32.mrf.mxu0  ;;  %v8474_v50 = vld [vmem:[%s14465_s5 + $0xb8] sm:$0xff]  ;;  %v8473_v53 = vld [vmem:[%s14465_s5 + $0xb0] sm:$0xff]  ;;  %v12613_v39 = vpop.permute.xlu1 %5851 }
 0x25a   : > { %v9470_v10 = vpop.f32.mrf.mxu1  ;;  %14668 = vst [vmem:[#allocation171_spill] sm:$0xff] %v12613_v39  ;;  %v12629_v39 = vpop.permute.xlu0 %6007 }
 0x25b   : > { %14665 = vst [vmem:[#allocation168_spill] sm:$0xff] %v12593_v18  ;;  %14672 = vst [vmem:[#allocation175_spill] sm:$0xff] %v12629_v39  ;;  %v2056_v18 = vrot.slane %v14693_v36, %v11668_v47  ;;  %v2020_v36 = vrot.slane %v14698_v38, %v11668_v47 }
 0x25c   : > { %v9471_v0 = vpop.f32.mrf.mxu1 }
 0x25d   : > { %8590 = vperm.xlu1 %10274, %v8472_v63   ;;  %8585 = vperm.xlu0 %10273, %v8471_v49   ;;  %v12605_v20 = vadd.f32 %v9471_v0, %v9470_v10  ;;  %v12621_v10 = vpop.f32.mrf.mxu0  ;;  %v8476_v0 = vld [vmem:[%s14465_s5 + $0xc8] sm:$0xff]  ;;  %v12633_v61 = vpop.permute.xlu1 %6019 }
 0x25e   : > { %v12615_v17 = vpop.f32.mrf.mxu1  ;;  %14671 = vst [vmem:[#allocation174_spill] sm:$0xff] %v12621_v10  ;;  %14673 = vst [vmem:[#allocation176_spill] sm:$0xff] %v12633_v61  ;;  %v12647_v39 = vpop.permute.xlu0 %5815  ;;  %v8479_v61 = vld [vmem:[%s14465_s5 + $0xe0] sm:$0xff] }
 0x25f   : > { %14667 = vst [vmem:[#allocation170_spill] sm:$0xff] %v12605_v20  ;;  %14669 = vst [vmem:[#allocation172_spill] sm:$0xff] %v12615_v17 }
 0x260   : > { %v12619_v49 = vpop.f32.mrf.mxu1  ;;  %14675 = vst [vmem:[#allocation178_spill] sm:$0xff] %v12647_v39  ;;  %v8481_v39 = vld [vmem:[%s14465_s5 + $0xf0] sm:$0xff] }
 0x261   : > { %14670 = vst [vmem:[#allocation173_spill] sm:$0xff] %v12619_v49  ;;  %8600 = vperm.xlu1 %10274, %v8474_v50   ;;  %8595 = vperm.xlu0 %10273, %v8473_v53   ;;  %v12637_v50 = vpop.f32.mrf.mxu0  ;;  %v8478_v53 = vld [vmem:[%s14465_s5 + $0xd8] sm:$0xff]  ;;  %v12659_v8 = vpop.permute.xlu1 %5827  ;;  %v8893_v49 = vcombine.low %v2044_v37, %v2056_v18 }
 0x262   : > { %v12631_v51 = vpop.f32.mrf.mxu1  ;;  %14674 = vst [vmem:[#allocation177_spill] sm:$0xff] %v12637_v50  ;;  %14677 = vst [vmem:[#allocation180_spill] sm:$0xff] %v12659_v8  ;;  %v12673_v27 = vpop.permute.xlu0 %5983  ;;  %v14705_v37 = vld [vmem:[#allocation33_spill] sm:$0xff] }
 0x263   : > { %14678 = vst [vmem:[#allocation181_spill] sm:$0xff] %v12673_v27 }
 0x264   : > { %v12635_v63 = vpop.f32.mrf.mxu1 }
 0x265   : > { %8610 = vperm.xlu1 %10274, %v8476_v0   ;;  %8605 = vperm.xlu0 %10273, %v8475_v55   ;;  %v12651_v0 = vpop.f32.mrf.mxu0  ;;  %v8480_v55 = vld [vmem:[%s14465_s5 + $0xe8] sm:$0xff]  ;;  %v12677_v8 = vpop.permute.xlu1 %5995 }
 0x266   : > { %v12645_v4 = vpop.f32.mrf.mxu1  ;;  %14676 = vst [vmem:[#allocation179_spill] sm:$0xff] %v12651_v0  ;;  %14679 = vst [vmem:[#allocation182_spill] sm:$0xff] %v12677_v8  ;;  %v12683_v41 = vpop.permute.xlu0 %5791 }
 0x267   : > { %14680 = vst [vmem:[#allocation183_spill] sm:$0xff] %v12683_v41  ;;  %v14683_v41 = vld [vmem:[#allocation7_spill] sm:$0xff] }
 0x268   : > { %v12649_v57 = vpop.f32.mrf.mxu1 }
 0x269   : > { %8620 = vperm.xlu1 %10274, %v8478_v53   ;;  %8615 = vperm.xlu0 %10273, %v8477_v22   ;;  %v12665_v53 = vpop.f32.mrf.mxu0  ;;  %v8482_v22 = vld [vmem:[%s14465_s5 + $0xf8] sm:$0xff] }
 0x26a   : > { %v12661_v3 = vpop.f32.mrf.mxu1 }
 0x26c   : > { %v12663_v21 = vpop.f32.mrf.mxu1 }
 0x26d   : > { %8630 = vperm.xlu1 %10274, %v8480_v55   ;;  %8625 = vperm.xlu0 %10273, %v8479_v61   ;;  %v12681_v61 = vpop.f32.mrf.mxu0  ;;  %v8712_v55 = vld [vmem:[#allocation2] sm:$0x1] }
 0x26e   : > { %v12675_v46 = vpop.f32.mrf.mxu1 }
 0x26f   : > { %v12685_v48 = vpop.f32.mrf.mxu0 }
 0x270   : > { %v12679_v1 = vpop.f32.mrf.mxu1 }
 0x271   : > { %8640 = vperm.xlu1 %10274, %v8482_v22   ;;  %8635 = vperm.xlu0 %10273, %v8481_v39   ;;  %v12687_v26 = vpop.f32.mrf.mxu0  ;;  %v14681_v22 = vld [vmem:[#allocation9_spill] sm:$0xff] }
 0x272   : > { %v9488_v14 = vpop.f32.mrf.mxu1  ;;  %v1936_v39 = vrot.slane %v14681_v22, %v11668_v47 }
 0x273   : > { %v9437_v35 = vpop.f32.mrf.mxu0 }
 0x274   : > { %v9489_v6 = vpop.f32.mrf.mxu1  ;;  %v8888_v29 = vcombine.low %v1924_v23, %v1936_v39  ;;  %v14691_v23 = vld [vmem:[#allocation20_spill] sm:$0xff] }
 0x275   : > { %8715 = vperm.xlu0 %10273, %v8712_v55   ;;  %v2128_v55 = vrot.slane %v14683_v41, %v11668_v47  ;;  %v9438_v5 = vpop.f32.mrf.mxu0  ;;  %v14689_v41 = vld [vmem:[#allocation16_spill] sm:$0xff]  ;;  %v1888_v39 = vrot.slane %v14691_v23, %v11668_v47  ;;  %v1852_v23 = vrot.slane %v14696_v7, %v11668_v47  ;;  %v9490_v17 = vadd.f32 %v9489_v6, %v9488_v14 }
 0x276   : > { %v9491_v30 = vpop.f32.mrf.mxu1  ;;  %v2080_v44 = vrot.slane %v14689_v41, %v11668_v47  ;;  %v1864_v41 = vrot.slane %v14695_v34, %v11668_v47  ;;  %v12728_v0 = vadd.bf16 %v8888_v29, %v14699_v9  ;;  %v14701_v29 = vpack.c.bf16 %v12523_v33, %v12511_v16  ;;  %v14713_v9 = vld [vmem:[#allocation177_spill] sm:$0xff] }
 0x277   : > { %v9440_v24 = vpop.f32.mrf.mxu0  ;;  %v8886_v50 = vcombine.low %v1876_v43, %v1888_v39  ;;  %v9487_v14 = vadd.f32 %v12679_v1, %v12675_v46  ;;  %v9484_v43 = vadd.f32 %v12663_v21, %v12661_v3  ;;  %v9433_v46 = vadd.f32 %v12681_v61, %v12665_v53  ;;  %v14707_v53 = vld [vmem:[#allocation34_spill] sm:$0xff] }
 0x278   : > { %v9492_v27 = vpop.f32.mrf.mxu1  ;;  %v2279_v6 = vmul.bf16 1069105081, %v12728_v0  ;;  %v9436_v21 = vadd.f32 %v12687_v26, %v12685_v48  ;;  %v9481_v3 = vadd.f32 %v12649_v57, %v12645_v4  ;;  %v1804_v26 = vrot.slane %v14707_v53, %v11668_v47  ;;  %v14708_v48 = vld [vmem:[#allocation35_spill] sm:$0xff]  ;;  %v14709_v4 = vld [vmem:[#allocation36_spill] sm:$0xff] }
 0x279   : > { %v9441_v54 = vpop.f32.mrf.mxu0  ;;  %v1709_v18 = vpack.c.bf16 %v9490_v17, %v9487_v14  ;;  %v1984_v57 = vrot.slane %v14708_v48, %v11668_v47  ;;  %v1972_v61 = vrot.slane %v14709_v4, %v11668_v47  ;;  %v14718_v14 = vld [vmem:[#allocation167_spill] sm:$0xff]  ;;  %v14730_v48 = vld [vmem:[#allocation168_spill] sm:$0xff]  ;;  %vm2248_vm2 = vcmp.gt.bf16.partialorder %v12728_v0, 0 }
 0x27a   : > { %v9494_v19 = vpop.f32.mrf.mxu1  ;;  %v9442_v38 = vadd.f32 %v9441_v54, %v9440_v24  ;;  %10661 = vpow.bf16 %v2279_v6  ;;  %v14717_v6 = vld [vmem:[#allocation163_spill] sm:$0xff] }
 0x27c   : > { %v9495_v8 = vpop.f32.mrf.mxu1 }
 0x27d   : > { %v9496_v20 = vadd.f32 %v9495_v8, %v9494_v19  ;;  %v9493_v19 = vadd.f32 %v9492_v27, %v9491_v30  ;;  %v8885_v30 = vcombine.low %v1852_v23, %v1864_v41  ;;  %v8892_v27 = vcombine.low %v2020_v36, %v2032_v2  ;;  %v14712_v36 = vld [vmem:[#allocation173_spill] sm:$0xff] }
 0x27e   : > { %v9497_v42 = vpop.f32.mrf.mxu1  ;;  %v1816_v41 = vrot.slane %v14705_v37, %v11668_v47  ;;  %v14723_v37 = vld [vmem:[#allocation43_spill] sm:$0xff] }
 0x280   : > { %v9498_v58 = vpop.f32.mrf.mxu1 }
 0x281   : > { %v9499_v13 = vadd.f32 %v9498_v58, %v9497_v42  ;;  %v8896_v58 = vcombine.low %v2116_v28, %v2128_v55  ;;  %v8887_v42 = vcombine.low %v1900_v11, %v1912_v32 }
 0x282   : > { %v9500_v22 = vpop.f32.mrf.mxu1 }
 0x284   : > { %v9501_v62 = vpop.f32.mrf.mxu1 }
 0x285   : > { %v9502_v59 = vadd.f32 %v9501_v62, %v9500_v22  ;;  %v8894_v22 = vcombine.low %v2068_v40, %v2080_v44  ;;  %v1710_v62 = vpack.c.bf16 %v9496_v20, %v9493_v19  ;;  %v14702_v44 = vld [vmem:[#allocation30_spill] sm:$0xff]  ;;  %v14704_v40 = vld [vmem:[#allocation32_spill] sm:$0xff] }
 0x286   : > { %v9503_v8 = vpop.f32.mrf.mxu1  ;;  %v1828_v28 = vrot.slane %v14702_v44, %v11668_v47  ;;  %v1996_v39 = vrot.slane %v14704_v40, %v11668_v47  ;;  %v14716_v44 = vld [vmem:[#allocation160_spill] sm:$0xff]  ;;  %v14722_v40 = vld [vmem:[#allocation42_spill] sm:$0xff] }
 0x287   : > { %v1711_v34 = vpack.c.bf16 %v9502_v59, %v9499_v13  ;;  %v12737_v13 = vadd.bf16 %v8887_v42, %v14701_v29  ;;  %v12748_v16 = vadd.bf16 %v8894_v22, %v1710_v62  ;;  %v9478_v59 = vadd.f32 %v12635_v63, %v12631_v51  ;;  %v14710_v51 = vld [vmem:[#allocation174_spill] sm:$0xff] }
 0x288   : > { %v9504_v7 = vpop.f32.mrf.mxu1  ;;  %v9427_v63 = vadd.f32 %v14710_v51, %v12603_v45  ;;  %v1700_v42 = vpack.c.bf16 %v9436_v21, %v9433_v46  ;;  %v8884_v15 = vcombine.low %v1828_v28, %v1840_v52  ;;  %v8891_v45 = vcombine.low %v1996_v39, %v2008_v31  ;;  %v14719_v52 = vld [vmem:[#allocation37_spill] sm:$0xff]  ;;  %v14720_v31 = vld [vmem:[#allocation38_spill] sm:$0xff]  ;;  %v14725_v46 = vld [vmem:[#allocation148_spill] sm:$0xff] }
 0x289   : > { %v12730_v10 = vadd.bf16 %v8895_v56, %v1711_v34  ;;  %v9439_v56 = vadd.f32 %v9438_v5, %v9437_v35  ;;  %v9505_v55 = vadd.f32 %v9504_v7, %v9503_v8  ;;  %v14706_v5 = vpack.c.bf16 %v12495_v12, %v12483_v60  ;;  %v14714_v34 = vld [vmem:[#allocation179_spill] sm:$0xff] }
 0x28a   : > { %v9506_v11 = vpop.f32.mrf.mxu1  ;;  %v2276_v1 = vmul.bf16 1069105081, %v12737_v13  ;;  %v2297_v60 = vmul.bf16 1069105081, %v12748_v16  ;;  %v1708_v12 = vpack.c.bf16 %v9484_v43, %v9481_v3  ;;  %v8883_v29 = vcombine.low %v1804_v26, %v1816_v41  ;;  %v14726_v21 = vld [vmem:[#allocation151_spill] sm:$0xff]  ;;  %v14729_v26 = vld [vmem:[#allocation170_spill] sm:$0xff] }
 0x28b   : > { %v2300_v20 = vmul.bf16 1069105081, %v12730_v10  ;;  %v12758_v35 = vadd.bf16 %v8886_v50, %v14706_v5  ;;  %v1701_v24 = vpack.c.bf16 %v9442_v38, %v9439_v56  ;;  %v12770_v50 = vadd.bf16 %v8893_v49, %v1709_v18  ;;  %v14711_v49 = vld [vmem:[#allocation172_spill] sm:$0xff] }
 0x28c   : > { %v9507_v33 = vpop.f32.mrf.mxu1  ;;  %v9475_v19 = vadd.f32 %v14712_v36, %v14711_v49  ;;  %v12790_v7 = vadd.bf16 %v8892_v27, %v1708_v12  ;;  %v9424_v56 = vadd.f32 %v14718_v14, %v14717_v6  ;;  %v8890_v27 = vcombine.low %v1972_v61, %v1984_v57  ;;  %v14724_v5 = vld [vmem:[#allocation44_spill] sm:$0xff] }
 0x28d   : > { %v9508_v32 = vadd.f32 %v9507_v33, %v9506_v11  ;;  %10663 = vpow.bf16 %v2300_v20  ;;  %v2273_v2 = vmul.bf16 1069105081, %v12758_v35  ;;  %v12788_v22 = vadd.bf16 %v8885_v30, %v1701_v24  ;;  %v14715_v11 = vld [vmem:[#allocation158_spill] sm:$0xff]  ;;  %v14728_v24 = vld [vmem:[#allocation155_spill] sm:$0xff] }
 0x28e   : > { %10665 = vpow.bf16 %v2276_v1  ;;  %v1707_v62 = vpack.c.bf16 %v9478_v59, %v9475_v19  ;;  %v2294_v54 = vmul.bf16 1069105081, %v12770_v50  ;;  %v9421_v25 = vadd.f32 %v14716_v44, %v14715_v11 }
 0x28f   : > { %v1712_v17 = vpack.c.bf16 %v9508_v32, %v9505_v55  ;;  %10667 = vpow.bf16 %v2297_v60  ;;  %v12797_v30 = vadd.bf16 %v8884_v15, %v1700_v42  ;;  %v2270_v43 = vmul.bf16 1069105081, %v12788_v22  ;;  %v14721_v55 = vld [vmem:[#allocation41_spill] sm:$0xff] }
 0x290   : > { %v12800_v33 = vadd.bf16 %v8891_v45, %v1707_v62  ;;  %v2291_v18 = vmul.bf16 1069105081, %v12790_v7  ;;  %v1792_v28 = vrot.slane %v14719_v52, %v11668_v47  ;;  %v1780_v20 = vrot.slane %v14720_v31, %v11668_v47  ;;  %v14733_v42 = vld [vmem:[#allocation161_spill] sm:$0xff] }
 0x291   : > { %v12772_v23 = vadd.bf16 %v8896_v58, %v1712_v17  ;;  %v9430_v58 = vadd.f32 %v14714_v34, %v14713_v9  ;;  %v1960_v32 = vrot.slane %v14721_v55, %v11668_v47  ;;  %v1948_v39 = vrot.slane %v14722_v40, %v11668_v47  ;;  %v14727_v17 = vld [vmem:[#allocation153_spill] sm:$0xff] }
 0x292   : > { %v1768_v41 = vrot.slane %v14723_v37, %v11668_v47  ;;  %v1756_v1 = vrot.slane %v14724_v5, %v11668_v47  ;;  %v9415_v3 = vadd.f32 %v14726_v21, %v14725_v46  ;;  %v9418_v59 = vadd.f32 %v14728_v24, %v14727_v17 }
 0x293   : > { %v2303_v8 = vmul.bf16 1069105081, %v12772_v23  ;;  %v1699_v38 = vpack.c.bf16 %v9430_v58, %v9427_v63  ;;  %v1698_v60 = vpack.c.bf16 %v9424_v56, %v9421_v25  ;;  %v2267_v53 = vmul.bf16 1069105081, %v12797_v30  ;;  %v14732_v58 = vld [vmem:[#allocation164_spill] sm:$0xff] }
 0x294   : > { %v14731_v57 = vpack.c.bf16 %v14729_v26, %v14730_v48  ;;  %v2288_v61 = vmul.bf16 1069105081, %v12800_v33  ;;  %v8882_v51 = vcombine.low %v1780_v20, %v1792_v28  ;;  %v8889_v49 = vcombine.low %v1948_v39, %v1960_v32 }
 0x295   : > { %10669 = vpow.bf16 %v2303_v8  ;;  %v12819_v12 = vadd.bf16 %v8883_v29, %v1699_v38  ;;  %v1697_v36 = vpack.c.bf16 %v9418_v59, %v9415_v3  ;;  %v8881_v19 = vcombine.low %v1756_v1, %v1768_v41 }
 0x296   : > { %10671 = vpow.bf16 %v2273_v2  ;;  %v12825_v4 = vadd.bf16 %v8890_v27, %v14731_v57  ;;  %v10662_v2 = vpop.eup %10661  ;;  %v12828_v8 = vadd.bf16 %v8882_v51, %v1698_v60  ;;  %v14734_v62 = vpack.c.bf16 %v14732_v58, %v14733_v42 }
 0x297   : > { %10673 = vpow.bf16 %v2294_v54  ;;  %v2264_v9 = vmul.bf16 1069105081, %v12819_v12  ;;  %v14735_v45 = vmov 1065369472   ;;  %v12839_v6 = vadd.bf16 %v8881_v19, %v1697_v36 }
 0x298   : > { %10675 = vpow.bf16 %v2270_v43  ;;  %v12834_v54 = vadd.bf16 %v8889_v49, %v14734_v62  ;;  %v2285_v15 = vmul.bf16 1069105081, %v12825_v4  ;;  %v2312_v29 = vsub.bf16 %v10662_v2, %v14735_v45 }
 0x299   : > { %10677 = vpow.bf16 %v2291_v18  ;;  %v2261_v14 = vmul.bf16 1069105081, %v12828_v8  ;;  %v2258_v55 = vmul.bf16 1069105081, %v12839_v6  ;;  %vm2256_vm1 = vcmp.gt.bf16.partialorder %v12772_v23, 0 }
 0x29a   : > { %10679 = vpow.bf16 %v2267_v53  ;;  %v2282_v43 = vmul.bf16 1069105081, %v12834_v54  ;;  %v2328_v27 = vmul.bf16 1071005654, %v2312_v29  ;;  %vm2255_vm3 = vcmp.gt.bf16.partialorder %v12730_v10, 0 }
 0x29b   : > { %v10664_v63 = vpop.eup %10663  ;;  %10681 = vpow.bf16 %v2288_v61  ;;  %vm2247_vm4 = vcmp.gt.bf16.partialorder %v12737_v13, 0  ;;  %vm2254_vm5 = vcmp.gt.bf16.partialorder %v12748_v16, 0  ;;  %vm2246_vm6 = vcmp.gt.bf16.partialorder %v12758_v35, 0 }
 0x29c   : > { %v10666_v34 = vpop.eup %10665  ;;  %v2319_v44 = vsub.bf16 %v10664_v63, %v14735_v45  ;;  %10683 = vpow.bf16 %v2264_v9  ;;  %v2344_v39 = vsel %vm2248_vm2, %v12728_v0, %v2328_v27  ;;  %vm2253_vm7 = vcmp.gt.bf16.partialorder %v12770_v50, 0  ;;  %v10347_v27 = vld [vmem:[#allocation4 + $0x124] ss:$8 sps:$4 sm:$0xff]  }
 0x29d   : > { %v10668_v11 = vpop.eup %10667  ;;  %10685 = vpow.bf16 %v2285_v15  ;;  %v2311_v18 = vsub.bf16 %v10666_v34, %v14735_v45  ;;  %vm2245_vm8 = vcmp.gt.bf16.partialorder %v12788_v22, 0  ;;  %vm2252_vm9 = vcmp.gt.bf16.partialorder %v12790_v7, 0 }
 0x29e   : > { %v2335_v28 = vmul.bf16 1071005654, %v2319_v44  ;;  %v2318_v31 = vsub.bf16 %v10668_v11, %v14735_v45  ;;  %10687 = vpow.bf16 %v2261_v14  ;;  %vm2244_vm10 = vcmp.gt.bf16.partialorder %v12797_v30, 0 }
 0x29f   : > { %10689 = vpow.bf16 %v2282_v43  ;;  %v2327_v37 = vmul.bf16 1071005654, %v2311_v18  ;;  %vm2251_vm11 = vcmp.gt.bf16.partialorder %v12800_v33, 0  ;;  %vm2243_vm12 = vcmp.gt.bf16.partialorder %v12819_v12, 0  ;;  %v10346_v43 = vld [vmem:[#allocation4 + $0x110] ss:$8 sps:$4 sm:$0xff]  }
 0x2a0   : > { %v2351_v5 = vsel %vm2255_vm3, %v12730_v10, %v2335_v28  ;;  %v2334_v1 = vmul.bf16 1071005654, %v2318_v31  ;;  %10691 = vpow.bf16 %v2258_v55  ;;  %vm2250_vm13 = vcmp.gt.bf16.partialorder %v12825_v4, 0  ;;  %v10350_v18 = vld [vmem:[#allocation4 + $0x134] ss:$8 sps:$4 sm:$0xff]  }
 0x2a1   : > { %vm2242_vm14 = vcmp.gt.bf16.partialorder %v12828_v8, 0  ;;  %vm2249_vm15 = vcmp.gt.bf16.partialorder %v12834_v54, 0  ;;  %vm2241_vm0 = vcmp.gt.bf16.partialorder %v12839_v6, 0  ;;  %v10355_v28 = vld [vmem:[#allocation4 + $0x140] ss:$8 sps:$4 sm:$0xff]  }
 0x2a2   : > { %v2350_v24 = vsel %vm2254_vm5, %v12748_v16, %v2334_v1  ;;  %v10356_v31 = vld [vmem:[#allocation4 + $0x154] ss:$8 sps:$4 sm:$0xff]   ;;  %v10361_v55 = vld [vmem:[#allocation4 + $0x160] ss:$8 sps:$4 sm:$0xff]   ;;  %v10371_v1 = vld [vmem:[#allocation4 + $0x1a4] ss:$8 sps:$4 sm:$0xff]  }
 0x2a3   : > { %v10670_v25 = vpop.eup %10669 }
 0x2a4   : > { %v2320_v56 = vsub.bf16 %v10670_v25, %v14735_v45  ;;  %v10672_v38 = vpop.eup %10671 }
 0x2a5   : > { %v10674_v20 = vpop.eup %10673  ;;  %v2310_v40 = vsub.bf16 %v10672_v38, %v14735_v45  ;;  %v10341_v38 = vld [vmem:[#allocation4 + $0x100] ss:$8 sps:$4 sm:$0xff]  }
 0x2a6   : > { %v2336_v52 = vmul.bf16 1071005654, %v2320_v56  ;;  %v10676_v41 = vpop.eup %10675  ;;  %v2317_v46 = vsub.bf16 %v10674_v20, %v14735_v45  ;;  %v10359_v20 = vld [vmem:[#allocation4 + $0x164] ss:$8 sps:$4 sm:$0xff]  }
 0x2a7   : > { %v10678_v21 = vpop.eup %10677  ;;  %v2326_v0 = vmul.bf16 1071005654, %v2310_v40  ;;  %v2309_v3 = vsub.bf16 %v10676_v41, %v14735_v45  ;;  %v10364_v40 = vld [vmem:[#allocation4 + $0x170] ss:$8 sps:$4 sm:$0xff]   ;;  %v10368_v41 = vld [vmem:[#allocation4 + $0x194] ss:$8 sps:$4 sm:$0xff]  }
 0x2a8   : > { %v2352_v32 = vsel %vm2256_vm1, %v12772_v23, %v2336_v52  ;;  %v2343_v23 = vsel %vm2247_vm4, %v12737_v13, %v2327_v37  ;;  %v10680_v17 = vpop.eup %10679  ;;  %v2333_v10 = vmul.bf16 1071005654, %v2317_v46  ;;  %v2316_v59 = vsub.bf16 %v10678_v21, %v14735_v45  ;;  %v10352_v52 = vld [vmem:[#allocation4 + $0x130] ss:$8 sps:$4 sm:$0xff]   ;;  %v10367_v37 = vld [vmem:[#allocation4 + $0x180] ss:$8 sps:$4 sm:$0xff]  }
 0x2a9   : > { %9509 = vmatprep.subr.bf16.mxu0 %v2352_v32  ;;  %v10682_v60 = vpop.eup %10681  ;;  %v2342_v53 = vsel %vm2246_vm6, %v12758_v35, %v2326_v0  ;;  %v2325_v13 = vmul.bf16 1071005654, %v2309_v3  ;;  %v2308_v26 = vsub.bf16 %v10680_v17, %v14735_v45  ;;  %v10362_v32 = vld [vmem:[#allocation4 + $0x174] ss:$8 sps:$4 sm:$0xff]   ;;  %v10373_v46 = vld [vmem:[#allocation4 + $0x1a0] ss:$8 sps:$4 sm:$0xff]  }
 0x2aa   : > { %9510 = vmatpush3.bf16.msra.mxu0 %v2344_v39  ;;  %v10684_v48 = vpop.eup %10683  ;;  %v2349_v57 = vsel %vm2253_vm7, %v12770_v50, %v2333_v10  ;;  %v2332_v61 = vmul.bf16 1071005654, %v2316_v59  ;;  %v2315_v16 = vsub.bf16 %v10682_v60, %v14735_v45  ;;  %v10365_v39 = vld [vmem:[#allocation4 + $0x184] ss:$8 sps:$4 sm:$0xff]   ;;  %v10374_v21 = vld [vmem:[#allocation4 + $0x1b4] ss:$8 sps:$4 sm:$0xff]  }
 0x2ab   : > { %9511 = vmatprep.subr.bf16.mxu0 %v2351_v5  ;;  %v10686_v2 = vpop.eup %10685  ;;  %v2341_v51 = vsel %vm2245_vm8, %v12788_v22, %v2325_v13  ;;  %v2324_v35 = vmul.bf16 1071005654, %v2308_v26  ;;  %v2307_v63 = vsub.bf16 %v10684_v48, %v14735_v45  ;;  %v10370_v5 = vld [vmem:[#allocation4 + $0x190] ss:$8 sps:$4 sm:$0xff]   ;;  %v10377_v0 = vld [vmem:[#allocation4 + $0x1c4] ss:$8 sps:$4 sm:$0xff]  }
 0x2ac   : > { %v10688_v49 = vpop.eup %10687  ;;  %v2348_v36 = vsel %vm2252_vm9, %v12790_v7, %v2332_v61  ;;  %v2331_v19 = vmul.bf16 1071005654, %v2315_v16  ;;  %v2314_v50 = vsub.bf16 %v10686_v2, %v14735_v45  ;;  %v10379_v3 = vld [vmem:[#allocation4 + $0x1c0] ss:$8 sps:$4 sm:$0xff]   ;;  %v10380_v17 = vld [vmem:[#allocation4 + $0x1d4] ss:$8 sps:$4 sm:$0xff]  }
 0x2ad   : > { %v10690_v9 = vpop.eup %10689  ;;  %v2340_v34 = vsel %vm2244_vm10, %v12797_v30, %v2324_v35  ;;  %v2323_v22 = vmul.bf16 1071005654, %v2307_v63  ;;  %v2306_v58 = vsub.bf16 %v10688_v49, %v14735_v45  ;;  %v10383_v10 = vld [vmem:[#allocation4 + $0x1e4] ss:$8 sps:$4 sm:$0xff]   ;;  %v10385_v59 = vld [vmem:[#allocation4 + $0x1e0] ss:$8 sps:$4 sm:$0xff]  }
 0x2ae   : > { %9512 = vmatpush3.bf16.msra.mxu0 %v2343_v23  ;;  %v10692_v42 = vpop.eup %10691  ;;  %v2347_v62 = vsel %vm2251_vm11, %v12800_v33, %v2331_v19  ;;  %v2330_v15 = vmul.bf16 1071005654, %v2314_v50  ;;  %v2313_v7 = vsub.bf16 %v10690_v9, %v14735_v45  ;;  %v10376_v23 = vld [vmem:[#allocation4 + $0x1b0] ss:$8 sps:$4 sm:$0xff]   ;;  %v10388_v60 = vld [vmem:[#allocation4 + $0x1f4] ss:$8 sps:$4 sm:$0xff]  }
 0x2af   : > { %9513 = vmatprep.subr.bf16.mxu0 %v2350_v24  ;;  %v2339_v29 = vsel %vm2243_vm12, %v12819_v12, %v2323_v22  ;;  %v2322_v30 = vmul.bf16 1071005654, %v2306_v58  ;;  %v2305_v11 = vsub.bf16 %v10692_v42, %v14735_v45  ;;  %v10382_v24 = vld [vmem:[#allocation4 + $0x1d0] ss:$8 sps:$4 sm:$0xff]  }
 0x2b0   : > { %v2346_v44 = vsel %vm2250_vm13, %v12825_v4, %v2330_v15  ;;  %v2329_v25 = vmul.bf16 1071005654, %v2313_v7  ;;  %v10344_v4 = vld [vmem:[#allocation4 + $0x114] ss:$8 sps:$4 sm:$0xff]  }
 0x2b1   : > { %v2338_v33 = vsel %vm2242_vm14, %v12828_v8, %v2322_v30  ;;  %v2321_v14 = vmul.bf16 1071005654, %v2305_v11  ;;  %v10349_v8 = vld [vmem:[#allocation4 + $0x120] ss:$8 sps:$4 sm:$0xff]  }
 0x2b2   : > { %9514 = vmatpush3.bf16.msra.mxu0 %v2342_v53  ;;  %v2345_v12 = vsel %vm2249_vm15, %v12834_v54, %v2329_v25  ;;  %v10353_v54 = vld [vmem:[#allocation4 + $0x144] ss:$8 sps:$4 sm:$0xff]   ;;  %v10386_v53 = vld [vmem:[#allocation4 + $0x1f0] ss:$8 sps:$4 sm:$0xff]  }
 0x2b3   : > { %9515 = vmatprep.subr.bf16.mxu0 %v2349_v57  ;;  %v2337_v56 = vsel %vm2241_vm0, %v12839_v6, %v2321_v14  ;;  %v10358_v6 = vld [vmem:[#allocation4 + $0x150] ss:$8 sps:$4 sm:$0xff]   ;;  %v14744_v14 = vld [vmem:[#allocation55_spill] sm:$0xff] }
 0x2b6   : > { %9516 = vmatpush3.bf16.msra.mxu0 %v2341_v51 }
 0x2b7   : > { %9517 = vmatprep.subr.bf16.mxu0 %v2348_v36 }
 0x2ba   : > { %9518 = vmatpush3.bf16.msra.mxu0 %v2340_v34 }
 0x2bb   : > { %9519 = vmatprep.subr.bf16.mxu0 %v2347_v62 }
 0x2be   : > { %9520 = vmatpush3.bf16.msra.mxu0 %v2339_v29 }
 0x2bf   : > { %9521 = vmatprep.subr.bf16.mxu0 %v2346_v44 }
 0x2c2   : > { %9522 = vmatpush3.bf16.msra.mxu0 %v2338_v33 }
 0x2c3   : > { %9523 = vmatprep.subr.bf16.mxu0 %v2345_v12 }
 0x2c6   : > { %9524 = vmatpush3.bf16.msra.mxu0 %v2337_v56 }
 0x2c9   : > { %2579 = vmatmul.mubr.bf16.vlgmr.msra.gmra.mxu0 %v10341_v38 }
 0x2ca   : > { %2586 = vmatprep.mubr.bf16.mxu0 %v10344_v4 }
 0x2d1   : > { %2587 = vmatmul.mubr.bf16.gmra.mxu0 %v10346_v43 }
 0x2d2   : > { %2594 = vmatprep.mubr.bf16.mxu0 %v10347_v27 }
 0x2d9   : > { %2595 = vmatmul.mubr.bf16.gmra.mxu0 %v10349_v8  ;;  %v14745_v8 = vld [vmem:[#allocation56_spill] sm:$0xff] }
 0x2da   : > { %2602 = vmatprep.mubr.bf16.mxu0 %v10350_v18 }
 0x2e1   : > { %2603 = vmatmul.mubr.bf16.gmra.mxu0 %v10352_v52 }
 0x2e2   : > { %2610 = vmatprep.mubr.bf16.mxu0 %v10353_v54 }
 0x2e9   : > { %2611 = vmatmul.mubr.bf16.gmra.mxu0 %v10355_v28 }
 0x2ea   : > { %2618 = vmatprep.mubr.bf16.mxu0 %v10356_v31 }
 0x2f1   : > { %2619 = vmatmul.mubr.bf16.gmra.mxu0 %v10358_v6 }
 0x2f2   : > { %2626 = vmatprep.mubr.bf16.mxu0 %v10359_v20 }
 0x2f9   : > { %2627 = vmatmul.mubr.bf16.gmra.mxu0 %v10361_v55 }
 0x2fa   : > { %2634 = vmatprep.mubr.bf16.mxu0 %v10362_v32 }
 0x301   : > { %2635 = vmatmul.mubr.bf16.gmra.mxu0 %v10364_v40 }
 0x302   : > { %2642 = vmatprep.mubr.bf16.mxu0 %v10365_v39 }
 0x309   : > { %2643 = vmatmul.mubr.bf16.gmra.mxu0 %v10367_v37 }
 0x30a   : > { %2650 = vmatprep.mubr.bf16.mxu0 %v10368_v41 }
 0x311   : > { %2651 = vmatmul.mubr.bf16.gmra.mxu0 %v10370_v5  ;;  %v10391_v5 = vld [vmem:[#allocation4 + $0x204] ss:$8 sps:$4 sm:$0xff]  }
 0x312   : > { %2658 = vmatprep.mubr.bf16.mxu0 %v10371_v1  ;;  %3589 = vmatprep.mubr.bf16.mxu1 %v10391_v5  ;;  %v14737_v5 = vld [vmem:[#allocation48_spill] sm:$0xff] }
 0x319   : > { %2659 = vmatmul.mubr.bf16.gmra.mxu0 %v10373_v46 }
 0x31a   : > { %2666 = vmatprep.mubr.bf16.mxu0 %v10374_v21 }
 0x321   : > { %2667 = vmatmul.mubr.bf16.gmra.mxu0 %v10376_v23 }
 0x322   : > { %2674 = vmatprep.mubr.bf16.mxu0 %v10377_v0 }
 0x329   : > { %2675 = vmatmul.mubr.bf16.gmra.mxu0 %v10379_v3 }
 0x32a   : > { %2682 = vmatprep.mubr.bf16.mxu0 %v10380_v17 }
 0x331   : > { %2683 = vmatmul.mubr.bf16.gmra.mxu0 %v10382_v24 }
 0x332   : > { %2690 = vmatprep.mubr.bf16.mxu0 %v10383_v10 }
 0x339   : > { %2691 = vmatmul.mubr.bf16.gmra.mxu0 %v10385_v59 }
 0x33a   : > { %2698 = vmatprep.mubr.bf16.mxu0 %v10388_v60 }
 0x341   : > { %2699 = vmatmul.mubr.bf16.gmra.mxu0 %v10386_v53 }
 0x389   : > { %v9525_v13 = vpop.f32.mrf.mxu0 }
 0x38b   : > { %v9526_v26 = vpop.f32.mrf.mxu0 }
 0x38c   : > { %v12890_v48 = vadd.f32 %v9526_v26, %v9525_v13 }
 0x38d   : > { %v9528_v57 = vpop.f32.mrf.mxu0 }
 0x38f   : > { %v9529_v61 = vpop.f32.mrf.mxu0 }
 0x390   : > { %v12892_v16 = vadd.f32 %v9529_v61, %v9528_v57 }
 0x391   : > { %v9531_v2 = vpop.f32.mrf.mxu0 }
 0x393   : > { %v9532_v35 = vpop.f32.mrf.mxu0 }
 0x394   : > { %v12896_v63 = vadd.f32 %v9532_v35, %v9531_v2 }
 0x395   : > { %v9534_v49 = vpop.f32.mrf.mxu0 }
 0x397   : > { %v9535_v36 = vpop.f32.mrf.mxu0 }
 0x398   : > { %v12898_v19 = vadd.f32 %v9535_v36, %v9534_v49 }
 0x399   : > { %v9537_v50 = vpop.f32.mrf.mxu0 }
 0x39b   : > { %v9538_v34 = vpop.f32.mrf.mxu0 }
 0x39c   : > { %v12902_v22 = vadd.f32 %v9538_v34, %v9537_v50 }
 0x39d   : > { %v9540_v58 = vpop.f32.mrf.mxu0 }
 0x39f   : > { %v9541_v42 = vpop.f32.mrf.mxu0 }
 0x3a0   : > { %v12904_v62 = vadd.f32 %v9541_v42, %v9540_v58 }
 0x3a1   : > { %v9543_v15 = vpop.f32.mrf.mxu0 }
 0x3a3   : > { %v9544_v29 = vpop.f32.mrf.mxu0 }
 0x3a4   : > { %v12908_v30 = vadd.f32 %v9544_v29, %v9543_v15 }
 0x3a5   : > { %v9546_v11 = vpop.f32.mrf.mxu0 }
 0x3a7   : > { %v9547_v44 = vpop.f32.mrf.mxu0 }
 0x3a8   : > { %v12910_v25 = vadd.f32 %v9547_v44, %v9546_v11 }
 0x3a9   : > { %v9549_v33 = vpop.f32.mrf.mxu0 }
 0x3ab   : > { %v9550_v12 = vpop.f32.mrf.mxu0 }
 0x3ac   : > { %v12914_v56 = vadd.f32 %v9550_v12, %v9549_v33 }
 0x3ad   : > { %v9552_v38 = vpop.f32.mrf.mxu0 }
 0x3af   : > { %v9553_v4 = vpop.f32.mrf.mxu0 }
 0x3b0   : > { %v12916_v43 = vadd.f32 %v9553_v4, %v9552_v38 }
 0x3b1   : > { %v9555_v27 = vpop.f32.mrf.mxu0 }
 0x3b3   : > { %v9556_v18 = vpop.f32.mrf.mxu0 }
 0x3b4   : > { %v12920_v52 = vadd.f32 %v9556_v18, %v9555_v27 }
 0x3b5   : > { %v9558_v54 = vpop.f32.mrf.mxu0 }
 0x3b7   : > { %v9559_v28 = vpop.f32.mrf.mxu0 }
 0x3b8   : > { %v12922_v31 = vadd.f32 %v9559_v28, %v9558_v54 }
 0x3b9   : > { %v9561_v6 = vpop.f32.mrf.mxu0 }
 0x3bb   : > { %v9562_v55 = vpop.f32.mrf.mxu0 }
 0x3bc   : > { %v12926_v32 = vadd.f32 %v9562_v55, %v9561_v6 }
 0x3bd   : > { %v9564_v40 = vpop.f32.mrf.mxu0 }
 0x3bf   : > { %v9565_v39 = vpop.f32.mrf.mxu0 }
 0x3c0   : > { %v12928_v37 = vadd.f32 %v9565_v39, %v9564_v40  ;;  %v14736_v39 = vld [vmem:[#allocation47_spill] sm:$0xff] }
 0x3c1   : > { %v9567_v41 = vpop.f32.mrf.mxu0 }
 0x3c3   : > { %v9568_v46 = vpop.f32.mrf.mxu0 }
 0x3c4   : > { %v9569_v21 = vadd.f32 %v9568_v46, %v9567_v41  ;;  %v2947_v41 = vrot.slane %v14736_v39, %v11668_v47  ;;  %v2935_v46 = vrot.slane %v14737_v5, %v11668_v47  ;;  %v14743_v5 = vld [vmem:[#allocation54_spill] sm:$0xff] }
 0x3c5   : > { %v9570_v23 = vpop.f32.mrf.mxu0  ;;  %v3079_v51 = vrot.slane %v14743_v5, %v11668_v47 }
 0x3c7   : > { %v9571_v0 = vpop.f32.mrf.mxu0 }
 0x3c8   : > { %v9572_v3 = vadd.f32 %v9571_v0, %v9570_v23  ;;  %v14738_v23 = vld [vmem:[#allocation49_spill] sm:$0xff] }
 0x3c9   : > { %v9573_v17 = vpop.f32.mrf.mxu0  ;;  %v3115_v0 = vrot.slane %v14738_v23, %v11668_v47  ;;  %v8968_v23 = vcombine.low %v2935_v46, %v2947_v41 }
 0x3ca   : > { %v2714_v24 = vpack.c.bf16 %v9572_v3, %v9569_v21  ;;  %v14739_v3 = vld [vmem:[#allocation50_spill] sm:$0xff] }
 0x3cb   : > { %v9574_v10 = vpop.f32.mrf.mxu0 }
 0x3cc   : > { %v12932_v59 = vadd.f32 %v9574_v10, %v9573_v17  ;;  %v3103_v17 = vrot.slane %v14739_v3, %v11668_v47  ;;  %v14740_v10 = vld [vmem:[#allocation51_spill] sm:$0xff]  ;;  %v12980_v5 = vadd.bf16 %v8968_v23, %v2714_v24 }
 0x3cd   : > { %v9576_v60 = vpop.f32.mrf.mxu0 }
 0x3ce   : > { %v8975_v3 = vcombine.low %v3103_v17, %v3115_v0  ;;  %v14751_v17 = vld [vmem:[#allocation19_spill] sm:$0xff]  ;;  %v3290_v23 = vmul.bf16 1069105081, %v12980_v5  ;;  %vm3259_vm2 = vcmp.gt.bf16.partialorder %v12980_v5, 0 }
 0x3cf   : > { %v9577_v53 = vpop.f32.mrf.mxu0  ;;  %v2863_v24 = vrot.slane %v14751_v17, %v11668_v47  ;;  %v14760_v17 = vpack.c.bf16 %v12916_v43, %v12914_v56  ;;  %v14764_v43 = vld [vmem:[#allocation65_spill] sm:$0xff] }
 0x3d0   : > { %v12934_v13 = vadd.f32 %v9577_v53, %v9576_v60  ;;  %v2923_v60 = vrot.slane %v14740_v10, %v11668_v47  ;;  %v14741_v53 = vld [vmem:[#allocation52_spill] sm:$0xff]  ;;  %v2899_v10 = vrot.slane %v14744_v14, %v11668_v47  ;;  %v14748_v14 = vld [vmem:[#allocation57_spill] sm:$0xff]  ;;  %10693 = vpow.bf16 %v3290_v23 }
 0x3d1   : > { %v9579_v26 = vpop.f32.mrf.mxu0  ;;  %v2983_v23 = vrot.slane %v14764_v43, %v11668_v47 }
 0x3d3   : > { %v9580_v61 = vpop.f32.mrf.mxu0 }
 0x3d4   : > { %v12938_v2 = vadd.f32 %v9580_v61, %v9579_v26  ;;  %v2911_v26 = vrot.slane %v14741_v53, %v11668_v47  ;;  %v2887_v53 = vrot.slane %v14745_v8, %v11668_v47 }
 0x3d5   : > { %v9582_v35 = vpop.f32.mrf.mxu0 }
 0x3d7   : > { %v9583_v49 = vpop.f32.mrf.mxu0 }
 0x3d8   : > { %v12940_v36 = vadd.f32 %v9583_v49, %v9582_v35  ;;  %v14742_v49 = vld [vmem:[#allocation53_spill] sm:$0xff] }
 0x3d9   : > { %v12942_v50 = vpop.f32.mrf.mxu0  ;;  %v3091_v39 = vrot.slane %v14742_v49, %v11668_v47  ;;  %v14747_v49 = vld [vmem:[#allocation46_spill] sm:$0xff] }
 0x3da   : > { %v3127_v1 = vrot.slane %v14747_v49, %v11668_v47 }
 0x3db   : > { %v12946_v58 = vpop.f32.mrf.mxu0 }
 0x3dd   : > { %v12948_v42 = vpop.f32.mrf.mxu0 }
 0x3df   : > { %v12950_v15 = vpop.f32.mrf.mxu0 }
 0x3e1   : > { %v12952_v29 = vpop.f32.mrf.mxu0 }
 0x3e3   : > { %v12954_v11 = vpop.f32.mrf.mxu0 }
 0x3e5   : > { %v9594_v44 = vpop.f32.mrf.mxu0 }
 0x3e7   : > { %v9595_v33 = vpop.f32.mrf.mxu0 }
 0x3e9   : > { %v9597_v12 = vpop.f32.mrf.mxu0 }
 0x3eb   : > { %v9598_v38 = vpop.f32.mrf.mxu0 }
 0x3ed   : > { %v9600_v4 = vpop.f32.mrf.mxu0 }
 0x3ef   : > { %v9601_v27 = vpop.f32.mrf.mxu0 }
 0x3f0   : > { %v9602_v41 = vadd.f32 %v9601_v27, %v9600_v4  ;;  %v14753_v4 = vpack.c.bf16 %v12928_v37, %v12926_v32  ;;  %v14755_v37 = vpack.c.bf16 %v12922_v31, %v12920_v52  ;;  %v14756_v31 = vld [vmem:[#allocation22_spill] sm:$0xff] }
 0x3f1   : > { %v9603_v18 = vpop.f32.mrf.mxu0 }
 0x3f3   : > { %v9604_v54 = vpop.f32.mrf.mxu0 }
 0x3f4   : > { %v9605_v34 = vadd.f32 %v9604_v54, %v9603_v18  ;;  %v8967_v18 = vcombine.low %v2911_v26, %v2923_v60  ;;  %v8974_v54 = vcombine.low %v3079_v51, %v3091_v39  ;;  %v14752_v60 = vld [vmem:[#allocation15_spill] sm:$0xff]  ;;  %v9599_v26 = vadd.f32 %v9598_v38, %v9597_v12 }
 0x3f5   : > { %v9606_v28 = vpop.f32.mrf.mxu0  ;;  %v3043_v51 = vrot.slane %v14752_v60, %v11668_v47 }
 0x3f6   : > { %v12997_v27 = vadd.bf16 %v8967_v18, %v14753_v4  ;;  %v2719_v49 = vpack.c.bf16 %v9602_v41, %v9599_v26  ;;  %v2851_v18 = vrot.slane %v14756_v31, %v11668_v47  ;;  %v14761_v4 = vld [vmem:[#allocation62_spill] sm:$0xff]  ;;  %v14772_v31 = vpack.c.bf16 %v12904_v62, %v12902_v22 }
 0x3f7   : > { %v9607_v6 = vpop.f32.mrf.mxu0  ;;  %v2827_v26 = vrot.slane %v14761_v4, %v11668_v47  ;;  %v14774_v22 = vpack.c.bf16 %v12898_v19, %v12896_v63  ;;  %v14776_v19 = vpack.c.bf16 %v12892_v16, %v12890_v48 }
 0x3f8   : > { %v9608_v61 = vadd.f32 %v9607_v6, %v9606_v28  ;;  %v14746_v6 = vld [vmem:[#allocation45_spill] sm:$0xff]  ;;  %v3287_v38 = vmul.bf16 1069105081, %v12997_v27  ;;  %vm3258_vm4 = vcmp.gt.bf16.partialorder %v12997_v27, 0 }
 0x3f9   : > { %v9609_v55 = vpop.f32.mrf.mxu0  ;;  %v3139_v20 = vrot.slane %v14746_v6, %v11668_v47 }
 0x3fb   : > { %v9610_v40 = vpop.f32.mrf.mxu0 }
 0x3fc   : > { %v9611_v57 = vadd.f32 %v9610_v40, %v9609_v55  ;;  %v2720_v55 = vpack.c.bf16 %v9608_v61, %v9605_v34  ;;  %v8966_v34 = vcombine.low %v2887_v53, %v2899_v10  ;;  %v14754_v61 = vld [vmem:[#allocation18_spill] sm:$0xff] }
 0x3fd   : > { %v9612_v21 = vpop.f32.mrf.mxu0  ;;  %v3031_v39 = vrot.slane %v14754_v61, %v11668_v47 }
 0x3fe   : > { %v13008_v12 = vadd.bf16 %v8966_v34, %v14755_v37 }
 0x3ff   : > { %v9613_v35 = vpop.f32.mrf.mxu0 }
 0x400   : > { %v9614_v9 = vadd.f32 %v9613_v35, %v9612_v21  ;;  %v3067_v21 = vrot.slane %v14748_v14, %v11668_v47  ;;  %vm3257_vm6 = vcmp.gt.bf16.partialorder %v13008_v12, 0 }
 0x401   : > { %v9615_v7 = vpop.f32.mrf.mxu0 }
 0x402   : > { %v2721_v28 = vpack.c.bf16 %v9614_v9, %v9611_v57  ;;  %v14749_v9 = vld [vmem:[#allocation58_spill] sm:$0xff]  ;;  %v14750_v57 = vld [vmem:[#allocation39_spill] sm:$0xff] }
 0x403   : > { %v9616_v40 = vpop.f32.mrf.mxu0  ;;  %v3055_v8 = vrot.slane %v14749_v9, %v11668_v47  ;;  %v2875_v0 = vrot.slane %v14750_v57, %v11668_v47  ;;  %v8976_v9 = vcombine.low %v3127_v1, %v3139_v20 }
 0x404   : > { %v12982_v46 = vadd.bf16 %v8975_v3, %v2721_v28  ;;  %v9596_v3 = vadd.f32 %v9595_v33, %v9594_v44  ;;  %v13002_v28 = vadd.bf16 %v8974_v54, %v2720_v55  ;;  %v9617_v53 = vadd.f32 %v9616_v40, %v9615_v7  ;;  %v14757_v54 = vld [vmem:[#allocation59_spill] sm:$0xff] }
 0x405   : > { %v9618_v35 = vpop.f32.mrf.mxu0  ;;  %v8973_v57 = vcombine.low %v3055_v8, %v3067_v21  ;;  %v8965_v32 = vcombine.low %v2863_v24, %v2875_v0  ;;  %v9593_v44 = vadd.f32 %v12954_v11, %v12952_v29  ;;  %v8972_v55 = vcombine.low %v3031_v39, %v3043_v51  ;;  %v14758_v11 = vld [vmem:[#allocation60_spill] sm:$0xff]  ;;  %v14759_v21 = vld [vmem:[#allocation61_spill] sm:$0xff] }
 0x406   : > { %v3311_v10 = vmul.bf16 1069105081, %v12982_v46  ;;  %v9590_v7 = vadd.f32 %v12950_v15, %v12948_v42  ;;  %v3308_v20 = vmul.bf16 1069105081, %v13002_v28  ;;  %v2839_v29 = vrot.slane %v14757_v54, %v11668_v47  ;;  %v14763_v39 = vld [vmem:[#allocation64_spill] sm:$0xff] }
 0x407   : > { %v9619_v6 = vpop.f32.mrf.mxu0  ;;  %v2718_v1 = vpack.c.bf16 %v9596_v3, %v9593_v44  ;;  %v13016_v40 = vadd.bf16 %v8973_v57, %v2719_v49  ;;  %v3019_v41 = vrot.slane %v14758_v11, %v11668_v47  ;;  %v3007_v42 = vrot.slane %v14759_v21, %v11668_v47  ;;  %v14768_v44 = vld [vmem:[#allocation68_spill] sm:$0xff]  ;;  %v10694_v21 = vpop.eup %10693 }
 0x408   : > { %v9620_v14 = vadd.f32 %v9619_v6, %v9618_v35  ;;  %10695 = vpow.bf16 %v3311_v10  ;;  %v3284_v15 = vmul.bf16 1069105081, %v13008_v12  ;;  %v9587_v8 = vadd.f32 %v12946_v58, %v12942_v50  ;;  %v14762_v50 = vld [vmem:[#allocation63_spill] sm:$0xff] }
 0x409   : > { %10697 = vpow.bf16 %v3287_v38  ;;  %v13035_v24 = vadd.bf16 %v8965_v32, %v14760_v17  ;;  %v13037_v34 = vadd.bf16 %v8972_v55, %v2718_v1  ;;  %v3305_v60 = vmul.bf16 1069105081, %v13016_v40  ;;  %v14767_v32 = vld [vmem:[#allocation67_spill] sm:$0xff]  ;;  %v14770_v55 = vld [vmem:[#allocation70_spill] sm:$0xff] }
 0x40a   : > { %v2722_v33 = vpack.c.bf16 %v9620_v14, %v9617_v53  ;;  %10699 = vpow.bf16 %v3308_v20  ;;  %v2717_v35 = vpack.c.bf16 %v9590_v7, %v9587_v8  ;;  %v8964_v51 = vcombine.low %v2839_v29, %v2851_v18  ;;  %v14771_v20 = vld [vmem:[#allocation71_spill] sm:$0xff] }
 0x40b   : > { %v2815_v58 = vrot.slane %v14762_v50, %v11668_v47  ;;  %v8971_v61 = vcombine.low %v3007_v42, %v3019_v41  ;;  %v2995_v56 = vrot.slane %v14763_v39, %v11668_v47  ;;  %v14765_v3 = vpack.c.bf16 %v12910_v25, %v12908_v30  ;;  %v14769_v25 = vld [vmem:[#allocation69_spill] sm:$0xff] }
 0x40c   : > { %v13018_v52 = vadd.bf16 %v8976_v9, %v2722_v33  ;;  %v3281_v49 = vmul.bf16 1069105081, %v13035_v24  ;;  %v3302_v53 = vmul.bf16 1069105081, %v13037_v34  ;;  %v14766_v9 = vld [vmem:[#allocation66_spill] sm:$0xff]  ;;  %v2791_v37 = vrot.slane %v14767_v32, %v11668_v47 }
 0x40d   : > { %v13051_v6 = vadd.bf16 %v8964_v51, %v14765_v3  ;;  %v13054_v10 = vadd.bf16 %v8971_v61, %v2717_v35  ;;  %v8963_v14 = vcombine.low %v2815_v58, %v2827_v26  ;;  %v2803_v57 = vrot.slane %v14766_v9, %v11668_v47 }
 0x40e   : > { %v3314_v0 = vmul.bf16 1069105081, %v13018_v52  ;;  %v8970_v38 = vcombine.low %v2983_v23, %v2995_v56  ;;  %v2971_v30 = vrot.slane %v14768_v44, %v11668_v47  ;;  %v2959_v33 = vrot.slane %v14769_v25, %v11668_v47 }
 0x40f   : > { %v2779_v7 = vrot.slane %v14770_v55, %v11668_v47  ;;  %v2767_v1 = vrot.slane %v14771_v20, %v11668_v47  ;;  %v13072_v18 = vadd.bf16 %v8963_v14, %v14772_v31  ;;  %v3278_v54 = vmul.bf16 1069105081, %v13051_v6 }
 0x410   : > { %10701 = vpow.bf16 %v3314_v0  ;;  %v14773_v29 = vpack.c.bf16 %v12940_v36, %v12938_v2  ;;  %v3299_v41 = vmul.bf16 1069105081, %v13054_v10  ;;  %v8962_v42 = vcombine.low %v2791_v37, %v2803_v57 }
 0x411   : > { %10703 = vpow.bf16 %v3284_v15  ;;  %v8969_v8 = vcombine.low %v2959_v33, %v2971_v30  ;;  %v8961_v0 = vcombine.low %v2767_v1, %v2779_v7  ;;  %v3275_v17 = vmul.bf16 1069105081, %v13072_v18 }
 0x412   : > { %10705 = vpow.bf16 %v3305_v60  ;;  %v13078_v11 = vadd.bf16 %v8970_v38, %v14773_v29  ;;  %v13084_v62 = vadd.bf16 %v8962_v42, %v14774_v22  ;;  %v14775_v2 = vpack.c.bf16 %v12934_v13, %v12932_v59 }
 0x413   : > { %10707 = vpow.bf16 %v3281_v49  ;;  %v3323_v51 = vsub.bf16 %v10694_v21, %v14735_v45  ;;  %v13098_v50 = vadd.bf16 %v8961_v0, %v14776_v19  ;;  %vm3267_vm1 = vcmp.gt.bf16.partialorder %v13018_v52, 0 }
 0x414   : > { %10709 = vpow.bf16 %v3302_v53  ;;  %v13090_v36 = vadd.bf16 %v8969_v8, %v14775_v2  ;;  %v3296_v60 = vmul.bf16 1069105081, %v13078_v11  ;;  %v3272_v58 = vmul.bf16 1069105081, %v13084_v62 }
 0x415   : > { %10711 = vpow.bf16 %v3278_v54  ;;  %v3339_v39 = vmul.bf16 1071005654, %v3323_v51  ;;  %v3269_v48 = vmul.bf16 1069105081, %v13098_v50  ;;  %vm3266_vm3 = vcmp.gt.bf16.partialorder %v12982_v46, 0 }
 0x416   : > { %v10696_v15 = vpop.eup %10695  ;;  %10713 = vpow.bf16 %v3299_v41  ;;  %v3293_v61 = vmul.bf16 1069105081, %v13090_v36  ;;  %vm3265_vm5 = vcmp.gt.bf16.partialorder %v13002_v28, 0  ;;  %vm3264_vm7 = vcmp.gt.bf16.partialorder %v13016_v40, 0 }
 0x417   : > { %v10698_v35 = vpop.eup %10697  ;;  %v3330_v26 = vsub.bf16 %v10696_v15, %v14735_v45  ;;  %10715 = vpow.bf16 %v3275_v17  ;;  %v3355_v14 = vsel %vm3259_vm2, %v12980_v5, %v3339_v39  ;;  %vm3256_vm8 = vcmp.gt.bf16.partialorder %v13035_v24, 0  ;;  %v10395_v39 = vld [vmem:[#allocation4 + $0x224] ss:$8 sps:$4 sm:$0xff]  }
 0x418   : > { %v10700_v4 = vpop.eup %10699  ;;  %10717 = vpow.bf16 %v3296_v60  ;;  %v3322_v56 = vsub.bf16 %v10698_v35, %v14735_v45  ;;  %vm3263_vm9 = vcmp.gt.bf16.partialorder %v13037_v34, 0  ;;  %vm3255_vm10 = vcmp.gt.bf16.partialorder %v13051_v6, 0 }
 0x419   : > { %v3346_v23 = vmul.bf16 1071005654, %v3330_v26  ;;  %v3329_v3 = vsub.bf16 %v10700_v4, %v14735_v45  ;;  %10719 = vpow.bf16 %v3272_v58  ;;  %vm3262_vm11 = vcmp.gt.bf16.partialorder %v13054_v10, 0 }
 0x41a   : > { %10721 = vpow.bf16 %v3293_v61  ;;  %v3338_v9 = vmul.bf16 1071005654, %v3322_v56  ;;  %vm3254_vm12 = vcmp.gt.bf16.partialorder %v13072_v18, 0  ;;  %vm3261_vm13 = vcmp.gt.bf16.partialorder %v13078_v11, 0  ;;  %v10394_v61 = vld [vmem:[#allocation4 + $0x210] ss:$8 sps:$4 sm:$0xff]  }
 0x41b   : > { %v3362_v32 = vsel %vm3266_vm3, %v12982_v46, %v3346_v23  ;;  %v3345_v37 = vmul.bf16 1071005654, %v3329_v3  ;;  %10723 = vpow.bf16 %v3269_v48  ;;  %vm3253_vm14 = vcmp.gt.bf16.partialorder %v13084_v62, 0  ;;  %v10398_v56 = vld [vmem:[#allocation4 + $0x234] ss:$8 sps:$4 sm:$0xff]  }
 0x41c   : > { %vm3260_vm15 = vcmp.gt.bf16.partialorder %v13090_v36, 0  ;;  %vm3252_vm0 = vcmp.gt.bf16.partialorder %v13098_v50, 0  ;;  %v10403_v23 = vld [vmem:[#allocation4 + $0x240] ss:$8 sps:$4 sm:$0xff]   ;;  %v10404_v3 = vld [vmem:[#allocation4 + $0x254] ss:$8 sps:$4 sm:$0xff]  }
 0x41d   : > { %v3361_v33 = vsel %vm3265_vm5, %v13002_v28, %v3345_v37  ;;  %v10409_v48 = vld [vmem:[#allocation4 + $0x260] ss:$8 sps:$4 sm:$0xff]   ;;  %v10419_v37 = vld [vmem:[#allocation4 + $0x2a4] ss:$8 sps:$4 sm:$0xff]  }
 0x41e   : > { %v10702_v63 = vpop.eup %10701 }
 0x41f   : > { %v3331_v59 = vsub.bf16 %v10702_v63, %v14735_v45  ;;  %v10704_v13 = vpop.eup %10703 }
 0x420   : > { %v10706_v49 = vpop.eup %10705  ;;  %v3321_v53 = vsub.bf16 %v10704_v13, %v14735_v45  ;;  %v10389_v13 = vld [vmem:[#allocation4 + $0x200] ss:$8 sps:$4 sm:$0xff]  }
 0x421   : > { %v3347_v43 = vmul.bf16 1071005654, %v3331_v59  ;;  %v10708_v57 = vpop.eup %10707  ;;  %v3328_v38 = vsub.bf16 %v10706_v49, %v14735_v45  ;;  %v10407_v49 = vld [vmem:[#allocation4 + $0x264] ss:$8 sps:$4 sm:$0xff]  }
 0x422   : > { %v10710_v44 = vpop.eup %10709  ;;  %v3337_v5 = vmul.bf16 1071005654, %v3321_v53  ;;  %v3320_v30 = vsub.bf16 %v10708_v57, %v14735_v45  ;;  %v10412_v53 = vld [vmem:[#allocation4 + $0x270] ss:$8 sps:$4 sm:$0xff]   ;;  %v10416_v57 = vld [vmem:[#allocation4 + $0x294] ss:$8 sps:$4 sm:$0xff]  }
 0x423   : > { %v3363_v16 = vsel %vm3267_vm1, %v13018_v52, %v3347_v43  ;;  %v3354_v52 = vsel %vm3258_vm4, %v12997_v27, %v3338_v9  ;;  %v10712_v25 = vpop.eup %10711  ;;  %v3344_v46 = vmul.bf16 1071005654, %v3328_v38  ;;  %v3327_v55 = vsub.bf16 %v10710_v44, %v14735_v45  ;;  %v10400_v43 = vld [vmem:[#allocation4 + $0x230] ss:$8 sps:$4 sm:$0xff]   ;;  %v10415_v9 = vld [vmem:[#allocation4 + $0x280] ss:$8 sps:$4 sm:$0xff]  }
 0x424   : > { %9621 = vmatprep.subr.bf16.mxu1 %v3363_v16  ;;  %v10714_v7 = vpop.eup %10713  ;;  %v3353_v20 = vsel %vm3257_vm6, %v13008_v12, %v3337_v5  ;;  %v3336_v27 = vmul.bf16 1071005654, %v3320_v30  ;;  %v3319_v1 = vsub.bf16 %v10712_v25, %v14735_v45  ;;  %v10410_v16 = vld [vmem:[#allocation4 + $0x274] ss:$8 sps:$4 sm:$0xff]   ;;  %v10421_v38 = vld [vmem:[#allocation4 + $0x2a0] ss:$8 sps:$4 sm:$0xff]  }
 0x425   : > { %9622 = vmatpush3.bf16.msra.mxu1 %v3355_v14  ;;  %v10716_v31 = vpop.eup %10715  ;;  %v3360_v54 = vsel %vm3264_vm7, %v13016_v40, %v3344_v46  ;;  %v3343_v29 = vmul.bf16 1071005654, %v3327_v55  ;;  %v3326_v28 = vsub.bf16 %v10714_v7, %v14735_v45  ;;  %v10413_v14 = vld [vmem:[#allocation4 + $0x284] ss:$8 sps:$4 sm:$0xff]   ;;  %v10422_v44 = vld [vmem:[#allocation4 + $0x2b4] ss:$8 sps:$4 sm:$0xff]  }
 0x426   : > { %9623 = vmatprep.subr.bf16.mxu1 %v3362_v32  ;;  %v10718_v41 = vpop.eup %10717  ;;  %v3352_v21 = vsel %vm3256_vm8, %v13035_v24, %v3336_v27  ;;  %v3335_v12 = vmul.bf16 1071005654, %v3319_v1  ;;  %v3318_v42 = vsub.bf16 %v10716_v31, %v14735_v45  ;;  %v10418_v32 = vld [vmem:[#allocation4 + $0x290] ss:$8 sps:$4 sm:$0xff]   ;;  %v10425_v5 = vld [vmem:[#allocation4 + $0x2c4] ss:$8 sps:$4 sm:$0xff]  }
 0x427   : > { %v10720_v15 = vpop.eup %10719  ;;  %v3359_v8 = vsel %vm3263_vm9, %v13037_v34, %v3343_v29  ;;  %v3342_v0 = vmul.bf16 1071005654, %v3326_v28  ;;  %v3325_v40 = vsub.bf16 %v10718_v41, %v14735_v45  ;;  %v10427_v30 = vld [vmem:[#allocation4 + $0x2c0] ss:$8 sps:$4 sm:$0xff]   ;;  %v10428_v25 = vld [vmem:[#allocation4 + $0x2d4] ss:$8 sps:$4 sm:$0xff]  }
 0x428   : > { %v10722_v22 = vpop.eup %10721  ;;  %v3351_v17 = vsel %vm3255_vm10, %v13051_v6, %v3335_v12  ;;  %v3334_v24 = vmul.bf16 1071005654, %v3318_v42  ;;  %v3317_v35 = vsub.bf16 %v10720_v15, %v14735_v45  ;;  %v10431_v46 = vld [vmem:[#allocation4 + $0x2e4] ss:$8 sps:$4 sm:$0xff]   ;;  %v10433_v55 = vld [vmem:[#allocation4 + $0x2e0] ss:$8 sps:$4 sm:$0xff]  }
 0x429   : > { %9624 = vmatpush3.bf16.msra.mxu1 %v3354_v52  ;;  %v10724_v2 = vpop.eup %10723  ;;  %v3358_v60 = vsel %vm3262_vm11, %v13054_v10, %v3342_v0  ;;  %v3341_v51 = vmul.bf16 1071005654, %v3325_v40  ;;  %v3324_v34 = vsub.bf16 %v10722_v22, %v14735_v45  ;;  %v10424_v52 = vld [vmem:[#allocation4 + $0x2b0] ss:$8 sps:$4 sm:$0xff]   ;;  %v10434_v7 = vld [vmem:[#allocation4 + $0x2f4] ss:$8 sps:$4 sm:$0xff]  }
 0x42a   : > { %9625 = vmatprep.subr.bf16.mxu1 %v3361_v33  ;;  %v3350_v4 = vsel %vm3254_vm12, %v13072_v18, %v3334_v24  ;;  %v3333_v6 = vmul.bf16 1071005654, %v3317_v35  ;;  %v3316_v26 = vsub.bf16 %v10724_v2, %v14735_v45  ;;  %v10430_v33 = vld [vmem:[#allocation4 + $0x2d0] ss:$8 sps:$4 sm:$0xff]  }
 0x42b   : > { %v3357_v63 = vsel %vm3261_vm13, %v13078_v11, %v3341_v51  ;;  %v3340_v19 = vmul.bf16 1071005654, %v3324_v34  ;;  %v10392_v11 = vld [vmem:[#allocation4 + $0x214] ss:$8 sps:$4 sm:$0xff]  }
 0x42c   : > { %v3349_v10 = vsel %vm3253_vm14, %v13084_v62, %v3333_v6  ;;  %v3332_v58 = vmul.bf16 1071005654, %v3316_v26  ;;  %v10397_v62 = vld [vmem:[#allocation4 + $0x220] ss:$8 sps:$4 sm:$0xff]  }
 0x42d   : > { %9626 = vmatpush3.bf16.msra.mxu1 %v3353_v20  ;;  %v3356_v18 = vsel %vm3260_vm15, %v13090_v36, %v3340_v19  ;;  %v10401_v36 = vld [vmem:[#allocation4 + $0x244] ss:$8 sps:$4 sm:$0xff]   ;;  %v10436_v20 = vld [vmem:[#allocation4 + $0x2f0] ss:$8 sps:$4 sm:$0xff]  }
 0x42e   : > { %9627 = vmatprep.subr.bf16.mxu1 %v3360_v54  ;;  %v3348_v59 = vsel %vm3252_vm0, %v13098_v50, %v3332_v58  ;;  %v10406_v50 = vld [vmem:[#allocation4 + $0x250] ss:$8 sps:$4 sm:$0xff]  }
 0x42f   : > { %v14785_v58 = vld [vmem:[#allocation82_spill] sm:$0xff] }
 0x431   : > { %9628 = vmatpush3.bf16.msra.mxu1 %v3352_v21 }
 0x432   : > { %9629 = vmatprep.subr.bf16.mxu1 %v3359_v8 }
 0x435   : > { %9630 = vmatpush3.bf16.msra.mxu1 %v3351_v17 }
 0x436   : > { %9631 = vmatprep.subr.bf16.mxu1 %v3358_v60 }
 0x439   : > { %9632 = vmatpush3.bf16.msra.mxu1 %v3350_v4 }
 0x43a   : > { %9633 = vmatprep.subr.bf16.mxu1 %v3357_v63 }
 0x43d   : > { %9634 = vmatpush3.bf16.msra.mxu1 %v3349_v10 }
 0x43e   : > { %9635 = vmatprep.subr.bf16.mxu1 %v3356_v18 }
 0x441   : > { %9636 = vmatpush3.bf16.msra.mxu1 %v3348_v59 }
 0x444   : > { %3590 = vmatmul.mubr.bf16.vlgmr.msra.gmra.mxu1 %v10389_v13 }
 0x445   : > { %3597 = vmatprep.mubr.bf16.mxu1 %v10392_v11 }
 0x44c   : > { %3598 = vmatmul.mubr.bf16.gmra.mxu1 %v10394_v61 }
 0x44d   : > { %3605 = vmatprep.mubr.bf16.mxu1 %v10395_v39 }
 0x454   : > { %3606 = vmatmul.mubr.bf16.gmra.mxu1 %v10397_v62  ;;  %v14786_v62 = vld [vmem:[#allocation83_spill] sm:$0xff] }
 0x455   : > { %3613 = vmatprep.mubr.bf16.mxu1 %v10398_v56 }
 0x45c   : > { %3614 = vmatmul.mubr.bf16.gmra.mxu1 %v10400_v43 }
 0x45d   : > { %3621 = vmatprep.mubr.bf16.mxu1 %v10401_v36 }
 0x464   : > { %3622 = vmatmul.mubr.bf16.gmra.mxu1 %v10403_v23 }
 0x465   : > { %3629 = vmatprep.mubr.bf16.mxu1 %v10404_v3 }
 0x46c   : > { %3630 = vmatmul.mubr.bf16.gmra.mxu1 %v10406_v50 }
 0x46d   : > { %3637 = vmatprep.mubr.bf16.mxu1 %v10407_v49 }
 0x474   : > { %3638 = vmatmul.mubr.bf16.gmra.mxu1 %v10409_v48 }
 0x475   : > { %3645 = vmatprep.mubr.bf16.mxu1 %v10410_v16 }
 0x47c   : > { %3646 = vmatmul.mubr.bf16.gmra.mxu1 %v10412_v53 }
 0x47d   : > { %3653 = vmatprep.mubr.bf16.mxu1 %v10413_v14 }
 0x484   : > { %3654 = vmatmul.mubr.bf16.gmra.mxu1 %v10415_v9 }
 0x485   : > { %3661 = vmatprep.mubr.bf16.mxu1 %v10416_v57 }
 0x48c   : > { %3662 = vmatmul.mubr.bf16.gmra.mxu1 %v10418_v32  ;;  %v10439_v32 = vld [vmem:[#allocation4 + $0x304] ss:$8 sps:$4 sm:$0xff]  }
 0x48d   : > { %3669 = vmatprep.mubr.bf16.mxu1 %v10419_v37  ;;  %4600 = vmatprep.mubr.bf16.mxu0 %v10439_v32  ;;  %v14778_v32 = vld [vmem:[#allocation75_spill] sm:$0xff] }
 0x494   : > { %3670 = vmatmul.mubr.bf16.gmra.mxu1 %v10421_v38 }
 0x495   : > { %3677 = vmatprep.mubr.bf16.mxu1 %v10422_v44 }
 0x49c   : > { %3678 = vmatmul.mubr.bf16.gmra.mxu1 %v10424_v52 }
 0x49d   : > { %3685 = vmatprep.mubr.bf16.mxu1 %v10425_v5 }
 0x4a4   : > { %3686 = vmatmul.mubr.bf16.gmra.mxu1 %v10427_v30 }
 0x4a5   : > { %3693 = vmatprep.mubr.bf16.mxu1 %v10428_v25 }
 0x4ac   : > { %3694 = vmatmul.mubr.bf16.gmra.mxu1 %v10430_v33 }
 0x4ad   : > { %3701 = vmatprep.mubr.bf16.mxu1 %v10431_v46 }
 0x4b4   : > { %3702 = vmatmul.mubr.bf16.gmra.mxu1 %v10433_v55 }
 0x4b5   : > { %3709 = vmatprep.mubr.bf16.mxu1 %v10434_v7 }
 0x4bc   : > { %3710 = vmatmul.mubr.bf16.gmra.mxu1 %v10436_v20 }
 0x504   : > { %v9637_v27 = vpop.f32.mrf.mxu1 }
 0x506   : > { %v9638_v1 = vpop.f32.mrf.mxu1 }
 0x507   : > { %v13149_v31 = vadd.f32 %v9638_v1, %v9637_v27 }
 0x508   : > { %v9640_v54 = vpop.f32.mrf.mxu1 }
 0x50a   : > { %v9641_v29 = vpop.f32.mrf.mxu1 }
 0x50b   : > { %v13151_v28 = vadd.f32 %v9641_v29, %v9640_v54 }
 0x50c   : > { %v9643_v41 = vpop.f32.mrf.mxu1 }
 0x50e   : > { %v9644_v12 = vpop.f32.mrf.mxu1 }
 0x50f   : > { %v13155_v42 = vadd.f32 %v9644_v12, %v9643_v41 }
 0x510   : > { %v9646_v15 = vpop.f32.mrf.mxu1 }
 0x512   : > { %v9647_v8 = vpop.f32.mrf.mxu1 }
 0x513   : > { %v13157_v0 = vadd.f32 %v9647_v8, %v9646_v15 }
 0x514   : > { %v9649_v40 = vpop.f32.mrf.mxu1 }
 0x516   : > { %v9650_v17 = vpop.f32.mrf.mxu1 }
 0x517   : > { %v13161_v24 = vadd.f32 %v9650_v17, %v9649_v40 }
 0x518   : > { %v9652_v35 = vpop.f32.mrf.mxu1 }
 0x51a   : > { %v9653_v2 = vpop.f32.mrf.mxu1 }
 0x51b   : > { %v13163_v60 = vadd.f32 %v9653_v2, %v9652_v35 }
 0x51c   : > { %v9655_v51 = vpop.f32.mrf.mxu1 }
 0x51e   : > { %v9656_v4 = vpop.f32.mrf.mxu1 }
 0x51f   : > { %v13167_v6 = vadd.f32 %v9656_v4, %v9655_v51 }
 0x520   : > { %v9658_v26 = vpop.f32.mrf.mxu1 }
 0x522   : > { %v9659_v63 = vpop.f32.mrf.mxu1 }
 0x523   : > { %v13169_v19 = vadd.f32 %v9659_v63, %v9658_v26 }
 0x524   : > { %v9661_v10 = vpop.f32.mrf.mxu1 }
 0x526   : > { %v9662_v18 = vpop.f32.mrf.mxu1 }
 0x527   : > { %v13173_v59 = vadd.f32 %v9662_v18, %v9661_v10 }
 0x528   : > { %v9664_v13 = vpop.f32.mrf.mxu1 }
 0x52a   : > { %v9665_v11 = vpop.f32.mrf.mxu1 }
 0x52b   : > { %v13175_v61 = vadd.f32 %v9665_v11, %v9664_v13 }
 0x52c   : > { %v9667_v39 = vpop.f32.mrf.mxu1 }
 0x52e   : > { %v9668_v56 = vpop.f32.mrf.mxu1 }
 0x52f   : > { %v13179_v43 = vadd.f32 %v9668_v56, %v9667_v39 }
 0x530   : > { %v9670_v36 = vpop.f32.mrf.mxu1 }
 0x532   : > { %v9671_v23 = vpop.f32.mrf.mxu1 }
 0x533   : > { %v13181_v3 = vadd.f32 %v9671_v23, %v9670_v36 }
 0x534   : > { %v9673_v50 = vpop.f32.mrf.mxu1 }
 0x536   : > { %v9674_v48 = vpop.f32.mrf.mxu1 }
 0x537   : > { %v13185_v16 = vadd.f32 %v9674_v48, %v9673_v50 }
 0x538   : > { %v9676_v53 = vpop.f32.mrf.mxu1 }
 0x53a   : > { %v9677_v14 = vpop.f32.mrf.mxu1 }
 0x53b   : > { %v13187_v9 = vadd.f32 %v9677_v14, %v9676_v53  ;;  %v14777_v14 = vld [vmem:[#allocation74_spill] sm:$0xff] }
 0x53c   : > { %v9679_v57 = vpop.f32.mrf.mxu1 }
 0x53e   : > { %v9680_v38 = vpop.f32.mrf.mxu1 }
 0x53f   : > { %v9681_v44 = vadd.f32 %v9680_v38, %v9679_v57  ;;  %v3958_v57 = vrot.slane %v14777_v14, %v11668_v47  ;;  %v3946_v38 = vrot.slane %v14778_v32, %v11668_v47  ;;  %v14784_v32 = vld [vmem:[#allocation81_spill] sm:$0xff] }
 0x540   : > { %v9682_v52 = vpop.f32.mrf.mxu1  ;;  %v4090_v21 = vrot.slane %v14784_v32, %v11668_v47 }
 0x542   : > { %v9683_v5 = vpop.f32.mrf.mxu1 }
 0x543   : > { %v9684_v30 = vadd.f32 %v9683_v5, %v9682_v52  ;;  %v14779_v52 = vld [vmem:[#allocation76_spill] sm:$0xff] }
 0x544   : > { %v9685_v25 = vpop.f32.mrf.mxu1  ;;  %v4126_v5 = vrot.slane %v14779_v52, %v11668_v47  ;;  %v9048_v52 = vcombine.low %v3946_v38, %v3958_v57 }
 0x545   : > { %v3725_v33 = vpack.c.bf16 %v9684_v30, %v9681_v44  ;;  %v14780_v30 = vld [vmem:[#allocation77_spill] sm:$0xff] }
 0x546   : > { %v9686_v46 = vpop.f32.mrf.mxu1 }
 0x547   : > { %v13191_v55 = vadd.f32 %v9686_v46, %v9685_v25  ;;  %v4114_v25 = vrot.slane %v14780_v30, %v11668_v47  ;;  %v14781_v46 = vld [vmem:[#allocation78_spill] sm:$0xff]  ;;  %v13239_v32 = vadd.bf16 %v9048_v52, %v3725_v33 }
 0x548   : > { %v9688_v7 = vpop.f32.mrf.mxu1 }
 0x549   : > { %v9055_v30 = vcombine.low %v4114_v25, %v4126_v5  ;;  %v14792_v25 = vld [vmem:[#allocation87_spill] sm:$0xff]  ;;  %v4301_v52 = vmul.bf16 1069105081, %v13239_v32  ;;  %vm4270_vm2 = vcmp.gt.bf16.partialorder %v13239_v32, 0 }
 0x54a   : > { %v9689_v20 = vpop.f32.mrf.mxu1  ;;  %v3874_v33 = vrot.slane %v14792_v25, %v11668_v47  ;;  %v14801_v25 = vpack.c.bf16 %v13175_v61, %v13173_v59  ;;  %v14805_v61 = vld [vmem:[#allocation96_spill] sm:$0xff] }
 0x54b   : > { %v13193_v27 = vadd.f32 %v9689_v20, %v9688_v7  ;;  %v3934_v7 = vrot.slane %v14781_v46, %v11668_v47  ;;  %v14782_v20 = vld [vmem:[#allocation79_spill] sm:$0xff]  ;;  %v3910_v46 = vrot.slane %v14785_v58, %v11668_v47  ;;  %v14789_v58 = vld [vmem:[#allocation84_spill] sm:$0xff]  ;;  %10725 = vpow.bf16 %v4301_v52 }
 0x54c   : > { %v9691_v1 = vpop.f32.mrf.mxu1  ;;  %v3994_v52 = vrot.slane %v14805_v61, %v11668_v47 }
 0x54e   : > { %v9692_v29 = vpop.f32.mrf.mxu1 }
 0x54f   : > { %v13197_v41 = vadd.f32 %v9692_v29, %v9691_v1  ;;  %v3922_v1 = vrot.slane %v14782_v20, %v11668_v47  ;;  %v3898_v20 = vrot.slane %v14786_v62, %v11668_v47 }
 0x550   : > { %v9694_v12 = vpop.f32.mrf.mxu1 }
 0x552   : > { %v9695_v15 = vpop.f32.mrf.mxu1 }
 0x553   : > { %v13199_v8 = vadd.f32 %v9695_v15, %v9694_v12  ;;  %v14783_v15 = vld [vmem:[#allocation80_spill] sm:$0xff] }
 0x554   : > { %v13201_v40 = vpop.f32.mrf.mxu1  ;;  %v4102_v14 = vrot.slane %v14783_v15, %v11668_v47  ;;  %v14788_v15 = vld [vmem:[#allocation73_spill] sm:$0xff] }
 0x555   : > { %v4138_v37 = vrot.slane %v14788_v15, %v11668_v47 }
 0x556   : > { %v13205_v35 = vpop.f32.mrf.mxu1 }
 0x558   : > { %v13207_v2 = vpop.f32.mrf.mxu1 }
 0x55a   : > { %v13209_v51 = vpop.f32.mrf.mxu1 }
 0x55c   : > { %v13211_v4 = vpop.f32.mrf.mxu1 }
 0x55e   : > { %v13213_v26 = vpop.f32.mrf.mxu1 }
 0x560   : > { %v9706_v63 = vpop.f32.mrf.mxu1 }
 0x562   : > { %v9707_v10 = vpop.f32.mrf.mxu1 }
 0x564   : > { %v9709_v18 = vpop.f32.mrf.mxu1 }
 0x566   : > { %v9710_v13 = vpop.f32.mrf.mxu1 }
 0x568   : > { %v9712_v11 = vpop.f32.mrf.mxu1 }
 0x56a   : > { %v9713_v39 = vpop.f32.mrf.mxu1 }
 0x56b   : > { %v9714_v57 = vadd.f32 %v9713_v39, %v9712_v11  ;;  %v14794_v11 = vpack.c.bf16 %v13187_v9, %v13185_v16  ;;  %v14796_v9 = vpack.c.bf16 %v13181_v3, %v13179_v43  ;;  %v14797_v3 = vld [vmem:[#allocation90_spill] sm:$0xff] }
 0x56c   : > { %v9715_v56 = vpop.f32.mrf.mxu1 }
 0x56e   : > { %v9716_v36 = vpop.f32.mrf.mxu1 }
 0x56f   : > { %v9717_v17 = vadd.f32 %v9716_v36, %v9715_v56  ;;  %v9047_v56 = vcombine.low %v3922_v1, %v3934_v7  ;;  %v9054_v36 = vcombine.low %v4090_v21, %v4102_v14  ;;  %v14793_v7 = vld [vmem:[#allocation88_spill] sm:$0xff]  ;;  %v9711_v1 = vadd.f32 %v9710_v13, %v9709_v18 }
 0x570   : > { %v9718_v23 = vpop.f32.mrf.mxu1  ;;  %v4054_v21 = vrot.slane %v14793_v7, %v11668_v47 }
 0x571   : > { %v13256_v39 = vadd.bf16 %v9047_v56, %v14794_v11  ;;  %v3730_v15 = vpack.c.bf16 %v9714_v57, %v9711_v1  ;;  %v3862_v56 = vrot.slane %v14797_v3, %v11668_v47  ;;  %v14802_v11 = vld [vmem:[#allocation95_spill] sm:$0xff]  ;;  %v14813_v3 = vpack.c.bf16 %v13163_v60, %v13161_v24 }
 0x572   : > { %v9719_v50 = vpop.f32.mrf.mxu1  ;;  %v3838_v1 = vrot.slane %v14802_v11, %v11668_v47  ;;  %v14815_v24 = vpack.c.bf16 %v13157_v0, %v13155_v42  ;;  %v14817_v0 = vpack.c.bf16 %v13151_v28, %v13149_v31 }
 0x573   : > { %v9720_v29 = vadd.f32 %v9719_v50, %v9718_v23  ;;  %v14787_v50 = vld [vmem:[#allocation72_spill] sm:$0xff]  ;;  %v4298_v13 = vmul.bf16 1069105081, %v13256_v39  ;;  %vm4269_vm4 = vcmp.gt.bf16.partialorder %v13256_v39, 0 }
 0x574   : > { %v9721_v48 = vpop.f32.mrf.mxu1  ;;  %v4150_v49 = vrot.slane %v14787_v50, %v11668_v47 }
 0x576   : > { %v9722_v53 = vpop.f32.mrf.mxu1 }
 0x577   : > { %v9723_v54 = vadd.f32 %v9722_v53, %v9721_v48  ;;  %v3731_v48 = vpack.c.bf16 %v9720_v29, %v9717_v17  ;;  %v9046_v17 = vcombine.low %v3898_v20, %v3910_v46  ;;  %v14795_v29 = vld [vmem:[#allocation89_spill] sm:$0xff] }
 0x578   : > { %v9724_v44 = vpop.f32.mrf.mxu1  ;;  %v4042_v14 = vrot.slane %v14795_v29, %v11668_v47 }
 0x579   : > { %v13267_v18 = vadd.bf16 %v9046_v17, %v14796_v9 }
 0x57a   : > { %v9725_v12 = vpop.f32.mrf.mxu1 }
 0x57b   : > { %v9726_v22 = vadd.f32 %v9725_v12, %v9724_v44  ;;  %v4078_v44 = vrot.slane %v14789_v58, %v11668_v47  ;;  %vm4268_vm6 = vcmp.gt.bf16.partialorder %v13267_v18, 0 }
 0x57c   : > { %v9727_v34 = vpop.f32.mrf.mxu1 }
 0x57d   : > { %v3732_v23 = vpack.c.bf16 %v9726_v22, %v9723_v54  ;;  %v14790_v22 = vld [vmem:[#allocation85_spill] sm:$0xff]  ;;  %v14791_v54 = vld [vmem:[#allocation86_spill] sm:$0xff] }
 0x57e   : > { %v9728_v53 = vpop.f32.mrf.mxu1  ;;  %v4066_v62 = vrot.slane %v14790_v22, %v11668_v47  ;;  %v3886_v5 = vrot.slane %v14791_v54, %v11668_v47  ;;  %v9056_v22 = vcombine.low %v4138_v37, %v4150_v49 }
 0x57f   : > { %v13241_v38 = vadd.bf16 %v9055_v30, %v3732_v23  ;;  %v9708_v30 = vadd.f32 %v9707_v10, %v9706_v63  ;;  %v13261_v23 = vadd.bf16 %v9054_v36, %v3731_v48  ;;  %v9729_v20 = vadd.f32 %v9728_v53, %v9727_v34  ;;  %v14798_v36 = vld [vmem:[#allocation91_spill] sm:$0xff] }
 0x580   : > { %v9730_v12 = vpop.f32.mrf.mxu1  ;;  %v9053_v54 = vcombine.low %v4066_v62, %v4078_v44  ;;  %v9045_v16 = vcombine.low %v3874_v33, %v3886_v5  ;;  %v9705_v63 = vadd.f32 %v13213_v26, %v13211_v4  ;;  %v9052_v48 = vcombine.low %v4042_v14, %v4054_v21  ;;  %v14799_v26 = vld [vmem:[#allocation93_spill] sm:$0xff]  ;;  %v14800_v44 = vld [vmem:[#allocation92_spill] sm:$0xff] }
 0x581   : > { %v4322_v46 = vmul.bf16 1069105081, %v13241_v38  ;;  %v9702_v34 = vadd.f32 %v13209_v51, %v13207_v2  ;;  %v4319_v49 = vmul.bf16 1069105081, %v13261_v23  ;;  %v3850_v4 = vrot.slane %v14798_v36, %v11668_v47  ;;  %v14804_v14 = vld [vmem:[#allocation97_spill] sm:$0xff] }
 0x582   : > { %v9731_v50 = vpop.f32.mrf.mxu1  ;;  %v3729_v37 = vpack.c.bf16 %v9708_v30, %v9705_v63  ;;  %v13275_v53 = vadd.bf16 %v9053_v54, %v3730_v15  ;;  %v4030_v57 = vrot.slane %v14799_v26, %v11668_v47  ;;  %v4018_v2 = vrot.slane %v14800_v44, %v11668_v47  ;;  %v14809_v63 = vld [vmem:[#allocation101_spill] sm:$0xff]  ;;  %v10726_v44 = vpop.eup %10725 }
 0x583   : > { %v9732_v58 = vadd.f32 %v9731_v50, %v9730_v12  ;;  %10727 = vpow.bf16 %v4322_v46  ;;  %v4295_v51 = vmul.bf16 1069105081, %v13267_v18  ;;  %v9699_v62 = vadd.f32 %v13205_v35, %v13201_v40  ;;  %v14803_v40 = vld [vmem:[#allocation94_spill] sm:$0xff] }
 0x584   : > { %10729 = vpow.bf16 %v4298_v13  ;;  %v13294_v33 = vadd.bf16 %v9045_v16, %v14801_v25  ;;  %v13296_v17 = vadd.bf16 %v9052_v48, %v3729_v37  ;;  %v4316_v7 = vmul.bf16 1069105081, %v13275_v53  ;;  %v14808_v16 = vld [vmem:[#allocation98_spill] sm:$0xff]  ;;  %v14811_v48 = vld [vmem:[#allocation103_spill] sm:$0xff] }
 0x585   : > { %v3733_v10 = vpack.c.bf16 %v9732_v58, %v9729_v20  ;;  %10731 = vpow.bf16 %v4319_v49  ;;  %v3728_v12 = vpack.c.bf16 %v9702_v34, %v9699_v62  ;;  %v9044_v21 = vcombine.low %v3850_v4, %v3862_v56  ;;  %v14812_v49 = vld [vmem:[#allocation102_spill] sm:$0xff] }
 0x586   : > { %v3826_v35 = vrot.slane %v14803_v40, %v11668_v47  ;;  %v9051_v29 = vcombine.low %v4018_v2, %v4030_v57  ;;  %v4006_v59 = vrot.slane %v14804_v14, %v11668_v47  ;;  %v14806_v30 = vpack.c.bf16 %v13169_v19, %v13167_v6  ;;  %v14810_v19 = vld [vmem:[#allocation100_spill] sm:$0xff] }
 0x587   : > { %v13277_v43 = vadd.bf16 %v9056_v22, %v3733_v10  ;;  %v4292_v15 = vmul.bf16 1069105081, %v13294_v33  ;;  %v4313_v20 = vmul.bf16 1069105081, %v13296_v17  ;;  %v14807_v22 = vld [vmem:[#allocation99_spill] sm:$0xff]  ;;  %v3802_v9 = vrot.slane %v14808_v16, %v11668_v47 }
 0x588   : > { %v13310_v50 = vadd.bf16 %v9044_v21, %v14806_v30  ;;  %v13313_v46 = vadd.bf16 %v9051_v29, %v3728_v12  ;;  %v9043_v58 = vcombine.low %v3826_v35, %v3838_v1  ;;  %v3814_v54 = vrot.slane %v14807_v22, %v11668_v47 }
 0x589   : > { %v4325_v5 = vmul.bf16 1069105081, %v13277_v43  ;;  %v9050_v13 = vcombine.low %v3994_v52, %v4006_v59  ;;  %v3982_v6 = vrot.slane %v14809_v63, %v11668_v47  ;;  %v3970_v10 = vrot.slane %v14810_v19, %v11668_v47 }
 0x58a   : > { %v3790_v34 = vrot.slane %v14811_v48, %v11668_v47  ;;  %v3778_v37 = vrot.slane %v14812_v49, %v11668_v47  ;;  %v13331_v56 = vadd.bf16 %v9043_v58, %v14813_v3  ;;  %v4289_v36 = vmul.bf16 1069105081, %v13310_v50 }
 0x58b   : > { %10733 = vpow.bf16 %v4325_v5  ;;  %v14814_v4 = vpack.c.bf16 %v13199_v8, %v13197_v41  ;;  %v4310_v57 = vmul.bf16 1069105081, %v13313_v46  ;;  %v9042_v2 = vcombine.low %v3802_v9, %v3814_v54 }
 0x58c   : > { %10735 = vpow.bf16 %v4295_v51  ;;  %v9049_v62 = vcombine.low %v3970_v10, %v3982_v6  ;;  %v9041_v5 = vcombine.low %v3778_v37, %v3790_v34  ;;  %v4286_v25 = vmul.bf16 1069105081, %v13331_v56 }
 0x58d   : > { %10737 = vpow.bf16 %v4316_v7  ;;  %v13337_v26 = vadd.bf16 %v9050_v13, %v14814_v4  ;;  %v13343_v60 = vadd.bf16 %v9042_v2, %v14815_v24  ;;  %v14816_v41 = vpack.c.bf16 %v13193_v27, %v13191_v55 }
 0x58e   : > { %10739 = vpow.bf16 %v4292_v15  ;;  %v4334_v21 = vsub.bf16 %v10726_v44, %v14735_v45  ;;  %v13357_v40 = vadd.bf16 %v9041_v5, %v14817_v0  ;;  %vm4278_vm1 = vcmp.gt.bf16.partialorder %v13277_v43, 0 }
 0x58f   : > { %10741 = vpow.bf16 %v4313_v20  ;;  %v13349_v8 = vadd.bf16 %v9049_v62, %v14816_v41  ;;  %v4307_v7 = vmul.bf16 1069105081, %v13337_v26  ;;  %v4283_v35 = vmul.bf16 1069105081, %v13343_v60 }
 0x590   : > { %10743 = vpow.bf16 %v4289_v36  ;;  %v4350_v14 = vmul.bf16 1071005654, %v4334_v21  ;;  %v4280_v31 = vmul.bf16 1069105081, %v13357_v40  ;;  %vm4277_vm3 = vcmp.gt.bf16.partialorder %v13241_v38, 0 }
 0x591   : > { %v10728_v51 = vpop.eup %10727  ;;  %10745 = vpow.bf16 %v4310_v57  ;;  %v4304_v29 = vmul.bf16 1069105081, %v13349_v8  ;;  %vm4276_vm5 = vcmp.gt.bf16.partialorder %v13261_v23, 0  ;;  %vm4275_vm7 = vcmp.gt.bf16.partialorder %v13275_v53, 0 }
 0x592   : > { %v10730_v12 = vpop.eup %10729  ;;  %v4341_v1 = vsub.bf16 %v10728_v51, %v14735_v45  ;;  %10747 = vpow.bf16 %v4286_v25  ;;  %v4366_v58 = vsel %vm4270_vm2, %v13239_v32, %v4350_v14  ;;  %vm4267_vm8 = vcmp.gt.bf16.partialorder %v13294_v33, 0  ;;  %v10445_v14 = vld [vmem:[#allocation4 + $0x324] ss:$8 sps:$4 sm:$0xff]  }
 0x593   : > { %v10732_v11 = vpop.eup %10731  ;;  %10749 = vpow.bf16 %v4307_v7  ;;  %v4333_v59 = vsub.bf16 %v10730_v12, %v14735_v45  ;;  %vm4274_vm9 = vcmp.gt.bf16.partialorder %v13296_v17, 0  ;;  %vm4266_vm10 = vcmp.gt.bf16.partialorder %v13310_v50, 0 }
 0x594   : > { %v4357_v52 = vmul.bf16 1071005654, %v4341_v1  ;;  %v4340_v30 = vsub.bf16 %v10732_v11, %v14735_v45  ;;  %10751 = vpow.bf16 %v4283_v35  ;;  %vm4273_vm11 = vcmp.gt.bf16.partialorder %v13313_v46, 0 }
 0x595   : > { %10753 = vpow.bf16 %v4304_v29  ;;  %v4349_v22 = vmul.bf16 1071005654, %v4333_v59  ;;  %vm4265_vm12 = vcmp.gt.bf16.partialorder %v13331_v56, 0  ;;  %vm4272_vm13 = vcmp.gt.bf16.partialorder %v13337_v26, 0  ;;  %v10440_v29 = vld [vmem:[#allocation4 + $0x310] ss:$8 sps:$4 sm:$0xff]  }
 0x596   : > { %v4373_v16 = vsel %vm4277_vm3, %v13241_v38, %v4357_v52  ;;  %v4356_v9 = vmul.bf16 1071005654, %v4340_v30  ;;  %10755 = vpow.bf16 %v4280_v31  ;;  %vm4264_vm14 = vcmp.gt.bf16.partialorder %v13343_v60, 0  ;;  %v10448_v59 = vld [vmem:[#allocation4 + $0x334] ss:$8 sps:$4 sm:$0xff]  }
 0x597   : > { %vm4271_vm15 = vcmp.gt.bf16.partialorder %v13349_v8, 0  ;;  %vm4263_vm0 = vcmp.gt.bf16.partialorder %v13357_v40, 0  ;;  %v10449_v52 = vld [vmem:[#allocation4 + $0x340] ss:$8 sps:$4 sm:$0xff]   ;;  %v10454_v30 = vld [vmem:[#allocation4 + $0x354] ss:$8 sps:$4 sm:$0xff]  }
 0x598   : > { %v4372_v10 = vsel %vm4276_vm5, %v13261_v23, %v4356_v9  ;;  %v10455_v31 = vld [vmem:[#allocation4 + $0x360] ss:$8 sps:$4 sm:$0xff]   ;;  %v10469_v9 = vld [vmem:[#allocation4 + $0x3a4] ss:$8 sps:$4 sm:$0xff]  }
 0x599   : > { %v10734_v42 = vpop.eup %10733 }
 0x59a   : > { %v4342_v55 = vsub.bf16 %v10734_v42, %v14735_v45  ;;  %v10736_v27 = vpop.eup %10735 }
 0x59b   : > { %v10738_v15 = vpop.eup %10737  ;;  %v4332_v20 = vsub.bf16 %v10736_v27, %v14735_v45  ;;  %v10437_v27 = vld [vmem:[#allocation4 + $0x300] ss:$8 sps:$4 sm:$0xff]  }
 0x59c   : > { %v4358_v61 = vmul.bf16 1071005654, %v4342_v55  ;;  %v10740_v54 = vpop.eup %10739  ;;  %v4339_v13 = vsub.bf16 %v10738_v15, %v14735_v45  ;;  %v10457_v15 = vld [vmem:[#allocation4 + $0x364] ss:$8 sps:$4 sm:$0xff]  }
 0x59d   : > { %v10742_v63 = vpop.eup %10741  ;;  %v4348_v32 = vmul.bf16 1071005654, %v4332_v20  ;;  %v4331_v6 = vsub.bf16 %v10740_v54, %v14735_v45  ;;  %v10458_v20 = vld [vmem:[#allocation4 + $0x370] ss:$8 sps:$4 sm:$0xff]   ;;  %v10466_v54 = vld [vmem:[#allocation4 + $0x394] ss:$8 sps:$4 sm:$0xff]  }
 0x59e   : > { %v4374_v28 = vsel %vm4278_vm1, %v13277_v43, %v4358_v61  ;;  %v4365_v43 = vsel %vm4269_vm4, %v13256_v39, %v4349_v22  ;;  %v10744_v19 = vpop.eup %10743  ;;  %v4355_v38 = vmul.bf16 1071005654, %v4339_v13  ;;  %v4338_v48 = vsub.bf16 %v10742_v63, %v14735_v45  ;;  %v10446_v61 = vld [vmem:[#allocation4 + $0x330] ss:$8 sps:$4 sm:$0xff]   ;;  %v10461_v22 = vld [vmem:[#allocation4 + $0x380] ss:$8 sps:$4 sm:$0xff]  }
 0x59f   : > { %9733 = vmatprep.subr.bf16.mxu0 %v4374_v28  ;;  %v10746_v34 = vpop.eup %10745  ;;  %v4364_v49 = vsel %vm4268_vm6, %v13267_v18, %v4348_v32  ;;  %v4347_v39 = vmul.bf16 1071005654, %v4331_v6  ;;  %v4330_v37 = vsub.bf16 %v10744_v19, %v14735_v45  ;;  %v10460_v28 = vld [vmem:[#allocation4 + $0x374] ss:$8 sps:$4 sm:$0xff]   ;;  %v10467_v13 = vld [vmem:[#allocation4 + $0x3a0] ss:$8 sps:$4 sm:$0xff]  }
 0x5a0   : > { %9734 = vmatpush3.bf16.msra.mxu0 %v4366_v58  ;;  %v10748_v3 = vpop.eup %10747  ;;  %v4371_v36 = vsel %vm4275_vm7, %v13275_v53, %v4355_v38  ;;  %v4354_v4 = vmul.bf16 1071005654, %v4338_v48  ;;  %v4337_v23 = vsub.bf16 %v10746_v34, %v14735_v45  ;;  %v10463_v58 = vld [vmem:[#allocation4 + $0x384] ss:$8 sps:$4 sm:$0xff]   ;;  %v10472_v63 = vld [vmem:[#allocation4 + $0x3b4] ss:$8 sps:$4 sm:$0xff]  }
 0x5a1   : > { %9735 = vmatprep.subr.bf16.mxu0 %v4373_v16  ;;  %v10750_v57 = vpop.eup %10749  ;;  %v4363_v44 = vsel %vm4267_vm8, %v13294_v33, %v4347_v39  ;;  %v4346_v18 = vmul.bf16 1071005654, %v4330_v37  ;;  %v4329_v2 = vsub.bf16 %v10748_v3, %v14735_v45  ;;  %v10464_v16 = vld [vmem:[#allocation4 + $0x390] ss:$8 sps:$4 sm:$0xff]   ;;  %v10475_v32 = vld [vmem:[#allocation4 + $0x3c4] ss:$8 sps:$4 sm:$0xff]  }
 0x5a2   : > { %v10752_v51 = vpop.eup %10751  ;;  %v4370_v62 = vsel %vm4274_vm9, %v13296_v17, %v4354_v4  ;;  %v4353_v5 = vmul.bf16 1071005654, %v4337_v23  ;;  %v4336_v53 = vsub.bf16 %v10750_v57, %v14735_v45  ;;  %v10473_v6 = vld [vmem:[#allocation4 + $0x3c0] ss:$8 sps:$4 sm:$0xff]   ;;  %v10478_v19 = vld [vmem:[#allocation4 + $0x3d4] ss:$8 sps:$4 sm:$0xff]  }
 0x5a3   : > { %v10754_v24 = vpop.eup %10753  ;;  %v4362_v25 = vsel %vm4266_vm10, %v13310_v50, %v4346_v18  ;;  %v4345_v33 = vmul.bf16 1071005654, %v4329_v2  ;;  %v4328_v12 = vsub.bf16 %v10752_v51, %v14735_v45  ;;  %v10481_v38 = vld [vmem:[#allocation4 + $0x3e4] ss:$8 sps:$4 sm:$0xff]   ;;  %v10479_v48 = vld [vmem:[#allocation4 + $0x3e0] ss:$8 sps:$4 sm:$0xff]  }
 0x5a4   : > { %9736 = vmatpush3.bf16.msra.mxu0 %v4365_v43  ;;  %v10756_v41 = vpop.eup %10755  ;;  %v4369_v7 = vsel %vm4273_vm11, %v13313_v46, %v4353_v5  ;;  %v4352_v21 = vmul.bf16 1071005654, %v4336_v53  ;;  %v4335_v17 = vsub.bf16 %v10754_v24, %v14735_v45  ;;  %v10470_v43 = vld [vmem:[#allocation4 + $0x3b0] ss:$8 sps:$4 sm:$0xff]   ;;  %v10484_v34 = vld [vmem:[#allocation4 + $0x3f4] ss:$8 sps:$4 sm:$0xff]  }
 0x5a5   : > { %9737 = vmatprep.subr.bf16.mxu0 %v4372_v10  ;;  %v4361_v11 = vsel %vm4265_vm12, %v13331_v56, %v4345_v33  ;;  %v4344_v50 = vmul.bf16 1071005654, %v4328_v12  ;;  %v4327_v1 = vsub.bf16 %v10756_v41, %v14735_v45  ;;  %v10476_v10 = vld [vmem:[#allocation4 + $0x3d0] ss:$8 sps:$4 sm:$0xff]  }
 0x5a6   : > { %v4368_v42 = vsel %vm4272_vm13, %v13337_v26, %v4352_v21  ;;  %v4351_v0 = vmul.bf16 1071005654, %v4335_v17  ;;  %v10442_v26 = vld [vmem:[#allocation4 + $0x314] ss:$8 sps:$4 sm:$0xff]  }
 0x5a7   : > { %v4360_v46 = vsel %vm4264_vm14, %v13343_v60, %v4344_v50  ;;  %v4343_v35 = vmul.bf16 1071005654, %v4327_v1  ;;  %v10443_v60 = vld [vmem:[#allocation4 + $0x320] ss:$8 sps:$4 sm:$0xff]  }
 0x5a8   : > { %9738 = vmatpush3.bf16.msra.mxu0 %v4364_v49  ;;  %v4367_v56 = vsel %vm4271_vm15, %v13349_v8, %v4351_v0  ;;  %v10451_v8 = vld [vmem:[#allocation4 + $0x344] ss:$8 sps:$4 sm:$0xff]   ;;  %v10482_v49 = vld [vmem:[#allocation4 + $0x3f0] ss:$8 sps:$4 sm:$0xff]  }
 0x5a9   : > { %9739 = vmatprep.subr.bf16.mxu0 %v4371_v36  ;;  %v4359_v55 = vsel %vm4263_vm0, %v13357_v40, %v4343_v35  ;;  %v10452_v40 = vld [vmem:[#allocation4 + $0x350] ss:$8 sps:$4 sm:$0xff]   ;;  %v14826_v35 = vld [vmem:[#allocation115_spill] sm:$0xff] }
 0x5ac   : > { %9740 = vmatpush3.bf16.msra.mxu0 %v4363_v44 }
 0x5ad   : > { %9741 = vmatprep.subr.bf16.mxu0 %v4370_v62 }
 0x5b0   : > { %9742 = vmatpush3.bf16.msra.mxu0 %v4362_v25 }
 0x5b1   : > { %9743 = vmatprep.subr.bf16.mxu0 %v4369_v7 }
 0x5b4   : > { %9744 = vmatpush3.bf16.msra.mxu0 %v4361_v11 }
 0x5b5   : > { %9745 = vmatprep.subr.bf16.mxu0 %v4368_v42 }
 0x5b8   : > { %9746 = vmatpush3.bf16.msra.mxu0 %v4360_v46 }
 0x5b9   : > { %9747 = vmatprep.subr.bf16.mxu0 %v4367_v56 }
 0x5bc   : > { %9748 = vmatpush3.bf16.msra.mxu0 %v4359_v55 }
 0x5bf   : > { %4601 = vmatmul.mubr.bf16.vlgmr.msra.gmra.mxu0 %v10437_v27 }
 0x5c0   : > { %4608 = vmatprep.mubr.bf16.mxu0 %v10442_v26 }
 0x5c7   : > { %4609 = vmatmul.mubr.bf16.gmra.mxu0 %v10440_v29 }
 0x5c8   : > { %4616 = vmatprep.mubr.bf16.mxu0 %v10445_v14 }
 0x5cf   : > { %4617 = vmatmul.mubr.bf16.gmra.mxu0 %v10443_v60  ;;  %v14827_v60 = vld [vmem:[#allocation114_spill] sm:$0xff] }
 0x5d0   : > { %4624 = vmatprep.mubr.bf16.mxu0 %v10448_v59 }
 0x5d7   : > { %4625 = vmatmul.mubr.bf16.gmra.mxu0 %v10446_v61 }
 0x5d8   : > { %4632 = vmatprep.mubr.bf16.mxu0 %v10451_v8 }
 0x5df   : > { %4633 = vmatmul.mubr.bf16.gmra.mxu0 %v10449_v52 }
 0x5e0   : > { %4640 = vmatprep.mubr.bf16.mxu0 %v10454_v30 }
 0x5e7   : > { %4641 = vmatmul.mubr.bf16.gmra.mxu0 %v10452_v40 }
 0x5e8   : > { %4648 = vmatprep.mubr.bf16.mxu0 %v10457_v15 }
 0x5ef   : > { %4649 = vmatmul.mubr.bf16.gmra.mxu0 %v10455_v31 }
 0x5f0   : > { %4656 = vmatprep.mubr.bf16.mxu0 %v10460_v28 }
 0x5f7   : > { %4657 = vmatmul.mubr.bf16.gmra.mxu0 %v10458_v20 }
 0x5f8   : > { %4664 = vmatprep.mubr.bf16.mxu0 %v10463_v58 }
 0x5ff   : > { %4665 = vmatmul.mubr.bf16.gmra.mxu0 %v10461_v22 }
 0x600   : > { %4672 = vmatprep.mubr.bf16.mxu0 %v10466_v54 }
 0x607   : > { %4673 = vmatmul.mubr.bf16.gmra.mxu0 %v10464_v16  ;;  %v10487_v16 = vld [vmem:[#allocation4 + $0x404] ss:$8 sps:$4 sm:$0xff]  }
 0x608   : > { %4680 = vmatprep.mubr.bf16.mxu0 %v10469_v9  ;;  %5611 = vmatprep.mubr.bf16.mxu1 %v10487_v16  ;;  %v14819_v16 = vld [vmem:[#allocation106_spill] sm:$0xff] }
 0x60f   : > { %4681 = vmatmul.mubr.bf16.gmra.mxu0 %v10467_v13 }
 0x610   : > { %4688 = vmatprep.mubr.bf16.mxu0 %v10472_v63 }
 0x617   : > { %4689 = vmatmul.mubr.bf16.gmra.mxu0 %v10470_v43 }
 0x618   : > { %4696 = vmatprep.mubr.bf16.mxu0 %v10475_v32 }
 0x61f   : > { %4697 = vmatmul.mubr.bf16.gmra.mxu0 %v10473_v6 }
 0x620   : > { %4704 = vmatprep.mubr.bf16.mxu0 %v10478_v19 }
 0x627   : > { %4705 = vmatmul.mubr.bf16.gmra.mxu0 %v10476_v10 }
 0x628   : > { %4712 = vmatprep.mubr.bf16.mxu0 %v10481_v38 }
 0x62f   : > { %4713 = vmatmul.mubr.bf16.gmra.mxu0 %v10479_v48 }
 0x630   : > { %4720 = vmatprep.mubr.bf16.mxu0 %v10484_v34 }
 0x637   : > { %4721 = vmatmul.mubr.bf16.gmra.mxu0 %v10482_v49 }
 0x67f   : > { %v9749_v39 = vpop.f32.mrf.mxu0 }
 0x681   : > { %v9750_v37 = vpop.f32.mrf.mxu0 }
 0x682   : > { %v13408_v3 = vadd.f32 %v9750_v37, %v9749_v39 }
 0x683   : > { %v9752_v36 = vpop.f32.mrf.mxu0 }
 0x685   : > { %v9753_v4 = vpop.f32.mrf.mxu0 }
 0x686   : > { %v13410_v23 = vadd.f32 %v9753_v4, %v9752_v36 }
 0x687   : > { %v9755_v57 = vpop.f32.mrf.mxu0 }
 0x689   : > { %v9756_v18 = vpop.f32.mrf.mxu0 }
 0x68a   : > { %v13414_v2 = vadd.f32 %v9756_v18, %v9755_v57 }
 0x68b   : > { %v9758_v51 = vpop.f32.mrf.mxu0 }
 0x68d   : > { %v9759_v62 = vpop.f32.mrf.mxu0 }
 0x68e   : > { %v13416_v5 = vadd.f32 %v9759_v62, %v9758_v51 }
 0x68f   : > { %v9761_v53 = vpop.f32.mrf.mxu0 }
 0x691   : > { %v9762_v25 = vpop.f32.mrf.mxu0 }
 0x692   : > { %v13420_v33 = vadd.f32 %v9762_v25, %v9761_v53 }
 0x693   : > { %v9764_v12 = vpop.f32.mrf.mxu0 }
 0x695   : > { %v9765_v41 = vpop.f32.mrf.mxu0 }
 0x696   : > { %v13422_v7 = vadd.f32 %v9765_v41, %v9764_v12 }
 0x697   : > { %v9767_v21 = vpop.f32.mrf.mxu0 }
 0x699   : > { %v9768_v11 = vpop.f32.mrf.mxu0 }
 0x69a   : > { %v13426_v50 = vadd.f32 %v9768_v11, %v9767_v21 }
 0x69b   : > { %v9770_v1 = vpop.f32.mrf.mxu0 }
 0x69d   : > { %v9771_v42 = vpop.f32.mrf.mxu0 }
 0x69e   : > { %v13428_v0 = vadd.f32 %v9771_v42, %v9770_v1 }
 0x69f   : > { %v9773_v46 = vpop.f32.mrf.mxu0 }
 0x6a1   : > { %v9774_v56 = vpop.f32.mrf.mxu0 }
 0x6a2   : > { %v13432_v55 = vadd.f32 %v9774_v56, %v9773_v46 }
 0x6a3   : > { %v9776_v27 = vpop.f32.mrf.mxu0 }
 0x6a5   : > { %v9777_v26 = vpop.f32.mrf.mxu0 }
 0x6a6   : > { %v13434_v29 = vadd.f32 %v9777_v26, %v9776_v27 }
 0x6a7   : > { %v9779_v14 = vpop.f32.mrf.mxu0 }
 0x6a9   : > { %v9780_v59 = vpop.f32.mrf.mxu0 }
 0x6aa   : > { %v13438_v61 = vadd.f32 %v9780_v59, %v9779_v14 }
 0x6ab   : > { %v9782_v8 = vpop.f32.mrf.mxu0 }
 0x6ad   : > { %v9783_v52 = vpop.f32.mrf.mxu0 }
 0x6ae   : > { %v13440_v30 = vadd.f32 %v9783_v52, %v9782_v8 }
 0x6af   : > { %v9785_v40 = vpop.f32.mrf.mxu0 }
 0x6b1   : > { %v9786_v31 = vpop.f32.mrf.mxu0 }
 0x6b2   : > { %v13444_v28 = vadd.f32 %v9786_v31, %v9785_v40 }
 0x6b3   : > { %v9788_v20 = vpop.f32.mrf.mxu0 }
 0x6b5   : > { %v9789_v58 = vpop.f32.mrf.mxu0 }
 0x6b6   : > { %v13446_v22 = vadd.f32 %v9789_v58, %v9788_v20  ;;  %v14818_v58 = vld [vmem:[#allocation107_spill] sm:$0xff] }
 0x6b7   : > { %v9791_v54 = vpop.f32.mrf.mxu0 }
 0x6b9   : > { %v9792_v13 = vpop.f32.mrf.mxu0 }
 0x6ba   : > { %v9793_v63 = vadd.f32 %v9792_v13, %v9791_v54  ;;  %v4969_v54 = vrot.slane %v14818_v58, %v11668_v47  ;;  %v4957_v13 = vrot.slane %v14819_v16, %v11668_v47  ;;  %v14825_v16 = vld [vmem:[#allocation112_spill] sm:$0xff] }
 0x6bb   : > { %v9794_v43 = vpop.f32.mrf.mxu0  ;;  %v5101_v44 = vrot.slane %v14825_v16, %v11668_v47 }
 0x6bd   : > { %v9795_v32 = vpop.f32.mrf.mxu0 }
 0x6be   : > { %v9796_v6 = vadd.f32 %v9795_v32, %v9794_v43  ;;  %v14820_v43 = vld [vmem:[#allocation109_spill] sm:$0xff] }
 0x6bf   : > { %v9797_v19 = vpop.f32.mrf.mxu0  ;;  %v5137_v32 = vrot.slane %v14820_v43, %v11668_v47  ;;  %v9128_v43 = vcombine.low %v4957_v13, %v4969_v54 }
 0x6c0   : > { %v4736_v10 = vpack.c.bf16 %v9796_v6, %v9793_v63  ;;  %v14821_v6 = vld [vmem:[#allocation108_spill] sm:$0xff] }
 0x6c1   : > { %v9798_v38 = vpop.f32.mrf.mxu0 }
 0x6c2   : > { %v13450_v48 = vadd.f32 %v9798_v38, %v9797_v19  ;;  %v5125_v19 = vrot.slane %v14821_v6, %v11668_v47  ;;  %v14822_v38 = vld [vmem:[#allocation111_spill] sm:$0xff]  ;;  %v13498_v16 = vadd.bf16 %v9128_v43, %v4736_v10 }
 0x6c3   : > { %v9800_v34 = vpop.f32.mrf.mxu0 }
 0x6c4   : > { %v9135_v6 = vcombine.low %v5125_v19, %v5137_v32  ;;  %v14833_v19 = vld [vmem:[#allocation118_spill] sm:$0xff]  ;;  %v5312_v43 = vmul.bf16 1069105081, %v13498_v16  ;;  %vm5281_vm2 = vcmp.gt.bf16.partialorder %v13498_v16, 0 }
 0x6c5   : > { %v9801_v49 = vpop.f32.mrf.mxu0  ;;  %v4885_v10 = vrot.slane %v14833_v19, %v11668_v47  ;;  %v14842_v19 = vpack.c.bf16 %v13434_v29, %v13432_v55  ;;  %v14846_v29 = vld [vmem:[#allocation128_spill] sm:$0xff] }
 0x6c6   : > { %v13452_v39 = vadd.f32 %v9801_v49, %v9800_v34  ;;  %v4945_v34 = vrot.slane %v14822_v38, %v11668_v47  ;;  %v14823_v49 = vld [vmem:[#allocation110_spill] sm:$0xff]  ;;  %v4921_v38 = vrot.slane %v14826_v35, %v11668_v47  ;;  %v14830_v35 = vld [vmem:[#allocation117_spill] sm:$0xff]  ;;  %10757 = vpow.bf16 %v5312_v43 }
 0x6c7   : > { %v9803_v37 = vpop.f32.mrf.mxu0  ;;  %v5005_v43 = vrot.slane %v14846_v29, %v11668_v47 }
 0x6c9   : > { %v9804_v4 = vpop.f32.mrf.mxu0 }
 0x6ca   : > { %v13456_v57 = vadd.f32 %v9804_v4, %v9803_v37  ;;  %v4933_v37 = vrot.slane %v14823_v49, %v11668_v47  ;;  %v4909_v49 = vrot.slane %v14827_v60, %v11668_v47 }
 0x6cb   : > { %v9806_v18 = vpop.f32.mrf.mxu0 }
 0x6cd   : > { %v9807_v51 = vpop.f32.mrf.mxu0 }
 0x6ce   : > { %v13458_v62 = vadd.f32 %v9807_v51, %v9806_v18  ;;  %v14824_v51 = vld [vmem:[#allocation113_spill] sm:$0xff] }
 0x6cf   : > { %v13460_v53 = vpop.f32.mrf.mxu0  ;;  %v5113_v58 = vrot.slane %v14824_v51, %v11668_v47  ;;  %v14829_v51 = vld [vmem:[#allocation104_spill] sm:$0xff] }
 0x6d0   : > { %v5149_v9 = vrot.slane %v14829_v51, %v11668_v47 }
 0x6d1   : > { %v13464_v12 = vpop.f32.mrf.mxu0 }
 0x6d3   : > { %v13466_v41 = vpop.f32.mrf.mxu0 }
 0x6d5   : > { %v13468_v21 = vpop.f32.mrf.mxu0 }
 0x6d7   : > { %v13470_v11 = vpop.f32.mrf.mxu0 }
 0x6d9   : > { %v13472_v1 = vpop.f32.mrf.mxu0 }
 0x6db   : > { %v9818_v42 = vpop.f32.mrf.mxu0 }
 0x6dd   : > { %v9819_v46 = vpop.f32.mrf.mxu0 }
 0x6df   : > { %v9821_v56 = vpop.f32.mrf.mxu0 }
 0x6e1   : > { %v9822_v27 = vpop.f32.mrf.mxu0 }
 0x6e3   : > { %v9824_v26 = vpop.f32.mrf.mxu0 }
 0x6e5   : > { %v9825_v14 = vpop.f32.mrf.mxu0 }
 0x6e6   : > { %v9826_v54 = vadd.f32 %v9825_v14, %v9824_v26  ;;  %v14835_v26 = vpack.c.bf16 %v13446_v22, %v13444_v28  ;;  %v14837_v22 = vpack.c.bf16 %v13440_v30, %v13438_v61  ;;  %v14838_v30 = vld [vmem:[#allocation123_spill] sm:$0xff] }
 0x6e7   : > { %v9827_v59 = vpop.f32.mrf.mxu0 }
 0x6e9   : > { %v9828_v8 = vpop.f32.mrf.mxu0 }
 0x6ea   : > { %v9829_v25 = vadd.f32 %v9828_v8, %v9827_v59  ;;  %v9127_v59 = vcombine.low %v4933_v37, %v4945_v34  ;;  %v9134_v8 = vcombine.low %v5101_v44, %v5113_v58  ;;  %v14834_v34 = vld [vmem:[#allocation121_spill] sm:$0xff]  ;;  %v9823_v37 = vadd.f32 %v9822_v27, %v9821_v56 }
 0x6eb   : > { %v9830_v52 = vpop.f32.mrf.mxu0  ;;  %v5065_v44 = vrot.slane %v14834_v34, %v11668_v47 }
 0x6ec   : > { %v13515_v14 = vadd.bf16 %v9127_v59, %v14835_v26  ;;  %v4741_v51 = vpack.c.bf16 %v9826_v54, %v9823_v37  ;;  %v4873_v59 = vrot.slane %v14838_v30, %v11668_v47  ;;  %v14843_v26 = vld [vmem:[#allocation127_spill] sm:$0xff]  ;;  %v14854_v30 = vpack.c.bf16 %v13422_v7, %v13420_v33 }
 0x6ed   : > { %v9831_v40 = vpop.f32.mrf.mxu0  ;;  %v4849_v37 = vrot.slane %v14843_v26, %v11668_v47  ;;  %v14856_v33 = vpack.c.bf16 %v13416_v5, %v13414_v2  ;;  %v14858_v5 = vpack.c.bf16 %v13410_v23, %v13408_v3 }
 0x6ee   : > { %v9832_v4 = vadd.f32 %v9831_v40, %v9830_v52  ;;  %v14828_v40 = vld [vmem:[#allocation105_spill] sm:$0xff]  ;;  %v5309_v27 = vmul.bf16 1069105081, %v13515_v14  ;;  %vm5280_vm4 = vcmp.gt.bf16.partialorder %v13515_v14, 0 }
 0x6ef   : > { %v9833_v31 = vpop.f32.mrf.mxu0  ;;  %v5161_v15 = vrot.slane %v14828_v40, %v11668_v47 }
 0x6f1   : > { %v9834_v20 = vpop.f32.mrf.mxu0 }
 0x6f2   : > { %v9835_v36 = vadd.f32 %v9834_v20, %v9833_v31  ;;  %v4742_v31 = vpack.c.bf16 %v9832_v4, %v9829_v25  ;;  %v9126_v25 = vcombine.low %v4909_v49, %v4921_v38  ;;  %v14836_v4 = vld [vmem:[#allocation120_spill] sm:$0xff] }
 0x6f3   : > { %v9836_v63 = vpop.f32.mrf.mxu0  ;;  %v5053_v58 = vrot.slane %v14836_v4, %v11668_v47 }
 0x6f4   : > { %v13526_v56 = vadd.bf16 %v9126_v25, %v14837_v22 }
 0x6f5   : > { %v9837_v18 = vpop.f32.mrf.mxu0 }
 0x6f6   : > { %v9838_v24 = vadd.f32 %v9837_v18, %v9836_v63  ;;  %v5089_v63 = vrot.slane %v14830_v35, %v11668_v47  ;;  %vm5279_vm6 = vcmp.gt.bf16.partialorder %v13526_v56, 0 }
 0x6f7   : > { %v9839_v17 = vpop.f32.mrf.mxu0 }
 0x6f8   : > { %v4743_v52 = vpack.c.bf16 %v9838_v24, %v9835_v36  ;;  %v14831_v24 = vld [vmem:[#allocation116_spill] sm:$0xff]  ;;  %v14832_v36 = vld [vmem:[#allocation119_spill] sm:$0xff] }
 0x6f9   : > { %v9840_v20 = vpop.f32.mrf.mxu0  ;;  %v5077_v60 = vrot.slane %v14831_v24, %v11668_v47  ;;  %v4897_v32 = vrot.slane %v14832_v36, %v11668_v47  ;;  %v9136_v24 = vcombine.low %v5149_v9, %v5161_v15 }
 0x6fa   : > { %v13500_v13 = vadd.bf16 %v9135_v6, %v4743_v52  ;;  %v9820_v6 = vadd.f32 %v9819_v46, %v9818_v42  ;;  %v13520_v52 = vadd.bf16 %v9134_v8, %v4742_v31  ;;  %v9841_v49 = vadd.f32 %v9840_v20, %v9839_v17  ;;  %v14839_v8 = vld [vmem:[#allocation122_spill] sm:$0xff] }
 0x6fb   : > { %v9842_v18 = vpop.f32.mrf.mxu0  ;;  %v9133_v36 = vcombine.low %v5077_v60, %v5089_v63  ;;  %v9125_v28 = vcombine.low %v4885_v10, %v4897_v32  ;;  %v9817_v42 = vadd.f32 %v13472_v1, %v13470_v11  ;;  %v9132_v31 = vcombine.low %v5053_v58, %v5065_v44  ;;  %v14840_v1 = vld [vmem:[#allocation125_spill] sm:$0xff]  ;;  %v14841_v63 = vld [vmem:[#allocation124_spill] sm:$0xff] }
 0x6fc   : > { %v5333_v38 = vmul.bf16 1069105081, %v13500_v13  ;;  %v9814_v17 = vadd.f32 %v13468_v21, %v13466_v41  ;;  %v5330_v15 = vmul.bf16 1069105081, %v13520_v52  ;;  %v4861_v11 = vrot.slane %v14839_v8, %v11668_v47  ;;  %v14845_v58 = vld [vmem:[#allocation129_spill] sm:$0xff] }
 0x6fd   : > { %v9843_v40 = vpop.f32.mrf.mxu0  ;;  %v4740_v9 = vpack.c.bf16 %v9820_v6, %v9817_v42  ;;  %v13534_v20 = vadd.bf16 %v9133_v36, %v4741_v51  ;;  %v5041_v54 = vrot.slane %v14840_v1, %v11668_v47  ;;  %v5029_v41 = vrot.slane %v14841_v63, %v11668_v47  ;;  %v14850_v42 = vld [vmem:[#allocation133_spill] sm:$0xff]  ;;  %v10758_v63 = vpop.eup %10757 }
 0x6fe   : > { %v9844_v35 = vadd.f32 %v9843_v40, %v9842_v18  ;;  %10759 = vpow.bf16 %v5333_v38  ;;  %v5306_v21 = vmul.bf16 1069105081, %v13526_v56  ;;  %v9811_v60 = vadd.f32 %v13464_v12, %v13460_v53  ;;  %v14844_v53 = vld [vmem:[#allocation126_spill] sm:$0xff] }
 0x6ff   : > { %10761 = vpow.bf16 %v5309_v27  ;;  %v13553_v10 = vadd.bf16 %v9125_v28, %v14842_v19  ;;  %v13555_v25 = vadd.bf16 %v9132_v31, %v4740_v9  ;;  %v5327_v34 = vmul.bf16 1069105081, %v13534_v20  ;;  %v14849_v28 = vld [vmem:[#allocation130_spill] sm:$0xff]  ;;  %v14852_v31 = vld [vmem:[#allocation135_spill] sm:$0xff] }
 0x700   : > { %v4744_v46 = vpack.c.bf16 %v9844_v35, %v9841_v49  ;;  %10763 = vpow.bf16 %v5330_v15  ;;  %v4739_v18 = vpack.c.bf16 %v9814_v17, %v9811_v60  ;;  %v9124_v44 = vcombine.low %v4861_v11, %v4873_v59  ;;  %v14853_v15 = vld [vmem:[#allocation134_spill] sm:$0xff] }
 0x701   : > { %v4837_v12 = vrot.slane %v14844_v53, %v11668_v47  ;;  %v9131_v4 = vcombine.low %v5029_v41, %v5041_v54  ;;  %v5017_v55 = vrot.slane %v14845_v58, %v11668_v47  ;;  %v14847_v6 = vpack.c.bf16 %v13428_v0, %v13426_v50  ;;  %v14851_v0 = vld [vmem:[#allocation132_spill] sm:$0xff] }
 0x702   : > { %v13536_v61 = vadd.bf16 %v9136_v24, %v4744_v46  ;;  %v5303_v51 = vmul.bf16 1069105081, %v13553_v10  ;;  %v5324_v49 = vmul.bf16 1069105081, %v13555_v25  ;;  %v14848_v24 = vld [vmem:[#allocation131_spill] sm:$0xff]  ;;  %v4813_v22 = vrot.slane %v14849_v28, %v11668_v47 }
 0x703   : > { %v13569_v40 = vadd.bf16 %v9124_v44, %v14847_v6  ;;  %v13572_v38 = vadd.bf16 %v9131_v4, %v4739_v18  ;;  %v9123_v35 = vcombine.low %v4837_v12, %v4849_v37  ;;  %v4825_v36 = vrot.slane %v14848_v24, %v11668_v47 }
 0x704   : > { %v5336_v32 = vmul.bf16 1069105081, %v13536_v61  ;;  %v9130_v27 = vcombine.low %v5005_v43, %v5017_v55  ;;  %v4993_v50 = vrot.slane %v14850_v42, %v11668_v47  ;;  %v4981_v46 = vrot.slane %v14851_v0, %v11668_v47 }
 0x705   : > { %v4801_v17 = vrot.slane %v14852_v31, %v11668_v47  ;;  %v4789_v9 = vrot.slane %v14853_v15, %v11668_v47  ;;  %v13590_v59 = vadd.bf16 %v9123_v35, %v14854_v30  ;;  %v5300_v8 = vmul.bf16 1069105081, %v13569_v40 }
 0x706   : > { %10765 = vpow.bf16 %v5336_v32  ;;  %v14855_v11 = vpack.c.bf16 %v13458_v62, %v13456_v57  ;;  %v5321_v54 = vmul.bf16 1069105081, %v13572_v38  ;;  %v9122_v41 = vcombine.low %v4813_v22, %v4825_v36 }
 0x707   : > { %10767 = vpow.bf16 %v5306_v21  ;;  %v9129_v60 = vcombine.low %v4981_v46, %v4993_v50  ;;  %v9121_v32 = vcombine.low %v4789_v9, %v4801_v17  ;;  %v5297_v19 = vmul.bf16 1069105081, %v13590_v59 }
 0x708   : > { %10769 = vpow.bf16 %v5327_v34  ;;  %v13596_v1 = vadd.bf16 %v9130_v27, %v14855_v11  ;;  %v13602_v7 = vadd.bf16 %v9122_v41, %v14856_v33  ;;  %v14857_v57 = vpack.c.bf16 %v13452_v39, %v13450_v48 }
 0x709   : > { %10771 = vpow.bf16 %v5303_v51  ;;  %v5345_v44 = vsub.bf16 %v10758_v63, %v14735_v45  ;;  %v13616_v53 = vadd.bf16 %v9121_v32, %v14858_v5  ;;  %vm5289_vm1 = vcmp.gt.bf16.partialorder %v13536_v61, 0 }
 0x70a   : > { %10773 = vpow.bf16 %v5324_v49  ;;  %v13608_v62 = vadd.bf16 %v9129_v60, %v14857_v57  ;;  %v5318_v34 = vmul.bf16 1069105081, %v13596_v1  ;;  %v5294_v12 = vmul.bf16 1069105081, %v13602_v7 }
 0x70b   : > { %10775 = vpow.bf16 %v5300_v8  ;;  %v5361_v58 = vmul.bf16 1071005654, %v5345_v44  ;;  %v5291_v3 = vmul.bf16 1069105081, %v13616_v53  ;;  %vm5288_vm3 = vcmp.gt.bf16.partialorder %v13500_v13, 0 }
 0x70c   : > { %v10760_v21 = vpop.eup %10759  ;;  %10777 = vpow.bf16 %v5321_v54  ;;  %v5315_v4 = vmul.bf16 1069105081, %v13608_v62  ;;  %vm5287_vm5 = vcmp.gt.bf16.partialorder %v13520_v52, 0  ;;  %vm5286_vm7 = vcmp.gt.bf16.partialorder %v13534_v20, 0 }
 0x70d   : > { %v10762_v18 = vpop.eup %10761  ;;  %v5352_v37 = vsub.bf16 %v10760_v21, %v14735_v45  ;;  %10779 = vpow.bf16 %v5297_v19  ;;  %v5377_v35 = vsel %vm5281_vm2, %v13498_v16, %v5361_v58  ;;  %vm5278_vm8 = vcmp.gt.bf16.partialorder %v13553_v10, 0  ;;  %v10493_v58 = vld [vmem:[#allocation4 + $0x424] ss:$8 sps:$4 sm:$0xff]  }
 0x70e   : > { %v10764_v26 = vpop.eup %10763  ;;  %10781 = vpow.bf16 %v5318_v34  ;;  %v5344_v55 = vsub.bf16 %v10762_v18, %v14735_v45  ;;  %vm5285_vm9 = vcmp.gt.bf16.partialorder %v13555_v25, 0  ;;  %vm5277_vm10 = vcmp.gt.bf16.partialorder %v13569_v40, 0 }
 0x70f   : > { %v5368_v43 = vmul.bf16 1071005654, %v5352_v37  ;;  %v5351_v6 = vsub.bf16 %v10764_v26, %v14735_v45  ;;  %10783 = vpow.bf16 %v5294_v12  ;;  %vm5284_vm11 = vcmp.gt.bf16.partialorder %v13572_v38, 0 }
 0x710   : > { %10785 = vpow.bf16 %v5315_v4  ;;  %v5360_v24 = vmul.bf16 1071005654, %v5344_v55  ;;  %vm5276_vm12 = vcmp.gt.bf16.partialorder %v13590_v59, 0  ;;  %vm5283_vm13 = vcmp.gt.bf16.partialorder %v13596_v1, 0  ;;  %v10488_v4 = vld [vmem:[#allocation4 + $0x410] ss:$8 sps:$4 sm:$0xff]  }
 0x711   : > { %v5384_v28 = vsel %vm5288_vm3, %v13500_v13, %v5368_v43  ;;  %v5367_v22 = vmul.bf16 1071005654, %v5351_v6  ;;  %10787 = vpow.bf16 %v5291_v3  ;;  %vm5275_vm14 = vcmp.gt.bf16.partialorder %v13602_v7, 0  ;;  %v10496_v55 = vld [vmem:[#allocation4 + $0x434] ss:$8 sps:$4 sm:$0xff]  }
 0x712   : > { %vm5282_vm15 = vcmp.gt.bf16.partialorder %v13608_v62, 0  ;;  %vm5274_vm0 = vcmp.gt.bf16.partialorder %v13616_v53, 0  ;;  %v10497_v43 = vld [vmem:[#allocation4 + $0x440] ss:$8 sps:$4 sm:$0xff]   ;;  %v10502_v6 = vld [vmem:[#allocation4 + $0x454] ss:$8 sps:$4 sm:$0xff]  }
 0x713   : > { %v5383_v46 = vsel %vm5287_vm5, %v13520_v52, %v5367_v22  ;;  %v10503_v3 = vld [vmem:[#allocation4 + $0x460] ss:$8 sps:$4 sm:$0xff]   ;;  %v10517_v22 = vld [vmem:[#allocation4 + $0x4a4] ss:$8 sps:$4 sm:$0xff]  }
 0x714   : > { %v10766_v2 = vpop.eup %10765 }
 0x715   : > { %v5353_v48 = vsub.bf16 %v10766_v2, %v14735_v45  ;;  %v10768_v39 = vpop.eup %10767 }
 0x716   : > { %v10770_v51 = vpop.eup %10769  ;;  %v5343_v49 = vsub.bf16 %v10768_v39, %v14735_v45  ;;  %v10485_v39 = vld [vmem:[#allocation4 + $0x400] ss:$8 sps:$4 sm:$0xff]  }
 0x717   : > { %v5369_v29 = vmul.bf16 1071005654, %v5353_v48  ;;  %v10772_v36 = vpop.eup %10771  ;;  %v5350_v27 = vsub.bf16 %v10770_v51, %v14735_v45  ;;  %v10505_v51 = vld [vmem:[#allocation4 + $0x464] ss:$8 sps:$4 sm:$0xff]  }
 0x718   : > { %v10774_v42 = vpop.eup %10773  ;;  %v5359_v16 = vmul.bf16 1071005654, %v5343_v49  ;;  %v5342_v50 = vsub.bf16 %v10772_v36, %v14735_v45  ;;  %v10506_v49 = vld [vmem:[#allocation4 + $0x470] ss:$8 sps:$4 sm:$0xff]   ;;  %v10514_v36 = vld [vmem:[#allocation4 + $0x494] ss:$8 sps:$4 sm:$0xff]  }
 0x719   : > { %v5385_v23 = vsel %vm5289_vm1, %v13536_v61, %v5369_v29  ;;  %v5376_v61 = vsel %vm5280_vm4, %v13515_v14, %v5360_v24  ;;  %v10776_v0 = vpop.eup %10775  ;;  %v5366_v13 = vmul.bf16 1071005654, %v5350_v27  ;;  %v5349_v31 = vsub.bf16 %v10774_v42, %v14735_v45  ;;  %v10494_v29 = vld [vmem:[#allocation4 + $0x430] ss:$8 sps:$4 sm:$0xff]   ;;  %v10509_v24 = vld [vmem:[#allocation4 + $0x480] ss:$8 sps:$4 sm:$0xff]  }
 0x71a   : > { %9845 = vmatprep.subr.bf16.mxu1 %v5385_v23  ;;  %v10778_v17 = vpop.eup %10777  ;;  %v5375_v15 = vsel %vm5279_vm6, %v13526_v56, %v5359_v16  ;;  %v5358_v14 = vmul.bf16 1071005654, %v5342_v50  ;;  %v5341_v9 = vsub.bf16 %v10776_v0, %v14735_v45  ;;  %v10508_v23 = vld [vmem:[#allocation4 + $0x474] ss:$8 sps:$4 sm:$0xff]   ;;  %v10515_v27 = vld [vmem:[#allocation4 + $0x4a0] ss:$8 sps:$4 sm:$0xff]  }
 0x71b   : > { %9846 = vmatpush3.bf16.msra.mxu1 %v5377_v35  ;;  %v10780_v30 = vpop.eup %10779  ;;  %v5382_v8 = vsel %vm5286_vm7, %v13534_v20, %v5366_v13  ;;  %v5365_v11 = vmul.bf16 1071005654, %v5349_v31  ;;  %v5348_v52 = vsub.bf16 %v10778_v17, %v14735_v45  ;;  %v10511_v35 = vld [vmem:[#allocation4 + $0x484] ss:$8 sps:$4 sm:$0xff]   ;;  %v10520_v42 = vld [vmem:[#allocation4 + $0x4b4] ss:$8 sps:$4 sm:$0xff]  }
 0x71c   : > { %9847 = vmatprep.subr.bf16.mxu1 %v5384_v28  ;;  %v10782_v54 = vpop.eup %10781  ;;  %v5374_v63 = vsel %vm5278_vm8, %v13553_v10, %v5358_v14  ;;  %v5357_v56 = vmul.bf16 1071005654, %v5341_v9  ;;  %v5340_v41 = vsub.bf16 %v10780_v30, %v14735_v45  ;;  %v10512_v28 = vld [vmem:[#allocation4 + $0x490] ss:$8 sps:$4 sm:$0xff]   ;;  %v10523_v16 = vld [vmem:[#allocation4 + $0x4c4] ss:$8 sps:$4 sm:$0xff]  }
 0x71d   : > { %v10784_v21 = vpop.eup %10783  ;;  %v5381_v60 = vsel %vm5285_vm9, %v13555_v25, %v5365_v11  ;;  %v5364_v32 = vmul.bf16 1071005654, %v5348_v52  ;;  %v5347_v20 = vsub.bf16 %v10782_v54, %v14735_v45  ;;  %v10521_v50 = vld [vmem:[#allocation4 + $0x4c0] ss:$8 sps:$4 sm:$0xff]   ;;  %v10526_v0 = vld [vmem:[#allocation4 + $0x4d4] ss:$8 sps:$4 sm:$0xff]  }
 0x71e   : > { %v10786_v33 = vpop.eup %10785  ;;  %v5373_v19 = vsel %vm5277_vm10, %v13569_v40, %v5357_v56  ;;  %v5356_v10 = vmul.bf16 1071005654, %v5340_v41  ;;  %v5339_v18 = vsub.bf16 %v10784_v21, %v14735_v45  ;;  %v10529_v13 = vld [vmem:[#allocation4 + $0x4e4] ss:$8 sps:$4 sm:$0xff]   ;;  %v10527_v31 = vld [vmem:[#allocation4 + $0x4e0] ss:$8 sps:$4 sm:$0xff]  }
 0x71f   : > { %9848 = vmatpush3.bf16.msra.mxu1 %v5376_v61  ;;  %v10788_v57 = vpop.eup %10787  ;;  %v5380_v34 = vsel %vm5284_vm11, %v13572_v38, %v5364_v32  ;;  %v5363_v44 = vmul.bf16 1071005654, %v5347_v20  ;;  %v5346_v25 = vsub.bf16 %v10786_v33, %v14735_v45  ;;  %v10518_v61 = vld [vmem:[#allocation4 + $0x4b0] ss:$8 sps:$4 sm:$0xff]   ;;  %v10532_v17 = vld [vmem:[#allocation4 + $0x4f4] ss:$8 sps:$4 sm:$0xff]  }
 0x720   : > { %9849 = vmatprep.subr.bf16.mxu1 %v5383_v46  ;;  %v5372_v26 = vsel %vm5276_vm12, %v13590_v59, %v5356_v10  ;;  %v5355_v40 = vmul.bf16 1071005654, %v5339_v18  ;;  %v5338_v37 = vsub.bf16 %v10788_v57, %v14735_v45  ;;  %v10524_v46 = vld [vmem:[#allocation4 + $0x4d0] ss:$8 sps:$4 sm:$0xff]  }
 0x721   : > { %v5379_v2 = vsel %vm5283_vm13, %v13596_v1, %v5363_v44  ;;  %v5362_v5 = vmul.bf16 1071005654, %v5346_v25  ;;  %v10490_v1 = vld [vmem:[#allocation4 + $0x414] ss:$8 sps:$4 sm:$0xff]  }
 0x722   : > { %v5371_v38 = vsel %vm5275_vm14, %v13602_v7, %v5355_v40  ;;  %v5354_v12 = vmul.bf16 1071005654, %v5338_v37  ;;  %v10491_v7 = vld [vmem:[#allocation4 + $0x420] ss:$8 sps:$4 sm:$0xff]  }
 0x723   : > { %9850 = vmatpush3.bf16.msra.mxu1 %v5375_v15  ;;  %v5378_v59 = vsel %vm5282_vm15, %v13608_v62, %v5362_v5  ;;  %v10499_v62 = vld [vmem:[#allocation4 + $0x444] ss:$8 sps:$4 sm:$0xff]   ;;  %v10530_v15 = vld [vmem:[#allocation4 + $0x4f0] ss:$8 sps:$4 sm:$0xff]  }
 0x724   : > { %9851 = vmatprep.subr.bf16.mxu1 %v5382_v8  ;;  %v5370_v48 = vsel %vm5274_vm0, %v13616_v53, %v5354_v12  ;;  %v10500_v53 = vld [vmem:[#allocation4 + $0x450] ss:$8 sps:$4 sm:$0xff]   ;;  %v14867_v12 = vld [vmem:[#allocation147_spill] sm:$0xff] }
 0x727   : > { %9852 = vmatpush3.bf16.msra.mxu1 %v5374_v63 }
 0x728   : > { %9853 = vmatprep.subr.bf16.mxu1 %v5381_v60 }
 0x72b   : > { %9854 = vmatpush3.bf16.msra.mxu1 %v5373_v19 }
 0x72c   : > { %9855 = vmatprep.subr.bf16.mxu1 %v5380_v34 }
 0x72f   : > { %9856 = vmatpush3.bf16.msra.mxu1 %v5372_v26 }
 0x730   : > { %9857 = vmatprep.subr.bf16.mxu1 %v5379_v2 }
 0x733   : > { %9858 = vmatpush3.bf16.msra.mxu1 %v5371_v38 }
 0x734   : > { %9859 = vmatprep.subr.bf16.mxu1 %v5378_v59 }
 0x737   : > { %9860 = vmatpush3.bf16.msra.mxu1 %v5370_v48 }
 0x73a   : > { %5612 = vmatmul.mubr.bf16.vlgmr.msra.gmra.mxu1 %v10485_v39 }
 0x73b   : > { %5619 = vmatprep.mubr.bf16.mxu1 %v10490_v1 }
 0x742   : > { %5620 = vmatmul.mubr.bf16.gmra.mxu1 %v10488_v4 }
 0x743   : > { %5627 = vmatprep.mubr.bf16.mxu1 %v10493_v58 }
 0x74a   : > { %5628 = vmatmul.mubr.bf16.gmra.mxu1 %v10491_v7  ;;  %v14868_v7 = vld [vmem:[#allocation146_spill] sm:$0xff] }
 0x74b   : > { %5635 = vmatprep.mubr.bf16.mxu1 %v10496_v55 }
 0x752   : > { %5636 = vmatmul.mubr.bf16.gmra.mxu1 %v10494_v29 }
 0x753   : > { %5643 = vmatprep.mubr.bf16.mxu1 %v10499_v62 }
 0x75a   : > { %5644 = vmatmul.mubr.bf16.gmra.mxu1 %v10497_v43 }
 0x75b   : > { %5651 = vmatprep.mubr.bf16.mxu1 %v10502_v6 }
 0x762   : > { %5652 = vmatmul.mubr.bf16.gmra.mxu1 %v10500_v53 }
 0x763   : > { %5659 = vmatprep.mubr.bf16.mxu1 %v10505_v51 }
 0x76a   : > { %5660 = vmatmul.mubr.bf16.gmra.mxu1 %v10503_v3 }
 0x76b   : > { %5667 = vmatprep.mubr.bf16.mxu1 %v10508_v23 }
 0x772   : > { %5668 = vmatmul.mubr.bf16.gmra.mxu1 %v10506_v49 }
 0x773   : > { %5675 = vmatprep.mubr.bf16.mxu1 %v10511_v35 }
 0x77a   : > { %5676 = vmatmul.mubr.bf16.gmra.mxu1 %v10509_v24 }
 0x77b   : > { %5683 = vmatprep.mubr.bf16.mxu1 %v10514_v36 }
 0x782   : > { %5684 = vmatmul.mubr.bf16.gmra.mxu1 %v10512_v28  ;;  %v10535_v28 = vld [vmem:[#allocation4 + $0x504] ss:$8 sps:$4 sm:$0xff]  }
 0x783   : > { %5691 = vmatprep.mubr.bf16.mxu1 %v10517_v22  ;;  %6622 = vmatprep.mubr.bf16.mxu0 %v10535_v28  ;;  %v14860_v28 = vld [vmem:[#allocation138_spill] sm:$0xff] }
 0x78a   : > { %5692 = vmatmul.mubr.bf16.gmra.mxu1 %v10515_v27 }
 0x78b   : > { %5699 = vmatprep.mubr.bf16.mxu1 %v10520_v42 }
 0x792   : > { %5700 = vmatmul.mubr.bf16.gmra.mxu1 %v10518_v61 }
 0x793   : > { %5707 = vmatprep.mubr.bf16.mxu1 %v10523_v16 }
 0x79a   : > { %5708 = vmatmul.mubr.bf16.gmra.mxu1 %v10521_v50 }
 0x79b   : > { %5715 = vmatprep.mubr.bf16.mxu1 %v10526_v0 }
 0x7a2   : > { %5716 = vmatmul.mubr.bf16.gmra.mxu1 %v10524_v46 }
 0x7a3   : > { %5723 = vmatprep.mubr.bf16.mxu1 %v10529_v13 }
 0x7aa   : > { %5724 = vmatmul.mubr.bf16.gmra.mxu1 %v10527_v31 }
 0x7ab   : > { %5731 = vmatprep.mubr.bf16.mxu1 %v10532_v17 }
 0x7b2   : > { %5732 = vmatmul.mubr.bf16.gmra.mxu1 %v10530_v15 }
 0x7fa   : > { %v9861_v14 = vpop.f32.mrf.mxu1 }
 0x7fc   : > { %v9862_v9 = vpop.f32.mrf.mxu1 }
 0x7fd   : > { %v13667_v30 = vadd.f32 %v9862_v9, %v9861_v14 }
 0x7fe   : > { %v9864_v8 = vpop.f32.mrf.mxu1 }
 0x800   : > { %v9865_v11 = vpop.f32.mrf.mxu1 }
 0x801   : > { %v13669_v52 = vadd.f32 %v9865_v11, %v9864_v8 }
 0x802   : > { %v9867_v54 = vpop.f32.mrf.mxu1 }
 0x804   : > { %v9868_v56 = vpop.f32.mrf.mxu1 }
 0x805   : > { %v13673_v41 = vadd.f32 %v9868_v56, %v9867_v54 }
 0x806   : > { %v9870_v21 = vpop.f32.mrf.mxu1 }
 0x808   : > { %v9871_v60 = vpop.f32.mrf.mxu1 }
 0x809   : > { %v13675_v32 = vadd.f32 %v9871_v60, %v9870_v21 }
 0x80a   : > { %v9873_v20 = vpop.f32.mrf.mxu1 }
 0x80c   : > { %v9874_v19 = vpop.f32.mrf.mxu1 }
 0x80d   : > { %v13679_v10 = vadd.f32 %v9874_v19, %v9873_v20 }
 0x80e   : > { %v9876_v18 = vpop.f32.mrf.mxu1 }
 0x810   : > { %v9877_v57 = vpop.f32.mrf.mxu1 }
 0x811   : > { %v13681_v34 = vadd.f32 %v9877_v57, %v9876_v18 }
 0x812   : > { %v9879_v44 = vpop.f32.mrf.mxu1 }
 0x814   : > { %v9880_v26 = vpop.f32.mrf.mxu1 }
 0x815   : > { %v13685_v40 = vadd.f32 %v9880_v26, %v9879_v44 }
 0x816   : > { %v9882_v37 = vpop.f32.mrf.mxu1 }
 0x818   : > { %v9883_v2 = vpop.f32.mrf.mxu1 }
 0x819   : > { %v13687_v5 = vadd.f32 %v9883_v2, %v9882_v37 }
 0x81a   : > { %v9885_v38 = vpop.f32.mrf.mxu1 }
 0x81c   : > { %v9886_v59 = vpop.f32.mrf.mxu1 }
 0x81d   : > { %v13691_v48 = vadd.f32 %v9886_v59, %v9885_v38 }
 0x81e   : > { %v9888_v39 = vpop.f32.mrf.mxu1 }
 0x820   : > { %v9889_v1 = vpop.f32.mrf.mxu1 }
 0x821   : > { %v13693_v4 = vadd.f32 %v9889_v1, %v9888_v39 }
 0x822   : > { %v9891_v58 = vpop.f32.mrf.mxu1 }
 0x824   : > { %v9892_v55 = vpop.f32.mrf.mxu1 }
 0x825   : > { %v13697_v29 = vadd.f32 %v9892_v55, %v9891_v58 }
 0x826   : > { %v9894_v62 = vpop.f32.mrf.mxu1 }
 0x828   : > { %v9895_v43 = vpop.f32.mrf.mxu1 }
 0x829   : > { %v13699_v6 = vadd.f32 %v9895_v43, %v9894_v62 }
 0x82a   : > { %v9897_v53 = vpop.f32.mrf.mxu1 }
 0x82c   : > { %v9898_v3 = vpop.f32.mrf.mxu1 }
 0x82d   : > { %v13703_v23 = vadd.f32 %v9898_v3, %v9897_v53 }
 0x82e   : > { %v9900_v49 = vpop.f32.mrf.mxu1 }
 0x830   : > { %v9901_v35 = vpop.f32.mrf.mxu1 }
 0x831   : > { %v13705_v24 = vadd.f32 %v9901_v35, %v9900_v49  ;;  %v14859_v35 = vld [vmem:[#allocation139_spill] sm:$0xff] }
 0x832   : > { %v9903_v36 = vpop.f32.mrf.mxu1 }
 0x834   : > { %v9904_v27 = vpop.f32.mrf.mxu1 }
 0x835   : > { %v9905_v42 = vadd.f32 %v9904_v27, %v9903_v36  ;;  %v5980_v36 = vrot.slane %v14859_v35, %v11668_v47  ;;  %v5968_v27 = vrot.slane %v14860_v28, %v11668_v47  ;;  %v14866_v28 = vld [vmem:[#allocation144_spill] sm:$0xff] }
 0x836   : > { %v9906_v61 = vpop.f32.mrf.mxu1  ;;  %v6112_v63 = vrot.slane %v14866_v28, %v11668_v47 }
 0x838   : > { %v9907_v16 = vpop.f32.mrf.mxu1 }
 0x839   : > { %v9908_v50 = vadd.f32 %v9907_v16, %v9906_v61  ;;  %v14861_v61 = vld [vmem:[#allocation141_spill] sm:$0xff] }
 0x83a   : > { %v9909_v0 = vpop.f32.mrf.mxu1  ;;  %v6148_v16 = vrot.slane %v14861_v61, %v11668_v47  ;;  %v9208_v61 = vcombine.low %v5968_v27, %v5980_v36 }
 0x83b   : > { %v5747_v46 = vpack.c.bf16 %v9908_v50, %v9905_v42  ;;  %v14862_v50 = vld [vmem:[#allocation140_spill] sm:$0xff] }
 0x83c   : > { %v9910_v13 = vpop.f32.mrf.mxu1 }
 0x83d   : > { %v13709_v31 = vadd.f32 %v9910_v13, %v9909_v0  ;;  %v6136_v0 = vrot.slane %v14862_v50, %v11668_v47  ;;  %v14863_v13 = vld [vmem:[#allocation143_spill] sm:$0xff]  ;;  %v13757_v28 = vadd.bf16 %v9208_v61, %v5747_v46 }
 0x83e   : > { %v9912_v17 = vpop.f32.mrf.mxu1 }
 0x83f   : > { %v9215_v50 = vcombine.low %v6136_v0, %v6148_v16  ;;  %v14874_v0 = vld [vmem:[#allocation152_spill] sm:$0xff]  ;;  %v6323_v61 = vmul.bf16 1069105081, %v13757_v28  ;;  %vm6292_vm2 = vcmp.gt.bf16.partialorder %v13757_v28, 0 }
 0x840   : > { %v9913_v15 = vpop.f32.mrf.mxu1  ;;  %v5896_v46 = vrot.slane %v14874_v0, %v11668_v47  ;;  %v14883_v0 = vpack.c.bf16 %v13693_v4, %v13691_v48  ;;  %v14887_v4 = vld [vmem:[#allocation175_spill] sm:$0xff] }
 0x841   : > { %v13711_v14 = vadd.f32 %v9913_v15, %v9912_v17  ;;  %v5956_v17 = vrot.slane %v14863_v13, %v11668_v47  ;;  %v14864_v15 = vld [vmem:[#allocation142_spill] sm:$0xff]  ;;  %v5932_v13 = vrot.slane %v14867_v12, %v11668_v47  ;;  %10789 = vpow.bf16 %v6323_v61 }
 0x842   : > { %v9915_v9 = vpop.f32.mrf.mxu1  ;;  %v14871_v12 = vld [vmem:[#allocation150_spill] sm:$0xff]  ;;  %v6016_v61 = vrot.slane %v14887_v4, %v11668_v47 }
 0x844   : > { %v9916_v11 = vpop.f32.mrf.mxu1 }
 0x845   : > { %v13715_v54 = vadd.f32 %v9916_v11, %v9915_v9  ;;  %v5944_v9 = vrot.slane %v14864_v15, %v11668_v47  ;;  %v5920_v15 = vrot.slane %v14868_v7, %v11668_v47 }
 0x846   : > { %v9918_v56 = vpop.f32.mrf.mxu1 }
 0x848   : > { %v9919_v21 = vpop.f32.mrf.mxu1 }
 0x849   : > { %v13717_v60 = vadd.f32 %v9919_v21, %v9918_v56  ;;  %v14865_v21 = vld [vmem:[#allocation145_spill] sm:$0xff] }
 0x84a   : > { %v13719_v20 = vpop.f32.mrf.mxu1  ;;  %v6124_v35 = vrot.slane %v14865_v21, %v11668_v47  ;;  %v14870_v21 = vld [vmem:[#allocation136_spill] sm:$0xff] }
 0x84b   : > { %v6160_v22 = vrot.slane %v14870_v21, %v11668_v47 }
 0x84c   : > { %v13723_v18 = vpop.f32.mrf.mxu1 }
 0x84e   : > { %v13725_v57 = vpop.f32.mrf.mxu1 }
 0x850   : > { %v13727_v44 = vpop.f32.mrf.mxu1 }
 0x852   : > { %v13729_v26 = vpop.f32.mrf.mxu1 }
 0x854   : > { %v13731_v37 = vpop.f32.mrf.mxu1 }
 0x856   : > { %v9930_v2 = vpop.f32.mrf.mxu1 }
 0x858   : > { %v9931_v38 = vpop.f32.mrf.mxu1 }
 0x85a   : > { %v9933_v59 = vpop.f32.mrf.mxu1 }
 0x85c   : > { %v9934_v39 = vpop.f32.mrf.mxu1 }
 0x85e   : > { %v9936_v1 = vpop.f32.mrf.mxu1 }
 0x860   : > { %v9937_v58 = vpop.f32.mrf.mxu1 }
 0x861   : > { %v9938_v36 = vadd.f32 %v9937_v58, %v9936_v1  ;;  %v14876_v1 = vpack.c.bf16 %v13705_v24, %v13703_v23  ;;  %v14878_v24 = vpack.c.bf16 %v13699_v6, %v13697_v29  ;;  %v14879_v6 = vld [vmem:[#allocation162_spill] sm:$0xff] }
 0x862   : > { %v9939_v55 = vpop.f32.mrf.mxu1 }
 0x864   : > { %v9940_v62 = vpop.f32.mrf.mxu1 }
 0x865   : > { %v9941_v19 = vadd.f32 %v9940_v62, %v9939_v55  ;;  %v9207_v55 = vcombine.low %v5944_v9, %v5956_v17  ;;  %v9214_v62 = vcombine.low %v6112_v63, %v6124_v35  ;;  %v14875_v17 = vld [vmem:[#allocation157_spill] sm:$0xff]  ;;  %v9935_v9 = vadd.f32 %v9934_v39, %v9933_v59 }
 0x866   : > { %v9942_v43 = vpop.f32.mrf.mxu1  ;;  %v6076_v63 = vrot.slane %v14875_v17, %v11668_v47 }
 0x867   : > { %v13774_v58 = vadd.bf16 %v9207_v55, %v14876_v1  ;;  %v5752_v21 = vpack.c.bf16 %v9938_v36, %v9935_v9  ;;  %v5884_v55 = vrot.slane %v14879_v6, %v11668_v47  ;;  %v14884_v1 = vld [vmem:[#allocation171_spill] sm:$0xff]  ;;  %v14894_v6 = vpack.c.bf16 %v13681_v34, %v13679_v10 }
 0x868   : > { %v9943_v53 = vpop.f32.mrf.mxu1  ;;  %v5860_v9 = vrot.slane %v14884_v1, %v11668_v47  ;;  %v14896_v10 = vpack.c.bf16 %v13675_v32, %v13673_v41  ;;  %v14898_v32 = vpack.c.bf16 %v13669_v52, %v13667_v30 }
 0x869   : > { %v9944_v11 = vadd.f32 %v9943_v53, %v9942_v43  ;;  %v14869_v53 = vld [vmem:[#allocation137_spill] sm:$0xff]  ;;  %v6320_v39 = vmul.bf16 1069105081, %v13774_v58  ;;  %vm6291_vm4 = vcmp.gt.bf16.partialorder %v13774_v58, 0 }
 0x86a   : > { %v9945_v3 = vpop.f32.mrf.mxu1  ;;  %v6172_v51 = vrot.slane %v14869_v53, %v11668_v47 }
 0x86c   : > { %v9946_v49 = vpop.f32.mrf.mxu1 }
 0x86d   : > { %v9947_v8 = vadd.f32 %v9946_v49, %v9945_v3  ;;  %v5753_v3 = vpack.c.bf16 %v9944_v11, %v9941_v19  ;;  %v9206_v19 = vcombine.low %v5920_v15, %v5932_v13  ;;  %v14877_v11 = vld [vmem:[#allocation156_spill] sm:$0xff] }
 0x86e   : > { %v9948_v42 = vpop.f32.mrf.mxu1  ;;  %v6064_v35 = vrot.slane %v14877_v11, %v11668_v47 }
 0x86f   : > { %v13785_v59 = vadd.bf16 %v9206_v19, %v14878_v24  ;;  %v14890_v24 = vld [vmem:[#allocation178_spill] sm:$0xff] }
 0x870   : > { %v9949_v56 = vpop.f32.mrf.mxu1 }
 0x871   : > { %v9950_v33 = vadd.f32 %v9949_v56, %v9948_v42  ;;  %v6100_v42 = vrot.slane %v14871_v12, %v11668_v47  ;;  %vm6290_vm6 = vcmp.gt.bf16.partialorder %v13785_v59, 0 }
 0x872   : > { %v9951_v25 = vpop.f32.mrf.mxu1 }
 0x873   : > { %v5754_v43 = vpack.c.bf16 %v9950_v33, %v9947_v8  ;;  %v14872_v33 = vld [vmem:[#allocation149_spill] sm:$0xff]  ;;  %v14873_v8 = vld [vmem:[#allocation154_spill] sm:$0xff] }
 0x874   : > { %v9952_v49 = vpop.f32.mrf.mxu1  ;;  %v6088_v7 = vrot.slane %v14872_v33, %v11668_v47  ;;  %v5908_v16 = vrot.slane %v14873_v8, %v11668_v47  ;;  %v9216_v33 = vcombine.low %v6160_v22, %v6172_v51 }
 0x875   : > { %v13759_v27 = vadd.bf16 %v9215_v50, %v5754_v43  ;;  %v9932_v50 = vadd.f32 %v9931_v38, %v9930_v2  ;;  %v13779_v43 = vadd.bf16 %v9214_v62, %v5753_v3  ;;  %v9953_v15 = vadd.f32 %v9952_v49, %v9951_v25  ;;  %v14880_v62 = vld [vmem:[#allocation159_spill] sm:$0xff] }
 0x876   : > { %v9954_v56 = vpop.f32.mrf.mxu1  ;;  %v9213_v8 = vcombine.low %v6088_v7, %v6100_v42  ;;  %v9205_v23 = vcombine.low %v5896_v46, %v5908_v16  ;;  %v9929_v2 = vadd.f32 %v13731_v37, %v13729_v26  ;;  %v9212_v3 = vcombine.low %v6064_v35, %v6076_v63  ;;  %v14881_v37 = vld [vmem:[#allocation166_spill] sm:$0xff]  ;;  %v14882_v42 = vld [vmem:[#allocation165_spill] sm:$0xff]  ;;  %v14886_v35 = vld [vmem:[#allocation176_spill] sm:$0xff] }
 0x877   : > { %v6344_v13 = vmul.bf16 1069105081, %v13759_v27  ;;  %v9926_v25 = vadd.f32 %v13727_v44, %v13725_v57  ;;  %v6341_v51 = vmul.bf16 1069105081, %v13779_v43  ;;  %v5872_v26 = vrot.slane %v14880_v62, %v11668_v47 }
 0x878   : > { %v9955_v53 = vpop.f32.mrf.mxu1  ;;  %v5751_v22 = vpack.c.bf16 %v9932_v50, %v9929_v2  ;;  %v13793_v49 = vadd.bf16 %v9213_v8, %v5752_v21  ;;  %v6052_v36 = vrot.slane %v14881_v37, %v11668_v47  ;;  %v6040_v57 = vrot.slane %v14882_v42, %v11668_v47  ;;  %v5804_v50 = vpop.permute.xlu1 %5803  ;;  %v14889_v8 = vld [vmem:[#allocation180_spill] sm:$0xff] }
 0x879   : > { %v9956_v12 = vadd.f32 %v9955_v53, %v9954_v56  ;;  %10791 = vpow.bf16 %v6344_v13  ;;  %v6317_v44 = vmul.bf16 1069105081, %v13785_v59  ;;  %v9923_v7 = vadd.f32 %v13723_v18, %v13719_v20  ;;  %v14885_v20 = vld [vmem:[#allocation169_spill] sm:$0xff]  ;;  %v10790_v42 = vpop.eup %10789 }
 0x87a   : > { %10793 = vpow.bf16 %v6320_v39  ;;  %v13812_v46 = vadd.bf16 %v9205_v23, %v14883_v0  ;;  %v13814_v19 = vadd.bf16 %v9212_v3, %v5751_v22  ;;  %v6338_v17 = vmul.bf16 1069105081, %v13793_v49 }
 0x87b   : > { %v5755_v38 = vpack.c.bf16 %v9956_v12, %v9953_v15  ;;  %10795 = vpow.bf16 %v6341_v51  ;;  %v5750_v56 = vpack.c.bf16 %v9926_v25, %v9923_v7  ;;  %v9204_v63 = vcombine.low %v5872_v26, %v5884_v55  ;;  %v14893_v51 = vld [vmem:[#allocation183_spill] sm:$0xff] }
 0x87c   : > { %v5848_v18 = vrot.slane %v14885_v20, %v11668_v47  ;;  %v9211_v11 = vcombine.low %v6040_v57, %v6052_v36  ;;  %v6028_v48 = vrot.slane %v14886_v35, %v11668_v47  ;;  %v14888_v53 = vpack.c.bf16 %v13687_v5, %v13685_v40  ;;  %v14892_v5 = vld [vmem:[#allocation181_spill] sm:$0xff] }
 0x87d   : > { %v13795_v29 = vadd.bf16 %v9216_v33, %v5755_v38  ;;  %v6314_v13 = vmul.bf16 1069105081, %v13812_v46  ;;  %v6335_v12 = vmul.bf16 1069105081, %v13814_v19  ;;  %v5836_v23 = vrot.slane %v14889_v8, %v11668_v47  ;;  %v14891_v38 = vld [vmem:[#allocation182_spill] sm:$0xff] }
 0x87e   : > { %v13828_v21 = vadd.bf16 %v9204_v63, %v14888_v53  ;;  %v13831_v15 = vadd.bf16 %v9211_v11, %v5750_v56  ;;  %v9203_v33 = vcombine.low %v5848_v18, %v5860_v9  ;;  %v5824_v39 = vrot.slane %v14890_v24, %v11668_v47 }
 0x87f   : > { %v6347_v16 = vmul.bf16 1069105081, %v13795_v29  ;;  %v9210_v2 = vcombine.low %v6016_v61, %v6028_v48  ;;  %v6004_v40 = vrot.slane %v14891_v38, %v11668_v47  ;;  %v5992_v3 = vrot.slane %v14892_v5, %v11668_v47 }
 0x880   : > { %v5812_v25 = vrot.slane %v5804_v50, %v11668_v47  ;;  %v5800_v22 = vrot.slane %v14893_v51, %v11668_v47  ;;  %v13848_v55 = vadd.bf16 %v9203_v33, %v14894_v6  ;;  %v6311_v62 = vmul.bf16 1069105081, %v13828_v21 }
 0x881   : > { %10797 = vpow.bf16 %v6347_v16  ;;  %v14895_v26 = vpack.c.bf16 %v13717_v60, %v13715_v54  ;;  %v6332_v36 = vmul.bf16 1069105081, %v13831_v15  ;;  %v9202_v57 = vcombine.low %v5824_v39, %v5836_v23 }
 0x882   : > { %10799 = vpow.bf16 %v6317_v44  ;;  %v9209_v7 = vcombine.low %v5992_v3, %v6004_v40  ;;  %v9201_v16 = vcombine.low %v5800_v22, %v5812_v25  ;;  %v6308_v0 = vmul.bf16 1069105081, %v13848_v55 }
 0x883   : > { %10801 = vpow.bf16 %v6338_v17  ;;  %v13854_v37 = vadd.bf16 %v9210_v2, %v14895_v26  ;;  %v13860_v34 = vadd.bf16 %v9202_v57, %v14896_v10  ;;  %v14897_v54 = vpack.c.bf16 %v13711_v14, %v13709_v31 }
 0x884   : > { %10803 = vpow.bf16 %v6314_v13  ;;  %v6356_v63 = vsub.bf16 %v10790_v42, %v14735_v45  ;;  %v13874_v20 = vadd.bf16 %v9201_v16, %v14898_v32  ;;  %vm6300_vm1 = vcmp.gt.bf16.partialorder %v13795_v29, 0 }
 0x885   : > { %10805 = vpow.bf16 %v6335_v12  ;;  %v13866_v60 = vadd.bf16 %v9209_v7, %v14897_v54  ;;  %v6329_v17 = vmul.bf16 1069105081, %v13854_v37  ;;  %v6305_v18 = vmul.bf16 1069105081, %v13860_v34 }
 0x886   : > { %10807 = vpow.bf16 %v6311_v62  ;;  %v6372_v35 = vmul.bf16 1071005654, %v6356_v63  ;;  %v6302_v30 = vmul.bf16 1069105081, %v13874_v20  ;;  %vm6299_vm3 = vcmp.gt.bf16.partialorder %v13759_v27, 0 }
 0x887   : > { %v10792_v44 = vpop.eup %10791  ;;  %10809 = vpow.bf16 %v6332_v36  ;;  %v6326_v11 = vmul.bf16 1069105081, %v13866_v60  ;;  %vm6298_vm5 = vcmp.gt.bf16.partialorder %v13779_v43, 0  ;;  %vm6297_vm7 = vcmp.gt.bf16.partialorder %v13793_v49, 0 }
 0x888   : > { %v10794_v56 = vpop.eup %10793  ;;  %v6363_v9 = vsub.bf16 %v10792_v44, %v14735_v45  ;;  %10811 = vpow.bf16 %v6308_v0  ;;  %v6388_v12 = vsel %vm6292_vm2, %v13757_v28, %v6372_v35  ;;  %vm6289_vm8 = vcmp.gt.bf16.partialorder %v13812_v46, 0  ;;  %v10541_v35 = vld [vmem:[#allocation4 + $0x524] ss:$8 sps:$4 sm:$0xff]  }
 0x889   : > { %v10796_v1 = vpop.eup %10795  ;;  %10813 = vpow.bf16 %v6329_v17  ;;  %v6355_v48 = vsub.bf16 %v10794_v56, %v14735_v45  ;;  %vm6296_vm9 = vcmp.gt.bf16.partialorder %v13814_v19, 0  ;;  %vm6288_vm10 = vcmp.gt.bf16.partialorder %v13828_v21, 0 }
 0x88a   : > { %v6379_v61 = vmul.bf16 1071005654, %v6363_v9  ;;  %v6362_v50 = vsub.bf16 %v10796_v1, %v14735_v45  ;;  %10815 = vpow.bf16 %v6305_v18  ;;  %vm6295_vm11 = vcmp.gt.bf16.partialorder %v13831_v15, 0 }
 0x88b   : > { %10817 = vpow.bf16 %v6326_v11  ;;  %v6371_v33 = vmul.bf16 1071005654, %v6355_v48  ;;  %vm6287_vm12 = vcmp.gt.bf16.partialorder %v13848_v55, 0  ;;  %vm6294_vm13 = vcmp.gt.bf16.partialorder %v13854_v37, 0  ;;  %v10536_v11 = vld [vmem:[#allocation4 + $0x510] ss:$8 sps:$4 sm:$0xff]  }
 0x88c   : > { %v6395_v23 = vsel %vm6299_vm3, %v13759_v27, %v6379_v61  ;;  %v6378_v24 = vmul.bf16 1071005654, %v6362_v50  ;;  %10819 = vpow.bf16 %v6302_v30  ;;  %vm6286_vm14 = vcmp.gt.bf16.partialorder %v13860_v34, 0  ;;  %v10544_v48 = vld [vmem:[#allocation4 + $0x534] ss:$8 sps:$4 sm:$0xff]  }
 0x88d   : > { %vm6293_vm15 = vcmp.gt.bf16.partialorder %v13866_v60, 0  ;;  %vm6285_vm0 = vcmp.gt.bf16.partialorder %v13874_v20, 0  ;;  %v10545_v61 = vld [vmem:[#allocation4 + $0x540] ss:$8 sps:$4 sm:$0xff]   ;;  %v10550_v50 = vld [vmem:[#allocation4 + $0x554] ss:$8 sps:$4 sm:$0xff]  }
 0x88e   : > { %v6394_v5 = vsel %vm6298_vm5, %v13779_v43, %v6378_v24  ;;  %v10551_v30 = vld [vmem:[#allocation4 + $0x560] ss:$8 sps:$4 sm:$0xff]   ;;  %v10565_v24 = vld [vmem:[#allocation4 + $0x5a4] ss:$8 sps:$4 sm:$0xff]  }
 0x88f   : > { %v10798_v41 = vpop.eup %10797 }
 0x890   : > { %v6364_v31 = vsub.bf16 %v10798_v41, %v14735_v45  ;;  %v10800_v14 = vpop.eup %10799 }
 0x891   : > { %v10802_v53 = vpop.eup %10801  ;;  %v6354_v13 = vsub.bf16 %v10800_v14, %v14735_v45  ;;  %v10533_v14 = vld [vmem:[#allocation4 + $0x500] ss:$8 sps:$4 sm:$0xff]  }
 0x892   : > { %v6380_v4 = vmul.bf16 1071005654, %v6364_v31  ;;  %v10804_v8 = vpop.eup %10803  ;;  %v6361_v39 = vsub.bf16 %v10802_v53, %v14735_v45  ;;  %v10553_v53 = vld [vmem:[#allocation4 + $0x564] ss:$8 sps:$4 sm:$0xff]  }
 0x893   : > { %v10806_v2 = vpop.eup %10805  ;;  %v6370_v28 = vmul.bf16 1071005654, %v6354_v13  ;;  %v6353_v38 = vsub.bf16 %v10804_v8, %v14735_v45  ;;  %v10554_v13 = vld [vmem:[#allocation4 + $0x570] ss:$8 sps:$4 sm:$0xff]   ;;  %v10562_v8 = vld [vmem:[#allocation4 + $0x594] ss:$8 sps:$4 sm:$0xff]  }
 0x894   : > { %v6396_v52 = vsel %vm6300_vm1, %v13795_v29, %v6380_v4  ;;  %v6387_v29 = vsel %vm6291_vm4, %v13774_v58, %v6371_v33  ;;  %v10808_v40 = vpop.eup %10807  ;;  %v6377_v27 = vmul.bf16 1071005654, %v6361_v39  ;;  %v6360_v3 = vsub.bf16 %v10806_v2, %v14735_v45  ;;  %v10542_v4 = vld [vmem:[#allocation4 + $0x530] ss:$8 sps:$4 sm:$0xff]   ;;  %v10557_v33 = vld [vmem:[#allocation4 + $0x580] ss:$8 sps:$4 sm:$0xff]  }
 0x895   : > { %9957 = vmatprep.subr.bf16.mxu0 %v6396_v52  ;;  %v10810_v25 = vpop.eup %10809  ;;  %v6386_v51 = vsel %vm6290_vm6, %v13785_v59, %v6370_v28  ;;  %v6369_v58 = vmul.bf16 1071005654, %v6353_v38  ;;  %v6352_v22 = vsub.bf16 %v10808_v40, %v14735_v45  ;;  %v10556_v52 = vld [vmem:[#allocation4 + $0x574] ss:$8 sps:$4 sm:$0xff]   ;;  %v10563_v39 = vld [vmem:[#allocation4 + $0x5a0] ss:$8 sps:$4 sm:$0xff]  }
 0x896   : > { %9958 = vmatpush3.bf16.msra.mxu0 %v6388_v12  ;;  %v10812_v6 = vpop.eup %10811  ;;  %v6393_v62 = vsel %vm6297_vm7, %v13793_v49, %v6377_v27  ;;  %v6376_v26 = vmul.bf16 1071005654, %v6360_v3  ;;  %v6359_v43 = vsub.bf16 %v10810_v25, %v14735_v45  ;;  %v10559_v12 = vld [vmem:[#allocation4 + $0x584] ss:$8 sps:$4 sm:$0xff]   ;;  %v10568_v2 = vld [vmem:[#allocation4 + $0x5b4] ss:$8 sps:$4 sm:$0xff]  }
 0x897   : > { %9959 = vmatprep.subr.bf16.mxu0 %v6395_v23  ;;  %v10814_v36 = vpop.eup %10813  ;;  %v6385_v42 = vsel %vm6289_vm8, %v13812_v46, %v6369_v58  ;;  %v6368_v59 = vmul.bf16 1071005654, %v6352_v22  ;;  %v6351_v57 = vsub.bf16 %v10812_v6, %v14735_v45  ;;  %v10560_v23 = vld [vmem:[#allocation4 + $0x590] ss:$8 sps:$4 sm:$0xff]   ;;  %v10571_v28 = vld [vmem:[#allocation4 + $0x5c4] ss:$8 sps:$4 sm:$0xff]  }
 0x898   : > { %v10816_v44 = vpop.eup %10815  ;;  %v6392_v7 = vsel %vm6296_vm9, %v13814_v19, %v6376_v26  ;;  %v6375_v16 = vmul.bf16 1071005654, %v6359_v43  ;;  %v6358_v49 = vsub.bf16 %v10814_v36, %v14735_v45  ;;  %v10569_v38 = vld [vmem:[#allocation4 + $0x5c0] ss:$8 sps:$4 sm:$0xff]   ;;  %v10574_v40 = vld [vmem:[#allocation4 + $0x5d4] ss:$8 sps:$4 sm:$0xff]  }
 0x899   : > { %v10818_v10 = vpop.eup %10817  ;;  %v6384_v0 = vsel %vm6288_vm10, %v13828_v21, %v6368_v59  ;;  %v6367_v46 = vmul.bf16 1071005654, %v6351_v57  ;;  %v6350_v56 = vsub.bf16 %v10816_v44, %v14735_v45  ;;  %v10577_v27 = vld [vmem:[#allocation4 + $0x5e4] ss:$8 sps:$4 sm:$0xff]   ;;  %v10575_v3 = vld [vmem:[#allocation4 + $0x5e0] ss:$8 sps:$4 sm:$0xff]  }
 0x89a   : > { %9960 = vmatpush3.bf16.msra.mxu0 %v6387_v29  ;;  %v10820_v54 = vpop.eup %10819  ;;  %v6391_v17 = vsel %vm6295_vm11, %v13831_v15, %v6375_v16  ;;  %v6374_v63 = vmul.bf16 1071005654, %v6358_v49  ;;  %v6357_v19 = vsub.bf16 %v10818_v10, %v14735_v45  ;;  %v10566_v29 = vld [vmem:[#allocation4 + $0x5b0] ss:$8 sps:$4 sm:$0xff]   ;;  %v10580_v25 = vld [vmem:[#allocation4 + $0x5f4] ss:$8 sps:$4 sm:$0xff]  }
 0x89b   : > { %9961 = vmatprep.subr.bf16.mxu0 %v6394_v5  ;;  %v6383_v1 = vsel %vm6287_vm12, %v13848_v55, %v6367_v46  ;;  %v6366_v21 = vmul.bf16 1071005654, %v6350_v56  ;;  %v6349_v9 = vsub.bf16 %v10820_v54, %v14735_v45  ;;  %v10572_v5 = vld [vmem:[#allocation4 + $0x5d0] ss:$8 sps:$4 sm:$0xff]  }
 0x89c   : > { %v6390_v41 = vsel %vm6294_vm13, %v13854_v37, %v6374_v63  ;;  %v6373_v32 = vmul.bf16 1071005654, %v6357_v19  ;;  %v10538_v37 = vld [vmem:[#allocation4 + $0x514] ss:$8 sps:$4 sm:$0xff]  }
 0x89d   : > { %v6382_v15 = vsel %vm6286_vm14, %v13860_v34, %v6366_v21  ;;  %v6365_v18 = vmul.bf16 1071005654, %v6349_v9  ;;  %v10539_v34 = vld [vmem:[#allocation4 + $0x520] ss:$8 sps:$4 sm:$0xff]  }
 0x89e   : > { %9962 = vmatpush3.bf16.msra.mxu0 %v6386_v51  ;;  %v6389_v55 = vsel %vm6293_vm15, %v13866_v60, %v6373_v32  ;;  %v10547_v60 = vld [vmem:[#allocation4 + $0x544] ss:$8 sps:$4 sm:$0xff]   ;;  %v10578_v51 = vld [vmem:[#allocation4 + $0x5f0] ss:$8 sps:$4 sm:$0xff]  }
 0x89f   : > { %9963 = vmatprep.subr.bf16.mxu0 %v6393_v62  ;;  %v6381_v31 = vsel %vm6285_vm0, %v13874_v20, %v6365_v18  ;;  %v10548_v20 = vld [vmem:[#allocation4 + $0x550] ss:$8 sps:$4 sm:$0xff]  }
 0x8a2   : > { %9964 = vmatpush3.bf16.msra.mxu0 %v6385_v42 }
 0x8a3   : > { %9965 = vmatprep.subr.bf16.mxu0 %v6392_v7 }
 0x8a6   : > { %9966 = vmatpush3.bf16.msra.mxu0 %v6384_v0 }
 0x8a7   : > { %9967 = vmatprep.subr.bf16.mxu0 %v6391_v17 }
 0x8aa   : > { %9968 = vmatpush3.bf16.msra.mxu0 %v6383_v1 }
 0x8ab   : > { %9969 = vmatprep.subr.bf16.mxu0 %v6390_v41 }
 0x8ae   : > { %9970 = vmatpush3.bf16.msra.mxu0 %v6382_v15 }
 0x8af   : > { %9971 = vmatprep.subr.bf16.mxu0 %v6389_v55 }
 0x8b2   : > { %9972 = vmatpush3.bf16.msra.mxu0 %v6381_v31 }
 0x8b5   : > { %6623 = vmatmul.mubr.bf16.vlgmr.msra.gmra.mxu0 %v10533_v14 }
 0x8b6   : > { %6630 = vmatprep.mubr.bf16.mxu0 %v10538_v37 }
 0x8bd   : > { %6631 = vmatmul.mubr.bf16.gmra.mxu0 %v10536_v11 }
 0x8be   : > { %6638 = vmatprep.mubr.bf16.mxu0 %v10541_v35 }
 0x8c5   : > { %6639 = vmatmul.mubr.bf16.gmra.mxu0 %v10539_v34 }
 0x8c6   : > { %6646 = vmatprep.mubr.bf16.mxu0 %v10544_v48 }
 0x8cd   : > { %6647 = vmatmul.mubr.bf16.gmra.mxu0 %v10542_v4 }
 0x8ce   : > { %6654 = vmatprep.mubr.bf16.mxu0 %v10547_v60 }
 0x8d5   : > { %6655 = vmatmul.mubr.bf16.gmra.mxu0 %v10545_v61 }
 0x8d6   : > { %6662 = vmatprep.mubr.bf16.mxu0 %v10550_v50 }
 0x8dd   : > { %6663 = vmatmul.mubr.bf16.gmra.mxu0 %v10548_v20  ;;  %v13959_v20 = vpop.permute.xlu1 %7174 }
 0x8de   : > { %6670 = vmatprep.mubr.bf16.mxu0 %v10553_v53 }
 0x8e5   : > { %6671 = vmatmul.mubr.bf16.gmra.mxu0 %v10551_v30  ;;  %v13961_v30 = vpop.permute.xlu0 %7162 }
 0x8e6   : > { %6678 = vmatprep.mubr.bf16.mxu0 %v10556_v52 }
 0x8ed   : > { %6679 = vmatmul.mubr.bf16.gmra.mxu0 %v10554_v13 }
 0x8ee   : > { %6686 = vmatprep.mubr.bf16.mxu0 %v10559_v12 }
 0x8f5   : > { %6687 = vmatmul.mubr.bf16.gmra.mxu0 %v10557_v33 }
 0x8f6   : > { %6694 = vmatprep.mubr.bf16.mxu0 %v10562_v8  ;;  %v13967_v8 = vpop.permute.xlu1 %6982 }
 0x8fd   : > { %6695 = vmatmul.mubr.bf16.gmra.mxu0 %v10560_v23 }
 0x8fe   : > { %6702 = vmatprep.mubr.bf16.mxu0 %v10565_v24  ;;  %v13969_v24 = vpop.permute.xlu0 %6970 }
 0x905   : > { %6703 = vmatmul.mubr.bf16.gmra.mxu0 %v10563_v39 }
 0x906   : > { %6710 = vmatprep.mubr.bf16.mxu0 %v10568_v2 }
 0x90d   : > { %6711 = vmatmul.mubr.bf16.gmra.mxu0 %v10566_v29  ;;  %v10583_v29 = vld [vmem:[#allocation4 + $0x604] ss:$8 sps:$4 sm:$0xff]  }
 0x90e   : > { %6718 = vmatprep.mubr.bf16.mxu0 %v10571_v28  ;;  %7633 = vmatprep.mubr.bf16.mxu1 %v10583_v29 }
 0x915   : > { %6719 = vmatmul.mubr.bf16.gmra.mxu0 %v10569_v38 }
 0x916   : > { %6726 = vmatprep.mubr.bf16.mxu0 %v10574_v40 }
 0x91d   : > { %6727 = vmatmul.mubr.bf16.gmra.mxu0 %v10572_v5  ;;  %v13977_v5 = vpop.permute.xlu1 %7150 }
 0x91e   : > { %6734 = vmatprep.mubr.bf16.mxu0 %v10577_v27 }
 0x925   : > { %6735 = vmatmul.mubr.bf16.gmra.mxu0 %v10575_v3  ;;  %v13979_v3 = vpop.permute.xlu0 %7138 }
 0x926   : > { %6742 = vmatprep.mubr.bf16.mxu0 %v10580_v25 }
 0x92d   : > { %6743 = vmatmul.mubr.bf16.gmra.mxu0 %v10578_v51 }
 0x975   : > { %v9973_v58 = vpop.f32.mrf.mxu0 }
 0x977   : > { %v9974_v22 = vpop.f32.mrf.mxu0 }
 0x978   : > { %v13925_v6 = vadd.f32 %v9974_v22, %v9973_v58 }
 0x979   : > { %v9976_v62 = vpop.f32.mrf.mxu0 }
 0x97a   : > { %14899 = vst [vmem:[#allocation9_spill] sm:$0xff] %v13925_v6  ;;  %v6991_v6 = vrot.slane %v13967_v8, %v11668_v47 }
 0x97b   : > { %v9977_v26 = vpop.f32.mrf.mxu0 }
 0x97c   : > { %v13927_v43 = vadd.f32 %v9977_v26, %v9976_v62  ;;  %v13985_v62 = vpop.permute.xlu1 %6958 }
 0x97d   : > { %v9979_v36 = vpop.f32.mrf.mxu0 }
 0x97e   : > { %14900 = vst [vmem:[#allocation10_spill] sm:$0xff] %v13927_v43  ;;  %v6979_v43 = vrot.slane %v13969_v24, %v11668_v47 }
 0x97f   : > { %v9980_v59 = vpop.f32.mrf.mxu0 }
 0x980   : > { %v13931_v57 = vadd.f32 %v9980_v59, %v9979_v36  ;;  %v13987_v36 = vpop.permute.xlu0 %6946 }
 0x981   : > { %v9982_v44 = vpop.f32.mrf.mxu0 }
 0x982   : > { %14901 = vst [vmem:[#allocation7_spill] sm:$0xff] %v13931_v57  ;;  %v6967_v57 = vrot.slane %v13985_v62, %v11668_v47 }
 0x983   : > { %v9983_v7 = vpop.f32.mrf.mxu0 }
 0x984   : > { %v13933_v16 = vadd.f32 %v9983_v7, %v9982_v44 }
 0x985   : > { %v9985_v49 = vpop.f32.mrf.mxu0 }
 0x986   : > { %14902 = vst [vmem:[#allocation8_spill] sm:$0xff] %v13933_v16  ;;  %v6955_v16 = vrot.slane %v13987_v36, %v11668_v47 }
 0x987   : > { %v9986_v0 = vpop.f32.mrf.mxu0 }
 0x988   : > { %v13937_v46 = vadd.f32 %v9986_v0, %v9985_v49  ;;  %v13993_v0 = vpop.permute.xlu1 %7126 }
 0x989   : > { %v9988_v56 = vpop.f32.mrf.mxu0  ;;  %v7135_v8 = vrot.slane %v13993_v0, %v11668_v47 }
 0x98a   : > { %14903 = vst [vmem:[#allocation11_spill] sm:$0xff] %v13937_v46 }
 0x98b   : > { %v9989_v54 = vpop.f32.mrf.mxu0 }
 0x98c   : > { %v13939_v17 = vadd.f32 %v9989_v54, %v9988_v56  ;;  %v13995_v54 = vpop.permute.xlu0 %7114 }
 0x98d   : > { %v9991_v63 = vpop.f32.mrf.mxu0  ;;  %v7123_v24 = vrot.slane %v13995_v54, %v11668_v47  ;;  %v7183_v54 = vrot.slane %v13959_v20, %v11668_v47 }
 0x98e   : > { %14904 = vst [vmem:[#allocation12_spill] sm:$0xff] %v13939_v17 }
 0x98f   : > { %v9992_v1 = vpop.f32.mrf.mxu0 }
 0x990   : > { %v13943_v21 = vadd.f32 %v9992_v1, %v9991_v63 }
 0x991   : > { %v9994_v9 = vpop.f32.mrf.mxu0 }
 0x992   : > { %14905 = vst [vmem:[#allocation13_spill] sm:$0xff] %v13943_v21 }
 0x993   : > { %v9995_v41 = vpop.f32.mrf.mxu0 }
 0x994   : > { %v13945_v32 = vadd.f32 %v9995_v41, %v9994_v9 }
 0x995   : > { %v9997_v15 = vpop.f32.mrf.mxu0 }
 0x996   : > { %14906 = vst [vmem:[#allocation14_spill] sm:$0xff] %v13945_v32 }
 0x997   : > { %v9998_v55 = vpop.f32.mrf.mxu0 }
 0x998   : > { %v13949_v31 = vadd.f32 %v9998_v55, %v9997_v15  ;;  %v14001_v15 = vpop.permute.xlu1 %6934 }
 0x999   : > { %v10000_v14 = vpop.f32.mrf.mxu0  ;;  %v6943_v62 = vrot.slane %v14001_v15, %v11668_v47 }
 0x99b   : > { %v10001_v37 = vpop.f32.mrf.mxu0 }
 0x99c   : > { %v13951_v11 = vadd.f32 %v10001_v37, %v10000_v14  ;;  %v14003_v14 = vpop.permute.xlu0 %6922 }
 0x99d   : > { %v10003_v35 = vpop.f32.mrf.mxu0 }
 0x99f   : > { %v10004_v48 = vpop.f32.mrf.mxu0 }
 0x9a0   : > { %v13955_v4 = vadd.f32 %v10004_v48, %v10003_v35 }
 0x9a1   : > { %v10006_v60 = vpop.f32.mrf.mxu0 }
 0x9a3   : > { %v10007_v61 = vpop.f32.mrf.mxu0 }
 0x9a4   : > { %v13957_v50 = vadd.f32 %v10007_v61, %v10006_v60  ;;  %v14013_v61 = vpop.permute.xlu1 %7102 }
 0x9a5   : > { %v10009_v53 = vpop.f32.mrf.mxu0 }
 0x9a7   : > { %v10010_v13 = vpop.f32.mrf.mxu0 }
 0x9a8   : > { %v13965_v12 = vadd.f32 %v10010_v13, %v10009_v53  ;;  %v14017_v13 = vpop.permute.xlu0 %7090 }
 0x9a9   : > { %v10012_v33 = vpop.f32.mrf.mxu0 }
 0x9ab   : > { %v10013_v23 = vpop.f32.mrf.mxu0 }
 0x9ac   : > { %v13971_v39 = vadd.f32 %v10013_v23, %v10012_v33 }
 0x9ad   : > { %v10015_v2 = vpop.f32.mrf.mxu0 }
 0x9af   : > { %v10016_v38 = vpop.f32.mrf.mxu0 }
 0x9b0   : > { %v13975_v40 = vadd.f32 %v10016_v38, %v10015_v2  ;;  %v14023_v2 = vpop.permute.xlu1 %6910  ;;  %v14027_v38 = vpop.permute.xlu0 %6898 }
 0x9b1   : > { %v10018_v27 = vpop.f32.mrf.mxu0  ;;  %v6919_v20 = vrot.slane %v14023_v2, %v11668_v47 }
 0x9b3   : > { %v10019_v25 = vpop.f32.mrf.mxu0 }
 0x9b4   : > { %v13981_v51 = vadd.f32 %v10019_v25, %v10018_v27 }
 0x9b5   : > { %v10021_v58 = vpop.f32.mrf.mxu0 }
 0x9b7   : > { %v10022_v26 = vpop.f32.mrf.mxu0 }
 0x9b8   : > { %v13989_v59 = vadd.f32 %v10022_v26, %v10021_v58  ;;  %v14031_v58 = vpop.permute.xlu1 %7078 }
 0x9b9   : > { %v10024_v44 = vpop.f32.mrf.mxu0 }
 0x9ba   : > { %14907 = vst [vmem:[#allocation16_spill] sm:$0xff] %v13989_v59  ;;  %v7159_v59 = vrot.slane %v13977_v5, %v11668_v47  ;;  %v9288_v5 = vcombine.low %v6979_v43, %v6991_v6  ;;  %v14912_v6 = vpack.c.bf16 %v13981_v51, %v13975_v40 }
 0x9bb   : > { %v10025_v7 = vpop.f32.mrf.mxu0 }
 0x9bc   : > { %v13991_v49 = vadd.f32 %v10025_v7, %v10024_v44  ;;  %v14033_v44 = vpop.permute.xlu0 %7066  ;;  %v14078_v43 = vadd.bf16 %v9288_v5, %v14912_v6 }
 0x9bd   : > { %v10027_v56 = vpop.f32.mrf.mxu0  ;;  %v7075_v15 = vrot.slane %v14033_v44, %v11668_v47  ;;  %v14914_v44 = vpack.c.bf16 %v13957_v50, %v13955_v4 }
 0x9be   : > { %14908 = vst [vmem:[#allocation17_spill] sm:$0xff] %v13991_v49  ;;  %v7147_v49 = vrot.slane %v13979_v3, %v11668_v47  ;;  %vm7303_vm2 = vcmp.gt.bf16.partialorder %v14078_v43, 0 }
 0x9bf   : > { %v10028_v1 = vpop.f32.mrf.mxu0 }
 0x9c0   : > { %v13999_v9 = vadd.f32 %v10028_v1, %v10027_v56  ;;  %v14035_v1 = vpop.permute.xlu1 %6886 }
 0x9c1   : > { %v10030_v41 = vpop.f32.mrf.mxu0  ;;  %v6895_v50 = vrot.slane %v14035_v1, %v11668_v47  ;;  %v14915_v1 = vpack.c.bf16 %v13951_v11, %v13949_v31 }
 0x9c2   : > { %14909 = vst [vmem:[#allocation20_spill] sm:$0xff] %v13999_v9 }
 0x9c3   : > { %v10031_v55 = vpop.f32.mrf.mxu0 }
 0x9c4   : > { %v14005_v37 = vadd.f32 %v10031_v55, %v10030_v41  ;;  %v14037_v55 = vpop.permute.xlu0 %6874  ;;  %v14039_v10 = vpop.permute.xlu1 %7054 }
 0x9c5   : > { %v14007_v35 = vpop.f32.mrf.mxu0 }
 0x9c6   : > { %14910 = vst [vmem:[#allocation21_spill] sm:$0xff] %v14005_v37 }
 0x9c7   : > { %v14011_v60 = vpop.f32.mrf.mxu0 }
 0x9c8   : > { %v14041_v19 = vpop.permute.xlu0 %7042  ;;  %v14043_v52 = vpop.permute.xlu1 %6862 }
 0x9c9   : > { %v14015_v53 = vpop.f32.mrf.mxu0 }
 0x9cb   : > { %v14019_v33 = vpop.f32.mrf.mxu0 }
 0x9cc   : > { %v14045_v22 = vpop.permute.xlu0 %6850  ;;  %v14063_v21 = vpop.permute.xlu1 %7030 }
 0x9cd   : > { %v14021_v23 = vpop.f32.mrf.mxu0  ;;  %14911 = vst [vmem:[#allocation23_spill] sm:$0xff] %v14045_v22  ;;  %v9295_v22 = vcombine.low %v7147_v49, %v7159_v59  ;;  %v9294_v59 = vcombine.low %v7123_v24, %v7135_v8  ;;  %v7039_v31 = vrot.slane %v14063_v21, %v11668_v47 }
 0x9cf   : > { %v14025_v29 = vpop.f32.mrf.mxu0 }
 0x9d0   : > { %v14069_v36 = vpop.permute.xlu0 %7018 }
 0x9d1   : > { %v14029_v27 = vpop.f32.mrf.mxu0  ;;  %v7027_v11 = vrot.slane %v14069_v36, %v11668_v47 }
 0x9d3   : > { %v10043_v25 = vpop.f32.mrf.mxu0 }
 0x9d4   : > { %v14105_v2 = vpop.permute.xlu0 %6826 }
 0x9d5   : > { %v10045_v26 = vpop.f32.mrf.mxu0  ;;  %v6835_v36 = vrot.slane %v14105_v2, %v11668_v47 }
 0x9d7   : > { %v10046_v7 = vpop.f32.mrf.mxu0 }
 0x9d9   : > { %v10048_v56 = vpop.f32.mrf.mxu0 }
 0x9db   : > { %v10049_v41 = vpop.f32.mrf.mxu0 }
 0x9dc   : > { %v10050_v49 = vadd.f32 %v10049_v41, %v10048_v56 }
 0x9dd   : > { %v10051_v42 = vpop.f32.mrf.mxu0 }
 0x9df   : > { %v10052_v63 = vpop.f32.mrf.mxu0 }
 0x9e0   : > { %v10053_v3 = vadd.f32 %v10052_v63, %v10051_v42 }
 0x9e1   : > { %v10054_v48 = vpop.f32.mrf.mxu0 }
 0x9e3   : > { %v10055_v18 = vpop.f32.mrf.mxu0 }
 0x9e4   : > { %v10056_v9 = vadd.f32 %v10055_v18, %v10054_v48  ;;  %v6931_v18 = vrot.slane %v14003_v14, %v11668_v47  ;;  %v14099_v14 = vpop.permute.xlu1 %6838  ;;  %v10044_v48 = vadd.f32 %v10043_v25, %v14029_v27  ;;  %v10041_v25 = vadd.f32 %v14025_v29, %v14021_v23 }
 0x9e5   : > { %v10057_v34 = vpop.f32.mrf.mxu0  ;;  %v6883_v23 = vrot.slane %v14037_v55, %v11668_v47  ;;  %v7063_v29 = vrot.slane %v14039_v10, %v11668_v47  ;;  %v6847_v21 = vrot.slane %v14099_v14, %v11668_v47  ;;  %v14923_v14 = vld [vmem:[#allocation21_spill] sm:$0xff] }
 0x9e6   : > { %v6764_v42 = vpack.c.bf16 %v10056_v9, %v10053_v3  ;;  %v9286_v51 = vcombine.low %v6931_v18, %v6943_v62  ;;  %v10047_v9 = vadd.f32 %v10046_v7, %v10045_v26  ;;  %v6762_v3 = vpack.c.bf16 %v10044_v48, %v10041_v25  ;;  %v6995_v18 = vpop.permute.xlu0 %6994 }
 0x9e7   : > { %v10058_v28 = vpop.f32.mrf.mxu0 }
 0x9e8   : > { %v10059_v46 = vadd.f32 %v10058_v28, %v10057_v34  ;;  %v9287_v28 = vcombine.low %v6955_v16, %v6967_v57  ;;  %v7087_v57 = vrot.slane %v14031_v58, %v11668_v47  ;;  %v14913_v16 = vpack.c.bf16 %v13971_v39, %v13965_v12 }
 0x9e9   : > { %v10060_v45 = vpop.f32.mrf.mxu0  ;;  %v14111_v41 = vadd.bf16 %v9286_v51, %v14914_v44 }
 0x9ea   : > { %v9292_v24 = vcombine.low %v7075_v15, %v7087_v57  ;;  %v7003_v15 = vrot.slane %v6995_v18, %v11668_v47 }
 0x9eb   : > { %v10061_v37 = vpop.f32.mrf.mxu0  ;;  %vm7301_vm6 = vcmp.gt.bf16.partialorder %v14111_v41, 0 }
 0x9ec   : > { %v10062_v17 = vadd.f32 %v10061_v37, %v10060_v45  ;;  %v7171_v45 = vrot.slane %v13961_v30, %v11668_v47  ;;  %v6907_v30 = vrot.slane %v14027_v38, %v11668_v47  ;;  %v7334_v37 = vmul.bf16 1069105081, %v14078_v43 }
 0x9ed   : > { %v10063_v32 = vpop.f32.mrf.mxu0  ;;  %v6763_v38 = vpack.c.bf16 %v10050_v49, %v10047_v9  ;;  %v14140_v6 = vadd.bf16 %v9292_v24, %v6762_v3  ;;  %v14917_v49 = vld [vmem:[#allocation14_spill] sm:$0xff] }
 0x9ee   : > { %v6765_v0 = vpack.c.bf16 %v10062_v17, %v10059_v46  ;;  %v7111_v46 = vrot.slane %v14013_v61, %v11668_v47  ;;  %v7099_v17 = vrot.slane %v14017_v13, %v11668_v47  ;;  %v14103_v61 = vadd.bf16 %v9294_v59, %v6764_v42 }
 0x9ef   : > { %v10064_v34 = vpop.f32.mrf.mxu0  ;;  %v9296_v26 = vcombine.low %v7171_v45, %v7183_v54  ;;  %v9285_v56 = vcombine.low %v6907_v30, %v6919_v20  ;;  %10821 = vpow.bf16 %v7334_v37  ;;  %v10035_v54 = vadd.f32 %v14011_v60, %v14007_v35  ;;  %v14916_v35 = vld [vmem:[#allocation23_spill] sm:$0xff] }
 0x9f0   : > { %v14080_v63 = vadd.bf16 %v9295_v22, %v6765_v0  ;;  %v14095_v22 = vadd.bf16 %v9287_v28, %v14913_v16  ;;  %v10065_v39 = vadd.f32 %v10064_v34, %v10063_v32  ;;  %v9293_v7 = vcombine.low %v7099_v17, %v7111_v46  ;;  %v14918_v46 = vld [vmem:[#allocation13_spill] sm:$0xff] }
 0x9f1   : > { %v10066_v40 = vpop.f32.mrf.mxu0  ;;  %v10038_v32 = vadd.f32 %v14019_v33, %v14015_v53  ;;  %v7352_v5 = vmul.bf16 1069105081, %v14103_v61  ;;  %v7051_v53 = vrot.slane %v14041_v19, %v11668_v47  ;;  %v7007_v33 = vpop.permute.xlu1 %7006  ;;  %v7328_v0 = vmul.bf16 1069105081, %v14111_v41 }
 0x9f2   : > { %v7355_v12 = vmul.bf16 1069105081, %v14080_v63  ;;  %v7331_v27 = vmul.bf16 1069105081, %v14095_v22  ;;  %v14119_v62 = vadd.bf16 %v9293_v7, %v6763_v38  ;;  %v14138_v55 = vadd.bf16 %v9285_v56, %v14915_v1  ;;  %v14921_v38 = vld [vmem:[#allocation11_spill] sm:$0xff] }
 0x9f3   : > { %v10067_v13 = vpop.f32.mrf.mxu0  ;;  %v6761_v10 = vpack.c.bf16 %v10038_v32, %v10035_v54  ;;  %v9284_v42 = vcombine.low %v6883_v23, %v6895_v50  ;;  %v6871_v34 = vrot.slane %v14043_v52, %v11668_v47  ;;  %v6859_v60 = vrot.slane %v14916_v35, %v11668_v47  ;;  %v6803_v52 = vpop.permute.xlu0 %6802  ;;  %v14926_v32 = vld [vmem:[#allocation8_spill] sm:$0xff]  ;;  %v14934_v35 = vld [vmem:[#allocation9_spill] sm:$0xff] }
 0x9f4   : > { %v10068_v58 = vadd.f32 %v10067_v13, %v10066_v40  ;;  %10823 = vpow.bf16 %v7355_v12  ;;  %v7349_v19 = vmul.bf16 1069105081, %v14119_v62  ;;  %v9291_v28 = vcombine.low %v7051_v53, %v7063_v29  ;;  %v14920_v13 = vld [vmem:[#allocation12_spill] sm:$0xff]  ;;  %v14929_v53 = vld [vmem:[#allocation17_spill] sm:$0xff] }
 0x9f5   : > { %10825 = vpow.bf16 %v7331_v27  ;;  %v6815_v59 = vpop.permute.xlu1 %6814  ;;  %v14919_v17 = vpack.c.bf16 %v14917_v49, %v14918_v46  ;;  %v7325_v30 = vmul.bf16 1069105081, %v14138_v55  ;;  %v7346_v51 = vmul.bf16 1069105081, %v14140_v6 }
 0x9f6   : > { %v6766_v8 = vpack.c.bf16 %v10068_v58, %v10065_v39  ;;  %10827 = vpow.bf16 %v7352_v5  ;;  %v14157_v40 = vadd.bf16 %v9291_v28, %v6761_v10  ;;  %v9283_v57 = vcombine.low %v6859_v60, %v6871_v34  ;;  %v14927_v5 = vld [vmem:[#allocation7_spill] sm:$0xff]  ;;  %v14933_v34 = vld [vmem:[#allocation10_spill] sm:$0xff] }
 0x9f7   : > { %v14154_v20 = vadd.bf16 %v9284_v42, %v14919_v17  ;;  %v9290_v16 = vcombine.low %v7027_v11, %v7039_v31  ;;  %v7015_v9 = vrot.slane %v7007_v33, %v11668_v47  ;;  %v6823_v37 = vrot.slane %v6815_v59, %v11668_v47  ;;  %v14930_v33 = vld [vmem:[#allocation16_spill] sm:$0xff] }
 0x9f8   : > { %v14121_v4 = vadd.bf16 %v9296_v26, %v6766_v8  ;;  %v6811_v48 = vrot.slane %v6803_v52, %v11668_v47  ;;  %v14922_v12 = vpack.c.bf16 %v14920_v13, %v14921_v38  ;;  %v14924_v26 = vld [vmem:[#allocation20_spill] sm:$0xff]  ;;  %v7343_v56 = vmul.bf16 1069105081, %v14157_v40 }
 0x9f9   : > { %v7322_v58 = vmul.bf16 1069105081, %v14154_v20  ;;  %v14925_v2 = vpack.c.bf16 %v14923_v14, %v14924_v26  ;;  %v9282_v27 = vcombine.low %v6835_v36, %v6847_v21  ;;  %v9289_v8 = vcombine.low %v7003_v15, %v7015_v9 }
 0x9fa   : > { %v7358_v45 = vmul.bf16 1069105081, %v14121_v4  ;;  %v14171_v39 = vadd.bf16 %v9283_v57, %v14922_v12  ;;  %v9281_v24 = vcombine.low %v6811_v48, %v6823_v37  ;;  %v14928_v3 = vpack.c.bf16 %v14926_v32, %v14927_v5 }
 0x9fb   : > { %v14177_v7 = vadd.bf16 %v9290_v16, %v14925_v2  ;;  %v14931_v18 = vpack.c.bf16 %v14929_v53, %v14930_v33  ;;  %v14935_v60 = vpack.c.bf16 %v14933_v34, %v14934_v35  ;;  %vm7311_vm1 = vcmp.gt.bf16.partialorder %v14121_v4, 0 }
 0x9fc   : > { %10829 = vpow.bf16 %v7358_v45  ;;  %v14183_v50 = vadd.bf16 %v9282_v27, %v14928_v3  ;;  %v7319_v23 = vmul.bf16 1069105081, %v14171_v39  ;;  %v14932_v45 = vmov 1065369472  }
 0x9fd   : > { %10831 = vpow.bf16 %v7328_v0  ;;  %v10822_v44 = vpop.eup %10821  ;;  %v14189_v0 = vadd.bf16 %v9289_v8, %v14931_v18  ;;  %v7340_v54 = vmul.bf16 1069105081, %v14177_v7  ;;  %v14197_v28 = vadd.bf16 %v9281_v24, %v14935_v60 }
 0x9fe   : > { %10833 = vpow.bf16 %v7349_v19  ;;  %v7367_v1 = vsub.bf16 %v10822_v44, %v14932_v45  ;;  %v7316_v31 = vmul.bf16 1069105081, %v14183_v50  ;;  %vm7310_vm3 = vcmp.gt.bf16.partialorder %v14080_v63, 0 }
 0x9ff   : > { %10835 = vpow.bf16 %v7325_v30  ;;  %v7337_v49 = vmul.bf16 1069105081, %v14189_v0  ;;  %v7313_v21 = vmul.bf16 1069105081, %v14197_v28  ;;  %vm7302_vm4 = vcmp.gt.bf16.partialorder %v14095_v22, 0 }
 0xa00   : > { %10837 = vpow.bf16 %v7346_v51  ;;  %v7383_v46 = vmul.bf16 1071005654, %v7367_v1  ;;  %vm7309_vm5 = vcmp.gt.bf16.partialorder %v14103_v61, 0  ;;  %vm7308_vm7 = vcmp.gt.bf16.partialorder %v14119_v62, 0 }
 0xa01   : > { %10839 = vpow.bf16 %v7322_v58  ;;  %vm7300_vm8 = vcmp.gt.bf16.partialorder %v14138_v55, 0  ;;  %vm7307_vm9 = vcmp.gt.bf16.partialorder %v14140_v6, 0  ;;  %vm7299_vm10 = vcmp.gt.bf16.partialorder %v14154_v20, 0 }
 0xa02   : > { %v10824_v25 = vpop.eup %10823  ;;  %10841 = vpow.bf16 %v7343_v56  ;;  %v7399_v9 = vsel %vm7303_vm2, %v14078_v43, %v7383_v46  ;;  %vm7306_vm11 = vcmp.gt.bf16.partialorder %v14157_v40, 0  ;;  %vm7298_vm12 = vcmp.gt.bf16.partialorder %v14171_v39, 0  ;;  %v10589_v46 = vld [vmem:[#allocation4 + $0x624] ss:$8 sps:$4 sm:$0xff]  }
 0xa03   : > { %v10826_v29 = vpop.eup %10825  ;;  %v7374_v19 = vsub.bf16 %v10824_v25, %v14932_v45  ;;  %10843 = vpow.bf16 %v7319_v23  ;;  %vm7305_vm13 = vcmp.gt.bf16.partialorder %v14177_v7, 0  ;;  %vm7297_vm14 = vcmp.gt.bf16.partialorder %v14183_v50, 0 }
 0xa04   : > { %v10828_v10 = vpop.eup %10827  ;;  %10845 = vpow.bf16 %v7340_v54  ;;  %v7366_v17 = vsub.bf16 %v10826_v29, %v14932_v45  ;;  %vm7304_vm15 = vcmp.gt.bf16.partialorder %v14189_v0, 0  ;;  %vm7296_vm0 = vcmp.gt.bf16.partialorder %v14197_v28, 0 }
 0xa05   : > { %v7390_v52 = vmul.bf16 1071005654, %v7374_v19  ;;  %v7373_v51 = vsub.bf16 %v10828_v10, %v14932_v45  ;;  %10847 = vpow.bf16 %v7316_v31 }
 0xa06   : > { %10849 = vpow.bf16 %v7337_v49  ;;  %v7382_v15 = vmul.bf16 1071005654, %v7366_v17  ;;  %v10584_v49 = vld [vmem:[#allocation4 + $0x610] ss:$8 sps:$4 sm:$0xff]   ;;  %v10592_v17 = vld [vmem:[#allocation4 + $0x634] ss:$8 sps:$4 sm:$0xff]  }
 0xa07   : > { %v7406_v48 = vsel %vm7310_vm3, %v14080_v63, %v7390_v52  ;;  %v7389_v13 = vmul.bf16 1071005654, %v7373_v51  ;;  %10851 = vpow.bf16 %v7313_v21  ;;  %v10593_v52 = vld [vmem:[#allocation4 + $0x640] ss:$8 sps:$4 sm:$0xff]   ;;  %v10598_v51 = vld [vmem:[#allocation4 + $0x654] ss:$8 sps:$4 sm:$0xff]  }
 0xa08   : > { %v10599_v21 = vld [vmem:[#allocation4 + $0x660] ss:$8 sps:$4 sm:$0xff]  }
 0xa09   : > { %v7405_v26 = vsel %vm7309_vm5, %v14103_v61, %v7389_v13  ;;  %v10613_v13 = vld [vmem:[#allocation4 + $0x6a4] ss:$8 sps:$4 sm:$0xff]  }
 0xa0a   : > { %v10830_v42 = vpop.eup %10829 }
 0xa0b   : > { %v7375_v11 = vsub.bf16 %v10830_v42, %v14932_v45  ;;  %v10832_v59 = vpop.eup %10831 }
 0xa0c   : > { %v10834_v57 = vpop.eup %10833  ;;  %v7365_v16 = vsub.bf16 %v10832_v59, %v14932_v45  ;;  %v10581_v59 = vld [vmem:[#allocation4 + $0x600] ss:$8 sps:$4 sm:$0xff]  }
 0xa0d   : > { %v7391_v30 = vmul.bf16 1071005654, %v7375_v11  ;;  %v10836_v37 = vpop.eup %10835  ;;  %v7372_v38 = vsub.bf16 %v10834_v57, %v14932_v45  ;;  %v10601_v57 = vld [vmem:[#allocation4 + $0x664] ss:$8 sps:$4 sm:$0xff]  }
 0xa0e   : > { %v10838_v12 = vpop.eup %10837  ;;  %v7381_v43 = vmul.bf16 1071005654, %v7365_v16  ;;  %v7364_v58 = vsub.bf16 %v10836_v37, %v14932_v45  ;;  %v10602_v16 = vld [vmem:[#allocation4 + $0x670] ss:$8 sps:$4 sm:$0xff]   ;;  %v10610_v37 = vld [vmem:[#allocation4 + $0x694] ss:$8 sps:$4 sm:$0xff]  }
 0xa0f   : > { %v7407_v36 = vsel %vm7311_vm1, %v14121_v4, %v7391_v30  ;;  %v7398_v4 = vsel %vm7302_vm4, %v14095_v22, %v7382_v15  ;;  %v10840_v14 = vpop.eup %10839  ;;  %v7388_v63 = vmul.bf16 1071005654, %v7372_v38  ;;  %v7371_v2 = vsub.bf16 %v10838_v12, %v14932_v45  ;;  %v10590_v30 = vld [vmem:[#allocation4 + $0x630] ss:$8 sps:$4 sm:$0xff]   ;;  %v10605_v15 = vld [vmem:[#allocation4 + $0x680] ss:$8 sps:$4 sm:$0xff]  }
 0xa10   : > { %10069 = vmatprep.subr.bf16.mxu1 %v7407_v36  ;;  %v10842_v56 = vpop.eup %10841  ;;  %v7397_v44 = vsel %vm7301_vm6, %v14111_v41, %v7381_v43  ;;  %v7380_v22 = vmul.bf16 1071005654, %v7364_v58  ;;  %v7363_v27 = vsub.bf16 %v10840_v14, %v14932_v45  ;;  %v10604_v36 = vld [vmem:[#allocation4 + $0x674] ss:$8 sps:$4 sm:$0xff]   ;;  %v10611_v38 = vld [vmem:[#allocation4 + $0x6a0] ss:$8 sps:$4 sm:$0xff]  }
 0xa11   : > { %10070 = vmatpush3.bf16.msra.mxu1 %v7399_v9  ;;  %v10844_v25 = vpop.eup %10843  ;;  %v7404_v8 = vsel %vm7308_vm7, %v14119_v62, %v7388_v63  ;;  %v7387_v24 = vmul.bf16 1071005654, %v7371_v2  ;;  %v7370_v61 = vsub.bf16 %v10842_v56, %v14932_v45  ;;  %v10607_v9 = vld [vmem:[#allocation4 + $0x684] ss:$8 sps:$4 sm:$0xff]   ;;  %v10616_v12 = vld [vmem:[#allocation4 + $0x6b4] ss:$8 sps:$4 sm:$0xff]  }
 0xa12   : > { %10071 = vmatprep.subr.bf16.mxu1 %v7406_v48  ;;  %v10846_v32 = vpop.eup %10845  ;;  %v7396_v5 = vsel %vm7300_vm8, %v14138_v55, %v7380_v22  ;;  %v7379_v41 = vmul.bf16 1071005654, %v7363_v27  ;;  %v7362_v3 = vsub.bf16 %v10844_v25, %v14932_v45  ;;  %v10608_v48 = vld [vmem:[#allocation4 + $0x690] ss:$8 sps:$4 sm:$0xff]   ;;  %v10619_v43 = vld [vmem:[#allocation4 + $0x6c4] ss:$8 sps:$4 sm:$0xff]   ;;  %v7814_v22 = vpop.permute.xlu0 %7813 }
 0xa13   : > { %v10848_v23 = vpop.eup %10847  ;;  %v7403_v29 = vsel %vm7307_vm9, %v14140_v6, %v7387_v24  ;;  %v7386_v53 = vmul.bf16 1071005654, %v7370_v61  ;;  %v7369_v62 = vsub.bf16 %v10846_v32, %v14932_v45  ;;  %v10617_v58 = vld [vmem:[#allocation4 + $0x6c0] ss:$8 sps:$4 sm:$0xff]   ;;  %v10622_v14 = vld [vmem:[#allocation4 + $0x6d4] ss:$8 sps:$4 sm:$0xff]   ;;  %v7826_v27 = vpop.permute.xlu1 %7825 }
 0xa14   : > { %v10850_v33 = vpop.eup %10849  ;;  %v7395_v18 = vsel %vm7299_vm10, %v14154_v20, %v7379_v41  ;;  %v7378_v55 = vmul.bf16 1071005654, %v7362_v3  ;;  %v7361_v54 = vsub.bf16 %v10848_v23, %v14932_v45  ;;  %v10625_v63 = vld [vmem:[#allocation4 + $0x6e4] ss:$8 sps:$4 sm:$0xff]   ;;  %v10623_v2 = vld [vmem:[#allocation4 + $0x6e0] ss:$8 sps:$4 sm:$0xff]  }
 0xa15   : > { %10072 = vmatpush3.bf16.msra.mxu1 %v7398_v4  ;;  %v10852_v1 = vpop.eup %10851  ;;  %v7402_v10 = vsel %vm7306_vm11, %v14157_v40, %v7386_v53  ;;  %v7385_v19 = vmul.bf16 1071005654, %v7369_v62  ;;  %v7368_v6 = vsub.bf16 %v10850_v33, %v14932_v45  ;;  %v10614_v4 = vld [vmem:[#allocation4 + $0x6b0] ss:$8 sps:$4 sm:$0xff]   ;;  %v10628_v56 = vld [vmem:[#allocation4 + $0x6f4] ss:$8 sps:$4 sm:$0xff]  }
 0xa16   : > { %10073 = vmatprep.subr.bf16.mxu1 %v7405_v26  ;;  %v7394_v42 = vsel %vm7298_vm12, %v14171_v39, %v7378_v55  ;;  %v7377_v20 = vmul.bf16 1071005654, %v7361_v54  ;;  %v7360_v34 = vsub.bf16 %v10852_v1, %v14932_v45  ;;  %v10620_v26 = vld [vmem:[#allocation4 + $0x6d0] ss:$8 sps:$4 sm:$0xff]   ;;  %v7838_v25 = vpop.permute.xlu0 %7837 }
 0xa17   : > { %v7401_v35 = vsel %vm7305_vm13, %v14177_v7, %v7385_v19  ;;  %v7384_v60 = vmul.bf16 1071005654, %v7368_v6  ;;  %v10586_v7 = vld [vmem:[#allocation4 + $0x614] ss:$8 sps:$4 sm:$0xff]  }
 0xa18   : > { %v7393_v40 = vsel %vm7297_vm14, %v14183_v50, %v7377_v20  ;;  %v7376_v31 = vmul.bf16 1071005654, %v7360_v34  ;;  %v10587_v50 = vld [vmem:[#allocation4 + $0x620] ss:$8 sps:$4 sm:$0xff]  }
 0xa19   : > { %10074 = vmatpush3.bf16.msra.mxu1 %v7397_v44  ;;  %v7400_v39 = vsel %vm7304_vm15, %v14189_v0, %v7384_v60  ;;  %v10595_v0 = vld [vmem:[#allocation4 + $0x644] ss:$8 sps:$4 sm:$0xff]   ;;  %v10626_v44 = vld [vmem:[#allocation4 + $0x6f0] ss:$8 sps:$4 sm:$0xff]  }
 0xa1a   : > { %10075 = vmatprep.subr.bf16.mxu1 %v7404_v8  ;;  %v7392_v11 = vsel %vm7296_vm0, %v14197_v28, %v7376_v31  ;;  %v10596_v28 = vld [vmem:[#allocation4 + $0x650] ss:$8 sps:$4 sm:$0xff]   ;;  %v7850_v8 = vpop.permute.xlu1 %7849  ;;  %v7862_v24 = vpop.permute.xlu0 %7861 }
 0xa1d   : > { %10076 = vmatpush3.bf16.msra.mxu1 %v7396_v5 }
 0xa1e   : > { %10077 = vmatprep.subr.bf16.mxu1 %v7403_v29  ;;  %v7874_v61 = vpop.permute.xlu1 %7873  ;;  %v14248_v32 = vpop.permute.xlu0 %7885 }
 0xa21   : > { %10078 = vmatpush3.bf16.msra.mxu1 %v7395_v18 }
 0xa22   : > { %10079 = vmatprep.subr.bf16.mxu1 %v7402_v10  ;;  %v14250_v5 = vpop.permute.xlu1 %7897  ;;  %v14252_v41 = vpop.permute.xlu0 %7909 }
 0xa25   : > { %10080 = vmatpush3.bf16.msra.mxu1 %v7394_v42 }
 0xa26   : > { %10081 = vmatprep.subr.bf16.mxu1 %v7401_v35  ;;  %v14254_v3 = vpop.permute.xlu1 %7921  ;;  %v14256_v23 = vpop.permute.xlu0 %7933 }
 0xa29   : > { %10082 = vmatpush3.bf16.msra.mxu1 %v7393_v40 }
 0xa2a   : > { %10083 = vmatprep.subr.bf16.mxu1 %v7400_v39  ;;  %v14258_v53 = vpop.permute.xlu1 %7945  ;;  %v14260_v33 = vpop.permute.xlu0 %7957 }
 0xa2d   : > { %10084 = vmatpush3.bf16.msra.mxu1 %v7392_v11 }
 0xa2e   : > { %v14262_v10 = vpop.permute.xlu1 %7969  ;;  %v14264_v6 = vpop.permute.xlu0 %7981 }
 0xa30   : > { %7634 = vmatmul.mubr.bf16.vlgmr.msra.gmra.mxu1 %v10581_v59 }
 0xa31   : > { %7641 = vmatprep.mubr.bf16.mxu1 %v10586_v7 }
 0xa32   : > { %v14266_v35 = vpop.permute.xlu1 %7993  ;;  %v14268_v40 = vpop.permute.xlu0 %8005 }
 0xa36   : > { %v14270_v11 = vpop.permute.xlu1 %8017  ;;  %v14272_v7 = vpop.permute.xlu0 %8029 }
 0xa38   : > { %7642 = vmatmul.mubr.bf16.gmra.mxu1 %v10584_v49  ;;  %v7834_v49 = vrot.slane %v7826_v27, %v11668_v47 }
 0xa39   : > { %7649 = vmatprep.mubr.bf16.mxu1 %v10589_v46  ;;  %v7822_v46 = vrot.slane %v7814_v22, %v11668_v47 }
 0xa40   : > { %7650 = vmatmul.mubr.bf16.gmra.mxu1 %v10587_v50 }
 0xa41   : > { %7657 = vmatprep.mubr.bf16.mxu1 %v10592_v17 }
 0xa48   : > { %7658 = vmatmul.mubr.bf16.gmra.mxu1 %v10590_v30  ;;  %v7858_v30 = vrot.slane %v7850_v8, %v11668_v47  ;;  %v7894_v8 = vrot.slane %v14248_v32, %v11668_v47  ;;  %v7930_v32 = vrot.slane %v14254_v3, %v11668_v47  ;;  %v7954_v3 = vrot.slane %v14258_v53, %v11668_v47 }
 0xa49   : > { %7665 = vmatprep.mubr.bf16.mxu1 %v10595_v0  ;;  %v7846_v0 = vrot.slane %v7838_v25, %v11668_v47  ;;  %v7906_v25 = vrot.slane %v14250_v5, %v11668_v47 }
 0xa50   : > { %7666 = vmatmul.mubr.bf16.gmra.mxu1 %v10593_v52 }
 0xa51   : > { %7673 = vmatprep.mubr.bf16.mxu1 %v10598_v51 }
 0xa58   : > { %7674 = vmatmul.mubr.bf16.gmra.mxu1 %v10596_v28  ;;  %v9361_v28 = vcombine.low %v7822_v46, %v7834_v49 }
 0xa59   : > { %7681 = vmatprep.mubr.bf16.mxu1 %v10601_v57  ;;  %v14278_v57 = vpop.permute.xlu1 %8041 }
 0xa60   : > { %7682 = vmatmul.mubr.bf16.gmra.mxu1 %v10599_v21 }
 0xa61   : > { %7689 = vmatprep.mubr.bf16.mxu1 %v10604_v36 }
 0xa68   : > { %7690 = vmatmul.mubr.bf16.gmra.mxu1 %v10602_v16  ;;  %v14280_v16 = vpop.permute.xlu0 %8053 }
 0xa69   : > { %7697 = vmatprep.mubr.bf16.mxu1 %v10607_v9  ;;  %v9362_v9 = vcombine.low %v7846_v0, %v7858_v30 }
 0xa70   : > { %7698 = vmatmul.mubr.bf16.gmra.mxu1 %v10605_v15 }
 0xa71   : > { %7705 = vmatprep.mubr.bf16.mxu1 %v10610_v37 }
 0xa78   : > { %7706 = vmatmul.mubr.bf16.gmra.mxu1 %v10608_v48 }
 0xa79   : > { %7713 = vmatprep.mubr.bf16.mxu1 %v10613_v13  ;;  %v7882_v13 = vrot.slane %v7874_v61, %v11668_v47 }
 0xa80   : > { %7714 = vmatmul.mubr.bf16.gmra.mxu1 %v10611_v38  ;;  %v7870_v38 = vrot.slane %v7862_v24, %v11668_v47 }
 0xa81   : > { %7721 = vmatprep.mubr.bf16.mxu1 %v10616_v12 }
 0xa88   : > { %7722 = vmatmul.mubr.bf16.gmra.mxu1 %v10614_v4 }
 0xa89   : > { %7729 = vmatprep.mubr.bf16.mxu1 %v10619_v43 }
 0xa90   : > { %7730 = vmatmul.mubr.bf16.gmra.mxu1 %v10617_v58  ;;  %v14288_v58 = vpop.permute.xlu1 %8065 }
 0xa91   : > { %7737 = vmatprep.mubr.bf16.mxu1 %v10622_v14 }
 0xa98   : > { %7738 = vmatmul.mubr.bf16.gmra.mxu1 %v10620_v26 }
 0xa99   : > { %7745 = vmatprep.mubr.bf16.mxu1 %v10625_v63 }
 0xaa0   : > { %7746 = vmatmul.mubr.bf16.gmra.mxu1 %v10623_v2  ;;  %v14291_v2 = vpop.permute.xlu0 %8077 }
 0xaa1   : > { %7753 = vmatprep.mubr.bf16.mxu1 %v10628_v56  ;;  %v9363_v56 = vcombine.low %v7870_v38, %v7882_v13 }
 0xaa8   : > { %7754 = vmatmul.mubr.bf16.gmra.mxu1 %v10626_v44 }
 0xaf0   : > { %v10085_v29 = vpop.f32.mrf.mxu1 }
 0xaf2   : > { %v10086_v62 = vpop.f32.mrf.mxu1 }
 0xaf3   : > { %v10087_v18 = vadd.f32 %v10086_v62, %v10085_v29  ;;  %v14300_v62 = vpop.permute.xlu1 %8089 }
 0xaf4   : > { %v10088_v55 = vpop.f32.mrf.mxu1 }
 0xaf6   : > { %v10089_v54 = vpop.f32.mrf.mxu1 }
 0xaf7   : > { %v10090_v1 = vadd.f32 %v10089_v54, %v10088_v55  ;;  %v14302_v54 = vpop.permute.xlu0 %8101 }
 0xaf8   : > { %v10091_v19 = vpop.f32.mrf.mxu1 }
 0xaf9   : > { %v7762_v42 = vpack.c.bf16 %v10090_v1, %v10087_v18  ;;  %v9364_v1 = vcombine.low %v7894_v8, %v7906_v25 }
 0xafa   : > { %v10092_v20 = vpop.f32.mrf.mxu1 }
 0xafb   : > { %v10093_v52 = vadd.f32 %v10092_v20, %v10091_v19  ;;  %v14282_v15 = vadd.bf16 %v9361_v28, %v7762_v42  ;;  %v7918_v20 = vrot.slane %v14252_v41, %v11668_v47  ;;  %v14313_v46 = vpop.permute.xlu0 %8125  ;;  %v7942_v41 = vrot.slane %v14256_v23, %v11668_v47 }
 0xafc   : > { %v10094_v34 = vpop.f32.mrf.mxu1  ;;  %v7978_v23 = vrot.slane %v14262_v10, %v11668_v47 }
 0xafd   : > { %v8324_v14 = vmul.bf16 1069105081, %v14282_v15  ;;  %v9366_v38 = vcombine.low %v7942_v41, %v7954_v3  ;;  %vm8307_vm1 = vcmp.gt.bf16.partialorder %v14282_v15, 0 }
 0xafe   : > { %v10095_v60 = vpop.f32.mrf.mxu1 }
 0xaff   : > { %v10096_v50 = vadd.f32 %v10095_v60, %v10094_v34  ;;  %10853 = vpow.bf16 %v8324_v14  ;;  %v7966_v14 = vrot.slane %v14260_v33, %v11668_v47 }
 0xb00   : > { %v10097_v31 = vpop.f32.mrf.mxu1 }
 0xb01   : > { %v7763_v21 = vpack.c.bf16 %v10096_v50, %v10093_v52  ;;  %v9365_v50 = vcombine.low %v7918_v20, %v7930_v32  ;;  %v7990_v32 = vrot.slane %v14264_v6, %v11668_v47 }
 0xb02   : > { %v10098_v39 = vpop.f32.mrf.mxu1 }
 0xb03   : > { %v14286_v12 = vadd.bf16 %v9362_v9, %v7763_v21  ;;  %v10099_v4 = vadd.f32 %v10098_v39, %v10097_v31  ;;  %v14311_v39 = vpop.permute.xlu1 %8113 }
 0xb04   : > { %v10100_v59 = vpop.f32.mrf.mxu1 }
 0xb05   : > { %v8327_v44 = vmul.bf16 1069105081, %v14286_v12  ;;  %vm8308_vm2 = vcmp.gt.bf16.partialorder %v14286_v12, 0 }
 0xb06   : > { %v10101_v17 = vpop.f32.mrf.mxu1 }
 0xb07   : > { %v10102_v37 = vadd.f32 %v10101_v17, %v10100_v59  ;;  %10855 = vpow.bf16 %v8327_v44 }
 0xb08   : > { %v10103_v51 = vpop.f32.mrf.mxu1 }
 0xb09   : > { %v7764_v26 = vpack.c.bf16 %v10102_v37, %v10099_v4 }
 0xb0a   : > { %v10104_v36 = vpop.f32.mrf.mxu1 }
 0xb0b   : > { %v14298_v24 = vadd.bf16 %v9363_v56, %v7764_v26  ;;  %v10105_v61 = vadd.f32 %v10104_v36, %v10103_v51  ;;  %v14322_v36 = vpop.permute.xlu1 %8137 }
 0xb0c   : > { %v10106_v48 = vpop.f32.mrf.mxu1 }
 0xb0d   : > { %v8330_v19 = vmul.bf16 1069105081, %v14298_v24  ;;  %v10854_v21 = vpop.eup %10853  ;;  %vm8309_vm3 = vcmp.gt.bf16.partialorder %v14298_v24, 0 }
 0xb0e   : > { %v10107_v43 = vpop.f32.mrf.mxu1 }
 0xb0f   : > { %v10108_v22 = vadd.f32 %v10107_v43, %v10106_v48  ;;  %10857 = vpow.bf16 %v8330_v19  ;;  %v14324_v48 = vpop.permute.xlu0 %8149  ;;  %v8371_v43 = vsub.bf16 %v10854_v21, %v14932_v45 }
 0xb10   : > { %v10109_v63 = vpop.f32.mrf.mxu1 }
 0xb11   : > { %v7765_v18 = vpack.c.bf16 %v10108_v22, %v10105_v61  ;;  %v8387_v61 = vmul.bf16 1071005654, %v8371_v43  ;;  %v8026_v43 = vrot.slane %v14270_v11, %v11668_v47 }
 0xb12   : > { %v10110_v27 = vpop.f32.mrf.mxu1 }
 0xb13   : > { %v14309_v34 = vadd.bf16 %v9364_v1, %v7765_v18  ;;  %v10111_v60 = vadd.f32 %v10110_v27, %v10109_v63  ;;  %v14335_v27 = vpop.permute.xlu1 %8161  ;;  %v8486_v8 = vpop.permute.xlu0 %8485  ;;  %v8403_v20 = vsel %vm8307_vm1, %v14282_v15, %v8387_v61 }
 0xb14   : > { %v10112_v29 = vpop.f32.mrf.mxu1  ;;  %v8419_v3 = vunpack.c.l.bf16 %v8403_v20 }
 0xb15   : > { %v8333_v17 = vmul.bf16 1069105081, %v14309_v34  ;;  %v10856_v13 = vpop.eup %10855  ;;  %vm8310_vm4 = vcmp.gt.bf16.partialorder %v14309_v34, 0 }
 0xb16   : > { %v10113_v55 = vpop.f32.mrf.mxu1  ;;  %v8372_v56 = vsub.bf16 %v10856_v13, %v14932_v45 }
 0xb17   : > { %v10114_v42 = vadd.f32 %v10113_v55, %v10112_v29  ;;  %10859 = vpow.bf16 %v8333_v17  ;;  %v9367_v55 = vcombine.low %v7966_v14, %v7978_v23  ;;  %v8014_v23 = vrot.slane %v14268_v40, %v11668_v47 }
 0xb18   : > { %v10115_v5 = vpop.f32.mrf.mxu1  ;;  %v8388_v33 = vmul.bf16 1071005654, %v8372_v56 }
 0xb19   : > { %v7766_v59 = vpack.c.bf16 %v10114_v42, %v10111_v60 }
 0xb1a   : > { %v10116_v31 = vpop.f32.mrf.mxu1 }
 0xb1b   : > { %v14320_v52 = vadd.bf16 %v9365_v50, %v7766_v59  ;;  %v10117_v51 = vadd.f32 %v10116_v31, %v10115_v5  ;;  %v8002_v5 = vrot.slane %v14266_v35, %v11668_v47  ;;  %v8491_v31 = vpop.permute.xlu1 %8490  ;;  %v8404_v50 = vsel %vm8308_vm2, %v14286_v12, %v8388_v33 }
 0xb1c   : > { %v10118_v49 = vpop.f32.mrf.mxu1  ;;  %v8420_v35 = vunpack.c.h.bf16 %v8403_v20  ;;  %v8421_v21 = vunpack.c.l.bf16 %v8404_v50  ;;  %v9369_v33 = vcombine.low %v8014_v23, %v8026_v43 }
 0xb1d   : > { %v8336_v4 = vmul.bf16 1069105081, %v14320_v52  ;;  %v10858_v18 = vpop.eup %10857  ;;  %vm8311_vm5 = vcmp.gt.bf16.partialorder %v14320_v52, 0 }
 0xb1e   : > { %v10119_v30 = vpop.f32.mrf.mxu1  ;;  %v8373_v60 = vsub.bf16 %v10858_v18, %v14932_v45  ;;  %v8644_v12 = vmul.f32 %v8491_v31, %v8420_v35 }
 0xb1f   : > { %v10120_v0 = vadd.f32 %v10119_v30, %v10118_v49  ;;  %10861 = vpow.bf16 %v8336_v4  ;;  %v8496_v49 = vpop.permute.xlu0 %8495  ;;  %v8643_v4 = vmul.f32 %v8486_v8, %v8419_v3 }
 0xb20   : > { %v10121_v28 = vpop.f32.mrf.mxu1  ;;  %v8389_v15 = vmul.bf16 1071005654, %v8373_v60 }
 0xb21   : > { %v7767_v9 = vpack.c.bf16 %v10120_v0, %v10117_v51  ;;  %v9368_v51 = vcombine.low %v7990_v32, %v8002_v5  ;;  %v8675_v18 = vadd.f32 %v8644_v12, %v8643_v4 }
 0xb22   : > { %v10122_v37 = vpop.f32.mrf.mxu1 }
 0xb23   : > { %v14332_v26 = vadd.bf16 %v9366_v38, %v7767_v9  ;;  %v10123_v44 = vadd.f32 %v10122_v37, %v10121_v28  ;;  %v8501_v38 = vpop.permute.xlu1 %8500  ;;  %v8506_v14 = vpop.permute.xlu0 %8505 }
 0xb24   : > { %v10124_v53 = vpop.f32.mrf.mxu1 }
 0xb25   : > { %v8339_v10 = vmul.bf16 1069105081, %v14332_v26  ;;  %v10860_v0 = vpop.eup %10859  ;;  %vm8312_vm6 = vcmp.gt.bf16.partialorder %v14332_v26, 0 }
 0xb26   : > { %v10125_v63 = vpop.f32.mrf.mxu1  ;;  %v8374_v37 = vsub.bf16 %v10860_v0, %v14932_v45 }
 0xb27   : > { %v10126_v22 = vadd.f32 %v10125_v63, %v10124_v53  ;;  %10863 = vpow.bf16 %v8339_v10  ;;  %v8405_v63 = vsel %vm8309_vm3, %v14298_v24, %v8389_v15  ;;  %v8511_v40 = vpop.permute.xlu1 %8510  ;;  %v8516_v32 = vpop.permute.xlu0 %8515 }
 0xb28   : > { %v10127_v25 = vpop.f32.mrf.mxu1  ;;  %v8390_v8 = vmul.bf16 1071005654, %v8374_v37  ;;  %v8423_v10 = vunpack.c.l.bf16 %v8405_v63 }
 0xb29   : > { %v7768_v29 = vpack.c.bf16 %v10126_v22, %v10123_v44  ;;  %v8645_v44 = vmul.f32 %v8496_v49, %v8421_v21 }
 0xb2a   : > { %v10128_v1 = vpop.f32.mrf.mxu1  ;;  %v8406_v20 = vsel %vm8310_vm4, %v14309_v34, %v8390_v8  ;;  %v8647_v49 = vmul.f32 %v8506_v14, %v8423_v10  ;;  %v8074_v8 = vrot.slane %v14288_v58, %v11668_v47 }
 0xb2b   : > { %v14339_v19 = vadd.bf16 %v9367_v55, %v7768_v29  ;;  %v10129_v17 = vadd.f32 %v10128_v1, %v10127_v25  ;;  %v8422_v55 = vunpack.c.h.bf16 %v8404_v50  ;;  %v8676_v5 = vadd.f32 %v8675_v18, %v8645_v44  ;;  %v8521_v21 = vpop.permute.xlu1 %8520 }
 0xb2c   : > { %v10130_v42 = vpop.f32.mrf.mxu1  ;;  %v8426_v44 = vunpack.c.h.bf16 %v8406_v20 }
 0xb2d   : > { %v8342_v41 = vmul.bf16 1069105081, %v14339_v19  ;;  %v10862_v56 = vpop.eup %10861  ;;  %vm8313_vm7 = vcmp.gt.bf16.partialorder %v14339_v19, 0 }
 0xb2e   : > { %v10131_v59 = vpop.f32.mrf.mxu1  ;;  %v8375_v11 = vsub.bf16 %v10862_v56, %v14932_v45  ;;  %v8650_v58 = vmul.f32 %v8521_v21, %v8426_v44 }
 0xb2f   : > { %v10132_v30 = vadd.f32 %v10131_v59, %v10130_v42  ;;  %10865 = vpow.bf16 %v8342_v41  ;;  %v8646_v59 = vmul.f32 %v8501_v38, %v8422_v55  ;;  %v8424_v41 = vunpack.c.h.bf16 %v8405_v63  ;;  %v8526_v38 = vpop.permute.xlu0 %8525  ;;  %v8531_v18 = vpop.permute.xlu1 %8530 }
 0xb30   : > { %v10133_v6 = vpop.f32.mrf.mxu1  ;;  %v8391_v0 = vmul.bf16 1071005654, %v8375_v11 }
 0xb31   : > { %v7769_v28 = vpack.c.bf16 %v10132_v30, %v10129_v17  ;;  %v8050_v17 = vrot.slane %v14278_v57, %v11668_v47  ;;  %v8038_v30 = vrot.slane %v14272_v7, %v11668_v47  ;;  %v8677_v35 = vadd.f32 %v8676_v5, %v8646_v59 }
 0xb32   : > { %v10134_v9 = vpop.f32.mrf.mxu1  ;;  %v8407_v7 = vsel %vm8311_vm5, %v14320_v52, %v8391_v0 }
 0xb33   : > { %v14351_v13 = vadd.bf16 %v9368_v51, %v7769_v28  ;;  %v10135_v61 = vadd.f32 %v10134_v9, %v10133_v6  ;;  %v8425_v6 = vunpack.c.l.bf16 %v8406_v20  ;;  %v8678_v9 = vadd.f32 %v8677_v35, %v8647_v49  ;;  %v8541_v0 = vpop.permute.xlu1 %8540 }
 0xb34   : > { %v10136_v53 = vpop.f32.mrf.mxu1  ;;  %v9370_v37 = vcombine.low %v8038_v30, %v8050_v17  ;;  %v8428_v59 = vunpack.c.h.bf16 %v8407_v7  ;;  %v8098_v35 = vrot.slane %v14300_v62, %v11668_v47 }
 0xb35   : > { %v8345_v22 = vmul.bf16 1069105081, %v14351_v13  ;;  %v10864_v31 = vpop.eup %10863  ;;  %v8649_v43 = vmul.f32 %v8516_v32, %v8425_v6  ;;  %vm8314_vm8 = vcmp.gt.bf16.partialorder %v14351_v13, 0 }
 0xb36   : > { %v10137_v25 = vpop.f32.mrf.mxu1  ;;  %v8376_v34 = vsub.bf16 %v10864_v31, %v14932_v45 }
 0xb37   : > { %v10138_v29 = vadd.f32 %v10137_v25, %v10136_v53  ;;  %10867 = vpow.bf16 %v8345_v22  ;;  %v8648_v53 = vmul.f32 %v8511_v40, %v8424_v41  ;;  %v8427_v22 = vunpack.c.l.bf16 %v8407_v7 }
 0xb38   : > { %v10139_v1 = vpop.f32.mrf.mxu1  ;;  %v8392_v14 = vmul.bf16 1071005654, %v8376_v34  ;;  %v8086_v41 = vrot.slane %v14291_v2, %v11668_v47 }
 0xb39   : > { %v7770_v42 = vpack.c.bf16 %v10138_v29, %v10135_v61  ;;  %v8679_v56 = vadd.f32 %v8678_v9, %v8648_v53  ;;  %v8062_v61 = vrot.slane %v14280_v16, %v11668_v47  ;;  %v8651_v5 = vmul.f32 %v8526_v38, %v8427_v22 }
 0xb3a   : > { %v10140_v24 = vpop.f32.mrf.mxu1  ;;  %v9372_v53 = vcombine.low %v8086_v41, %v8098_v35 }
 0xb3b   : > { %v14363_v60 = vadd.bf16 %v9369_v33, %v7770_v42  ;;  %v10141_v15 = vadd.f32 %v10140_v24, %v10139_v1  ;;  %v8680_v55 = vadd.f32 %v8679_v56, %v8649_v43  ;;  %v8536_v1 = vpop.permute.xlu0 %8535  ;;  %v8408_v33 = vsel %vm8312_vm6, %v14332_v26, %v8392_v14 }
 0xb3c   : > { %v10142_v50 = vpop.f32.mrf.mxu1  ;;  %v9371_v16 = vcombine.low %v8062_v61, %v8074_v8  ;;  %v8429_v49 = vunpack.c.l.bf16 %v8408_v33 }
 0xb3d   : > { %v8348_v3 = vmul.bf16 1069105081, %v14363_v60  ;;  %v10866_v12 = vpop.eup %10865  ;;  %v8681_v31 = vadd.f32 %v8680_v55, %v8650_v58  ;;  %vm8315_vm9 = vcmp.gt.bf16.partialorder %v14363_v60, 0 }
 0xb3e   : > { %v10143_v51 = vpop.f32.mrf.mxu1  ;;  %v8377_v52 = vsub.bf16 %v10866_v12, %v14932_v45  ;;  %v8653_v21 = vmul.f32 %v8536_v1, %v8429_v49 }
 0xb3f   : > { %v10144_v28 = vadd.f32 %v10143_v51, %v10142_v50  ;;  %10869 = vpow.bf16 %v8348_v3  ;;  %v8682_v26 = vadd.f32 %v8681_v31, %v8651_v5  ;;  %v8546_v6 = vpop.permute.xlu0 %8545 }
 0xb40   : > { %v10145_v57 = vpop.f32.mrf.mxu1  ;;  %v8393_v32 = vmul.bf16 1071005654, %v8377_v52 }
 0xb41   : > { %v7771_v4 = vpack.c.bf16 %v10144_v28, %v10141_v15  ;;  %v8652_v28 = vmul.f32 %v8531_v18, %v8428_v59  ;;  %v8110_v18 = vrot.slane %v14302_v54, %v11668_v47 }
 0xb42   : > { %v10146_v23 = vpop.f32.mrf.mxu1  ;;  %v8409_v51 = vsel %vm8313_vm7, %v14339_v19, %v8393_v32 }
 0xb43   : > { %v14373_v63 = vadd.bf16 %v9370_v37, %v7771_v4  ;;  %v10147_v11 = vadd.f32 %v10146_v23, %v10145_v57  ;;  %v8683_v7 = vadd.f32 %v8682_v26, %v8652_v28  ;;  %v8430_v4 = vunpack.c.h.bf16 %v8408_v33  ;;  %v8551_v23 = vpop.permute.xlu1 %8550  ;;  %v8556_v56 = vpop.permute.xlu0 %8555 }
 0xb44   : > { %v10148_v25 = vpop.f32.mrf.mxu1  ;;  %v8431_v12 = vunpack.c.l.bf16 %v8409_v51  ;;  %v8432_v33 = vunpack.c.h.bf16 %v8409_v51  ;;  %v8134_v51 = vrot.slane %v14313_v46, %v11668_v47 }
 0xb45   : > { %v8351_v29 = vmul.bf16 1069105081, %v14373_v63  ;;  %v10868_v40 = vpop.eup %10867  ;;  %v8684_v19 = vadd.f32 %v8683_v7, %v8653_v21  ;;  %vm8316_vm10 = vcmp.gt.bf16.partialorder %v14373_v63, 0 }
 0xb46   : > { %v10149_v10 = vpop.f32.mrf.mxu1  ;;  %v8378_v17 = vsub.bf16 %v10868_v40, %v14932_v45  ;;  %v8655_v8 = vmul.f32 %v8546_v6, %v8431_v12  ;;  %v8656_v31 = vmul.f32 %v8551_v23, %v8432_v33  ;;  %v8146_v6 = vrot.slane %v14322_v36, %v11668_v47 }
 0xb47   : > { %10871 = vpow.bf16 %v8351_v29  ;;  %v10150_v42 = vadd.f32 %v10149_v10, %v10148_v25  ;;  %v8654_v25 = vmul.f32 %v8541_v0, %v8430_v4  ;;  %v8122_v29 = vrot.slane %v14311_v39, %v11668_v47  ;;  %v14404_v5 = vpop.permute.xlu1 %8173  ;;  %v14407_v54 = vpop.permute.xlu0 %8185 }
 0xb48   : > { %v10151_v24 = vpop.f32.mrf.mxu1  ;;  %v8394_v57 = vmul.bf16 1071005654, %v8378_v17  ;;  %v9374_v12 = vcombine.low %v8134_v51, %v8146_v6 }
 0xb49   : > { %v7772_v20 = vpack.c.bf16 %v10150_v42, %v10147_v11  ;;  %v8685_v1 = vadd.f32 %v8684_v19, %v8654_v25 }
 0xb4a   : > { %v10152_v50 = vpop.f32.mrf.mxu1  ;;  %v8410_v44 = vsel %vm8314_vm8, %v14351_v13, %v8394_v57 }
 0xb4b   : > { %v14384_v30 = vadd.bf16 %v9371_v16, %v7772_v20  ;;  %v10153_v37 = vadd.f32 %v10152_v50, %v10151_v24  ;;  %v8433_v11 = vunpack.c.l.bf16 %v8410_v44  ;;  %v8686_v24 = vadd.f32 %v8685_v1, %v8655_v8 }
 0xb4c   : > { %v10154_v3 = vpop.f32.mrf.mxu1  ;;  %v9373_v16 = vcombine.low %v8110_v18, %v8122_v29  ;;  %v8434_v26 = vunpack.c.h.bf16 %v8410_v44  ;;  %v8158_v8 = vrot.slane %v14324_v48, %v11668_v47 }
 0xb4d   : > { %v8354_v34 = vmul.bf16 1069105081, %v14384_v30  ;;  %v10870_v15 = vpop.eup %10869  ;;  %v8657_v59 = vmul.f32 %v8556_v56, %v8433_v11  ;;  %v8687_v0 = vadd.f32 %v8686_v24, %v8656_v31  ;;  %vm8317_vm11 = vcmp.gt.bf16.partialorder %v14384_v30, 0 }
 0xb4e   : > { %v10155_v9 = vpop.f32.mrf.mxu1  ;;  %v8379_v2 = vsub.bf16 %v10870_v15, %v14932_v45 }
 0xb4f   : > { %10873 = vpow.bf16 %v8354_v34  ;;  %v10156_v38 = vadd.f32 %v10155_v9, %v10154_v3  ;;  %v8561_v34 = vpop.permute.xlu1 %8560  ;;  %v8688_v15 = vadd.f32 %v8687_v0, %v8657_v59  ;;  %v8566_v9 = vpop.permute.xlu0 %8565  ;;  %v8194_v0 = vrot.slane %v14407_v54, %v11668_v47 }
 0xb50   : > { %v10157_v62 = vpop.f32.mrf.mxu1  ;;  %v8395_v55 = vmul.bf16 1071005654, %v8379_v2  ;;  %v8658_v7 = vmul.f32 %v8561_v34, %v8434_v26 }
 0xb51   : > { %v7773_v43 = vpack.c.bf16 %v10156_v38, %v10153_v37 }
 0xb52   : > { %v10158_v14 = vpop.f32.mrf.mxu1  ;;  %v8411_v32 = vsel %vm8315_vm9, %v14363_v60, %v8395_v55 }
 0xb53   : > { %v14396_v22 = vadd.bf16 %v9372_v53, %v7773_v43  ;;  %v10159_v40 = vadd.f32 %v10158_v14, %v10157_v62  ;;  %v8435_v3 = vunpack.c.l.bf16 %v8411_v32  ;;  %v8689_v62 = vadd.f32 %v8688_v15, %v8658_v7  ;;  %v8571_v14 = vpop.permute.xlu1 %8570 }
 0xb54   : > { %v10160_v61 = vpop.f32.mrf.mxu1  ;;  %v8436_v53 = vunpack.c.h.bf16 %v8411_v32 }
 0xb55   : > { %v10872_v52 = vpop.eup %10871  ;;  %v8357_v10 = vmul.bf16 1069105081, %v14396_v22  ;;  %v8659_v36 = vmul.f32 %v8566_v9, %v8435_v3  ;;  %vm8318_vm12 = vcmp.gt.bf16.partialorder %v14396_v22, 0 }
 0xb56   : > { %v10161_v42 = vpop.f32.mrf.mxu1  ;;  %v8380_v13 = vsub.bf16 %v10872_v52, %v14932_v45  ;;  %v8660_v29 = vmul.f32 %v8571_v14, %v8436_v53 }
 0xb57   : > { %10875 = vpow.bf16 %v8357_v10  ;;  %v10162_v58 = vadd.f32 %v10161_v42, %v10160_v61  ;;  %v8690_v56 = vadd.f32 %v8689_v62, %v8659_v36  ;;  %v8576_v61 = vpop.permute.xlu0 %8575 }
 0xb58   : > { %v10163_v39 = vpop.f32.mrf.mxu1  ;;  %v8396_v50 = vmul.bf16 1071005654, %v8380_v13 }
 0xb59   : > { %v7774_v20 = vpack.c.bf16 %v10162_v58, %v10159_v40  ;;  %v8691_v42 = vadd.f32 %v8690_v56, %v8660_v29 }
 0xb5a   : > { %v10164_v49 = vpop.f32.mrf.mxu1  ;;  %v8412_v57 = vsel %vm8316_vm10, %v14373_v63, %v8396_v50  ;;  %v8170_v63 = vrot.slane %v14335_v27, %v11668_v47 }
 0xb5b   : > { %v14410_v17 = vadd.bf16 %v9373_v16, %v7774_v20  ;;  %v10165_v37 = vadd.f32 %v10164_v49, %v10163_v39  ;;  %v8437_v2 = vunpack.c.l.bf16 %v8412_v57  ;;  %v8438_v27 = vunpack.c.h.bf16 %v8412_v57  ;;  %v8581_v39 = vpop.permute.xlu1 %8580 }
 0xb5c   : > { %v10166_v35 = vpop.f32.mrf.mxu1  ;;  %v9375_v48 = vcombine.low %v8158_v8, %v8170_v63 }
 0xb5d   : > { %v10874_v41 = vpop.eup %10873  ;;  %v8360_v60 = vmul.bf16 1069105081, %v14410_v17  ;;  %v8661_v18 = vmul.f32 %v8576_v61, %v8437_v2  ;;  %v8662_v31 = vmul.f32 %v8581_v39, %v8438_v27  ;;  %vm8319_vm13 = vcmp.gt.bf16.partialorder %v14410_v17, 0 }
 0xb5e   : > { %v8381_v28 = vsub.bf16 %v10874_v41, %v14932_v45  ;;  %v10167_v21 = vpop.f32.mrf.mxu1 }
 0xb5f   : > { %10877 = vpow.bf16 %v8360_v60  ;;  %v10168_v38 = vadd.f32 %v10167_v21, %v10166_v35  ;;  %v8692_v16 = vadd.f32 %v8691_v42, %v8661_v18  ;;  %v8182_v35 = vrot.slane %v14404_v5, %v11668_v47 }
 0xb60   : > { %v10169_v4 = vpop.f32.mrf.mxu1  ;;  %v8397_v43 = vmul.bf16 1071005654, %v8381_v28 }
 0xb61   : > { %v7775_v46 = vpack.c.bf16 %v10168_v38, %v10165_v37  ;;  %v8693_v41 = vadd.f32 %v8692_v16, %v8662_v31  ;;  %v9376_v9 = vcombine.low %v8182_v35, %v8194_v0 }
 0xb62   : > { %v10170_v23 = vpop.f32.mrf.mxu1  ;;  %v8413_v55 = vsel %vm8317_vm11, %v14384_v30, %v8397_v43  ;;  %v8586_v30 = vpop.permute.xlu0 %8585 }
 0xb63   : > { %v14420_v19 = vadd.bf16 %v9374_v12, %v7775_v46  ;;  %v10171_v33 = vadd.f32 %v10170_v23, %v10169_v4  ;;  %v8439_v58 = vunpack.c.l.bf16 %v8413_v55  ;;  %v8440_v6 = vunpack.c.h.bf16 %v8413_v55 }
 0xb64   : > { %v10172_v44 = vpop.f32.mrf.mxu1 }
 0xb65   : > { %v10876_v25 = vpop.eup %10875  ;;  %v8363_v52 = vmul.bf16 1069105081, %v14420_v19  ;;  %v8663_v26 = vmul.f32 %v8586_v30, %v8439_v58  ;;  %vm8320_vm14 = vcmp.gt.bf16.partialorder %v14420_v19, 0 }
 0xb66   : > { %v8382_v10 = vsub.bf16 %v10876_v25, %v14932_v45  ;;  %v10173_v1 = vpop.f32.mrf.mxu1  ;;  %v8596_v37 = vpop.permute.xlu0 %8595 }
 0xb67   : > { %10879 = vpow.bf16 %v8363_v52  ;;  %v10174_v11 = vadd.f32 %v10173_v1, %v10172_v44  ;;  %v8694_v57 = vadd.f32 %v8693_v41, %v8663_v26 }
 0xb68   : > { %v8398_v13 = vmul.bf16 1071005654, %v8382_v10  ;;  %v10175_v40 = vpop.f32.mrf.mxu1 }
 0xb69   : > { %v7776_v24 = vpack.c.bf16 %v10174_v11, %v10171_v33 }
 0xb6a   : > { %v10176_v32 = vpop.f32.mrf.mxu1  ;;  %v8414_v59 = vsel %vm8318_vm12, %v14396_v22, %v8398_v13  ;;  %v8591_v22 = vpop.permute.xlu1 %8590 }
 0xb6b   : > { %v8305_v20 = vadd.bf16 %v9375_v48, %v7776_v24  ;;  %v8441_v34 = vunpack.c.l.bf16 %v8414_v59  ;;  %v10177_v15 = vadd.f32 %v10176_v32, %v10175_v40  ;;  %v8664_v47 = vmul.f32 %v8591_v22, %v8440_v6  ;;  %v8606_v23 = vpop.permute.xlu0 %8605  ;;  %v14936_v22 = vld [vmem:[#allocation40_spill] sm:$0xff] }
 0xb6c   : > { %v10178_v49 = vpop.f32.mrf.mxu1  ;;  %v8442_v12 = vunpack.c.h.bf16 %v8414_v59 }
 0xb6d   : > { %v10878_v50 = vpop.eup %10877  ;;  %v8366_v3 = vmul.bf16 1069105081, %v8305_v20  ;;  %v8665_v5 = vmul.f32 %v8596_v37, %v8441_v34  ;;  %v8695_v4 = vadd.f32 %v8694_v57, %v8664_v47  ;;  %vm8321_vm15 = vcmp.gt.bf16.partialorder %v8305_v20, 0 }
 0xb6e   : > { %v8383_v51 = vsub.bf16 %v10878_v50, %v14932_v45  ;;  %v10179_v60 = vpop.f32.mrf.mxu1  ;;  %v8601_v53 = vpop.permute.xlu1 %8600 }
 0xb6f   : > { %10881 = vpow.bf16 %v8366_v3  ;;  %v10180_v28 = vadd.f32 %v10179_v60, %v10178_v49  ;;  %v8696_v43 = vadd.f32 %v8695_v4, %v8665_v5  ;;  %v8666_v56 = vmul.f32 %v8601_v53, %v8442_v12  ;;  %v8616_v18 = vpop.permute.xlu0 %8615 }
 0xb70   : > { %v8399_v21 = vmul.bf16 1071005654, %v8383_v51 }
 0xb71   : > { %v7777_v54 = vpack.c.bf16 %v10180_v28, %v10177_v15  ;;  %v8697_v25 = vadd.f32 %v8696_v43, %v8666_v56 }
 0xb72   : > { %v8415_v38 = vsel %vm8319_vm13, %v14410_v17, %v8399_v21  ;;  %v8611_v61 = vpop.permute.xlu1 %8610  ;;  %v8720_v21 = vsub.s32 0, %v14936_v22 }
 0xb73   : > { %v8306_v7 = vadd.bf16 %v9376_v9, %v7777_v54  ;;  %v8443_v46 = vunpack.c.l.bf16 %v8415_v38  ;;  %v8444_v63 = vunpack.c.h.bf16 %v8415_v38 }
 0xb75   : > { %v10880_v36 = vpop.eup %10879  ;;  %v8369_v62 = vmul.bf16 1069105081, %v8306_v7  ;;  %v8667_v44 = vmul.f32 %v8606_v23, %v8443_v46  ;;  %v8668_v10 = vmul.f32 %v8611_v61, %v8444_v63  ;;  %vm8322_vm0 = vcmp.gt.bf16.partialorder %v8306_v7, 0 }
 0xb76   : > { %v8384_v2 = vsub.bf16 %v10880_v36, %v14932_v45  ;;  %v8621_v27 = vpop.permute.xlu1 %8620 }
 0xb77   : > { %10883 = vpow.bf16 %v8369_v62  ;;  %v8698_v29 = vadd.f32 %v8697_v25, %v8667_v44 }
 0xb78   : > { %v8400_v14 = vmul.bf16 1071005654, %v8384_v2 }
 0xb79   : > { %v8699_v11 = vadd.f32 %v8698_v29, %v8668_v10 }
 0xb7a   : > { %v8416_v17 = vsel %vm8320_vm14, %v14420_v19, %v8400_v14  ;;  %v8626_v19 = vpop.permute.xlu0 %8625  ;;  %v8631_v31 = vpop.permute.xlu1 %8630 }
 0xb7b   : > { %v8445_v8 = vunpack.c.l.bf16 %v8416_v17  ;;  %v8446_v42 = vunpack.c.h.bf16 %v8416_v17 }
 0xb7d   : > { %v10882_v52 = vpop.eup %10881  ;;  %v8669_v1 = vmul.f32 %v8616_v18, %v8445_v8  ;;  %v8670_v24 = vmul.f32 %v8621_v27, %v8446_v42 }
 0xb7e   : > { %v8385_v55 = vsub.bf16 %v10882_v52, %v14932_v45  ;;  %v8636_v3 = vpop.permute.xlu0 %8635  ;;  %v8641_v6 = vpop.permute.xlu1 %8640 }
 0xb7f   : > { %v8700_v40 = vadd.f32 %v8699_v11, %v8669_v1 }
 0xb80   : > { %v8401_v33 = vmul.bf16 1071005654, %v8385_v55 }
 0xb81   : > { %v8701_v32 = vadd.f32 %v8700_v40, %v8670_v24 }
 0xb82   : > { %v8417_v13 = vsel %vm8321_vm15, %v8305_v20, %v8401_v33  ;;  %v8716_v57 = vpop.permute.xlu0 %8715 }
 0xb83   : > { %v8447_v48 = vunpack.c.l.bf16 %v8417_v13  ;;  %v8448_v30 = vunpack.c.h.bf16 %v8417_v13  ;;  %v8721_v37 = vrot.slane %v8716_v57, %v8720_v21 }
 0xb85   : > { %v10884_v58 = vpop.eup %10883  ;;  %v8671_v39 = vmul.f32 %v8626_v19, %v8447_v48  ;;  %v8672_v0 = vmul.f32 %v8631_v31, %v8448_v30 }
 0xb86   : > { %v8386_v16 = vsub.bf16 %v10884_v58, %v14932_v45 }
 0xb87   : > { %v8702_v49 = vadd.f32 %v8701_v32, %v8671_v39 }
 0xb88   : > { %v8402_v59 = vmul.bf16 1071005654, %v8386_v16 }
 0xb89   : > { %v8703_v35 = vadd.f32 %v8702_v49, %v8672_v0 }
 0xb8a   : > { %v8418_v50 = vsel %vm8322_vm0, %v8306_v7, %v8402_v59 }
 0xb8b   : > { %v8449_v26 = vunpack.c.l.bf16 %v8418_v50  ;;  %v8450_v20 = vunpack.c.h.bf16 %v8418_v50 }
 0xb8d   : > { %v8673_v41 = vmul.f32 %v8636_v3, %v8449_v26  ;;  %v8674_v51 = vmul.f32 %v8641_v6, %v8450_v20 }
 0xb8f   : > { %v8704_v60 = vadd.f32 %v8703_v35, %v8673_v41 }
 0xb91   : > { %v8705_v34 = vadd.f32 %v8704_v60, %v8674_v51 }
 0xb93   : > { %v8706_v45 = vrot.slane %v8705_v34, 4 }
 0xb95   : > { %v8707_v15 = vadd.f32 %v8706_v45, %v8705_v34 }
 0xb97   : > { %v8708_v28 = vrot.slane %v8707_v15, 2 }
 0xb99   : > { %v8709_v9 = vadd.f32 %v8708_v28, %v8707_v15 }
 0xb9b   : > { %v8710_v54 = vrot.slane %v8709_v9, 1 }
 0xb9d   : > { %v8711_v38 = vadd.f32 %v8710_v54, %v8709_v9 }
 0xb9f   : > { %v8722_v47 = vadd.f32 %v8721_v37, %v8711_v38 }
 0xba1   : > { %8723 = vst [vmem:[%s346_s19] sm:$0x1] %v8722_v47 }
 0xba2 PF: > { %p17_p6 = scmp.ge.s32.totalorder %s11007_s29, 4   ;;  %s14937_s26 = smov %s10933_s27 }
 0xba3   : > { %s14938_s27 = smov %s11017_s9  ;;  %s14939_s28 = smov %s11007_s29 }
 0xba4   :  { %19 = sbr.rel (!%p17_p6) target bundleno = 5 (0x5), region = 141 }
 0xba9   :  { %8741 = vsyncpa [#allocation5], 1 }
 0xbaa   :  { %8743 = vsyncpa [#allocation5 + $0x1], 1 }

</bundles_post_ra>
